<compile_context>
chip_gen: v7x
topology: tpu7x:2x2x1
jax: 0.10.0
libtpu: 0.0.40
codegen_flags: <defaults>
</compile_context>

<pallas_src>
import functools

import jax
import jax.numpy as jnp
from jax.experimental import pallas as pl
from jax.experimental.pallas import tpu as pltpu


# ----------------------------------------------------------------------------- in-kernel math helpers

def _erf(x):
    # Abramowitz & Stegun 7.1.26 polynomial (|err| < 1.5e-7): exp + VPU ops only.
    a = jnp.abs(x)
    t = 1.0 / (1.0 + 0.3275911 * a)
    poly = t * (0.254829592 + t * (-0.284496736 + t * (1.421413741 + t * (-1.453152027 + t * 1.061405429))))
    e = 1.0 - poly * jnp.exp(-a * a)
    return jnp.where(x >= 0.0, e, -e)


def _gelu_exact(x):
    # HF wav2vec2 uses exact erf GELU ("gelu"), not the tanh approximation.
    return 0.5 * x * (1.0 + _erf(x * 0.7071067811865476))


def _ln(x, g, b, eps):
    mu = jnp.mean(x, axis=-1, keepdims=True)
    var = jnp.mean(jnp.square(x - mu), axis=-1, keepdims=True)
    return (x - mu) * jax.lax.rsqrt(var + eps) * g + b


# ----------------------------------------------------------------------------- kernel A: conv0 + GroupNorm(C,C) + GELU

def _conv0_gn_gelu_kernel(p_ref, w_ref, g_ref, b_ref, o_ref, *, eps):
    p = p_ref[0]                                                           # (T0, K*Cin)
    y = jnp.dot(p, w_ref[...], preferred_element_type=jnp.float32)        # (T0, C)
    mu = jnp.mean(y, axis=0, keepdims=True)                                # per-channel over time
    var = jnp.mean(jnp.square(y - mu), axis=0, keepdims=True)
    y = (y - mu) * jax.lax.rsqrt(var + eps)
    y = y * g_ref[...] + b_ref[...]
    o_ref[0] = _gelu_exact(y)


def conv0_gn_gelu(patches, w2d, g, b, eps=1e-5):
    B, T0, KC = patches.shape
    C = w2d.shape[1]
    return pl.pallas_call(
        functools.partial(_conv0_gn_gelu_kernel, eps=eps),
        out_shape=jax.ShapeDtypeStruct((B, T0, C), jnp.float32),
        grid=(B,),
        in_specs=[pl.BlockSpec((1, T0, KC), lambda i: (i, 0, 0)),
                  pl.BlockSpec((KC, C), lambda i: (0, 0)),
                  pl.BlockSpec((1, C), lambda i: (0, 0)),
                  pl.BlockSpec((1, C), lambda i: (0, 0))],
        out_specs=pl.BlockSpec((1, T0, C), lambda i: (i, 0, 0)),
        compiler_params=pltpu.CompilerParams(dimension_semantics=("parallel",)),
    )(patches, w2d, g.reshape(1, C), b.reshape(1, C))


# ----------------------------------------------------------------------------- kernel B: conv1 + GELU + feature-projection LN + Linear

def _conv1_fp_kernel(p_ref, wc_ref, lng_ref, lnb_ref, wp_ref, bp_ref, o_ref, *, eps):
    y = jnp.dot(p_ref[...], wc_ref[...], preferred_element_type=jnp.float32)
    y = _gelu_exact(y)                                                     # conv1 activation
    y = _ln(y, lng_ref[...], lnb_ref[...], eps)                            # feature-projection LayerNorm
    o_ref[...] = jnp.dot(y, wp_ref[...], preferred_element_type=jnp.float32) + bp_ref[...]


def conv1_feature_projection(patches, w_conv, ln_g, ln_b, w_proj, b_proj, eps=1e-5):
    M, KC = patches.shape
    C = w_conv.shape[1]
    D = w_proj.shape[1]
    return pl.pallas_call(
        functools.partial(_conv1_fp_kernel, eps=eps),
        out_shape=jax.ShapeDtypeStruct((M, D), jnp.float32),
        grid=(1,),
        in_specs=[pl.BlockSpec((M, KC), lambda i: (0, 0)),
                  pl.BlockSpec((KC, C), lambda i: (0, 0)),
                  pl.BlockSpec((1, C), lambda i: (0, 0)),
                  pl.BlockSpec((1, C), lambda i: (0, 0)),
                  pl.BlockSpec((C, D), lambda i: (0, 0)),
                  pl.BlockSpec((1, D), lambda i: (0, 0))],
        out_specs=pl.BlockSpec((M, D), lambda i: (0, 0)),
    )(patches, w_conv, ln_g.reshape(1, C), ln_b.reshape(1, C), w_proj, b_proj.reshape(1, D))


# ----------------------------------------------------------------------------- kernel C: grouped pos-conv (block-diag matmul) + GELU + residual + encoder LN

def _posconv_residual_ln_kernel(h_ref, p_ref, w_ref, b_ref, g_ref, be_ref, o_ref, *, eps):
    pos = jnp.dot(p_ref[...], w_ref[...], preferred_element_type=jnp.float32) + b_ref[...]
    pos = _gelu_exact(pos)
    o_ref[...] = _ln(h_ref[...] + pos, g_ref[...], be_ref[...], eps)


def posconv_residual_ln(h, patches, w_pos, b_pos, ln_g, ln_b, eps=1e-5):
    M, D = h.shape
    KD = patches.shape[1]
    return pl.pallas_call(
        functools.partial(_posconv_residual_ln_kernel, eps=eps),
        out_shape=jax.ShapeDtypeStruct((M, D), jnp.float32),
        grid=(1,),
        in_specs=[pl.BlockSpec((M, D), lambda i: (0, 0)),
                  pl.BlockSpec((M, KD), lambda i: (0, 0)),
                  pl.BlockSpec((KD, D), lambda i: (0, 0)),
                  pl.BlockSpec((1, D), lambda i: (0, 0)),
                  pl.BlockSpec((1, D), lambda i: (0, 0)),
                  pl.BlockSpec((1, D), lambda i: (0, 0))],
        out_specs=pl.BlockSpec((M, D), lambda i: (0, 0)),
    )(h, patches, w_pos, b_pos.reshape(1, D), ln_g.reshape(1, D), ln_b.reshape(1, D))


# ----------------------------------------------------------------------------- kernel D: fused 12-layer transformer + ScalarMix

def _encoder_stack_kernel(mix_ref, h0_ref, wqkv_ref, bqkv_ref, wo_ref, bo_ref,
                          ln1g_ref, ln1b_ref, w1_ref, b1_ref, w2_ref, b2_ref,
                          ln2g_ref, ln2b_ref, o_ref, h_scr, *, B, S, H, eps):
    l = pl.program_id(0)
    D = h_scr.shape[-1]
    Dh = D // H
    M = B * S
    scale = Dh ** -0.5

    @pl.when(l == 0)
    def _():
        h0 = h0_ref[...]
        h_scr[...] = h0
        o_ref[...] = mix_ref[0] * h0        # ScalarMix term for hidden_states[0]

    h_in = h_scr[...]                                                        # (M, D)

    # ---- self-attention (fused QKV, head-sliced batched einsums, no transposes) ----
    qkv = jnp.dot(h_in, wqkv_ref[0], preferred_element_type=jnp.float32) + bqkv_ref[0]
    qkv = qkv.reshape(B, S, 3 * D)
    heads = []
    for hh in range(H):
        q = qkv[:, :, hh * Dh:(hh + 1) * Dh] * scale
        k = qkv[:, :, D + hh * Dh:D + (hh + 1) * Dh]
        v = qkv[:, :, 2 * D + hh * Dh:2 * D + (hh + 1) * Dh]
        s = jnp.einsum("bqd,bkd->bqk", q, k, preferred_element_type=jnp.float32)
        s = s - jnp.max(s, axis=-1, keepdims=True)
        p = jnp.exp(s)
        p = p / jnp.sum(p, axis=-1, keepdims=True)
        heads.append(jnp.einsum("bqk,bkd->bqd", p, v, preferred_element_type=jnp.float32))
    ctx = jnp.concatenate(heads, axis=-1).reshape(M, D)
    attn = jnp.dot(ctx, wo_ref[0], preferred_element_type=jnp.float32) + bo_ref[0]

    # ---- post-norm residual structure (wav2vec2-base: do_stable_layer_norm=False) ----
    h = _ln(h_in + attn, ln1g_ref[0], ln1b_ref[0], eps)
    ff = _gelu_exact(jnp.dot(h, w1_ref[0], preferred_element_type=jnp.float32) + b1_ref[0])
    ff = jnp.dot(ff, w2_ref[0], preferred_element_type=jnp.float32) + b2_ref[0]
    h = _ln(h + ff, ln2g_ref[0], ln2b_ref[0], eps)

    h_scr[...] = h
    o_ref[...] = o_ref[...] + mix_ref[l + 1] * h     # incremental ScalarMix accumulation


def encoder_stack(mix, h0, stacked, *, B, S, H, eps=1e-5):
    (wqkv, bqkv, wo, bo, ln1g, ln1b, w1, b1, w2, b2, ln2g, ln2b) = stacked
    L, D, D3 = wqkv.shape
    F = w1.shape[2]
    M = B * S
    lmap = lambda l: (l, 0, 0)
    fixed = lambda l: (0, 0)
    return pl.pallas_call(
        functools.partial(_encoder_stack_kernel, B=B, S=S, H=H, eps=eps),
        out_shape=jax.ShapeDtypeStruct((M, D), jnp.float32),
        grid=(L,),
        in_specs=[pl.BlockSpec(memory_space=pltpu.MemorySpace.SMEM),  # gamma*softmax(w), 13 scalars
                  pl.BlockSpec((M, D), fixed),                        # h0 (resident across layers)
                  pl.BlockSpec((1, D, D3), lmap),
                  pl.BlockSpec((1, 1, D3), lmap),
                  pl.BlockSpec((1, D, D), lmap),
                  pl.BlockSpec((1, 1, D), lmap),
                  pl.BlockSpec((1, 1, D), lmap),
                  pl.BlockSpec((1, 1, D), lmap),
                  pl.BlockSpec((1, D, F), lmap),
                  pl.BlockSpec((1, 1, F), lmap),
                  pl.BlockSpec((1, F, D), lmap),
                  pl.BlockSpec((1, 1, D), lmap),
                  pl.BlockSpec((1, 1, D), lmap),
                  pl.BlockSpec((1, 1, D), lmap)],
        out_specs=pl.BlockSpec((M, D), fixed),                        # resident ScalarMix accumulator
        scratch_shapes=[pltpu.VMEM((M, D), jnp.float32)],             # persistent hidden state
        compiler_params=pltpu.CompilerParams(dimension_semantics=("arbitrary",)),
    )(mix, h0, wqkv, bqkv, wo, bo, ln1g, ln1b, w1, b1, w2, b2, ln2g, ln2b)


# ----------------------------------------------------------------------------- XLA glue (im2col / weight packing)

def _im2col_strided(x, K, stride):
    """x: (B, T, C) time-major -> (B, T_out, K*C) patches ordered [k, c]."""
    B, T, C = x.shape
    T_out = (T - K) // stride + 1
    cols = [x[:, k: k + stride * T_out: stride, :] for k in range(K)]
    return jnp.stack(cols, axis=2).reshape(B, T_out, K * C)


def _conv_weight_to_matmul(w_pt):
    """PyTorch Conv1d (Cout, Cin, K) -> (K*Cin, Cout) matching [k, cin] patch order."""
    Cout, Cin, K = w_pt.shape
    return jnp.transpose(w_pt, (2, 1, 0)).reshape(K * Cin, Cout)


def _pos_conv_patches(h, K, pad):
    """h: (B, S, D) -> (B, S, K*D) same-padded patches (keeps the first S conv outputs = SamePad)."""
    B, S, D = h.shape
    hp = jnp.pad(h, ((0, 0), (pad, pad), (0, 0)))
    return jnp.concatenate([hp[:, k: k + S, :] for k in range(K)], axis=-1)


def _pos_conv_weight(w_pt, groups):
    """Grouped Conv1d weight (Cout, Cin_g, K) -> block-diagonal (K*Cin, Cout) matmul weight."""
    Cout, Cin_g, K = w_pt.shape
    G_out = Cout // groups
    Cin = Cin_g * groups
    w_t = jnp.transpose(w_pt, (2, 1, 0)).astype(jnp.float32)          # (K, Cin_g, Cout)
    dense = jnp.zeros((K, Cin, Cout), jnp.float32)
    for g in range(groups):
        dense = dense.at[:, g * Cin_g:(g + 1) * Cin_g, g * G_out:(g + 1) * G_out].set(
            w_t[:, :, g * G_out:(g + 1) * G_out])
    return dense.reshape(K * Cin, Cout)


def _stack_layer_params(layers):
    L = len(layers)
    D = layers[0]["wq"].shape[0]
    F = layers[0]["w1"].shape[1]
    wqkv = jnp.stack([jnp.concatenate([lp["wq"], lp["wk"], lp["wv"]], axis=1) for lp in layers])
    bqkv = jnp.stack([jnp.concatenate([lp["bq"], lp["bk"], lp["bv"]], axis=0) for lp in layers]).reshape(L, 1, 3 * D)
    wo = jnp.stack([lp["wo"] for lp in layers])
    bo = jnp.stack([lp["bo"] for lp in layers]).reshape(L, 1, D)
    ln1g = jnp.stack([lp["ln1_g"] for lp in layers]).reshape(L, 1, D)
    ln1b = jnp.stack([lp["ln1_b"] for lp in layers]).reshape(L, 1, D)
    w1 = jnp.stack([lp["w1"] for lp in layers])
    b1 = jnp.stack([lp["b1"] for lp in layers]).reshape(L, 1, F)
    w2 = jnp.stack([lp["w2"] for lp in layers])
    b2 = jnp.stack([lp["b2"] for lp in layers]).reshape(L, 1, D)
    ln2g = jnp.stack([lp["ln2_g"] for lp in layers]).reshape(L, 1, D)
    ln2b = jnp.stack([lp["ln2_b"] for lp in layers]).reshape(L, 1, D)
    return (wqkv, bqkv, wo, bo, ln1g, ln1b, w1, b1, w2, b2, ln2g, ln2b)


# ----------------------------------------------------------------------------- forward

def speech_pretrain_forward(x, params, cfg):
    B = x.shape[0]
    D = cfg["hidden"]

    # --- wav2vec2 feature encoder (feat_extract_norm="group", conv_bias=False) ---
    p0 = _im2col_strided(x[:, :, None].astype(jnp.float32),
                         cfg["conv_kernels"][0], cfg["conv_strides"][0])       # (B, T0, K0)
    h = conv0_gn_gelu(p0, _conv_weight_to_matmul(params["conv0_w"]),
                      params["gn_g"], params["gn_b"])                          # (B, T0, C0)

    # --- conv1 + GELU + feature projection (LayerNorm + Linear), fused ---
    p1 = _im2col_strided(h, cfg["conv_kernels"][1], cfg["conv_strides"][1])    # (B, S, K1*C0)
    _, S, KC = p1.shape
    hf = conv1_feature_projection(p1.reshape(B * S, KC),
                                  _conv_weight_to_matmul(params["conv1_w"]),
                                  params["fp_ln_g"], params["fp_ln_b"],
                                  params["fp_w"], params["fp_b"])              # (B*S, D)

    # --- positional conv embedding + residual + encoder LayerNorm, fused ---
    ppos = _pos_conv_patches(hf.reshape(B, S, D), cfg["pos_conv_kernel"],
                             cfg["pos_conv_kernel"] // 2)                      # (B, S, K*D)
    h0 = posconv_residual_ln(hf, ppos.reshape(B * S, -1),
                             _pos_conv_weight(params["pc_w"], cfg["pos_conv_groups"]),
                             params["pc_b"], params["enc_ln_g"], params["enc_ln_b"])

    # --- 12 transformer layers + ScalarMix(13), single fused kernel ---
    mix = (params["mix_gamma"][0] * jax.nn.softmax(params["mix_w"])).astype(jnp.float32)
    stacked = _stack_layer_params(params["layers"])
    out = encoder_stack(mix, h0, stacked, B=B, S=S, H=cfg["heads"])
    return out.reshape(B, S, D)


# ----------------------------------------------------------------------------- deterministic params

# Lane-dense scaled-down config: hidden / conv channels = 128 (multiple of the 128-lane vreg),
# FFN = 4*hidden (wav2vec2 ratio), 4 heads, 12 layers.  M = B*S = 2*32 = 64 (sublane-multiple of 8).
CFG = dict(
    conv_dims=(128, 128), conv_kernels=(10, 3), conv_strides=(5, 2),
    hidden=128, heads=4, ffn=512, layers=12,
    pos_conv_kernel=4, pos_conv_groups=4,
)


def init_params(key, cfg):
    cnt = [0]

    def nrm(shape, scale=0.02):
        cnt[0] += 1
        return scale * jax.random.normal(jax.random.fold_in(key, cnt[0]), shape, jnp.float32)

    D, F, L = cfg["hidden"], cfg["ffn"], cfg["layers"]
    c0, c1 = cfg["conv_dims"]
    ones = lambda n: jnp.ones((n,), jnp.float32)
    zeros = lambda n: jnp.zeros((n,), jnp.float32)

    p = {
        "conv0_w": nrm((c0, 1, cfg["conv_kernels"][0])),
        "gn_g": ones(c0), "gn_b": zeros(c0),
        "conv1_w": nrm((c1, c0, cfg["conv_kernels"][1])),
        "fp_ln_g": ones(c1), "fp_ln_b": zeros(c1),
        "fp_w": nrm((c1, D)), "fp_b": zeros(D),
        "pc_w": nrm((D, D // cfg["pos_conv_groups"], cfg["pos_conv_kernel"])),
        "pc_b": zeros(D),
        "enc_ln_g": ones(D), "enc_ln_b": zeros(D),
        "mix_w": jnp.zeros((L + 1,), jnp.float32),   # ScalarMix weights init 0
        "mix_gamma": jnp.ones((1,), jnp.float32),    # ScalarMix gamma init 1
    }
    layers = []
    for _ in range(L):
        layers.append(dict(
            wq=nrm((D, D)), bq=zeros(D), wk=nrm((D, D)), bk=zeros(D),
            wv=nrm((D, D)), bv=zeros(D), wo=nrm((D, D)), bo=zeros(D),
            ln1_g=ones(D), ln1_b=zeros(D),
            w1=nrm((D, F)), b1=zeros(F), w2=nrm((F, D)), b2=zeros(D),
            ln2_g=ones(D), ln2_b=zeros(D),
        ))
    p["layers"] = layers
    return p


# TODO(synk): pretrained facebook/wav2vec2-base checkpoint weights (incl. weight_norm on the
# positional conv and the full 7-layer conv feature extractor) cannot be loaded here; deterministic
# synthetic parameters at scaled-down sizes preserve the structure/semantics of the eval-mode forward.

if __name__ == "__main__":
    key = jax.random.PRNGKey(0)
    pkey, xkey = jax.random.split(key)
    params = init_params(pkey, CFG)

    # raw waveform: batch=2, 330 samples -> conv stack -> seq=32, hidden=128
    x = jax.random.normal(xkey, (2, 330), jnp.float32)

    fwd = jax.jit(lambda inp: speech_pretrain_forward(inp, params, CFG))
    out = jax.block_until_ready(fwd(x))
    assert out.shape == (2, 32, CFG["hidden"]), out.shape
    assert jnp.isfinite(out).all()
    print("KERNEL_OK")
</pallas_src>

<mosaic_0001>
module attributes {stable_mosaic.version = 11 : i64} {
  func.func @_conv0_gn_gelu_kernel(%arg0: i32, %arg1: memref<1x65x10xf32, #tpu.memory_space<vmem>>, %arg2: memref<10x128xf32, #tpu.memory_space<vmem>>, %arg3: memref<1x128xf32, #tpu.memory_space<vmem>>, %arg4: memref<1x128xf32, #tpu.memory_space<vmem>>, %arg5: memref<1x65x128xf32, #tpu.memory_space<vmem>>) attributes {dimension_semantics = [#tpu.dimension_semantics<parallel>], iteration_bounds = array<i64: 2>, scalar_prefetch = 0 : i64, scratch_operands = 0 : i64, tpu.core_type = #tpu.core_type<tc>, window_params = [{transform_indices = @transform_0, window_bounds = array<i64: 1, 65, 10>}, {pipeline_mode = #tpu.pipeline_mode<synchronous>, transform_indices = @transform_1, window_bounds = array<i64: 10, 128>}, {pipeline_mode = #tpu.pipeline_mode<synchronous>, transform_indices = @transform_2, window_bounds = array<i64: 1, 128>}, {pipeline_mode = #tpu.pipeline_mode<synchronous>, transform_indices = @transform_3, window_bounds = array<i64: 1, 128>}, {transform_indices = @transform_4, window_bounds = array<i64: 1, 65, 128>}]} {
    %c0 = arith.constant 0 : index
    %c0_0 = arith.constant 0 : index
    %c0_1 = arith.constant 0 : index
    %0 = vector.load %arg1[%c0, %c0_0, %c0_1] : memref<1x65x10xf32, #tpu.memory_space<vmem>>, vector<1x65x10xf32>
    %1 = vector.shape_cast %0 : vector<1x65x10xf32> to vector<65x10xf32>
    %c0_2 = arith.constant 0 : index
    %c0_3 = arith.constant 0 : index
    %2 = vector.load %arg2[%c0_2, %c0_3] : memref<10x128xf32, #tpu.memory_space<vmem>>, vector<10x128xf32>
    %cst = arith.constant dense<0.000000e+00> : vector<65x128xf32>
    %3 = tpu.matmul %1, %2, %cst {dimension_numbers = #tpu.dot_dimension_numbers<[1], [0], [0], [1], [0, 0, 1, 1], [], []>} : vector<65x10xf32>, vector<10x128xf32>, vector<65x128xf32> -> vector<65x128xf32>
    %cst_4 = arith.constant dense<0.000000e+00> : vector<128xf32>
    %4 = vector.multi_reduction <add>, %3, %cst_4 [0] : vector<65x128xf32> to vector<128xf32>
    %5 = vector.shape_cast %4 : vector<128xf32> to vector<1x128xf32>
    %cst_5 = arith.constant 6.500000e+01 : f32
    %6 = vector.broadcast %cst_5 : f32 to vector<1x128xf32>
    %7 = arith.divf %5, %6 : vector<1x128xf32>
    %8 = vector.broadcast %7 : vector<1x128xf32> to vector<65x128xf32>
    %9 = arith.subf %3, %8 : vector<65x128xf32>
    %10 = arith.mulf %9, %9 : vector<65x128xf32>
    %cst_6 = arith.constant dense<0.000000e+00> : vector<128xf32>
    %11 = vector.multi_reduction <add>, %10, %cst_6 [0] : vector<65x128xf32> to vector<128xf32>
    %12 = vector.shape_cast %11 : vector<128xf32> to vector<1x128xf32>
    %cst_7 = arith.constant 6.500000e+01 : f32
    %13 = vector.broadcast %cst_7 : f32 to vector<1x128xf32>
    %14 = arith.divf %12, %13 : vector<1x128xf32>
    %15 = vector.broadcast %7 : vector<1x128xf32> to vector<65x128xf32>
    %16 = arith.subf %3, %15 : vector<65x128xf32>
    %cst_8 = arith.constant 9.99999974E-6 : f32
    %17 = vector.broadcast %cst_8 : f32 to vector<1x128xf32>
    %18 = arith.addf %14, %17 : vector<1x128xf32>
    %19 = math.rsqrt %18 : vector<1x128xf32>
    %20 = vector.broadcast %19 : vector<1x128xf32> to vector<65x128xf32>
    %21 = arith.mulf %16, %20 : vector<65x128xf32>
    %c0_9 = arith.constant 0 : index
    %c0_10 = arith.constant 0 : index
    %22 = vector.load %arg3[%c0_9, %c0_10] : memref<1x128xf32, #tpu.memory_space<vmem>>, vector<1x128xf32>
    %23 = vector.broadcast %22 : vector<1x128xf32> to vector<65x128xf32>
    %24 = arith.mulf %21, %23 : vector<65x128xf32>
    %c0_11 = arith.constant 0 : index
    %c0_12 = arith.constant 0 : index
    %25 = vector.load %arg4[%c0_11, %c0_12] : memref<1x128xf32, #tpu.memory_space<vmem>>, vector<1x128xf32>
    %26 = vector.broadcast %25 : vector<1x128xf32> to vector<65x128xf32>
    %27 = arith.addf %24, %26 : vector<65x128xf32>
    %cst_13 = arith.constant 5.000000e-01 : f32
    %28 = vector.broadcast %cst_13 : f32 to vector<65x128xf32>
    %29 = arith.mulf %28, %27 : vector<65x128xf32>
    %cst_14 = arith.constant 0.707106769 : f32
    %30 = vector.broadcast %cst_14 : f32 to vector<65x128xf32>
    %31 = arith.mulf %27, %30 : vector<65x128xf32>
    %32 = math.absf %31 : vector<65x128xf32>
    %cst_15 = arith.constant 0.327591091 : f32
    %33 = vector.broadcast %cst_15 : f32 to vector<65x128xf32>
    %34 = arith.mulf %33, %32 : vector<65x128xf32>
    %cst_16 = arith.constant 1.000000e+00 : f32
    %35 = vector.broadcast %cst_16 : f32 to vector<65x128xf32>
    %36 = arith.addf %35, %34 : vector<65x128xf32>
    %cst_17 = arith.constant 1.000000e+00 : f32
    %37 = vector.broadcast %cst_17 : f32 to vector<65x128xf32>
    %38 = arith.divf %37, %36 : vector<65x128xf32>
    %cst_18 = arith.constant 1.06140542 : f32
    %39 = vector.broadcast %cst_18 : f32 to vector<65x128xf32>
    %40 = arith.mulf %38, %39 : vector<65x128xf32>
    %cst_19 = arith.constant -1.45315206 : f32
    %41 = vector.broadcast %cst_19 : f32 to vector<65x128xf32>
    %42 = arith.addf %41, %40 : vector<65x128xf32>
    %43 = arith.mulf %38, %42 : vector<65x128xf32>
    %cst_20 = arith.constant 1.42141378 : f32
    %44 = vector.broadcast %cst_20 : f32 to vector<65x128xf32>
    %45 = arith.addf %44, %43 : vector<65x128xf32>
    %46 = arith.mulf %38, %45 : vector<65x128xf32>
    %cst_21 = arith.constant -0.284496725 : f32
    %47 = vector.broadcast %cst_21 : f32 to vector<65x128xf32>
    %48 = arith.addf %47, %46 : vector<65x128xf32>
    %49 = arith.mulf %38, %48 : vector<65x128xf32>
    %cst_22 = arith.constant 0.254829586 : f32
    %50 = vector.broadcast %cst_22 : f32 to vector<65x128xf32>
    %51 = arith.addf %50, %49 : vector<65x128xf32>
    %52 = arith.mulf %38, %51 : vector<65x128xf32>
    %cst_23 = arith.constant 0.000000e+00 : f32
    %53 = vector.broadcast %cst_23 : f32 to vector<65x128xf32>
    %54 = arith.subf %53, %32 : vector<65x128xf32>
    %55 = arith.mulf %54, %32 : vector<65x128xf32>
    %56 = math.exp %55 : vector<65x128xf32>
    %57 = arith.mulf %52, %56 : vector<65x128xf32>
    %cst_24 = arith.constant 1.000000e+00 : f32
    %58 = vector.broadcast %cst_24 : f32 to vector<65x128xf32>
    %59 = arith.subf %58, %57 : vector<65x128xf32>
    %cst_25 = arith.constant 0.000000e+00 : f32
    %60 = vector.broadcast %cst_25 : f32 to vector<65x128xf32>
    %61 = arith.cmpf oge, %31, %60 : vector<65x128xf32>
    %cst_26 = arith.constant 0.000000e+00 : f32
    %62 = vector.broadcast %cst_26 : f32 to vector<65x128xf32>
    %63 = arith.subf %62, %59 : vector<65x128xf32>
    %64 = arith.select %61, %59, %63 : vector<65x128xi1>, vector<65x128xf32>
    %cst_27 = arith.constant 1.000000e+00 : f32
    %65 = vector.broadcast %cst_27 : f32 to vector<65x128xf32>
    %66 = arith.addf %65, %64 : vector<65x128xf32>
    %67 = arith.mulf %29, %66 : vector<65x128xf32>
    %c0_28 = arith.constant 0 : index
    %c0_29 = arith.constant 0 : index
    %c0_30 = arith.constant 0 : index
    %68 = vector.load %arg5[%c0_28, %c0_29, %c0_30] : memref<1x65x128xf32, #tpu.memory_space<vmem>>, vector<1x65x128xf32>
    %69 = vector.shape_cast %68 : vector<1x65x128xf32> to vector<65x128xf32>
    %70 = vector.shape_cast %67 : vector<65x128xf32> to vector<1x65x128xf32>
    tpu.vector_store %arg5[%c0_28, %c0_29, %c0_30], %70 {strides = array<i32>} : memref<1x65x128xf32, #tpu.memory_space<vmem>>, vector<1x65x128xf32>,
    return
  }
  func.func @transform_0(%arg0: i32) -> (i32, i32, i32) {
    %c0_i32 = arith.constant 0 : i32
    %c0_i32_0 = arith.constant 0 : i32
    %c0_i32_1 = arith.constant 0 : i32
    return %arg0, %c0_i32, %c0_i32_0 : i32, i32, i32
  }
  func.func @transform_1(%arg0: i32) -> (i32, i32) {
    %c0_i32 = arith.constant 0 : i32
    %c0_i32_0 = arith.constant 0 : i32
    %c0_i32_1 = arith.constant 0 : i32
    return %c0_i32, %c0_i32_0 : i32, i32
  }
  func.func @transform_2(%arg0: i32) -> (i32, i32) {
    %c0_i32 = arith.constant 0 : i32
    %c0_i32_0 = arith.constant 0 : i32
    %c0_i32_1 = arith.constant 0 : i32
    return %c0_i32, %c0_i32_0 : i32, i32
  }
  func.func @transform_3(%arg0: i32) -> (i32, i32) {
    %c0_i32 = arith.constant 0 : i32
    %c0_i32_0 = arith.constant 0 : i32
    %c0_i32_1 = arith.constant 0 : i32
    return %c0_i32, %c0_i32_0 : i32, i32
  }
  func.func @transform_4(%arg0: i32) -> (i32, i32, i32) {
    %c0_i32 = arith.constant 0 : i32
    %c0_i32_0 = arith.constant 0 : i32
    %c0_i32_1 = arith.constant 0 : i32
    return %arg0, %c0_i32, %c0_i32_0 : i32, i32, i32
  }
}

module attributes {stable_mosaic.version = 11 : i64} {
  func.func @_posconv_residual_ln_kernel(%arg0: i32, %arg1: memref<64x128xf32, #tpu.memory_space<vmem>>, %arg2: memref<64x512xf32, #tpu.memory_space<vmem>>, %arg3: memref<512x128xf32, #tpu.memory_space<vmem>>, %arg4: memref<1x128xf32, #tpu.memory_space<vmem>>, %arg5: memref<1x128xf32, #tpu.memory_space<vmem>>, %arg6: memref<1x128xf32, #tpu.memory_space<vmem>>, %arg7: memref<64x128xf32, #tpu.memory_space<vmem>>) attributes {dimension_semantics = [#tpu.dimension_semantics<arbitrary>], iteration_bounds = array<i64: 1>, scalar_prefetch = 0 : i64, scratch_operands = 0 : i64, tpu.core_type = #tpu.core_type<tc>, window_params = [{pipeline_mode = #tpu.pipeline_mode<synchronous>, transform_indices = @transform_0, window_bounds = array<i64: 64, 128>}, {pipeline_mode = #tpu.pipeline_mode<synchronous>, transform_indices = @transform_1, window_bounds = array<i64: 64, 512>}, {pipeline_mode = #tpu.pipeline_mode<synchronous>, transform_indices = @transform_2, window_bounds = array<i64: 512, 128>}, {pipeline_mode = #tpu.pipeline_mode<synchronous>, transform_indices = @transform_3, window_bounds = array<i64: 1, 128>}, {pipeline_mode = #tpu.pipeline_mode<synchronous>, transform_indices = @transform_4, window_bounds = array<i64: 1, 128>}, {pipeline_mode = #tpu.pipeline_mode<synchronous>, transform_indices = @transform_5, window_bounds = array<i64: 1, 128>}, {pipeline_mode = #tpu.pipeline_mode<synchronous>, transform_indices = @transform_6, window_bounds = array<i64: 64, 128>}]} {
    %c0 = arith.constant 0 : index
    %c0_0 = arith.constant 0 : index
    %0 = vector.load %arg2[%c0, %c0_0] : memref<64x512xf32, #tpu.memory_space<vmem>>, vector<64x512xf32>
    %c0_1 = arith.constant 0 : index
    %c0_2 = arith.constant 0 : index
    %1 = vector.load %arg3[%c0_1, %c0_2] : memref<512x128xf32, #tpu.memory_space<vmem>>, vector<512x128xf32>
    %cst = arith.constant dense<0.000000e+00> : vector<64x128xf32>
    %2 = tpu.matmul %0, %1, %cst {dimension_numbers = #tpu.dot_dimension_numbers<[1], [0], [0], [1], [0, 0, 1, 1], [], []>} : vector<64x512xf32>, vector<512x128xf32>, vector<64x128xf32> -> vector<64x128xf32>
    %c0_3 = arith.constant 0 : index
    %c0_4 = arith.constant 0 : index
    %3 = vector.load %arg4[%c0_3, %c0_4] : memref<1x128xf32, #tpu.memory_space<vmem>>, vector<1x128xf32>
    %4 = vector.broadcast %3 : vector<1x128xf32> to vector<64x128xf32>
    %5 = arith.addf %2, %4 : vector<64x128xf32>
    %cst_5 = arith.constant 5.000000e-01 : f32
    %6 = vector.broadcast %cst_5 : f32 to vector<64x128xf32>
    %7 = arith.mulf %6, %5 : vector<64x128xf32>
    %cst_6 = arith.constant 0.707106769 : f32
    %8 = vector.broadcast %cst_6 : f32 to vector<64x128xf32>
    %9 = arith.mulf %5, %8 : vector<64x128xf32>
    %10 = math.absf %9 : vector<64x128xf32>
    %cst_7 = arith.constant 0.327591091 : f32
    %11 = vector.broadcast %cst_7 : f32 to vector<64x128xf32>
    %12 = arith.mulf %11, %10 : vector<64x128xf32>
    %cst_8 = arith.constant 1.000000e+00 : f32
    %13 = vector.broadcast %cst_8 : f32 to vector<64x128xf32>
    %14 = arith.addf %13, %12 : vector<64x128xf32>
    %cst_9 = arith.constant 1.000000e+00 : f32
    %15 = vector.broadcast %cst_9 : f32 to vector<64x128xf32>
    %16 = arith.divf %15, %14 : vector<64x128xf32>
    %cst_10 = arith.constant 1.06140542 : f32
    %17 = vector.broadcast %cst_10 : f32 to vector<64x128xf32>
    %18 = arith.mulf %16, %17 : vector<64x128xf32>
    %cst_11 = arith.constant -1.45315206 : f32
    %19 = vector.broadcast %cst_11 : f32 to vector<64x128xf32>
    %20 = arith.addf %19, %18 : vector<64x128xf32>
    %21 = arith.mulf %16, %20 : vector<64x128xf32>
    %cst_12 = arith.constant 1.42141378 : f32
    %22 = vector.broadcast %cst_12 : f32 to vector<64x128xf32>
    %23 = arith.addf %22, %21 : vector<64x128xf32>
    %24 = arith.mulf %16, %23 : vector<64x128xf32>
    %cst_13 = arith.constant -0.284496725 : f32
    %25 = vector.broadcast %cst_13 : f32 to vector<64x128xf32>
    %26 = arith.addf %25, %24 : vector<64x128xf32>
    %27 = arith.mulf %16, %26 : vector<64x128xf32>
    %cst_14 = arith.constant 0.254829586 : f32
    %28 = vector.broadcast %cst_14 : f32 to vector<64x128xf32>
    %29 = arith.addf %28, %27 : vector<64x128xf32>
    %30 = arith.mulf %16, %29 : vector<64x128xf32>
    %cst_15 = arith.constant 0.000000e+00 : f32
    %31 = vector.broadcast %cst_15 : f32 to vector<64x128xf32>
    %32 = arith.subf %31, %10 : vector<64x128xf32>
    %33 = arith.mulf %32, %10 : vector<64x128xf32>
    %34 = math.exp %33 : vector<64x128xf32>
    %35 = arith.mulf %30, %34 : vector<64x128xf32>
    %cst_16 = arith.constant 1.000000e+00 : f32
    %36 = vector.broadcast %cst_16 : f32 to vector<64x128xf32>
    %37 = arith.subf %36, %35 : vector<64x128xf32>
    %cst_17 = arith.constant 0.000000e+00 : f32
    %38 = vector.broadcast %cst_17 : f32 to vector<64x128xf32>
    %39 = arith.cmpf oge, %9, %38 : vector<64x128xf32>
    %cst_18 = arith.constant 0.000000e+00 : f32
    %40 = vector.broadcast %cst_18 : f32 to vector<64x128xf32>
    %41 = arith.subf %40, %37 : vector<64x128xf32>
    %42 = arith.select %39, %37, %41 : vector<64x128xi1>, vector<64x128xf32>
    %cst_19 = arith.constant 1.000000e+00 : f32
    %43 = vector.broadcast %cst_19 : f32 to vector<64x128xf32>
    %44 = arith.addf %43, %42 : vector<64x128xf32>
    %45 = arith.mulf %7, %44 : vector<64x128xf32>
    %c0_20 = arith.constant 0 : index
    %c0_21 = arith.constant 0 : index
    %46 = vector.load %arg1[%c0_20, %c0_21] : memref<64x128xf32, #tpu.memory_space<vmem>>, vector<64x128xf32>
    %47 = arith.addf %46, %45 : vector<64x128xf32>
    %c0_22 = arith.constant 0 : index
    %c0_23 = arith.constant 0 : index
    %48 = vector.load %arg5[%c0_22, %c0_23] : memref<1x128xf32, #tpu.memory_space<vmem>>, vector<1x128xf32>
    %c0_24 = arith.constant 0 : index
    %c0_25 = arith.constant 0 : index
    %49 = vector.load %arg6[%c0_24, %c0_25] : memref<1x128xf32, #tpu.memory_space<vmem>>, vector<1x128xf32>
    %cst_26 = arith.constant dense<0.000000e+00> : vector<64xf32>
    %50 = vector.multi_reduction <add>, %47, %cst_26 [1] : vector<64x128xf32> to vector<64xf32>
    %51 = vector.shape_cast %50 : vector<64xf32> to vector<64x1xf32>
    %cst_27 = arith.constant 1.280000e+02 : f32
    %52 = vector.broadcast %cst_27 : f32 to vector<64x1xf32>
    %53 = arith.divf %51, %52 : vector<64x1xf32>
    %54 = vector.broadcast %53 : vector<64x1xf32> to vector<64x128xf32>
    %55 = arith.subf %47, %54 : vector<64x128xf32>
    %56 = arith.mulf %55, %55 : vector<64x128xf32>
    %cst_28 = arith.constant dense<0.000000e+00> : vector<64xf32>
    %57 = vector.multi_reduction <add>, %56, %cst_28 [1] : vector<64x128xf32> to vector<64xf32>
    %58 = vector.shape_cast %57 : vector<64xf32> to vector<64x1xf32>
    %cst_29 = arith.constant 1.280000e+02 : f32
    %59 = vector.broadcast %cst_29 : f32 to vector<64x1xf32>
    %60 = arith.divf %58, %59 : vector<64x1xf32>
    %61 = vector.broadcast %53 : vector<64x1xf32> to vector<64x128xf32>
    %62 = arith.subf %47, %61 : vector<64x128xf32>
    %cst_30 = arith.constant 9.99999974E-6 : f32
    %63 = vector.broadcast %cst_30 : f32 to vector<64x1xf32>
    %64 = arith.addf %60, %63 : vector<64x1xf32>
    %65 = math.rsqrt %64 : vector<64x1xf32>
    %66 = vector.broadcast %65 : vector<64x1xf32> to vector<64x128xf32>
    %67 = arith.mulf %62, %66 : vector<64x128xf32>
    %68 = vector.broadcast %48 : vector<1x128xf32> to vector<64x128xf32>
    %69 = arith.mulf %67, %68 : vector<64x128xf32>
    %70 = vector.broadcast %49 : vector<1x128xf32> to vector<64x128xf32>
    %71 = arith.addf %69, %70 : vector<64x128xf32>
    %c0_31 = arith.constant 0 : index
    %c0_32 = arith.constant 0 : index
    %72 = vector.load %arg7[%c0_31, %c0_32] : memref<64x128xf32, #tpu.memory_space<vmem>>, vector<64x128xf32>
    tpu.vector_store %arg7[%c0_31, %c0_32], %71 {strides = array<i32>} : memref<64x128xf32, #tpu.memory_space<vmem>>, vector<64x128xf32>,
    return
  }
  func.func @transform_0(%arg0: i32) -> (i32, i32) {
    %c0_i32 = arith.constant 0 : i32
    %c0_i32_0 = arith.constant 0 : i32
    %c0_i32_1 = arith.constant 0 : i32
    return %c0_i32, %c0_i32_0 : i32, i32
  }
  func.func @transform_1(%arg0: i32) -> (i32, i32) {
    %c0_i32 = arith.constant 0 : i32
    %c0_i32_0 = arith.constant 0 : i32
    %c0_i32_1 = arith.constant 0 : i32
    return %c0_i32, %c0_i32_0 : i32, i32
  }
  func.func @transform_2(%arg0: i32) -> (i32, i32) {
    %c0_i32 = arith.constant 0 : i32
    %c0_i32_0 = arith.constant 0 : i32
    %c0_i32_1 = arith.constant 0 : i32
    return %c0_i32, %c0_i32_0 : i32, i32
  }
  func.func @transform_3(%arg0: i32) -> (i32, i32) {
    %c0_i32 = arith.constant 0 : i32
    %c0_i32_0 = arith.constant 0 : i32
    %c0_i32_1 = arith.constant 0 : i32
    return %c0_i32, %c0_i32_0 : i32, i32
  }
  func.func @transform_4(%arg0: i32) -> (i32, i32) {
    %c0_i32 = arith.constant 0 : i32
    %c0_i32_0 = arith.constant 0 : i32
    %c0_i32_1 = arith.constant 0 : i32
    return %c0_i32, %c0_i32_0 : i32, i32
  }
  func.func @transform_5(%arg0: i32) -> (i32, i32) {
    %c0_i32 = arith.constant 0 : i32
    %c0_i32_0 = arith.constant 0 : i32
    %c0_i32_1 = arith.constant 0 : i32
    return %c0_i32, %c0_i32_0 : i32, i32
  }
  func.func @transform_6(%arg0: i32) -> (i32, i32) {
    %c0_i32 = arith.constant 0 : i32
    %c0_i32_0 = arith.constant 0 : i32
    %c0_i32_1 = arith.constant 0 : i32
    return %c0_i32, %c0_i32_0 : i32, i32
  }
}

module attributes {stable_mosaic.version = 11 : i64} {
  func.func @_encoder_stack_kernel(%arg0: i32, %arg1: memref<13xf32, #tpu.memory_space<smem>>, %arg2: memref<64x128xf32, #tpu.memory_space<vmem>>, %arg3: memref<1x128x384xf32, #tpu.memory_space<vmem>>, %arg4: memref<1x1x384xf32, #tpu.memory_space<vmem>>, %arg5: memref<1x128x128xf32, #tpu.memory_space<vmem>>, %arg6: memref<1x1x128xf32, #tpu.memory_space<vmem>>, %arg7: memref<1x1x128xf32, #tpu.memory_space<vmem>>, %arg8: memref<1x1x128xf32, #tpu.memory_space<vmem>>, %arg9: memref<1x128x512xf32, #tpu.memory_space<vmem>>, %arg10: memref<1x1x512xf32, #tpu.memory_space<vmem>>, %arg11: memref<1x512x128xf32, #tpu.memory_space<vmem>>, %arg12: memref<1x1x128xf32, #tpu.memory_space<vmem>>, %arg13: memref<1x1x128xf32, #tpu.memory_space<vmem>>, %arg14: memref<1x1x128xf32, #tpu.memory_space<vmem>>, %arg15: memref<64x128xf32, #tpu.memory_space<vmem>>, %arg16: memref<64x128xf32, #tpu.memory_space<vmem>>) attributes {dimension_semantics = [#tpu.dimension_semantics<arbitrary>], iteration_bounds = array<i64: 12>, scalar_prefetch = 0 : i64, scratch_operands = 1 : i64, tpu.core_type = #tpu.core_type<tc>, window_params = [{transform_indices = @transform_0, window_bounds = array<i64: 13>}, {pipeline_mode = #tpu.pipeline_mode<synchronous>, transform_indices = @transform_1, window_bounds = array<i64: 64, 128>}, {transform_indices = @transform_2, window_bounds = array<i64: 1, 128, 384>}, {transform_indices = @transform_3, window_bounds = array<i64: 1, 1, 384>}, {transform_indices = @transform_4, window_bounds = array<i64: 1, 128, 128>}, {transform_indices = @transform_5, window_bounds = array<i64: 1, 1, 128>}, {transform_indices = @transform_6, window_bounds = array<i64: 1, 1, 128>}, {transform_indices = @transform_7, window_bounds = array<i64: 1, 1, 128>}, {transform_indices = @transform_8, window_bounds = array<i64: 1, 128, 512>}, {transform_indices = @transform_9, window_bounds = array<i64: 1, 1, 512>}, {transform_indices = @transform_10, window_bounds = array<i64: 1, 512, 128>}, {transform_indices = @transform_11, window_bounds = array<i64: 1, 1, 128>}, {transform_indices = @transform_12, window_bounds = array<i64: 1, 1, 128>}, {transform_indices = @transform_13, window_bounds = array<i64: 1, 1, 128>}, {pipeline_mode = #tpu.pipeline_mode<synchronous>, transform_indices = @transform_14, window_bounds = array<i64: 64, 128>}]} {
    %c0_i32 = arith.constant 0 : i32
    %0 = arith.cmpi eq, %arg0, %c0_i32 : i32
    %1 = arith.extui %0 : i1 to i32
    %c0_i32_0 = arith.constant 0 : i32
    %2 = arith.cmpi ne, %1, %c0_i32_0 : i32
    scf.if %2 {
      %c0_92 = arith.constant 0 : index
      %c0_93 = arith.constant 0 : index
      %202 = vector.load %arg2[%c0_92, %c0_93] : memref<64x128xf32, #tpu.memory_space<vmem>>, vector<64x128xf32>
      %c0_94 = arith.constant 0 : index
      %c0_95 = arith.constant 0 : index
      %203 = vector.load %arg16[%c0_94, %c0_95] : memref<64x128xf32, #tpu.memory_space<vmem>>, vector<64x128xf32>
      tpu.vector_store %arg16[%c0_94, %c0_95], %202 {strides = array<i32>} : memref<64x128xf32, #tpu.memory_space<vmem>>, vector<64x128xf32>,
      %c0_96 = arith.constant 0 : index
      %204 = memref.load %arg1[%c0_96] : memref<13xf32, #tpu.memory_space<smem>>
      %205 = vector.broadcast %204 : f32 to vector<64x128xf32>
      %206 = arith.mulf %205, %202 : vector<64x128xf32>
      %c0_97 = arith.constant 0 : index
      %c0_98 = arith.constant 0 : index
      %207 = vector.load %arg15[%c0_97, %c0_98] : memref<64x128xf32, #tpu.memory_space<vmem>>, vector<64x128xf32>
      tpu.vector_store %arg15[%c0_97, %c0_98], %206 {strides = array<i32>} : memref<64x128xf32, #tpu.memory_space<vmem>>, vector<64x128xf32>,
    } else {
    }
    %c0 = arith.constant 0 : index
    %c0_1 = arith.constant 0 : index
    %3 = vector.load %arg16[%c0, %c0_1] : memref<64x128xf32, #tpu.memory_space<vmem>>, vector<64x128xf32>
    %c0_2 = arith.constant 0 : index
    %c0_3 = arith.constant 0 : index
    %c0_4 = arith.constant 0 : index
    %4 = vector.load %arg3[%c0_2, %c0_3, %c0_4] : memref<1x128x384xf32, #tpu.memory_space<vmem>>, vector<1x128x384xf32>
    %5 = vector.shape_cast %4 : vector<1x128x384xf32> to vector<128x384xf32>
    %cst = arith.constant dense<0.000000e+00> : vector<64x384xf32>
    %6 = tpu.matmul %3, %5, %cst {dimension_numbers = #tpu.dot_dimension_numbers<[1], [0], [0], [1], [0, 0, 1, 1], [], []>} : vector<64x128xf32>, vector<128x384xf32>, vector<64x384xf32> -> vector<64x384xf32>
    %c0_5 = arith.constant 0 : index
    %c0_6 = arith.constant 0 : index
    %c0_7 = arith.constant 0 : index
    %7 = vector.load %arg4[%c0_5, %c0_6, %c0_7] : memref<1x1x384xf32, #tpu.memory_space<vmem>>, vector<1x1x384xf32>
    %8 = vector.shape_cast %7 : vector<1x1x384xf32> to vector<1x384xf32>
    %9 = vector.broadcast %8 : vector<1x384xf32> to vector<64x384xf32>
    %10 = arith.addf %6, %9 : vector<64x384xf32>
    %11 = vector.shape_cast %10 : vector<64x384xf32> to vector<2x32x384xf32>
    %12 = vector.extract_strided_slice %11 {offsets = [0, 0, 0], sizes = [2, 32, 32], strides = [1, 1, 1]} : vector<2x32x384xf32> to vector<2x32x32xf32>
    %cst_8 = arith.constant 0.176776692 : f32
    %13 = vector.broadcast %cst_8 : f32 to vector<2x32x32xf32>
    %14 = arith.mulf %12, %13 : vector<2x32x32xf32>
    %15 = vector.extract_strided_slice %11 {offsets = [0, 0, 128], sizes = [2, 32, 32], strides = [1, 1, 1]} : vector<2x32x384xf32> to vector<2x32x32xf32>
    %16 = vector.extract_strided_slice %11 {offsets = [0, 0, 256], sizes = [2, 32, 32], strides = [1, 1, 1]} : vector<2x32x384xf32> to vector<2x32x32xf32>
    "tpu.trace_start"() <{level = 10 : i32, message = "bqd,bkd->bqk"}> : () -> ()
    %cst_9 = arith.constant dense<0.000000e+00> : vector<2x32x32xf32>
    %17 = tpu.matmul %14, %15, %cst_9 {dimension_numbers = #tpu.dot_dimension_numbers<[2], [2], [1], [1], [0, 0, 0, 1, 1, 1], [0], [0]>} : vector<2x32x32xf32>, vector<2x32x32xf32>, vector<2x32x32xf32> -> vector<2x32x32xf32>
    "tpu.trace_stop"() : () -> ()
    %cst_10 = arith.constant dense<0xFF800000> : vector<2x32xf32>
    %18 = vector.multi_reduction <maximumf>, %17, %cst_10 [2] : vector<2x32x32xf32> to vector<2x32xf32>
    %19 = vector.shape_cast %18 : vector<2x32xf32> to vector<2x32x1xf32>
    %20 = vector.broadcast %19 : vector<2x32x1xf32> to vector<2x32x32xf32>
    %21 = arith.subf %17, %20 : vector<2x32x32xf32>
    %22 = math.exp %21 : vector<2x32x32xf32>
    %cst_11 = arith.constant dense<0.000000e+00> : vector<2x32xf32>
    %23 = vector.multi_reduction <add>, %22, %cst_11 [2] : vector<2x32x32xf32> to vector<2x32xf32>
    %24 = vector.shape_cast %23 : vector<2x32xf32> to vector<2x32x1xf32>
    %25 = vector.broadcast %24 : vector<2x32x1xf32> to vector<2x32x32xf32>
    %26 = arith.divf %22, %25 : vector<2x32x32xf32>
    "tpu.trace_start"() <{level = 10 : i32, message = "bqk,bkd->bqd"}> : () -> ()
    %cst_12 = arith.constant dense<0.000000e+00> : vector<2x32x32xf32>
    %27 = tpu.matmul %26, %16, %cst_12 {dimension_numbers = #tpu.dot_dimension_numbers<[2], [1], [1], [2], [0, 0, 0, 1, 1, 2], [0], [0]>} : vector<2x32x32xf32>, vector<2x32x32xf32>, vector<2x32x32xf32> -> vector<2x32x32xf32>
    "tpu.trace_stop"() : () -> ()
    %28 = vector.extract_strided_slice %11 {offsets = [0, 0, 32], sizes = [2, 32, 32], strides = [1, 1, 1]} : vector<2x32x384xf32> to vector<2x32x32xf32>
    %cst_13 = arith.constant 0.176776692 : f32
    %29 = vector.broadcast %cst_13 : f32 to vector<2x32x32xf32>
    %30 = arith.mulf %28, %29 : vector<2x32x32xf32>
    %31 = vector.extract_strided_slice %11 {offsets = [0, 0, 160], sizes = [2, 32, 32], strides = [1, 1, 1]} : vector<2x32x384xf32> to vector<2x32x32xf32>
    %32 = vector.extract_strided_slice %11 {offsets = [0, 0, 288], sizes = [2, 32, 32], strides = [1, 1, 1]} : vector<2x32x384xf32> to vector<2x32x32xf32>
    "tpu.trace_start"() <{level = 10 : i32, message = "bqd,bkd->bqk"}> : () -> ()
    %cst_14 = arith.constant dense<0.000000e+00> : vector<2x32x32xf32>
    %33 = tpu.matmul %30, %31, %cst_14 {dimension_numbers = #tpu.dot_dimension_numbers<[2], [2], [1], [1], [0, 0, 0, 1, 1, 1], [0], [0]>} : vector<2x32x32xf32>, vector<2x32x32xf32>, vector<2x32x32xf32> -> vector<2x32x32xf32>
    "tpu.trace_stop"() : () -> ()
    %cst_15 = arith.constant dense<0xFF800000> : vector<2x32xf32>
    %34 = vector.multi_reduction <maximumf>, %33, %cst_15 [2] : vector<2x32x32xf32> to vector<2x32xf32>
    %35 = vector.shape_cast %34 : vector<2x32xf32> to vector<2x32x1xf32>
    %36 = vector.broadcast %35 : vector<2x32x1xf32> to vector<2x32x32xf32>
    %37 = arith.subf %33, %36 : vector<2x32x32xf32>
    %38 = math.exp %37 : vector<2x32x32xf32>
    %cst_16 = arith.constant dense<0.000000e+00> : vector<2x32xf32>
    %39 = vector.multi_reduction <add>, %38, %cst_16 [2] : vector<2x32x32xf32> to vector<2x32xf32>
    %40 = vector.shape_cast %39 : vector<2x32xf32> to vector<2x32x1xf32>
    %41 = vector.broadcast %40 : vector<2x32x1xf32> to vector<2x32x32xf32>
    %42 = arith.divf %38, %41 : vector<2x32x32xf32>
    "tpu.trace_start"() <{level = 10 : i32, message = "bqk,bkd->bqd"}> : () -> ()
    %cst_17 = arith.constant dense<0.000000e+00> : vector<2x32x32xf32>
    %43 = tpu.matmul %42, %32, %cst_17 {dimension_numbers = #tpu.dot_dimension_numbers<[2], [1], [1], [2], [0, 0, 0, 1, 1, 2], [0], [0]>} : vector<2x32x32xf32>, vector<2x32x32xf32>, vector<2x32x32xf32> -> vector<2x32x32xf32>
    "tpu.trace_stop"() : () -> ()
    %44 = vector.extract_strided_slice %11 {offsets = [0, 0, 64], sizes = [2, 32, 32], strides = [1, 1, 1]} : vector<2x32x384xf32> to vector<2x32x32xf32>
    %cst_18 = arith.constant 0.176776692 : f32
    %45 = vector.broadcast %cst_18 : f32 to vector<2x32x32xf32>
    %46 = arith.mulf %44, %45 : vector<2x32x32xf32>
    %47 = vector.extract_strided_slice %11 {offsets = [0, 0, 192], sizes = [2, 32, 32], strides = [1, 1, 1]} : vector<2x32x384xf32> to vector<2x32x32xf32>
    %48 = vector.extract_strided_slice %11 {offsets = [0, 0, 320], sizes = [2, 32, 32], strides = [1, 1, 1]} : vector<2x32x384xf32> to vector<2x32x32xf32>
    "tpu.trace_start"() <{level = 10 : i32, message = "bqd,bkd->bqk"}> : () -> ()
    %cst_19 = arith.constant dense<0.000000e+00> : vector<2x32x32xf32>
    %49 = tpu.matmul %46, %47, %cst_19 {dimension_numbers = #tpu.dot_dimension_numbers<[2], [2], [1], [1], [0, 0, 0, 1, 1, 1], [0], [0]>} : vector<2x32x32xf32>, vector<2x32x32xf32>, vector<2x32x32xf32> -> vector<2x32x32xf32>
    "tpu.trace_stop"() : () -> ()
    %cst_20 = arith.constant dense<0xFF800000> : vector<2x32xf32>
    %50 = vector.multi_reduction <maximumf>, %49, %cst_20 [2] : vector<2x32x32xf32> to vector<2x32xf32>
    %51 = vector.shape_cast %50 : vector<2x32xf32> to vector<2x32x1xf32>
    %52 = vector.broadcast %51 : vector<2x32x1xf32> to vector<2x32x32xf32>
    %53 = arith.subf %49, %52 : vector<2x32x32xf32>
    %54 = math.exp %53 : vector<2x32x32xf32>
    %cst_21 = arith.constant dense<0.000000e+00> : vector<2x32xf32>
    %55 = vector.multi_reduction <add>, %54, %cst_21 [2] : vector<2x32x32xf32> to vector<2x32xf32>
    %56 = vector.shape_cast %55 : vector<2x32xf32> to vector<2x32x1xf32>
    %57 = vector.broadcast %56 : vector<2x32x1xf32> to vector<2x32x32xf32>
    %58 = arith.divf %54, %57 : vector<2x32x32xf32>
    "tpu.trace_start"() <{level = 10 : i32, message = "bqk,bkd->bqd"}> : () -> ()
    %cst_22 = arith.constant dense<0.000000e+00> : vector<2x32x32xf32>
    %59 = tpu.matmul %58, %48, %cst_22 {dimension_numbers = #tpu.dot_dimension_numbers<[2], [1], [1], [2], [0, 0, 0, 1, 1, 2], [0], [0]>} : vector<2x32x32xf32>, vector<2x32x32xf32>, vector<2x32x32xf32> -> vector<2x32x32xf32>
    "tpu.trace_stop"() : () -> ()
    %60 = vector.extract_strided_slice %11 {offsets = [0, 0, 96], sizes = [2, 32, 32], strides = [1, 1, 1]} : vector<2x32x384xf32> to vector<2x32x32xf32>
    %cst_23 = arith.constant 0.176776692 : f32
    %61 = vector.broadcast %cst_23 : f32 to vector<2x32x32xf32>
    %62 = arith.mulf %60, %61 : vector<2x32x32xf32>
    %63 = vector.extract_strided_slice %11 {offsets = [0, 0, 224], sizes = [2, 32, 32], strides = [1, 1, 1]} : vector<2x32x384xf32> to vector<2x32x32xf32>
    %64 = vector.extract_strided_slice %11 {offsets = [0, 0, 352], sizes = [2, 32, 32], strides = [1, 1, 1]} : vector<2x32x384xf32> to vector<2x32x32xf32>
    "tpu.trace_start"() <{level = 10 : i32, message = "bqd,bkd->bqk"}> : () -> ()
    %cst_24 = arith.constant dense<0.000000e+00> : vector<2x32x32xf32>
    %65 = tpu.matmul %62, %63, %cst_24 {dimension_numbers = #tpu.dot_dimension_numbers<[2], [2], [1], [1], [0, 0, 0, 1, 1, 1], [0], [0]>} : vector<2x32x32xf32>, vector<2x32x32xf32>, vector<2x32x32xf32> -> vector<2x32x32xf32>
    "tpu.trace_stop"() : () -> ()
    %cst_25 = arith.constant dense<0xFF800000> : vector<2x32xf32>
    %66 = vector.multi_reduction <maximumf>, %65, %cst_25 [2] : vector<2x32x32xf32> to vector<2x32xf32>
    %67 = vector.shape_cast %66 : vector<2x32xf32> to vector<2x32x1xf32>
    %68 = vector.broadcast %67 : vector<2x32x1xf32> to vector<2x32x32xf32>
    %69 = arith.subf %65, %68 : vector<2x32x32xf32>
    %70 = math.exp %69 : vector<2x32x32xf32>
    %cst_26 = arith.constant dense<0.000000e+00> : vector<2x32xf32>
    %71 = vector.multi_reduction <add>, %70, %cst_26 [2] : vector<2x32x32xf32> to vector<2x32xf32>
    %72 = vector.shape_cast %71 : vector<2x32xf32> to vector<2x32x1xf32>
    %73 = vector.broadcast %72 : vector<2x32x1xf32> to vector<2x32x32xf32>
    %74 = arith.divf %70, %73 : vector<2x32x32xf32>
    "tpu.trace_start"() <{level = 10 : i32, message = "bqk,bkd->bqd"}> : () -> ()
    %cst_27 = arith.constant dense<0.000000e+00> : vector<2x32x32xf32>
    %75 = tpu.matmul %74, %64, %cst_27 {dimension_numbers = #tpu.dot_dimension_numbers<[2], [1], [1], [2], [0, 0, 0, 1, 1, 2], [0], [0]>} : vector<2x32x32xf32>, vector<2x32x32xf32>, vector<2x32x32xf32> -> vector<2x32x32xf32>
    "tpu.trace_stop"() : () -> ()
    %76 = tpu.concatenate %27, %43, %59, %75 in 2 : vector<2x32x32xf32>, vector<2x32x32xf32>, vector<2x32x32xf32>, vector<2x32x32xf32> -> vector<2x32x128xf32>
    %77 = vector.shape_cast %76 : vector<2x32x128xf32> to vector<64x128xf32>
    %c0_28 = arith.constant 0 : index
    %c0_29 = arith.constant 0 : index
    %c0_30 = arith.constant 0 : index
    %78 = vector.load %arg5[%c0_28, %c0_29, %c0_30] : memref<1x128x128xf32, #tpu.memory_space<vmem>>, vector<1x128x128xf32>
    %79 = vector.shape_cast %78 : vector<1x128x128xf32> to vector<128x128xf32>
    %cst_31 = arith.constant dense<0.000000e+00> : vector<64x128xf32>
    %80 = tpu.matmul %77, %79, %cst_31 {dimension_numbers = #tpu.dot_dimension_numbers<[1], [0], [0], [1], [0, 0, 1, 1], [], []>} : vector<64x128xf32>, vector<128x128xf32>, vector<64x128xf32> -> vector<64x128xf32>
    %c0_32 = arith.constant 0 : index
    %c0_33 = arith.constant 0 : index
    %c0_34 = arith.constant 0 : index
    %81 = vector.load %arg6[%c0_32, %c0_33, %c0_34] : memref<1x1x128xf32, #tpu.memory_space<vmem>>, vector<1x1x128xf32>
    %82 = vector.shape_cast %81 : vector<1x1x128xf32> to vector<1x128xf32>
    %83 = vector.broadcast %82 : vector<1x128xf32> to vector<64x128xf32>
    %84 = arith.addf %80, %83 : vector<64x128xf32>
    %85 = arith.addf %3, %84 : vector<64x128xf32>
    %c0_35 = arith.constant 0 : index
    %c0_36 = arith.constant 0 : index
    %c0_37 = arith.constant 0 : index
    %86 = vector.load %arg7[%c0_35, %c0_36, %c0_37] : memref<1x1x128xf32, #tpu.memory_space<vmem>>, vector<1x1x128xf32>
    %87 = vector.shape_cast %86 : vector<1x1x128xf32> to vector<1x128xf32>
    %c0_38 = arith.constant 0 : index
    %c0_39 = arith.constant 0 : index
    %c0_40 = arith.constant 0 : index
    %88 = vector.load %arg8[%c0_38, %c0_39, %c0_40] : memref<1x1x128xf32, #tpu.memory_space<vmem>>, vector<1x1x128xf32>
    %89 = vector.shape_cast %88 : vector<1x1x128xf32> to vector<1x128xf32>
    %cst_41 = arith.constant dense<0.000000e+00> : vector<64xf32>
    %90 = vector.multi_reduction <add>, %85, %cst_41 [1] : vector<64x128xf32> to vector<64xf32>
    %91 = vector.shape_cast %90 : vector<64xf32> to vector<64x1xf32>
    %cst_42 = arith.constant 1.280000e+02 : f32
    %92 = vector.broadcast %cst_42 : f32 to vector<64x1xf32>
    %93 = arith.divf %91, %92 : vector<64x1xf32>
    %94 = vector.broadcast %93 : vector<64x1xf32> to vector<64x128xf32>
    %95 = arith.subf %85, %94 : vector<64x128xf32>
    %96 = arith.mulf %95, %95 : vector<64x128xf32>
    %cst_43 = arith.constant dense<0.000000e+00> : vector<64xf32>
    %97 = vector.multi_reduction <add>, %96, %cst_43 [1] : vector<64x128xf32> to vector<64xf32>
    %98 = vector.shape_cast %97 : vector<64xf32> to vector<64x1xf32>
    %cst_44 = arith.constant 1.280000e+02 : f32
    %99 = vector.broadcast %cst_44 : f32 to vector<64x1xf32>
    %100 = arith.divf %98, %99 : vector<64x1xf32>
    %101 = vector.broadcast %93 : vector<64x1xf32> to vector<64x128xf32>
    %102 = arith.subf %85, %101 : vector<64x128xf32>
    %cst_45 = arith.constant 9.99999974E-6 : f32
    %103 = vector.broadcast %cst_45 : f32 to vector<64x1xf32>
    %104 = arith.addf %100, %103 : vector<64x1xf32>
    %105 = math.rsqrt %104 : vector<64x1xf32>
    %106 = vector.broadcast %105 : vector<64x1xf32> to vector<64x128xf32>
    %107 = arith.mulf %102, %106 : vector<64x128xf32>
    %108 = vector.broadcast %87 : vector<1x128xf32> to vector<64x128xf32>
    %109 = arith.mulf %107, %108 : vector<64x128xf32>
    %110 = vector.broadcast %89 : vector<1x128xf32> to vector<64x128xf32>
    %111 = arith.addf %109, %110 : vector<64x128xf32>
    %c0_46 = arith.constant 0 : index
    %c0_47 = arith.constant 0 : index
    %c0_48 = arith.constant 0 : index
    %112 = vector.load %arg9[%c0_46, %c0_47, %c0_48] : memref<1x128x512xf32, #tpu.memory_space<vmem>>, vector<1x128x512xf32>
    %113 = vector.shape_cast %112 : vector<1x128x512xf32> to vector<128x512xf32>
    %cst_49 = arith.constant dense<0.000000e+00> : vector<64x512xf32>
    %114 = tpu.matmul %111, %113, %cst_49 {dimension_numbers = #tpu.dot_dimension_numbers<[1], [0], [0], [1], [0, 0, 1, 1], [], []>} : vector<64x128xf32>, vector<128x512xf32>, vector<64x512xf32> -> vector<64x512xf32>
    %c0_50 = arith.constant 0 : index
    %c0_51 = arith.constant 0 : index
    %c0_52 = arith.constant 0 : index
    %115 = vector.load %arg10[%c0_50, %c0_51, %c0_52] : memref<1x1x512xf32, #tpu.memory_space<vmem>>, vector<1x1x512xf32>
    %116 = vector.shape_cast %115 : vector<1x1x512xf32> to vector<1x512xf32>
    %117 = vector.broadcast %116 : vector<1x512xf32> to vector<64x512xf32>
    %118 = arith.addf %114, %117 : vector<64x512xf32>
    %cst_53 = arith.constant 5.000000e-01 : f32
    %119 = vector.broadcast %cst_53 : f32 to vector<64x512xf32>
    %120 = arith.mulf %119, %118 : vector<64x512xf32>
    %cst_54 = arith.constant 0.707106769 : f32
    %121 = vector.broadcast %cst_54 : f32 to vector<64x512xf32>
    %122 = arith.mulf %118, %121 : vector<64x512xf32>
    %123 = math.absf %122 : vector<64x512xf32>
    %cst_55 = arith.constant 0.327591091 : f32
    %124 = vector.broadcast %cst_55 : f32 to vector<64x512xf32>
    %125 = arith.mulf %124, %123 : vector<64x512xf32>
    %cst_56 = arith.constant 1.000000e+00 : f32
    %126 = vector.broadcast %cst_56 : f32 to vector<64x512xf32>
    %127 = arith.addf %126, %125 : vector<64x512xf32>
    %cst_57 = arith.constant 1.000000e+00 : f32
    %128 = vector.broadcast %cst_57 : f32 to vector<64x512xf32>
    %129 = arith.divf %128, %127 : vector<64x512xf32>
    %cst_58 = arith.constant 1.06140542 : f32
    %130 = vector.broadcast %cst_58 : f32 to vector<64x512xf32>
    %131 = arith.mulf %129, %130 : vector<64x512xf32>
    %cst_59 = arith.constant -1.45315206 : f32
    %132 = vector.broadcast %cst_59 : f32 to vector<64x512xf32>
    %133 = arith.addf %132, %131 : vector<64x512xf32>
    %134 = arith.mulf %129, %133 : vector<64x512xf32>
    %cst_60 = arith.constant 1.42141378 : f32
    %135 = vector.broadcast %cst_60 : f32 to vector<64x512xf32>
    %136 = arith.addf %135, %134 : vector<64x512xf32>
    %137 = arith.mulf %129, %136 : vector<64x512xf32>
    %cst_61 = arith.constant -0.284496725 : f32
    %138 = vector.broadcast %cst_61 : f32 to vector<64x512xf32>
    %139 = arith.addf %138, %137 : vector<64x512xf32>
    %140 = arith.mulf %129, %139 : vector<64x512xf32>
    %cst_62 = arith.constant 0.254829586 : f32
    %141 = vector.broadcast %cst_62 : f32 to vector<64x512xf32>
    %142 = arith.addf %141, %140 : vector<64x512xf32>
    %143 = arith.mulf %129, %142 : vector<64x512xf32>
    %cst_63 = arith.constant 0.000000e+00 : f32
    %144 = vector.broadcast %cst_63 : f32 to vector<64x512xf32>
    %145 = arith.subf %144, %123 : vector<64x512xf32>
    %146 = arith.mulf %145, %123 : vector<64x512xf32>
    %147 = math.exp %146 : vector<64x512xf32>
    %148 = arith.mulf %143, %147 : vector<64x512xf32>
    %cst_64 = arith.constant 1.000000e+00 : f32
    %149 = vector.broadcast %cst_64 : f32 to vector<64x512xf32>
    %150 = arith.subf %149, %148 : vector<64x512xf32>
    %cst_65 = arith.constant 0.000000e+00 : f32
    %151 = vector.broadcast %cst_65 : f32 to vector<64x512xf32>
    %152 = arith.cmpf oge, %122, %151 : vector<64x512xf32>
    %cst_66 = arith.constant 0.000000e+00 : f32
    %153 = vector.broadcast %cst_66 : f32 to vector<64x512xf32>
    %154 = arith.subf %153, %150 : vector<64x512xf32>
    %155 = arith.select %152, %150, %154 : vector<64x512xi1>, vector<64x512xf32>
    %cst_67 = arith.constant 1.000000e+00 : f32
    %156 = vector.broadcast %cst_67 : f32 to vector<64x512xf32>
    %157 = arith.addf %156, %155 : vector<64x512xf32>
    %158 = arith.mulf %120, %157 : vector<64x512xf32>
    %c0_68 = arith.constant 0 : index
    %c0_69 = arith.constant 0 : index
    %c0_70 = arith.constant 0 : index
    %159 = vector.load %arg11[%c0_68, %c0_69, %c0_70] : memref<1x512x128xf32, #tpu.memory_space<vmem>>, vector<1x512x128xf32>
    %160 = vector.shape_cast %159 : vector<1x512x128xf32> to vector<512x128xf32>
    %cst_71 = arith.constant dense<0.000000e+00> : vector<64x128xf32>
    %161 = tpu.matmul %158, %160, %cst_71 {dimension_numbers = #tpu.dot_dimension_numbers<[1], [0], [0], [1], [0, 0, 1, 1], [], []>} : vector<64x512xf32>, vector<512x128xf32>, vector<64x128xf32> -> vector<64x128xf32>
    %c0_72 = arith.constant 0 : index
    %c0_73 = arith.constant 0 : index
    %c0_74 = arith.constant 0 : index
    %162 = vector.load %arg12[%c0_72, %c0_73, %c0_74] : memref<1x1x128xf32, #tpu.memory_space<vmem>>, vector<1x1x128xf32>
    %163 = vector.shape_cast %162 : vector<1x1x128xf32> to vector<1x128xf32>
    %164 = vector.broadcast %163 : vector<1x128xf32> to vector<64x128xf32>
    %165 = arith.addf %161, %164 : vector<64x128xf32>
    %166 = arith.addf %111, %165 : vector<64x128xf32>
    %c0_75 = arith.constant 0 : index
    %c0_76 = arith.constant 0 : index
    %c0_77 = arith.constant 0 : index
    %167 = vector.load %arg13[%c0_75, %c0_76, %c0_77] : memref<1x1x128xf32, #tpu.memory_space<vmem>>, vector<1x1x128xf32>
    %168 = vector.shape_cast %167 : vector<1x1x128xf32> to vector<1x128xf32>
    %c0_78 = arith.constant 0 : index
    %c0_79 = arith.constant 0 : index
    %c0_80 = arith.constant 0 : index
    %169 = vector.load %arg14[%c0_78, %c0_79, %c0_80] : memref<1x1x128xf32, #tpu.memory_space<vmem>>, vector<1x1x128xf32>
    %170 = vector.shape_cast %169 : vector<1x1x128xf32> to vector<1x128xf32>
    %cst_81 = arith.constant dense<0.000000e+00> : vector<64xf32>
    %171 = vector.multi_reduction <add>, %166, %cst_81 [1] : vector<64x128xf32> to vector<64xf32>
    %172 = vector.shape_cast %171 : vector<64xf32> to vector<64x1xf32>
    %cst_82 = arith.constant 1.280000e+02 : f32
    %173 = vector.broadcast %cst_82 : f32 to vector<64x1xf32>
    %174 = arith.divf %172, %173 : vector<64x1xf32>
    %175 = vector.broadcast %174 : vector<64x1xf32> to vector<64x128xf32>
    %176 = arith.subf %166, %175 : vector<64x128xf32>
    %177 = arith.mulf %176, %176 : vector<64x128xf32>
    %cst_83 = arith.constant dense<0.000000e+00> : vector<64xf32>
    %178 = vector.multi_reduction <add>, %177, %cst_83 [1] : vector<64x128xf32> to vector<64xf32>
    %179 = vector.shape_cast %178 : vector<64xf32> to vector<64x1xf32>
    %cst_84 = arith.constant 1.280000e+02 : f32
    %180 = vector.broadcast %cst_84 : f32 to vector<64x1xf32>
    %181 = arith.divf %179, %180 : vector<64x1xf32>
    %182 = vector.broadcast %174 : vector<64x1xf32> to vector<64x128xf32>
    %183 = arith.subf %166, %182 : vector<64x128xf32>
    %cst_85 = arith.constant 9.99999974E-6 : f32
    %184 = vector.broadcast %cst_85 : f32 to vector<64x1xf32>
    %185 = arith.addf %181, %184 : vector<64x1xf32>
    %186 = math.rsqrt %185 : vector<64x1xf32>
    %187 = vector.broadcast %186 : vector<64x1xf32> to vector<64x128xf32>
    %188 = arith.mulf %183, %187 : vector<64x128xf32>
    %189 = vector.broadcast %168 : vector<1x128xf32> to vector<64x128xf32>
    %190 = arith.mulf %188, %189 : vector<64x128xf32>
    %191 = vector.broadcast %170 : vector<1x128xf32> to vector<64x128xf32>
    %192 = arith.addf %190, %191 : vector<64x128xf32>
    %c0_86 = arith.constant 0 : index
    %c0_87 = arith.constant 0 : index
    %193 = vector.load %arg16[%c0_86, %c0_87] : memref<64x128xf32, #tpu.memory_space<vmem>>, vector<64x128xf32>
    tpu.vector_store %arg16[%c0_86, %c0_87], %192 {strides = array<i32>} : memref<64x128xf32, #tpu.memory_space<vmem>>, vector<64x128xf32>,
    %c0_88 = arith.constant 0 : index
    %c0_89 = arith.constant 0 : index
    %194 = vector.load %arg15[%c0_88, %c0_89] : memref<64x128xf32, #tpu.memory_space<vmem>>, vector<64x128xf32>
    %c1_i32 = arith.constant 1 : i32
    %195 = arith.addi %arg0, %c1_i32 : i32
    %196 = arith.index_cast %195 : i32 to index
    %197 = memref.load %arg1[%196] : memref<13xf32, #tpu.memory_space<smem>>
    %198 = vector.broadcast %197 : f32 to vector<64x128xf32>
    %199 = arith.mulf %198, %192 : vector<64x128xf32>
    %200 = arith.addf %194, %199 : vector<64x128xf32>
    %c0_90 = arith.constant 0 : index
    %c0_91 = arith.constant 0 : index
    %201 = vector.load %arg15[%c0_90, %c0_91] : memref<64x128xf32, #tpu.memory_space<vmem>>, vector<64x128xf32>
    tpu.vector_store %arg15[%c0_90, %c0_91], %200 {strides = array<i32>} : memref<64x128xf32, #tpu.memory_space<vmem>>, vector<64x128xf32>,
    return
  }
  func.func @transform_0(%arg0: i32) -> i32 {
    %c0_i32 = arith.constant 0 : i32
    %c0_i32_0 = arith.constant 0 : i32
    return %c0_i32 : i32
  }
  func.func @transform_1(%arg0: i32) -> (i32, i32) {
    %c0_i32 = arith.constant 0 : i32
    %c0_i32_0 = arith.constant 0 : i32
    %c0_i32_1 = arith.constant 0 : i32
    return %c0_i32, %c0_i32_0 : i32, i32
  }
  func.func @transform_2(%arg0: i32) -> (i32, i32, i32) {
    %c0_i32 = arith.constant 0 : i32
    %c0_i32_0 = arith.constant 0 : i32
    %c0_i32_1 = arith.constant 0 : i32
    return %arg0, %c0_i32, %c0_i32_0 : i32, i32, i32
  }
  func.func @transform_3(%arg0: i32) -> (i32, i32, i32) {
    %c0_i32 = arith.constant 0 : i32
    %c0_i32_0 = arith.constant 0 : i32
    %c0_i32_1 = arith.constant 0 : i32
    return %arg0, %c0_i32, %c0_i32_0 : i32, i32, i32
  }
  func.func @transform_4(%arg0: i32) -> (i32, i32, i32) {
    %c0_i32 = arith.constant 0 : i32
    %c0_i32_0 = arith.constant 0 : i32
    %c0_i32_1 = arith.constant 0 : i32
    return %arg0, %c0_i32, %c0_i32_0 : i32, i32, i32
  }
  func.func @transform_5(%arg0: i32) -> (i32, i32, i32) {
    %c0_i32 = arith.constant 0 : i32
    %c0_i32_0 = arith.constant 0 : i32
    %c0_i32_1 = arith.constant 0 : i32
    return %arg0, %c0_i32, %c0_i32_0 : i32, i32, i32
  }
  func.func @transform_6(%arg0: i32) -> (i32, i32, i32) {
    %c0_i32 = arith.constant 0 : i32
    %c0_i32_0 = arith.constant 0 : i32
    %c0_i32_1 = arith.constant 0 : i32
    return %arg0, %c0_i32, %c0_i32_0 : i32, i32, i32
  }
  func.func @transform_7(%arg0: i32) -> (i32, i32, i32) {
    %c0_i32 = arith.constant 0 : i32
    %c0_i32_0 = arith.constant 0 : i32
    %c0_i32_1 = arith.constant 0 : i32
    return %arg0, %c0_i32, %c0_i32_0 : i32, i32, i32
  }
  func.func @transform_8(%arg0: i32) -> (i32, i32, i32) {
    %c0_i32 = arith.constant 0 : i32
    %c0_i32_0 = arith.constant 0 : i32
    %c0_i32_1 = arith.constant 0 : i32
    return %arg0, %c0_i32, %c0_i32_0 : i32, i32, i32
  }
  func.func @transform_9(%arg0: i32) -> (i32, i32, i32) {
    %c0_i32 = arith.constant 0 : i32
    %c0_i32_0 = arith.constant 0 : i32
    %c0_i32_1 = arith.constant 0 : i32
    return %arg0, %c0_i32, %c0_i32_0 : i32, i32, i32
  }
  func.func @transform_10(%arg0: i32) -> (i32, i32, i32) {
    %c0_i32 = arith.constant 0 : i32
    %c0_i32_0 = arith.constant 0 : i32
    %c0_i32_1 = arith.constant 0 : i32
    return %arg0, %c0_i32, %c0_i32_0 : i32, i32, i32
  }
  func.func @transform_11(%arg0: i32) -> (i32, i32, i32) {
    %c0_i32 = arith.constant 0 : i32
    %c0_i32_0 = arith.constant 0 : i32
    %c0_i32_1 = arith.constant 0 : i32
    return %arg0, %c0_i32, %c0_i32_0 : i32, i32, i32
  }
  func.func @transform_12(%arg0: i32) -> (i32, i32, i32) {
    %c0_i32 = arith.constant 0 : i32
    %c0_i32_0 = arith.constant 0 : i32
    %c0_i32_1 = arith.constant 0 : i32
    return %arg0, %c0_i32, %c0_i32_0 : i32, i32, i32
  }
  func.func @transform_13(%arg0: i32) -> (i32, i32, i32) {
    %c0_i32 = arith.constant 0 : i32
    %c0_i32_0 = arith.constant 0 : i32
    %c0_i32_1 = arith.constant 0 : i32
    return %arg0, %c0_i32, %c0_i32_0 : i32, i32, i32
  }
  func.func @transform_14(%arg0: i32) -> (i32, i32) {
    %c0_i32 = arith.constant 0 : i32
    %c0_i32_0 = arith.constant 0 : i32
    %c0_i32_1 = arith.constant 0 : i32
    return %c0_i32, %c0_i32_0 : i32, i32
  }
}

module attributes {stable_mosaic.version = 11 : i64} {
  func.func @_conv1_fp_kernel(%arg0: i32, %arg1: memref<64x384xf32, #tpu.memory_space<vmem>>, %arg2: memref<384x128xf32, #tpu.memory_space<vmem>>, %arg3: memref<1x128xf32, #tpu.memory_space<vmem>>, %arg4: memref<1x128xf32, #tpu.memory_space<vmem>>, %arg5: memref<128x128xf32, #tpu.memory_space<vmem>>, %arg6: memref<1x128xf32, #tpu.memory_space<vmem>>, %arg7: memref<64x128xf32, #tpu.memory_space<vmem>>) attributes {dimension_semantics = [#tpu.dimension_semantics<arbitrary>], iteration_bounds = array<i64: 1>, scalar_prefetch = 0 : i64, scratch_operands = 0 : i64, tpu.core_type = #tpu.core_type<tc>, window_params = [{pipeline_mode = #tpu.pipeline_mode<synchronous>, transform_indices = @transform_0, window_bounds = array<i64: 64, 384>}, {pipeline_mode = #tpu.pipeline_mode<synchronous>, transform_indices = @transform_1, window_bounds = array<i64: 384, 128>}, {pipeline_mode = #tpu.pipeline_mode<synchronous>, transform_indices = @transform_2, window_bounds = array<i64: 1, 128>}, {pipeline_mode = #tpu.pipeline_mode<synchronous>, transform_indices = @transform_3, window_bounds = array<i64: 1, 128>}, {pipeline_mode = #tpu.pipeline_mode<synchronous>, transform_indices = @transform_4, window_bounds = array<i64: 128, 128>}, {pipeline_mode = #tpu.pipeline_mode<synchronous>, transform_indices = @transform_5, window_bounds = array<i64: 1, 128>}, {pipeline_mode = #tpu.pipeline_mode<synchronous>, transform_indices = @transform_6, window_bounds = array<i64: 64, 128>}]} {
    %c0 = arith.constant 0 : index
    %c0_0 = arith.constant 0 : index
    %0 = vector.load %arg1[%c0, %c0_0] : memref<64x384xf32, #tpu.memory_space<vmem>>, vector<64x384xf32>
    %c0_1 = arith.constant 0 : index
    %c0_2 = arith.constant 0 : index
    %1 = vector.load %arg2[%c0_1, %c0_2] : memref<384x128xf32, #tpu.memory_space<vmem>>, vector<384x128xf32>
    %cst = arith.constant dense<0.000000e+00> : vector<64x128xf32>
    %2 = tpu.matmul %0, %1, %cst {dimension_numbers = #tpu.dot_dimension_numbers<[1], [0], [0], [1], [0, 0, 1, 1], [], []>} : vector<64x384xf32>, vector<384x128xf32>, vector<64x128xf32> -> vector<64x128xf32>
    %cst_3 = arith.constant 5.000000e-01 : f32
    %3 = vector.broadcast %cst_3 : f32 to vector<64x128xf32>
    %4 = arith.mulf %3, %2 : vector<64x128xf32>
    %cst_4 = arith.constant 0.707106769 : f32
    %5 = vector.broadcast %cst_4 : f32 to vector<64x128xf32>
    %6 = arith.mulf %2, %5 : vector<64x128xf32>
    %7 = math.absf %6 : vector<64x128xf32>
    %cst_5 = arith.constant 0.327591091 : f32
    %8 = vector.broadcast %cst_5 : f32 to vector<64x128xf32>
    %9 = arith.mulf %8, %7 : vector<64x128xf32>
    %cst_6 = arith.constant 1.000000e+00 : f32
    %10 = vector.broadcast %cst_6 : f32 to vector<64x128xf32>
    %11 = arith.addf %10, %9 : vector<64x128xf32>
    %cst_7 = arith.constant 1.000000e+00 : f32
    %12 = vector.broadcast %cst_7 : f32 to vector<64x128xf32>
    %13 = arith.divf %12, %11 : vector<64x128xf32>
    %cst_8 = arith.constant 1.06140542 : f32
    %14 = vector.broadcast %cst_8 : f32 to vector<64x128xf32>
    %15 = arith.mulf %13, %14 : vector<64x128xf32>
    %cst_9 = arith.constant -1.45315206 : f32
    %16 = vector.broadcast %cst_9 : f32 to vector<64x128xf32>
    %17 = arith.addf %16, %15 : vector<64x128xf32>
    %18 = arith.mulf %13, %17 : vector<64x128xf32>
    %cst_10 = arith.constant 1.42141378 : f32
    %19 = vector.broadcast %cst_10 : f32 to vector<64x128xf32>
    %20 = arith.addf %19, %18 : vector<64x128xf32>
    %21 = arith.mulf %13, %20 : vector<64x128xf32>
    %cst_11 = arith.constant -0.284496725 : f32
    %22 = vector.broadcast %cst_11 : f32 to vector<64x128xf32>
    %23 = arith.addf %22, %21 : vector<64x128xf32>
    %24 = arith.mulf %13, %23 : vector<64x128xf32>
    %cst_12 = arith.constant 0.254829586 : f32
    %25 = vector.broadcast %cst_12 : f32 to vector<64x128xf32>
    %26 = arith.addf %25, %24 : vector<64x128xf32>
    %27 = arith.mulf %13, %26 : vector<64x128xf32>
    %cst_13 = arith.constant 0.000000e+00 : f32
    %28 = vector.broadcast %cst_13 : f32 to vector<64x128xf32>
    %29 = arith.subf %28, %7 : vector<64x128xf32>
    %30 = arith.mulf %29, %7 : vector<64x128xf32>
    %31 = math.exp %30 : vector<64x128xf32>
    %32 = arith.mulf %27, %31 : vector<64x128xf32>
    %cst_14 = arith.constant 1.000000e+00 : f32
    %33 = vector.broadcast %cst_14 : f32 to vector<64x128xf32>
    %34 = arith.subf %33, %32 : vector<64x128xf32>
    %cst_15 = arith.constant 0.000000e+00 : f32
    %35 = vector.broadcast %cst_15 : f32 to vector<64x128xf32>
    %36 = arith.cmpf oge, %6, %35 : vector<64x128xf32>
    %cst_16 = arith.constant 0.000000e+00 : f32
    %37 = vector.broadcast %cst_16 : f32 to vector<64x128xf32>
    %38 = arith.subf %37, %34 : vector<64x128xf32>
    %39 = arith.select %36, %34, %38 : vector<64x128xi1>, vector<64x128xf32>
    %cst_17 = arith.constant 1.000000e+00 : f32
    %40 = vector.broadcast %cst_17 : f32 to vector<64x128xf32>
    %41 = arith.addf %40, %39 : vector<64x128xf32>
    %42 = arith.mulf %4, %41 : vector<64x128xf32>
    %c0_18 = arith.constant 0 : index
    %c0_19 = arith.constant 0 : index
    %43 = vector.load %arg3[%c0_18, %c0_19] : memref<1x128xf32, #tpu.memory_space<vmem>>, vector<1x128xf32>
    %c0_20 = arith.constant 0 : index
    %c0_21 = arith.constant 0 : index
    %44 = vector.load %arg4[%c0_20, %c0_21] : memref<1x128xf32, #tpu.memory_space<vmem>>, vector<1x128xf32>
    %cst_22 = arith.constant dense<0.000000e+00> : vector<64xf32>
    %45 = vector.multi_reduction <add>, %42, %cst_22 [1] : vector<64x128xf32> to vector<64xf32>
    %46 = vector.shape_cast %45 : vector<64xf32> to vector<64x1xf32>
    %cst_23 = arith.constant 1.280000e+02 : f32
    %47 = vector.broadcast %cst_23 : f32 to vector<64x1xf32>
    %48 = arith.divf %46, %47 : vector<64x1xf32>
    %49 = vector.broadcast %48 : vector<64x1xf32> to vector<64x128xf32>
    %50 = arith.subf %42, %49 : vector<64x128xf32>
    %51 = arith.mulf %50, %50 : vector<64x128xf32>
    %cst_24 = arith.constant dense<0.000000e+00> : vector<64xf32>
    %52 = vector.multi_reduction <add>, %51, %cst_24 [1] : vector<64x128xf32> to vector<64xf32>
    %53 = vector.shape_cast %52 : vector<64xf32> to vector<64x1xf32>
    %cst_25 = arith.constant 1.280000e+02 : f32
    %54 = vector.broadcast %cst_25 : f32 to vector<64x1xf32>
    %55 = arith.divf %53, %54 : vector<64x1xf32>
    %56 = vector.broadcast %48 : vector<64x1xf32> to vector<64x128xf32>
    %57 = arith.subf %42, %56 : vector<64x128xf32>
    %cst_26 = arith.constant 9.99999974E-6 : f32
    %58 = vector.broadcast %cst_26 : f32 to vector<64x1xf32>
    %59 = arith.addf %55, %58 : vector<64x1xf32>
    %60 = math.rsqrt %59 : vector<64x1xf32>
    %61 = vector.broadcast %60 : vector<64x1xf32> to vector<64x128xf32>
    %62 = arith.mulf %57, %61 : vector<64x128xf32>
    %63 = vector.broadcast %43 : vector<1x128xf32> to vector<64x128xf32>
    %64 = arith.mulf %62, %63 : vector<64x128xf32>
    %65 = vector.broadcast %44 : vector<1x128xf32> to vector<64x128xf32>
    %66 = arith.addf %64, %65 : vector<64x128xf32>
    %c0_27 = arith.constant 0 : index
    %c0_28 = arith.constant 0 : index
    %67 = vector.load %arg5[%c0_27, %c0_28] : memref<128x128xf32, #tpu.memory_space<vmem>>, vector<128x128xf32>
    %cst_29 = arith.constant dense<0.000000e+00> : vector<64x128xf32>
    %68 = tpu.matmul %66, %67, %cst_29 {dimension_numbers = #tpu.dot_dimension_numbers<[1], [0], [0], [1], [0, 0, 1, 1], [], []>} : vector<64x128xf32>, vector<128x128xf32>, vector<64x128xf32> -> vector<64x128xf32>
    %c0_30 = arith.constant 0 : index
    %c0_31 = arith.constant 0 : index
    %69 = vector.load %arg6[%c0_30, %c0_31] : memref<1x128xf32, #tpu.memory_space<vmem>>, vector<1x128xf32>
    %70 = vector.broadcast %69 : vector<1x128xf32> to vector<64x128xf32>
    %71 = arith.addf %68, %70 : vector<64x128xf32>
    %c0_32 = arith.constant 0 : index
    %c0_33 = arith.constant 0 : index
    %72 = vector.load %arg7[%c0_32, %c0_33] : memref<64x128xf32, #tpu.memory_space<vmem>>, vector<64x128xf32>
    tpu.vector_store %arg7[%c0_32, %c0_33], %71 {strides = array<i32>} : memref<64x128xf32, #tpu.memory_space<vmem>>, vector<64x128xf32>,
    return
  }
  func.func @transform_0(%arg0: i32) -> (i32, i32) {
    %c0_i32 = arith.constant 0 : i32
    %c0_i32_0 = arith.constant 0 : i32
    %c0_i32_1 = arith.constant 0 : i32
    return %c0_i32, %c0_i32_0 : i32, i32
  }
  func.func @transform_1(%arg0: i32) -> (i32, i32) {
    %c0_i32 = arith.constant 0 : i32
    %c0_i32_0 = arith.constant 0 : i32
    %c0_i32_1 = arith.constant 0 : i32
    return %c0_i32, %c0_i32_0 : i32, i32
  }
  func.func @transform_2(%arg0: i32) -> (i32, i32) {
    %c0_i32 = arith.constant 0 : i32
    %c0_i32_0 = arith.constant 0 : i32
    %c0_i32_1 = arith.constant 0 : i32
    return %c0_i32, %c0_i32_0 : i32, i32
  }
  func.func @transform_3(%arg0: i32) -> (i32, i32) {
    %c0_i32 = arith.constant 0 : i32
    %c0_i32_0 = arith.constant 0 : i32
    %c0_i32_1 = arith.constant 0 : i32
    return %c0_i32, %c0_i32_0 : i32, i32
  }
  func.func @transform_4(%arg0: i32) -> (i32, i32) {
    %c0_i32 = arith.constant 0 : i32
    %c0_i32_0 = arith.constant 0 : i32
    %c0_i32_1 = arith.constant 0 : i32
    return %c0_i32, %c0_i32_0 : i32, i32
  }
  func.func @transform_5(%arg0: i32) -> (i32, i32) {
    %c0_i32 = arith.constant 0 : i32
    %c0_i32_0 = arith.constant 0 : i32
    %c0_i32_1 = arith.constant 0 : i32
    return %c0_i32, %c0_i32_0 : i32, i32
  }
  func.func @transform_6(%arg0: i32) -> (i32, i32) {
    %c0_i32 = arith.constant 0 : i32
    %c0_i32_0 = arith.constant 0 : i32
    %c0_i32_1 = arith.constant 0 : i32
    return %c0_i32, %c0_i32_0 : i32, i32
  }
}

</mosaic_0001>

<bundles_post_ra>
// kernel: _lambda_.6
= control target key start
LH: loop header
LB: loop body
LE: loop exit
PB: predicated region body
PF: predicated region fallthrough
CT: control target
= control target key end

     0   :  { %11 = vsyncpa [#allocation3], 0  ;;  %s968_s21 = smov [#allocation2]   ;;  %s1358_s0 = inlined_call_operand.vmem [shape: f32[64,128], index: 0, kind: input, shape index: {}]   ;;  %s1359_s1 = inlined_call_operand.vmem [shape: f32[64,512], index: 1, kind: input, shape index: {}]   ;;  %s1360_s2 = inlined_call_operand.hbm [shape: f32[512,128], index: 2, kind: input, shape index: {}]   ;;  %s1361_s3 = inlined_call_operand.vmem [shape: f32[1,128], index: 3, kind: input, shape index: {}, may-alias: {3,5}]   ;;  %s1362_s4 = inlined_call_operand.vmem [shape: f32[1,128], index: 4, kind: input, shape index: {}]   ;;  %s1363_s5 = inlined_call_operand.vmem [shape: f32[1,128], index: 5, kind: input, shape index: {}, may-alias: {3,5}]   ;;  %s1364_s6 = inlined_call_operand.vmem [shape: f32[64,128], index: 6, kind: output, shape index: {}]  }
   0x1   :  { %s21_s22 = sshll.u32 %s968_s21, 4  ;;  %s944_s25 = scalar_lea.hbm %s1360_s2, 8192  ;;  %s22_s22 = int_to_ptr.vmem [resolvable:$true] %s21_s22 }
   0x2   :  { %p945_p0 = scmp.ne.s32.totalorder %s1360_s2, %s944_s25  ;;  %p948_p1 = scmp.lt.u32.totalorder %s944_s25, %s1360_s2 }
   0x4   :  { %p950_p2 = pnand %p948_p1, %p945_p0 }
   0x6   :  { %953 = shalt.err (!%p950_p2)
}
   0x7   :  { %s954_s30 = scalar_lea.vmem %s22_s22, 8192  ;;  %p959_p4 = scmp.lt.s32.totalorder %s22_s22, %s22_s22 }
   0x8   :  { %p955_p3 = scmp.ne.s32.totalorder %s22_s22, %s954_s30  ;;  %p960_p5 = scmp.lt.s32.totalorder %s954_s30, %s954_s30 }
   0xa   :  { %p961_p6 = por %p960_p5, %p959_p4 }
   0xc   :  { %p962_p7 = pnand %p961_p6, %p955_p3 }
   0xe   :  { %965 = shalt.err (!%p962_p7)
}
   0xf   :  { %s969_s7 = smov 128   ;;  %s970_s8 = smov 8  }
  0x10   :  { %27 = dma.hbm_to_vmem [thread:$0]  %s1360_s2, 8192, %s22_s22, [#allocation3], %s969_s7, %s969_s7, %s970_s8  }
  0x11   :  { %966 = dma.done.wait [#allocation3], 8192  }
  0x12   :  { %967 = vsyncadd [#allocation3], 4294959104  ;;  %v85_v0 = vld [vmem:[#allocation2 + $0x80] sm:$0xff]  ;;  %v86_v1 = vld [vmem:[#allocation2 + $0x88] sm:$0xff] }
  0x13   :  { %v69_v2 = vld [vmem:[#allocation2] sm:$0xff]  ;;  %v829_v3 = vpack.c.bf16 %v86_v1, %v85_v0  ;;  %v70_v4 = vld [vmem:[#allocation2 + $0x8] sm:$0xff]  ;;  %v87_v11 = vld [vmem:[#allocation2 + $0x90] sm:$0xff] }
  0x14   :  { %v117_v5 = vld [vmem:[#allocation2 + $0x180] sm:$0xff]  ;;  %v118_v6 = vld [vmem:[#allocation2 + $0x188] sm:$0xff]  ;;  %v831_v7 = vpack.c.bf16 %v70_v4, %v69_v2  ;;  %v88_v13 = vld [vmem:[#allocation2 + $0x98] sm:$0xff] }
  0x15   :  { %v861_v8 = vpack.c.bf16 %v118_v6, %v117_v5  ;;  %v101_v9 = vld [vmem:[#allocation2 + $0x100] sm:$0xff]  ;;  %v102_v10 = vld [vmem:[#allocation2 + $0x108] sm:$0xff]  ;;  %830 = vmatprep.subr.bf16.mxu0 %v829_v3  ;;  %v71_v14 = vld [vmem:[#allocation2 + $0x10] sm:$0xff]  ;;  %v833_v16 = vpack.c.bf16 %v88_v13, %v87_v11 }
  0x16   :  { %v863_v12 = vpack.c.bf16 %v102_v10, %v101_v9  ;;  %v72_v15 = vld [vmem:[#allocation2 + $0x18] sm:$0xff]  ;;  %832 = vmatpush3.bf16.msra.mxu0 %v831_v7  ;;  %v119_v18 = vld [vmem:[#allocation2 + $0x190] sm:$0xff]  ;;  %v89_v23 = vld [vmem:[#allocation2 + $0xa0] sm:$0xff] }
  0x17   :  { %862 = vmatprep.subr.bf16.mxu1 %v861_v8  ;;  %v835_v17 = vpack.c.bf16 %v72_v15, %v71_v14  ;;  %v120_v19 = vld [vmem:[#allocation2 + $0x198] sm:$0xff]  ;;  %v103_v20 = vld [vmem:[#allocation2 + $0x110] sm:$0xff]  ;;  %v90_v24 = vld [vmem:[#allocation2 + $0xa8] sm:$0xff]  ;;  %834 = vmatprep.subr.bf16.mxu0 %v833_v16 }
  0x18   :  { %864 = vmatpush3.bf16.msra.mxu1 %v863_v12  ;;  %v865_v21 = vpack.c.bf16 %v120_v19, %v119_v18  ;;  %v104_v22 = vld [vmem:[#allocation2 + $0x118] sm:$0xff]  ;;  %v837_v26 = vpack.c.bf16 %v90_v24, %v89_v23  ;;  %v73_v27 = vld [vmem:[#allocation2 + $0x20] sm:$0xff]  ;;  %v74_v28 = vld [vmem:[#allocation2 + $0x28] sm:$0xff] }
  0x19   :  { %v867_v25 = vpack.c.bf16 %v104_v22, %v103_v20  ;;  %v121_v29 = vld [vmem:[#allocation2 + $0x1a0] sm:$0xff]  ;;  %v122_v30 = vld [vmem:[#allocation2 + $0x1a8] sm:$0xff]  ;;  %v839_v33 = vpack.c.bf16 %v74_v28, %v73_v27  ;;  %v91_v35 = vld [vmem:[#allocation2 + $0xb0] sm:$0xff] }
  0x1a   :  { %866 = vmatprep.subr.bf16.mxu1 %v865_v21  ;;  %v105_v31 = vld [vmem:[#allocation2 + $0x120] sm:$0xff]  ;;  %v106_v32 = vld [vmem:[#allocation2 + $0x128] sm:$0xff]  ;;  %836 = vmatpush3.bf16.msra.mxu0 %v835_v17  ;;  %v869_v34 = vpack.c.bf16 %v122_v30, %v121_v29  ;;  %v92_v36 = vld [vmem:[#allocation2 + $0xb8] sm:$0xff] }
  0x1b   :  { %v75_v37 = vld [vmem:[#allocation2 + $0x30] sm:$0xff]  ;;  %838 = vmatprep.subr.bf16.mxu0 %v837_v26  ;;  %v871_v38 = vpack.c.bf16 %v106_v32, %v105_v31  ;;  %v841_v39 = vpack.c.bf16 %v92_v36, %v91_v35  ;;  %v76_v40 = vld [vmem:[#allocation2 + $0x38] sm:$0xff]  ;;  %v93_v46 = vld [vmem:[#allocation2 + $0xc0] sm:$0xff] }
  0x1c   :  { %868 = vmatpush3.bf16.msra.mxu1 %v867_v25  ;;  %v123_v41 = vld [vmem:[#allocation2 + $0x1b0] sm:$0xff]  ;;  %v124_v42 = vld [vmem:[#allocation2 + $0x1b8] sm:$0xff]  ;;  %v94_v47 = vld [vmem:[#allocation2 + $0xc8] sm:$0xff]  ;;  %v843_v48 = vpack.c.bf16 %v76_v40, %v75_v37 }
  0x1d   :  { %870 = vmatprep.subr.bf16.mxu1 %v869_v34  ;;  %v873_v43 = vpack.c.bf16 %v124_v42, %v123_v41  ;;  %v107_v44 = vld [vmem:[#allocation2 + $0x130] sm:$0xff]  ;;  %v108_v45 = vld [vmem:[#allocation2 + $0x138] sm:$0xff]  ;;  %v125_v49 = vld [vmem:[#allocation2 + $0x1c0] sm:$0xff]  ;;  %v845_v52 = vpack.c.bf16 %v94_v47, %v93_v46 }
  0x1e   :  { %840 = vmatpush3.bf16.msra.mxu0 %v839_v33  ;;  %v126_v50 = vld [vmem:[#allocation2 + $0x1c8] sm:$0xff]  ;;  %v875_v51 = vpack.c.bf16 %v108_v45, %v107_v44  ;;  %v77_v53 = vld [vmem:[#allocation2 + $0x40] sm:$0xff]  ;;  %v95_v58 = vld [vmem:[#allocation2 + $0xd0] sm:$0xff] }
  0x1f   :  { %842 = vmatprep.subr.bf16.mxu0 %v841_v39  ;;  %v78_v54 = vld [vmem:[#allocation2 + $0x48] sm:$0xff]  ;;  %v109_v55 = vld [vmem:[#allocation2 + $0x140] sm:$0xff]  ;;  %v877_v56 = vpack.c.bf16 %v126_v50, %v125_v49  ;;  %v96_v59 = vld [vmem:[#allocation2 + $0xd8] sm:$0xff] }
  0x20   :  { %872 = vmatpush3.bf16.msra.mxu1 %v871_v38  ;;  %v110_v57 = vld [vmem:[#allocation2 + $0x148] sm:$0xff]  ;;  %v127_v60 = vld [vmem:[#allocation2 + $0x1d0] sm:$0xff]  ;;  %v128_v61 = vld [vmem:[#allocation2 + $0x1d8] sm:$0xff]  ;;  %v847_v62 = vpack.c.bf16 %v78_v54, %v77_v53  ;;  %v849_v0 = vpack.c.bf16 %v96_v59, %v95_v58 }
  0x21   :  { %874 = vmatprep.subr.bf16.mxu1 %v873_v43  ;;  %v879_v63 = vpack.c.bf16 %v110_v57, %v109_v55  ;;  %v79_v1 = vld [vmem:[#allocation2 + $0x50] sm:$0xff]  ;;  %v80_v2 = vld [vmem:[#allocation2 + $0x58] sm:$0xff]  ;;  %v881_v4 = vpack.c.bf16 %v128_v61, %v127_v60  ;;  %v97_v6 = vld [vmem:[#allocation2 + $0xe0] sm:$0xff] }
  0x22   :  { %844 = vmatpush3.bf16.msra.mxu0 %v843_v48  ;;  %v111_v3 = vld [vmem:[#allocation2 + $0x150] sm:$0xff]  ;;  %v112_v5 = vld [vmem:[#allocation2 + $0x158] sm:$0xff]  ;;  %v98_v7 = vld [vmem:[#allocation2 + $0xe8] sm:$0xff]  ;;  %v851_v10 = vpack.c.bf16 %v80_v2, %v79_v1 }
  0x23   :  { %846 = vmatprep.subr.bf16.mxu0 %v845_v52  ;;  %v129_v8 = vld [vmem:[#allocation2 + $0x1e0] sm:$0xff]  ;;  %v130_v9 = vld [vmem:[#allocation2 + $0x1e8] sm:$0xff]  ;;  %v883_v13 = vpack.c.bf16 %v112_v5, %v111_v3  ;;  %v853_v14 = vpack.c.bf16 %v98_v7, %v97_v6  ;;  %v99_v19 = vld [vmem:[#allocation2 + $0xf0] sm:$0xff] }
  0x24   :  { %876 = vmatpush3.bf16.msra.mxu1 %v875_v51  ;;  %v81_v11 = vld [vmem:[#allocation2 + $0x60] sm:$0xff]  ;;  %v82_v12 = vld [vmem:[#allocation2 + $0x68] sm:$0xff]  ;;  %v885_v18 = vpack.c.bf16 %v130_v9, %v129_v8  ;;  %v100_v20 = vld [vmem:[#allocation2 + $0xf8] sm:$0xff] }
  0x25   :  { %878 = vmatprep.subr.bf16.mxu1 %v877_v56  ;;  %v113_v15 = vld [vmem:[#allocation2 + $0x160] sm:$0xff]  ;;  %v114_v16 = vld [vmem:[#allocation2 + $0x168] sm:$0xff]  ;;  %v40_v21 = vld [vmem:[%s1359_s1 + $0x18] sm:$0xff]  ;;  %v855_v24 = vpack.c.bf16 %v82_v12, %v81_v11  ;;  %v857_v26 = vpack.c.bf16 %v100_v20, %v99_v19 }
  0x26   :  { %848 = vmatpush3.bf16.msra.mxu0 %v847_v62  ;;  %v38_v17 = vld [vmem:[%s1359_s1 + $0x8] sm:$0xff]  ;;  %v131_v22 = vld [vmem:[#allocation2 + $0x1f0] sm:$0xff]  ;;  %v132_v23 = vld [vmem:[#allocation2 + $0x1f8] sm:$0xff]  ;;  %309 = vmatprep.mubr.f32.mxu1 %v40_v21  ;;  %v887_v25 = vpack.c.bf16 %v114_v16, %v113_v15 }
  0x27   :  { %850 = vmatprep.subr.bf16.mxu0 %v849_v0  ;;  %204 = vmatprep.mubr.f32.mxu0 %v38_v17  ;;  %v83_v27 = vld [vmem:[#allocation2 + $0x70] sm:$0xff]  ;;  %v84_v28 = vld [vmem:[#allocation2 + $0x78] sm:$0xff]  ;;  %v889_v29 = vpack.c.bf16 %v132_v23, %v131_v22  ;;  %v37_v34 = vld [vmem:[%s1359_s1] sm:$0xff] }
  0x28   :  { %880 = vmatpush3.bf16.msra.mxu1 %v879_v63  ;;  %v115_v30 = vld [vmem:[#allocation2 + $0x170] sm:$0xff]  ;;  %v116_v31 = vld [vmem:[#allocation2 + $0x178] sm:$0xff]  ;;  %v859_v32 = vpack.c.bf16 %v84_v28, %v83_v27  ;;  %v42_v36 = vld [vmem:[%s1359_s1 + $0x28] sm:$0xff] }
  0x29   :  { %882 = vmatprep.subr.bf16.mxu1 %v881_v4  ;;  %v891_v33 = vpack.c.bf16 %v116_v31, %v115_v30  ;;  %v39_v35 = vld [vmem:[%s1359_s1 + $0x10] sm:$0xff]  ;;  %v44_v37 = vld [vmem:[%s1359_s1 + $0x38] sm:$0xff]  ;;  %v41_v38 = vld [vmem:[%s1359_s1 + $0x20] sm:$0xff] }
  0x2a   :  { %852 = vmatpush3.bf16.msra.mxu0 %v851_v10  ;;  %v43_v39 = vld [vmem:[%s1359_s1 + $0x30] sm:$0xff]  ;;  %v46_v40 = vld [vmem:[%s1359_s1 + $0x48] sm:$0xff]  ;;  %v48_v41 = vld [vmem:[%s1359_s1 + $0x58] sm:$0xff] }
  0x2b   :  { %854 = vmatprep.subr.bf16.mxu0 %v853_v14  ;;  %v45_v42 = vld [vmem:[%s1359_s1 + $0x40] sm:$0xff]  ;;  %v47_v43 = vld [vmem:[%s1359_s1 + $0x50] sm:$0xff]  ;;  %v50_v44 = vld [vmem:[%s1359_s1 + $0x68] sm:$0xff] }
  0x2c   :  { %884 = vmatpush3.bf16.msra.mxu1 %v883_v13  ;;  %v52_v45 = vld [vmem:[%s1359_s1 + $0x78] sm:$0xff]  ;;  %v49_v46 = vld [vmem:[%s1359_s1 + $0x60] sm:$0xff]  ;;  %v51_v47 = vld [vmem:[%s1359_s1 + $0x70] sm:$0xff] }
  0x2d   :  { %886 = vmatprep.subr.bf16.mxu1 %v885_v18  ;;  %v54_v48 = vld [vmem:[%s1359_s1 + $0x88] sm:$0xff]  ;;  %v56_v49 = vld [vmem:[%s1359_s1 + $0x98] sm:$0xff]  ;;  %v53_v50 = vld [vmem:[%s1359_s1 + $0x80] sm:$0xff] }
  0x2e   :  { %856 = vmatpush3.bf16.msra.mxu0 %v855_v24  ;;  %v55_v51 = vld [vmem:[%s1359_s1 + $0x90] sm:$0xff]  ;;  %v58_v52 = vld [vmem:[%s1359_s1 + $0xa8] sm:$0xff]  ;;  %v60_v53 = vld [vmem:[%s1359_s1 + $0xb8] sm:$0xff] }
  0x2f   :  { %858 = vmatprep.subr.bf16.mxu0 %v857_v26  ;;  %v57_v54 = vld [vmem:[%s1359_s1 + $0xa0] sm:$0xff]  ;;  %v59_v55 = vld [vmem:[%s1359_s1 + $0xb0] sm:$0xff]  ;;  %v62_v56 = vld [vmem:[%s1359_s1 + $0xc8] sm:$0xff] }
  0x30   :  { %888 = vmatpush3.bf16.msra.mxu1 %v887_v25  ;;  %v64_v57 = vld [vmem:[%s1359_s1 + $0xd8] sm:$0xff]  ;;  %v61_v58 = vld [vmem:[%s1359_s1 + $0xc0] sm:$0xff]  ;;  %v63_v59 = vld [vmem:[%s1359_s1 + $0xd0] sm:$0xff] }
  0x31   :  { %890 = vmatprep.subr.bf16.mxu1 %v889_v29  ;;  %v66_v60 = vld [vmem:[%s1359_s1 + $0xe8] sm:$0xff]  ;;  %v68_v61 = vld [vmem:[%s1359_s1 + $0xf8] sm:$0xff]  ;;  %v65_v62 = vld [vmem:[%s1359_s1 + $0xe0] sm:$0xff] }
  0x32   :  { %860 = vmatpush3.bf16.msra.mxu0 %v859_v32  ;;  %v67_v63 = vld [vmem:[%s1359_s1 + $0xf0] sm:$0xff]  ;;  %v1117_v1 = vld [vmem:[%s1361_s3] ss:$0 sm:$0xff] }
  0x34   :  { %892 = vmatpush3.bf16.msra.mxu1 %v891_v33 }
  0x35   :  { %205 = vmatmul.mubr.f32.vlgmr.msra.gmra.mrb[0].mxu0 %v37_v34 }
  0x36   :  { %209 = vmatprep.mubr.f32.mxu0 %v42_v36 }
  0x37   :  { %310 = vmatmul.mubr.f32.vlgmr.msra.gmra.mrb[0].mxu1 %v39_v35 }
  0x38   :  { %314 = vmatprep.mubr.f32.mxu1 %v44_v37 }
  0x39   :  { %210 = vmatmul.mubr.f32.gmra.mrb[2].mxu0 %v41_v38 }
  0x3a   :  { %214 = vmatprep.mubr.f32.mxu0 %v46_v40 }
  0x3b   :  { %315 = vmatmul.mubr.f32.gmra.mrb[2].mxu1 %v43_v39 }
  0x3c   :  { %319 = vmatprep.mubr.f32.mxu1 %v48_v41 }
  0x3d   :  { %215 = vmatmul.mubr.f32.gmra.mrb[4].mxu0 %v45_v42 }
  0x3e   :  { %219 = vmatprep.mubr.f32.mxu0 %v50_v44 }
  0x3f   :  { %320 = vmatmul.mubr.f32.gmra.mrb[4].mxu1 %v47_v43 }
  0x40   :  { %324 = vmatprep.mubr.f32.mxu1 %v52_v45 }
  0x41   :  { %220 = vmatmul.mubr.f32.gmra.mrb[6].mxu0 %v49_v46 }
  0x42   :  { %224 = vmatprep.mubr.f32.mxu0 %v54_v48 }
  0x43   :  { %325 = vmatmul.mubr.f32.gmra.mrb[6].mxu1 %v51_v47 }
  0x44   :  { %329 = vmatprep.mubr.f32.mxu1 %v56_v49 }
  0x45   :  { %225 = vmatmul.mubr.f32.gmra.mrb[8].mxu0 %v53_v50 }
  0x46   :  { %229 = vmatprep.mubr.f32.mxu0 %v58_v52 }
  0x47   :  { %330 = vmatmul.mubr.f32.gmra.mrb[8].mxu1 %v55_v51 }
  0x48   :  { %334 = vmatprep.mubr.f32.mxu1 %v60_v53 }
  0x49   :  { %230 = vmatmul.mubr.f32.gmra.mrb[10].mxu0 %v57_v54 }
  0x4a   :  { %234 = vmatprep.mubr.f32.mxu0 %v62_v56 }
  0x4b   :  { %335 = vmatmul.mubr.f32.gmra.mrb[10].mxu1 %v59_v55 }
  0x4c   :  { %339 = vmatprep.mubr.f32.mxu1 %v64_v57 }
  0x4d   :  { %235 = vmatmul.mubr.f32.gmra.mrb[12].mxu0 %v61_v58 }
  0x4e   :  { %239 = vmatprep.mubr.f32.mxu0 %v66_v60 }
  0x4f   :  { %340 = vmatmul.mubr.f32.gmra.mrb[12].mxu1 %v63_v59 }
  0x50   :  { %344 = vmatprep.mubr.f32.mxu1 %v68_v61 }
  0x51   :  { %240 = vmatmul.mubr.f32.gmra.mrb[14].mxu0 %v65_v62 }
  0x53   :  { %345 = vmatmul.mubr.f32.gmra.mrb[14].mxu1 %v67_v63 }
 0x108   :  { %v749_v0 = vpop.f32.mrb[0].mxu0 }
 0x109   :  { %v750_v2 = vpop.f32.mrb[1].mxu0 }
 0x10a   :  { %v805_v3 = vpop.f32.mrb[0].mxu1  ;;  %v751_v4 = vadd.f32 %v750_v2, %v749_v0 }
 0x10b   :  { %v806_v5 = vpop.f32.mrb[1].mxu1 }
 0x10c   :  { %v807_v6 = vadd.f32 %v806_v5, %v805_v3  ;;  %v207_v7 = vadd.f32 %v751_v4, %v1117_v1  ;;  %v752_v8 = vpop.f32.mrb[2].mxu0 }
 0x10d   :  { %v753_v9 = vpop.f32.mrb[3].mxu0 }
 0x10e   :  { %v808_v10 = vpop.f32.mrb[2].mxu1  ;;  %v1120_v11 = vadd.f32 %v807_v6, %v207_v7  ;;  %v754_v12 = vadd.f32 %v753_v9, %v752_v8 }
 0x10f   :  { %v809_v13 = vpop.f32.mrb[3].mxu1 }
 0x110   :  { %v810_v14 = vadd.f32 %v809_v13, %v808_v10  ;;  %v1123_v15 = vmul.f32 0.70710677, %v1120_v11  ;;  %v212_v16 = vadd.f32 %v754_v12, %v1117_v1  ;;  %v755_v17 = vpop.f32.mrb[4].mxu0 }
 0x111   :  { %v756_v18 = vpop.f32.mrb[5].mxu0 }
 0x112   :  { %v811_v19 = vpop.f32.mrb[4].mxu1  ;;  %v366_v20 = vand.u32 2147483647, %v1123_v15  ;;  %v1127_v21 = vadd.f32 %v810_v14, %v212_v16  ;;  %v757_v22 = vadd.f32 %v756_v18, %v755_v17  ;;  %vm526_vm0 = vcmp.ge.f32.partialorder %v1123_v15, 0.0 }
 0x113   :  { %v812_v23 = vpop.f32.mrb[5].mxu1 }
 0x114   :  { %v813_v24 = vadd.f32 %v812_v23, %v811_v19  ;;  %v374_v25 = vmul.f32 0.3275911, %v366_v20  ;;  %v1130_v26 = vmul.f32 0.70710677, %v1127_v21  ;;  %v217_v27 = vadd.f32 %v757_v22, %v1117_v1  ;;  %v758_v28 = vpop.f32.mrb[6].mxu0 }
 0x115   :  { %v759_v32 = vpop.f32.mrb[7].mxu0  ;;  %v478_v59 = vsub.f32 0.0, %v366_v20  ;;  %v1162_v19 = vmul.f32 0.5, %v1120_v11 }
 0x116   :  { %v814_v29 = vpop.f32.mrb[6].mxu1  ;;  %v382_v30 = vadd.f32 1.0, %v374_v25  ;;  %v367_v31 = vand.u32 2147483647, %v1130_v26  ;;  %v1134_v34 = vadd.f32 %v813_v24, %v217_v27  ;;  %v760_v35 = vadd.f32 %v759_v32, %v758_v28 }
 0x117   :  { %v815_v33 = vpop.f32.mrb[7].mxu1  ;;  %v486_v13 = vmul.f32 %v478_v59, %v366_v20  ;;  %vm527_vm1 = vcmp.ge.f32.partialorder %v1130_v26, 0.0 }
 0x118   :  { %v816_v36 = vadd.f32 %v815_v33, %v814_v29  ;;  %896 = vrcp.f32 %v382_v30  ;;  %v375_v37 = vmul.f32 0.3275911, %v367_v31  ;;  %v761_v38 = vpop.f32.mrb[8].mxu0  ;;  %v1137_v39 = vmul.f32 0.70710677, %v1134_v34 }
 0x119   :  { %v222_v40 = vadd.f32 %v760_v35, %v1117_v1  ;;  %v762_v41 = vpop.f32.mrb[9].mxu0  ;;  %v479_v4 = vsub.f32 0.0, %v367_v31  ;;  %v1170_v33 = vmul.f32 0.5, %v1127_v21 }
 0x11a   :  { %v817_v42 = vpop.f32.mrb[8].mxu1  ;;  %v383_v43 = vadd.f32 1.0, %v375_v37  ;;  %v763_v44 = vadd.f32 %v762_v41, %v761_v38  ;;  %v368_v46 = vand.u32 2147483647, %v1137_v39  ;;  %v494_v37 = vmul.f32 1.442695, %v486_v13 }
 0x11b   :  { %v818_v45 = vpop.f32.mrb[9].mxu1  ;;  %v1141_v47 = vadd.f32 %v816_v36, %v222_v40  ;;  %v487_v27 = vmul.f32 %v479_v4, %v367_v31  ;;  %v1175_v38 = vmul.f32 0.5, %v1134_v34  ;;  %vm528_vm2 = vcmp.ge.f32.partialorder %v1137_v39, 0.0 }
 0x11c   :  { %v819_v48 = vadd.f32 %v818_v45, %v817_v42  ;;  %v227_v49 = vadd.f32 %v763_v44, %v1117_v1  ;;  %v764_v50 = vpop.f32.mrb[10].mxu0  ;;  %898 = vrcp.f32 %v383_v43  ;;  %v376_v51 = vmul.f32 0.3275911, %v368_v46 }
 0x11d   :  { %v1145_v52 = vmul.f32 0.70710677, %v1141_v47  ;;  %v765_v54 = vpop.f32.mrb[11].mxu0  ;;  %v480_v28 = vsub.f32 0.0, %v368_v46  ;;  %v496_v43 = vmul.f32 1.442695, %v487_v27 }
 0x11e   :  { %v1147_v53 = vadd.f32 %v819_v48, %v227_v49  ;;  %v820_v55 = vpop.f32.mrb[10].mxu1  ;;  %v384_v56 = vadd.f32 1.0, %v376_v51  ;;  %v766_v61 = vadd.f32 %v765_v54, %v764_v50 }
 0x11f   :  { %v369_v57 = vand.u32 2147483647, %v1145_v52  ;;  %v821_v58 = vpop.f32.mrb[11].mxu1  ;;  %v488_v44 = vmul.f32 %v480_v28, %v368_v46  ;;  %vm529_vm3 = vcmp.ge.f32.partialorder %v1145_v52, 0.0 }
 0x120   :  { %v1151_v60 = vmul.f32 0.70710677, %v1147_v53  ;;  %v822_v62 = vadd.f32 %v821_v58, %v820_v55  ;;  %v767_v63 = vpop.f32.mrb[12].mxu0  ;;  %900 = vrcp.f32 %v384_v56  ;;  %v232_v6 = vadd.f32 %v766_v61, %v1117_v1 }
 0x121   :  { %v377_v0 = vmul.f32 0.3275911, %v369_v57  ;;  %v768_v2 = vpop.f32.mrb[13].mxu0  ;;  %v481_v40 = vsub.f32 0.0, %v369_v57 }
 0x122   :  { %v1153_v3 = vpop.eup %896  ;;  %v370_v5 = vand.u32 2147483647, %v1151_v60  ;;  %v769_v7 = vadd.f32 %v768_v2, %v767_v63  ;;  %v823_v8 = vpop.f32.mrb[12].mxu1  ;;  %v1158_v16 = vadd.f32 %v822_v62, %v232_v6  ;;  %v498_v62 = vmul.f32 1.442695, %v488_v44 }
 0x123   :  { %v385_v9 = vadd.f32 1.0, %v377_v0  ;;  %v824_v10 = vpop.f32.mrb[13].mxu1  ;;  %v406_v12 = vmul.f32 1.0614054, %v1153_v3  ;;  %v489_v58 = vmul.f32 %v481_v40, %v369_v57  ;;  %vm530_vm4 = vcmp.ge.f32.partialorder %v1151_v60, 0.0  ;;  %v569_v60 = vld [vmem:[%s1358_s0 + $0x18] sm:$0xff] }
 0x124   :  { %v378_v14 = vmul.f32 0.3275911, %v370_v5  ;;  %v237_v17 = vadd.f32 %v769_v7, %v1117_v1  ;;  %v770_v18 = vpop.f32.mrb[14].mxu0  ;;  %v825_v22 = vadd.f32 %v824_v10, %v823_v8  ;;  %v1165_v30 = vmul.f32 0.70710677, %v1158_v16 }
 0x125   :  { %902 = vrcp.f32 %v385_v9  ;;  %v771_v23 = vpop.f32.mrb[15].mxu0  ;;  %v414_v25 = vadd.f32 -1.4531521, %v406_v12  ;;  %v482_v34 = vsub.f32 0.0, %v370_v5  ;;  %v500_v12 = vmul.f32 1.442695, %v489_v58 }
 0x126   :  { %v826_v24 = vpop.f32.mrb[14].mxu1  ;;  %v386_v29 = vadd.f32 1.0, %v378_v14  ;;  %v1167_v32 = vpop.eup %898  ;;  %v1172_v35 = vadd.f32 %v825_v22, %v237_v17  ;;  %v772_v11 = vadd.f32 %v771_v23, %v770_v18  ;;  %v371_v31 = vand.u32 2147483647, %v1165_v30 }
 0x127   :  { %v827_v20 = vpop.f32.mrb[15].mxu1  ;;  %v422_v21 = vmul.f32 %v1153_v3, %v414_v25  ;;  %v407_v48 = vmul.f32 1.0614054, %v1167_v32  ;;  %v490_v4 = vmul.f32 %v482_v34, %v370_v5  ;;  %vm531_vm5 = vcmp.ge.f32.partialorder %v1165_v30, 0.0 }
 0x128   :  { %v828_v36 = vadd.f32 %v827_v20, %v826_v24  ;;  %904 = vrcp.f32 %v386_v29  ;;  %v1179_v41 = vmul.f32 0.70710677, %v1172_v35  ;;  %v242_v42 = vadd.f32 %v772_v11, %v1117_v1 }
 0x129   :  { %v379_v45 = vmul.f32 0.3275911, %v371_v31  ;;  %v430_v54 = vadd.f32 1.4214138, %v422_v21  ;;  %906 = vpow2.f32 %v494_v37  ;;  %v415_v56 = vadd.f32 -1.4531521, %v407_v48 }
 0x12a   :  { %v1184_v49 = vpop.eup %900  ;;  %v372_v50 = vand.u32 2147483647, %v1179_v41  ;;  %v1187_v51 = vadd.f32 %v828_v36, %v242_v42  ;;  %v483_v59 = vsub.f32 0.0, %v371_v31  ;;  %v502_v24 = vmul.f32 1.442695, %v490_v4 }
 0x12b   :  { %v387_v55 = vadd.f32 1.0, %v379_v45  ;;  %v408_v1 = vmul.f32 1.0614054, %v1184_v49  ;;  %v438_v63 = vmul.f32 %v1153_v3, %v430_v54  ;;  %v423_v0 = vmul.f32 %v1167_v32, %v415_v56 }
 0x12c   :  { %v380_v61 = vmul.f32 0.3275911, %v372_v50  ;;  %v1191_v46 = vmul.f32 0.70710677, %v1187_v51  ;;  %v484_v7 = vsub.f32 0.0, %v372_v50  ;;  %v491_v13 = vmul.f32 %v483_v59, %v371_v31 }
 0x12d   :  { %908 = vrcp.f32 %v387_v55  ;;  %v446_v57 = vadd.f32 -0.28449672, %v438_v63  ;;  %v431_v9 = vadd.f32 1.4214138, %v423_v0  ;;  %v416_v10 = vadd.f32 -1.4531521, %v408_v1 }
 0x12e   :  { %v388_v6 = vadd.f32 1.0, %v380_v61  ;;  %v373_v8 = vand.u32 2147483647, %v1191_v46  ;;  %910 = vpow2.f32 %v496_v43  ;;  %v492_v25 = vmul.f32 %v484_v7, %v372_v50 }
 0x12f   :  { %v1195_v2 = vpop.eup %902  ;;  %v454_v18 = vmul.f32 %v1153_v3, %v446_v57  ;;  %v439_v22 = vmul.f32 %v1167_v32, %v431_v9  ;;  %v424_v5 = vmul.f32 %v1184_v49, %v416_v10  ;;  %v504_v42 = vmul.f32 1.442695, %v491_v13 }
 0x130   :  { %912 = vrcp.f32 %v388_v6  ;;  %v381_v14 = vmul.f32 0.3275911, %v373_v8  ;;  %v409_v23 = vmul.f32 1.0614054, %v1195_v2  ;;  %v485_v36 = vsub.f32 0.0, %v373_v8 }
 0x131   :  { %914 = vpow2.f32 %v498_v62  ;;  %v462_v29 = vadd.f32 0.2548296, %v454_v18  ;;  %v447_v20 = vadd.f32 -0.28449672, %v439_v22  ;;  %v432_v11 = vadd.f32 1.4214138, %v424_v5 }
 0x132   :  { %v1198_v17 = vpop.eup %904  ;;  %v389_v27 = vadd.f32 1.0, %v381_v14  ;;  %v417_v37 = vadd.f32 -1.4531521, %v409_v23  ;;  %v506_v45 = vmul.f32 1.442695, %v492_v25  ;;  %v493_v1 = vmul.f32 %v485_v36, %v373_v8  ;;  %v566_v36 = vld [vmem:[%s1358_s0] sm:$0xff] }
 0x133   :  { %v410_v28 = vmul.f32 1.0614054, %v1198_v17  ;;  %v907_v40 = vpop.eup %906  ;;  %v470_v21 = vmul.f32 %v1153_v3, %v462_v29  ;;  %v455_v43 = vmul.f32 %v1167_v32, %v447_v20  ;;  %v440_v44 = vmul.f32 %v1184_v49, %v432_v11 }
 0x134   :  { %916 = vrcp.f32 %v389_v27  ;;  %v425_v48 = vmul.f32 %v1195_v2, %v417_v37  ;;  %v508_v13 = vmul.f32 1.442695, %v493_v1  ;;  %vm532_vm6 = vcmp.ge.f32.partialorder %v1179_v41, 0.0 }
 0x135   :  { %v418_v31 = vadd.f32 -1.4531521, %v410_v28  ;;  %918 = vpow2.f32 %v500_v12  ;;  %v510_v54 = vmul.f32 %v907_v40, %v470_v21  ;;  %v463_v55 = vadd.f32 0.2548296, %v455_v43 }
 0x136   :  { %920 = vpow2.f32 %v502_v24  ;;  %v448_v56 = vadd.f32 -0.28449672, %v440_v44  ;;  %v433_v3 = vadd.f32 1.4214138, %v425_v48  ;;  %v356_v30 = vmul.f32 0.5, %v1172_v35  ;;  %v573_v35 = vld [vmem:[%s1358_s0 + $0x38] sm:$0xff] }
 0x137   :  { %v426_v34 = vmul.f32 %v1198_v17, %v418_v31  ;;  %v1211_v50 = vpop.eup %908  ;;  %922 = vpow2.f32 %v504_v42  ;;  %v518_v62 = vsub.f32 1.0, %v510_v54  ;;  %v471_v63 = vmul.f32 %v1167_v32, %v463_v55 }
 0x138   :  { %v411_v59 = vmul.f32 1.0614054, %v1211_v50  ;;  %v911_v61 = vpop.eup %910  ;;  %v456_v0 = vmul.f32 %v1184_v49, %v448_v56  ;;  %924 = vpow2.f32 %v506_v45  ;;  %v441_v6 = vmul.f32 %v1195_v2, %v433_v3 }
 0x139   :  { %v434_v58 = vadd.f32 1.4214138, %v426_v34  ;;  %v534_v8 = vsub.f32 0.0, %v518_v62  ;;  %v511_v9 = vmul.f32 %v911_v61, %v471_v63  ;;  %926 = vpow2.f32 %v508_v13 }
 0x13a   :  { %v1217_v4 = vpop.eup %912  ;;  %v419_v57 = vadd.f32 -1.4531521, %v411_v59  ;;  %v464_v10 = vadd.f32 0.2548296, %v456_v0  ;;  %v449_v14 = vadd.f32 -0.28449672, %v441_v6 }
 0x13b   :  { %v442_v7 = vmul.f32 %v1198_v17, %v434_v58  ;;  %v412_v12 = vmul.f32 1.0614054, %v1217_v4  ;;  %v915_v22 = vpop.eup %914  ;;  %v542_v5 = vsel %vm526_vm0, %v518_v62, %v534_v8  ;;  %v519_v23 = vsub.f32 1.0, %v511_v9 }
 0x13c   :  { %v427_v18 = vmul.f32 %v1211_v50, %v419_v57  ;;  %v472_v24 = vmul.f32 %v1184_v49, %v464_v10  ;;  %v550_v28 = vadd.f32 1.0, %v542_v5  ;;  %v457_v29 = vmul.f32 %v1195_v2, %v449_v14 }
 0x13d   :  { %v450_v32 = vadd.f32 -0.28449672, %v442_v7  ;;  %v420_v25 = vadd.f32 -1.4531521, %v412_v12  ;;  %v535_v37 = vsub.f32 0.0, %v519_v23  ;;  %v353_v6 = vmul.f32 0.5, %v1141_v47 }
 0x13e   :  { %v1227_v27 = vpop.eup %916  ;;  %v435_v11 = vadd.f32 1.4214138, %v427_v18  ;;  %v512_v31 = vmul.f32 %v915_v22, %v472_v24  ;;  %v558_v42 = vmul.f32 %v550_v28, %v1162_v19  ;;  %v465_v21 = vadd.f32 0.2548296, %v457_v29  ;;  %v567_v19 = vld [vmem:[%s1358_s0 + $0x8] sm:$0xff]  ;;  %v568_v47 = vld [vmem:[%s1358_s0 + $0x10] sm:$0xff] }
 0x13f   :  { %v458_v20 = vmul.f32 %v1198_v17, %v450_v32  ;;  %v428_v15 = vmul.f32 %v1217_v4, %v420_v25  ;;  %v413_v40 = vmul.f32 1.0614054, %v1227_v27  ;;  %v919_v49 = vpop.eup %918  ;;  %v543_v48 = vsel %vm527_vm1, %v519_v23, %v535_v37 }
 0x140   :  { %v443_v44 = vmul.f32 %v1211_v50, %v435_v11  ;;  %v921_v45 = vpop.eup %920  ;;  %v520_v34 = vsub.f32 1.0, %v512_v31  ;;  %v1240_v56 = vadd.f32 %v566_v36, %v558_v42  ;;  %v551_v1 = vadd.f32 1.0, %v543_v48 }
 0x141   :  { %v466_v43 = vadd.f32 0.2548296, %v458_v20  ;;  %v436_v54 = vadd.f32 1.4214138, %v428_v15  ;;  %v421_v55 = vadd.f32 -1.4531521, %v413_v40  ;;  %v473_v3 = vmul.f32 %v1195_v2, %v465_v21  ;;  %v923_v59 = vpop.eup %922 }
 0x142   :  { %v536_v61 = vsub.f32 0.0, %v520_v34  ;;  %v451_v62 = vadd.f32 -0.28449672, %v443_v44  ;;  %v925_v0 = vpop.eup %924  ;;  %584 = vadd.xlane.f32.xlu0 %v1240_v56  ;;  %v559_v2 = vmul.f32 %v551_v1, %v1170_v33  ;;  %v354_v29 = vmul.f32 0.5, %v1147_v53 }
 0x143   :  { %v474_v58 = vmul.f32 %v1198_v17, %v466_v43  ;;  %v444_v26 = vmul.f32 %v1217_v4, %v436_v54  ;;  %v429_v63 = vmul.f32 %v1227_v27, %v421_v55  ;;  %v513_v7 = vmul.f32 %v919_v49, %v473_v3 }
 0x144   :  { %v544_v57 = vsel %vm528_vm2, %v520_v34, %v536_v61  ;;  %v459_v8 = vmul.f32 %v1211_v50, %v451_v62  ;;  %v1255_v12 = vadd.f32 %v567_v19, %v559_v2  ;;  %v927_v34 = vpop.eup %926  ;;  %v355_v1 = vmul.f32 0.5, %v1158_v16 }
 0x145   :  { %v514_v17 = vmul.f32 %v921_v45, %v474_v58  ;;  %v452_v9 = vadd.f32 -0.28449672, %v444_v26  ;;  %v437_v10 = vadd.f32 1.4214138, %v429_v63  ;;  %v552_v14 = vadd.f32 1.0, %v544_v57  ;;  %v572_v26 = vld [vmem:[%s1358_s0 + $0x30] sm:$0xff] }
 0x146   :  { %v521_v32 = vsub.f32 1.0, %v513_v7  ;;  %v467_v33 = vadd.f32 0.2548296, %v459_v8  ;;  %586 = vadd.xlane.f32.xlu0 %v1255_v12  ;;  %vm533_vm7 = vcmp.ge.f32.partialorder %v1191_v46, 0.0  ;;  %v357_v2 = vmul.f32 0.5, %v1187_v51 }
 0x147   :  { %v522_v18 = vsub.f32 1.0, %v514_v17  ;;  %v460_v22 = vmul.f32 %v1217_v4, %v452_v9  ;;  %v445_v39 = vmul.f32 %v1227_v27, %v437_v10  ;;  %v560_v5 = vmul.f32 %v552_v14, %v1175_v38  ;;  %v570_v38 = vld [vmem:[%s1358_s0 + $0x20] sm:$0xff] }
 0x148   :  { %v537_v23 = vsub.f32 0.0, %v521_v32  ;;  %v475_v13 = vmul.f32 %v1211_v50, %v467_v33 }
 0x149   :  { %v538_v24 = vsub.f32 0.0, %v522_v18  ;;  %v468_v25 = vadd.f32 0.2548296, %v460_v22  ;;  %v453_v28 = vadd.f32 -0.28449672, %v445_v39  ;;  %v1268_v20 = vadd.f32 %v568_v47, %v560_v5 }
 0x14a   :  { %v545_v11 = vsel %vm529_vm3, %v521_v32, %v537_v23  ;;  %v515_v31 = vmul.f32 %v923_v59, %v475_v13  ;;  %v571_v59 = vld [vmem:[%s1358_s0 + $0x28] sm:$0xff] }
 0x14b   :  { %v546_v36 = vsel %vm530_vm4, %v522_v18, %v538_v24  ;;  %v553_v37 = vadd.f32 1.0, %v545_v11  ;;  %v476_v15 = vmul.f32 %v1217_v4, %v468_v25  ;;  %588 = vadd.xlane.f32.xlu1 %v1268_v20  ;;  %v461_v53 = vmul.f32 %v1227_v27, %v453_v28 }
 0x14c   :  { %v554_v52 = vadd.f32 1.0, %v546_v36  ;;  %v523_v49 = vsub.f32 1.0, %v515_v31 }
 0x14d   :  { %v561_v50 = vmul.f32 %v553_v37, %v353_v6  ;;  %v516_v42 = vmul.f32 %v925_v0, %v476_v15  ;;  %v469_v21 = vadd.f32 0.2548296, %v461_v53 }
 0x14e   :  { %v562_v40 = vmul.f32 %v554_v52, %v354_v29  ;;  %v539_v4 = vsub.f32 0.0, %v523_v49 }
 0x14f   :  { %v577_v43 = vadd.f32 %v569_v60, %v561_v50  ;;  %v524_v45 = vsub.f32 1.0, %v516_v42  ;;  %v477_v48 = vmul.f32 %v1227_v27, %v469_v21 }
 0x150   :  { %v578_v44 = vadd.f32 %v570_v38, %v562_v40  ;;  %v547_v54 = vsel %vm531_vm5, %v523_v49, %v539_v4 }
 0x151   :  { %590 = vadd.xlane.f32.xlu1 %v577_v43  ;;  %v540_v55 = vsub.f32 0.0, %v524_v45  ;;  %v555_v3 = vadd.f32 1.0, %v547_v54  ;;  %v517_v58 = vmul.f32 %v927_v34, %v477_v48 }
 0x152   :  { %592 = vadd.xlane.f32.xlu0 %v578_v44 }
 0x153   :  { %v548_v19 = vsel %vm532_vm6, %v524_v45, %v540_v55  ;;  %v563_v61 = vmul.f32 %v555_v3, %v355_v1  ;;  %v525_v62 = vsub.f32 1.0, %v517_v58  ;;  %v715_v58 = vld [vmem:[%s1362_s4] ss:$0 sm:$0xff] }
 0x154   :  { %v556_v27 = vadd.f32 1.0, %v548_v19 }
 0x155   :  { %v579_v63 = vadd.f32 %v571_v59, %v563_v61  ;;  %v541_v0 = vsub.f32 0.0, %v525_v62  ;;  %v716_v61 = vld [vmem:[%s1363_s5] ss:$0 sm:$0xff] }
 0x156   :  { %v564_v16 = vmul.f32 %v556_v27, %v356_v30 }
 0x157   :  { %594 = vadd.xlane.f32.xlu1 %v579_v63  ;;  %v549_v6 = vsel %vm533_vm7, %v525_v62, %v541_v0 }
 0x158   :  { %v580_v41 = vadd.f32 %v572_v26, %v564_v16  ;;  %v557_v7 = vadd.f32 1.0, %v549_v6 }
 0x15a   :  { %596 = vadd.xlane.f32.xlu0 %v580_v41  ;;  %v565_v17 = vmul.f32 %v557_v7, %v357_v2 }
 0x15c   :  { %v581_v57 = vadd.f32 %v573_v35, %v565_v17 }
 0x15e   :  { %598 = vadd.xlane.f32.xlu1 %v581_v57 }
 0x1cf   :  { %v585_v8 = vpop.xlane.xlu0 %584 }
 0x1d0   :  { %v601_v9 = vmul.f32 0.0078125, %v585_v8 }
 0x1d2   :  { %v609_v10 = vsub.f32 %v1240_v56, %v601_v9 }
 0x1d3   :  { %v587_v14 = vpop.xlane.xlu0 %586 }
 0x1d4   :  { %v602_v46 = vmul.f32 0.0078125, %v587_v14  ;;  %v617_v32 = vmul.f32 %v609_v10, %v609_v10 }
 0x1d6   :  { %v610_v18 = vsub.f32 %v1255_v12, %v602_v46  ;;  %625 = vadd.xlane.f32.xlu0 %v617_v32 }
 0x1d8   :  { %v589_v51 = vpop.xlane.xlu1 %588  ;;  %v618_v33 = vmul.f32 %v610_v18, %v610_v18 }
 0x1d9   :  { %v603_v47 = vmul.f32 0.0078125, %v589_v51 }
 0x1da   :  { %627 = vadd.xlane.f32.xlu1 %v618_v33 }
 0x1db   :  { %v1298_v22 = vsub.f32 %v1268_v20, %v603_v47 }
 0x1dd   :  { %v619_v5 = vmul.f32 %v1298_v22, %v1298_v22 }
 0x1de   :  { %v591_v39 = vpop.xlane.xlu1 %590 }
 0x1df   :  { %v593_v23 = vpop.xlane.xlu0 %592  ;;  %v604_v24 = vmul.f32 0.0078125, %v591_v39  ;;  %629 = vadd.xlane.f32.xlu0 %v619_v5 }
 0x1e0   :  { %v605_v56 = vmul.f32 0.0078125, %v593_v23 }
 0x1e1   :  { %v1302_v13 = vsub.f32 %v577_v43, %v604_v24 }
 0x1e2   :  { %v1304_v25 = vsub.f32 %v578_v44, %v605_v56 }
 0x1e3   :  { %v620_v12 = vmul.f32 %v1302_v13, %v1302_v13 }
 0x1e4   :  { %v621_v28 = vmul.f32 %v1304_v25, %v1304_v25  ;;  %v595_v29 = vpop.xlane.xlu1 %594 }
 0x1e5   :  { %631 = vadd.xlane.f32.xlu1 %v620_v12  ;;  %v606_v20 = vmul.f32 0.0078125, %v595_v29 }
 0x1e6   :  { %633 = vadd.xlane.f32.xlu0 %v621_v28 }
 0x1e7   :  { %v597_v11 = vpop.xlane.xlu0 %596  ;;  %v1310_v36 = vsub.f32 %v579_v63, %v606_v20 }
 0x1e8   :  { %v607_v37 = vmul.f32 0.0078125, %v597_v11 }
 0x1e9   :  { %v622_v31 = vmul.f32 %v1310_v36, %v1310_v36 }
 0x1ea   :  { %v1312_v52 = vsub.f32 %v580_v41, %v607_v37 }
 0x1eb   :  { %635 = vadd.xlane.f32.xlu1 %v622_v31  ;;  %v599_v15 = vpop.xlane.xlu1 %598 }
 0x1ec   :  { %v623_v60 = vmul.f32 %v1312_v52, %v1312_v52  ;;  %v608_v38 = vmul.f32 0.0078125, %v599_v15 }
 0x1ee   :  { %637 = vadd.xlane.f32.xlu0 %v623_v60  ;;  %v1318_v53 = vsub.f32 %v581_v57, %v608_v38 }
 0x1f0   :  { %v624_v50 = vmul.f32 %v1318_v53, %v1318_v53 }
 0x1f2   :  { %639 = vadd.xlane.f32.xlu1 %v624_v50 }
 0x263   :  { %v626_v40 = vpop.xlane.xlu0 %625 }
 0x264   :  { %v641_v49 = vmul.f32 0.0078125, %v626_v40 }
 0x266   :  { %v649_v42 = vadd.f32 1e-05, %v641_v49 }
 0x267   :  { %v628_v21 = vpop.xlane.xlu1 %627 }
 0x268   :  { %928 = vrsqrt.f32 %v649_v42  ;;  %v642_v43 = vmul.f32 0.0078125, %v628_v21 }
 0x26a   :  { %v650_v44 = vadd.f32 1e-05, %v642_v43 }
 0x26c   :  { %v630_v4 = vpop.xlane.xlu0 %629  ;;  %930 = vrsqrt.f32 %v650_v44 }
 0x26d   :  { %v643_v45 = vmul.f32 0.0078125, %v630_v4 }
 0x26f   :  { %v651_v48 = vadd.f32 1e-05, %v643_v45 }
 0x271   :  { %932 = vrsqrt.f32 %v651_v48 }
 0x272   :  { %v632_v34 = vpop.xlane.xlu1 %631  ;;  %v929_v3 = vpop.eup %928 }
 0x273   :  { %v634_v54 = vpop.xlane.xlu0 %633  ;;  %v644_v55 = vmul.f32 0.0078125, %v632_v34  ;;  %v665_v59 = vmul.f32 %v929_v3, %v609_v10 }
 0x274   :  { %v645_v1 = vmul.f32 0.0078125, %v634_v54 }
 0x275   :  { %v652_v19 = vadd.f32 1e-05, %v644_v55  ;;  %v679_v27 = vmul.f32 %v715_v58, %v665_v59 }
 0x276   :  { %v653_v30 = vadd.f32 1e-05, %v645_v1  ;;  %v931_v62 = vpop.eup %930 }
 0x277   :  { %934 = vrsqrt.f32 %v652_v19  ;;  %v693_v26 = vadd.f32 %v716_v61, %v679_v27  ;;  %v666_v63 = vmul.f32 %v931_v62, %v610_v18 }
 0x278   :  { %936 = vrsqrt.f32 %v653_v30  ;;  %v636_v16 = vpop.xlane.xlu1 %635 }
 0x279   :  { %v646_v0 = vmul.f32 0.0078125, %v636_v16  ;;  %701 = vst [vmem:[%s1364_s6] sm:$0xff] %v693_v26  ;;  %v680_v41 = vmul.f32 %v715_v58, %v666_v63 }
 0x27b   :  { %v638_v6 = vpop.xlane.xlu0 %637  ;;  %v933_v2 = vpop.eup %932  ;;  %v654_v7 = vadd.f32 1e-05, %v646_v0  ;;  %v694_v17 = vadd.f32 %v716_v61, %v680_v41 }
 0x27c   :  { %v647_v35 = vmul.f32 0.0078125, %v638_v6  ;;  %v667_v57 = vmul.f32 %v933_v2, %v1298_v22 }
 0x27d   :  { %938 = vrsqrt.f32 %v654_v7  ;;  %702 = vst [vmem:[%s1364_s6 + $0x8] sm:$0xff] %v694_v17 }
 0x27e   :  { %v655_v8 = vadd.f32 1e-05, %v647_v35  ;;  %v681_v9 = vmul.f32 %v715_v58, %v667_v57 }
 0x27f   :  { %v640_v10 = vpop.xlane.xlu1 %639 }
 0x280   :  { %940 = vrsqrt.f32 %v655_v8  ;;  %v695_v46 = vadd.f32 %v716_v61, %v681_v9  ;;  %v648_v32 = vmul.f32 0.0078125, %v640_v10 }
 0x281   :  { %v935_v14 = vpop.eup %934 }
 0x282   :  { %v937_v18 = vpop.eup %936  ;;  %v668_v51 = vmul.f32 %v935_v14, %v1302_v13  ;;  %703 = vst [vmem:[%s1364_s6 + $0x10] sm:$0xff] %v695_v46  ;;  %v656_v33 = vadd.f32 1e-05, %v648_v32 }
 0x283   :  { %v669_v47 = vmul.f32 %v937_v18, %v1304_v25 }
 0x284   :  { %v682_v22 = vmul.f32 %v715_v58, %v668_v51  ;;  %942 = vrsqrt.f32 %v656_v33 }
 0x285   :  { %v683_v39 = vmul.f32 %v715_v58, %v669_v47 }
 0x286   :  { %v696_v5 = vadd.f32 %v716_v61, %v682_v22 }
 0x287   :  { %v697_v23 = vadd.f32 %v716_v61, %v683_v39  ;;  %v939_v24 = vpop.eup %938 }
 0x288   :  { %704 = vst [vmem:[%s1364_s6 + $0x18] sm:$0xff] %v696_v5  ;;  %v670_v56 = vmul.f32 %v939_v24, %v1310_v36 }
 0x289   :  { %705 = vst [vmem:[%s1364_s6 + $0x20] sm:$0xff] %v697_v23 }
 0x28a   :  { %v941_v13 = vpop.eup %940  ;;  %v684_v12 = vmul.f32 %v715_v58, %v670_v56 }
 0x28b   :  { %v671_v25 = vmul.f32 %v941_v13, %v1312_v52 }
 0x28c   :  { %v698_v28 = vadd.f32 %v716_v61, %v684_v12 }
 0x28d   :  { %v685_v29 = vmul.f32 %v715_v58, %v671_v25 }
 0x28e   :  { %v943_v20 = vpop.eup %942  ;;  %706 = vst [vmem:[%s1364_s6 + $0x28] sm:$0xff] %v698_v28 }
 0x28f   :  { %v699_v11 = vadd.f32 %v716_v61, %v685_v29  ;;  %v672_v37 = vmul.f32 %v943_v20, %v1318_v53 }
 0x291   :  { %707 = vst [vmem:[%s1364_s6 + $0x30] sm:$0xff] %v699_v11  ;;  %v686_v31 = vmul.f32 %v715_v58, %v672_v37 }
 0x293   :  { %v700_v36 = vadd.f32 %v716_v61, %v686_v31 }
 0x295   :  { %708 = vst [vmem:[%s1364_s6 + $0x38] sm:$0xff] %v700_v36 }
 0x296   :  { %713 = vsyncpa [#allocation3], 1 }

// kernel: _lambda_.4
= control target key start
LH: loop header
LB: loop body
LE: loop exit
PB: predicated region body
PF: predicated region fallthrough
CT: control target
= control target key end

     0   :  { %9 = vsyncpa [#allocation3], 0  ;;  %s987_s15 = smov 0   ;;  %s1277_s0 = inlined_call_operand.vmem [shape: f32[2,65,10], index: 0, kind: input, shape index: {}]   ;;  %s1278_s1 = inlined_call_operand.hbm [shape: f32[10,128], index: 1, kind: input, shape index: {}]   ;;  %s1279_s2 = inlined_call_operand.vmem [shape: f32[1,128], index: 2, kind: input, shape index: {}]   ;;  %s1280_s3 = inlined_call_operand.vmem [shape: f32[1,128], index: 3, kind: input, shape index: {}]   ;;  %s1281_s4 = inlined_call_operand.vmem [shape: f32[2,65,128], index: 4, kind: output, shape index: {}]  }
   0x1 LB: > { %s993_s16 = sadd.s32 4294967295, %s953_s15   ;;  %p782_p0 = scmp.ge.s32.totalorder %s953_s15, 1  ;;  %s953_s15 = sphi %s987_s15, %s15_s15  }
   0x2   : > { %p135_p1 = scmp.lt.s32.totalorder %s953_s15, 3  ;;  %s955_s17 = smov [#allocation2]  }
   0x3   : > { %s147_s18 = sshll.u32 %s955_s17, 4  ;;  %p1282_p3 = scmp.eq.s32.totalorder %s993_s16, 0  ;;  %s148_s18 = int_to_ptr.vmem [resolvable:$true] %s147_s18 }
   0x4   : > { %p997_p2 = pnand %p782_p0, %p135_p1  ;;  %s915_s23 = scalar_lea.hbm %s1278_s1, 256 }
   0x5   : > { %p916_p6 = scmp.ne.s32.totalorder %s1278_s1, %s915_s23  ;;  %p922_p10 = scmp.lt.u32.totalorder %s915_s23, %s1278_s1 }
   0x6   : > { %s1284_s19 = scalar_select %p997_p2, 1, 0 }
   0x7   : > { %p856_p4 = pneg %p997_p2 }
   0x9   : > { %p1006_p5 = pnand %p1282_p3, %p856_p4 }
   0xb   : > { %p917_p7 = pneg %p1006_p5 }
   0xd   : > { %p918_p8 = pnand %p917_p7, %p916_p6 }
   0xf   : > { %p919_p9 = pneg %p918_p8 }
  0x11   : > { %p924_p11 = pnand %p922_p10, %p919_p9 }
  0x13   : > { %927 = shalt.err (!%p924_p11)
}
  0x14   : > { %s928_s28 = scalar_lea.vmem %s148_s18, 256  ;;  %p936_p1 = scmp.lt.s32.totalorder %s148_s18, %s148_s18 }
  0x15   : > { %p929_p12 = scmp.ne.s32.totalorder %s148_s18, %s928_s28  ;;  %p937_p4 = scmp.lt.s32.totalorder %s928_s28, %s928_s28 }
  0x17   : > { %p931_p13 = pnand %p929_p12, %p917_p7  ;;  %p938_p3 = por %p937_p4, %p936_p1 }
  0x19   : > { %p932_p0 = pneg %p931_p13 }
  0x1b   : > { %p939_p2 = pnand %p938_p3, %p932_p0 }
  0x1d   : > { %942 = shalt.err (!%p939_p2)
}
  0x1e   : > { %s956_s29 = smov 128   ;;  %s957_s30 = smov 8  }
  0x1f   : > { %859 = dma.hbm_to_vmem [thread:$0]  (!%p1006_p5), %s1278_s1, 256, %s148_s18, [#allocation3], %s956_s29, %s956_s29, %s957_s30  }
  0x20   : > { %p1286_p6 = scmp.ne.s32.totalorder %s1284_s19, 0 }
  0x21   : > { %p1287_p8 = scmp.eq.s32.totalorder (!%p1286_p6), %s993_s16, 0 }
  0x22   : > { %177 = sbr.rel (%p1286_p6) target bundleno = 423 (0x1a7), region = 36 }
  0x29   : > { %948 = dma.done.wait (%p1287_p8), [#allocation3], 256   ;;  %p1288_p7 = pmov %p1287_p8 }
  0x2a   : > { %v958_v0 = vmov 0.0|0.0   ;;  %p203_p2 = scmp.lt.s32.totalorder %s993_s16, 1  ;;  %vm959_vm0 = vmmov 0   ;;  %v960_v1 = vmov 0.0   ;;  %vm252_vm1 = vcmask 1041408   ;;  %v222_v2 = vld [vmem:[#allocation2] sm:$0xff] }
  0x2b   : > { %950 = vsyncadd (%p1288_p7), [#allocation3], 4294967040  ;;  %845 = vmatprep.subr.bf16.mxu0 %v958_v0  ;;  %849 = vmatprep.subr.bf16.mxu1 %v958_v0  ;;  %v223_v3 = vld [vmem:[#allocation2 + $0x8] sm:$0x3]  ;;  %vm961_vm2 = vmmov 1   ;;  %vm224_vm4 = vcmask 80896  }
  0x2c   : > { %818 = vmatprep.mubr.msk.f32.mxu0 %vm959_vm0, %v960_v1  ;;  %833 = vmatprep.mubr.msk.f32.mxu1 %vm959_vm0, %v960_v1  ;;  %s1290_s16 = smov (!%p203_p2, %s993_s16), 1  ;;  %vm847_vm3 = vmpackc.low %vm252_vm1, %vm961_vm2  ;;  %v846_v4 = vpack.c.bf16 %v223_v3, %v222_v2  ;;  %vm373_vm5 = vcmask 1040384  }
  0x2d   : > { %s851_s7 = smul.u32 72, %s1290_s16 }
  0x2e   : > { %848 = vmatpush3.bf16.msk.msra.mxu0 %vm847_vm3, %v846_v4  ;;  %850 = vmatpush3.bf16.msk.msra.mxu1 %vm847_vm3, %v846_v4 }
  0x2f   : > { %s207_s10 = scalar_lea.vmem %s1277_s0, %s851_s7  ;;  %s1253_s19 = scalar_lea.vmem %s1281_s4, %s851_s7 }
  0x30   : > { %v213_v5 = vld [vmem:[%s207_s10] sm:$0xff]  ;;  %v218_v6 = vld [vmem:[%s207_s10 + $0x28] sm:$0xff]  ;;  %v219_v8 = vld [vmem:[%s207_s10 + $0x30] sm:$0xff] }
  0x31   : > { %819 = vmatmul.mubr.msk.f32.vlgmr.msra.gmra.mrb[0].mxu0 %vm224_vm4, %v213_v5  ;;  %834 = vmatmul.mubr.msk.f32.vlgmr.msra.gmra.mrb[0].mxu1 %vm224_vm4, %v218_v6  ;;  %v214_v7 = vld [vmem:[%s207_s10 + $0x8] sm:$0xff]  ;;  %v215_v9 = vld [vmem:[%s207_s10 + $0x10] sm:$0xff]  ;;  %v220_v10 = vld [vmem:[%s207_s10 + $0x38] sm:$0xff] }
  0x32   : > { %821 = vmatprep.mubr.msk.f32.mxu0 %vm959_vm0, %v960_v1  ;;  %836 = vmatprep.mubr.msk.f32.mxu1 %vm959_vm0, %v960_v1  ;;  %v216_v11 = vld [vmem:[%s207_s10 + $0x18] sm:$0xff]  ;;  %v221_v12 = vld [vmem:[%s207_s10 + $0x40] sm:$0x1] }
  0x33   : > { %v217_v13 = vld [vmem:[%s207_s10 + $0x20] sm:$0xff] }
  0x35   : > { %822 = vmatmul.mubr.msk.f32.gmra.mrb[2].mxu0 %vm224_vm4, %v214_v7  ;;  %837 = vmatmul.mubr.msk.f32.gmra.mrb[2].mxu1 %vm224_vm4, %v219_v8 }
  0x36   : > { %824 = vmatprep.mubr.msk.f32.mxu0 %vm959_vm0, %v960_v1  ;;  %839 = vmatprep.mubr.msk.f32.mxu1 %vm959_vm0, %v960_v1 }
  0x39   : > { %825 = vmatmul.mubr.msk.f32.gmra.mrb[4].mxu0 %vm224_vm4, %v215_v9  ;;  %840 = vmatmul.mubr.msk.f32.gmra.mrb[4].mxu1 %vm224_vm4, %v220_v10 }
  0x3a   : > { %827 = vmatprep.mubr.msk.f32.mxu0 %vm959_vm0, %v960_v1  ;;  %842 = vmatprep.mubr.msk.f32.mxu1 %vm959_vm0, %v960_v1 }
  0x3d   : > { %828 = vmatmul.mubr.msk.f32.gmra.mrb[6].mxu0 %vm224_vm4, %v216_v11  ;;  %843 = vmatmul.mubr.msk.f32.gmra.mrb[6].mxu1 %vm224_vm4, %v221_v12 }
  0x3e   : > { %830 = vmatprep.mubr.msk.f32.mxu0 %vm959_vm0, %v960_v1 }
  0x41   : > { %831 = vmatmul.mubr.msk.f32.gmra.mrb[8].mxu0 %vm224_vm4, %v217_v13 }
 0x104   : > { %v322_v14 = vpop.f32.mrb[0].mxu0  ;;  %v347_v15 = vpop.f32.mrb[0].mxu1 }
 0x105   : > { %v820_v16 = vpop.f32.mrb[1].mxu0  ;;  %v835_v17 = vpop.f32.mrb[1].mxu1 }
 0x108   : > { %v327_v18 = vpop.f32.mrb[2].mxu0  ;;  %v352_v19 = vpop.f32.mrb[2].mxu1 }
 0x109   : > { %v366_v20 = vadd.f32 %v327_v18, %v322_v14  ;;  %v823_v21 = vpop.f32.mrb[3].mxu0  ;;  %v838_v22 = vpop.f32.mrb[3].mxu1 }
 0x10c   : > { %v332_v23 = vpop.f32.mrb[4].mxu0  ;;  %v357_v24 = vpop.f32.mrb[4].mxu1 }
 0x10d   : > { %v367_v25 = vadd.f32 %v366_v20, %v332_v23  ;;  %v826_v26 = vpop.f32.mrb[5].mxu0  ;;  %v841_v27 = vpop.f32.mrb[5].mxu1  ;;  %v799_v20 = vld [vmem:[%s1279_s2] ss:$0 sm:$0xff] }
 0x110   : > { %v337_v28 = vpop.f32.mrb[6].mxu0  ;;  %v362_v29 = vpop.f32.mrb[6].mxu1 }
 0x111   : > { %v368_v30 = vadd.f32 %v367_v25, %v337_v28  ;;  %v829_v31 = vpop.f32.mrb[7].mxu0  ;;  %v844_v32 = vpop.f32.mrb[7].mxu1  ;;  %v374_v38 = vsel %vm373_vm5, %v362_v29, 0.0 }
 0x114   : > { %v342_v33 = vpop.f32.mrb[8].mxu0 }
 0x115   : > { %v369_v34 = vadd.f32 %v368_v30, %v342_v33  ;;  %v832_v35 = vpop.f32.mrb[9].mxu0 }
 0x117   : > { %v370_v36 = vadd.f32 %v369_v34, %v347_v15 }
 0x119   : > { %v371_v37 = vadd.f32 %v370_v36, %v352_v19 }
 0x11b   : > { %v372_v39 = vadd.f32 %v371_v37, %v357_v24 }
 0x11d   : > { %v375_v40 = vadd.f32 %v374_v38, %v372_v39 }
 0x11f   : > { %v376_v41 = vrot.slane %v375_v40, 4 }
 0x121   : > { %v377_v42 = vadd.f32 %v376_v41, %v375_v40 }
 0x123   : > { %v378_v43 = vrot.slane %v377_v42, 2 }
 0x125   : > { %v379_v44 = vadd.f32 %v378_v43, %v377_v42 }
 0x127   : > { %v380_v45 = vrot.slane %v379_v44, 1 }
 0x129   : > { %v381_v46 = vadd.f32 %v380_v45, %v379_v44 }
 0x12b   : > { %v383_v47 = vmul.f32 0.015384615, %v381_v46 }
 0x12d   : > { %v384_v48 = vsub.f32 %v322_v14, %v383_v47  ;;  %v385_v49 = vsub.f32 %v327_v18, %v383_v47  ;;  %v386_v50 = vsub.f32 %v332_v23, %v383_v47  ;;  %v387_v51 = vsub.f32 %v337_v28, %v383_v47 }
 0x12e   : > { %v388_v52 = vsub.f32 %v342_v33, %v383_v47  ;;  %v389_v53 = vsub.f32 %v347_v15, %v383_v47  ;;  %v390_v54 = vsub.f32 %v352_v19, %v383_v47  ;;  %v391_v55 = vsub.f32 %v357_v24, %v383_v47  ;;  %v800_v33 = vld [vmem:[%s1280_s3] ss:$0 sm:$0xff] }
 0x12f   : > { %v392_v56 = vsub.f32 %v362_v29, %v383_v47  ;;  %v393_v57 = vmul.f32 %v384_v48, %v384_v48  ;;  %v394_v58 = vmul.f32 %v385_v49, %v385_v49  ;;  %v395_v59 = vmul.f32 %v386_v50, %v386_v50 }
 0x130   : > { %v396_v61 = vmul.f32 %v387_v51, %v387_v51  ;;  %v397_v63 = vmul.f32 %v388_v52, %v388_v52  ;;  %v398_v1 = vmul.f32 %v389_v53, %v389_v53  ;;  %v399_v3 = vmul.f32 %v390_v54, %v390_v54 }
 0x131   : > { %v402_v60 = vadd.f32 %v394_v58, %v393_v57  ;;  %v401_v5 = vmul.f32 %v392_v56, %v392_v56  ;;  %v400_v6 = vmul.f32 %v391_v55, %v391_v55 }
 0x133   : > { %v403_v62 = vadd.f32 %v402_v60, %v395_v59  ;;  %v409_v9 = vsel %vm373_vm5, %v401_v5, 0.0 }
 0x135   : > { %v404_v0 = vadd.f32 %v403_v62, %v396_v61 }
 0x137   : > { %v405_v2 = vadd.f32 %v404_v0, %v397_v63 }
 0x139   : > { %v406_v4 = vadd.f32 %v405_v2, %v398_v1 }
 0x13b   : > { %v407_v7 = vadd.f32 %v406_v4, %v399_v3 }
 0x13d   : > { %v408_v8 = vadd.f32 %v407_v7, %v400_v6 }
 0x13f   : > { %v410_v10 = vadd.f32 %v409_v9, %v408_v8 }
 0x141   : > { %v411_v11 = vrot.slane %v410_v10, 4 }
 0x143   : > { %v412_v12 = vadd.f32 %v411_v11, %v410_v10 }
 0x145   : > { %v413_v13 = vrot.slane %v412_v12, 2 }
 0x147   : > { %v414_v14 = vadd.f32 %v413_v13, %v412_v12 }
 0x149   : > { %v415_v15 = vrot.slane %v414_v14, 1 }
 0x14b   : > { %v416_v16 = vadd.f32 %v415_v15, %v414_v14 }
 0x14d   : > { %v417_v17 = vmul.f32 0.015384615, %v416_v16 }
 0x14f   : > { %v418_v18 = vadd.f32 1e-05, %v417_v17 }
 0x151   : > { %877 = vrsqrt.f32 %v418_v18 }
 0x15b   : > { %v878_v19 = vpop.eup %877 }
 0x15c   : > { %v420_v21 = vmul.f32 %v878_v19, %v384_v48  ;;  %v421_v22 = vmul.f32 %v878_v19, %v385_v49  ;;  %v422_v23 = vmul.f32 %v878_v19, %v386_v50  ;;  %v423_v24 = vmul.f32 %v878_v19, %v387_v51 }
 0x15d   : > { %v424_v25 = vmul.f32 %v878_v19, %v388_v52  ;;  %v425_v26 = vmul.f32 %v878_v19, %v389_v53  ;;  %v426_v27 = vmul.f32 %v878_v19, %v390_v54  ;;  %v427_v28 = vmul.f32 %v878_v19, %v391_v55 }
 0x15e   : > { %v428_v29 = vmul.f32 %v878_v19, %v392_v56  ;;  %v436_v30 = vmul.f32 %v799_v20, %v420_v21  ;;  %v437_v31 = vmul.f32 %v799_v20, %v421_v22  ;;  %v438_v32 = vmul.f32 %v799_v20, %v422_v23 }
 0x15f   : > { %v439_v34 = vmul.f32 %v799_v20, %v423_v24  ;;  %v440_v35 = vmul.f32 %v799_v20, %v424_v25  ;;  %v441_v36 = vmul.f32 %v799_v20, %v425_v26  ;;  %v442_v37 = vmul.f32 %v799_v20, %v426_v27 }
 0x160   : > { %v443_v38 = vmul.f32 %v799_v20, %v427_v28  ;;  %v444_v39 = vmul.f32 %v799_v20, %v428_v29  ;;  %v1068_v40 = vadd.f32 %v800_v33, %v436_v30  ;;  %v1070_v41 = vadd.f32 %v800_v33, %v437_v31 }
 0x161   : > { %v1072_v42 = vadd.f32 %v800_v33, %v438_v32  ;;  %v1074_v43 = vadd.f32 %v800_v33, %v439_v34  ;;  %v1076_v44 = vadd.f32 %v800_v33, %v440_v35  ;;  %v1078_v45 = vadd.f32 %v800_v33, %v441_v36 }
 0x162   : > { %v1080_v46 = vadd.f32 %v800_v33, %v442_v37  ;;  %v1082_v47 = vadd.f32 %v800_v33, %v443_v38  ;;  %v1084_v48 = vadd.f32 %v800_v33, %v444_v39  ;;  %v1087_v49 = vmul.f32 0.70710677, %v1068_v40 }
 0x163   : > { %v1090_v50 = vmul.f32 0.70710677, %v1070_v41  ;;  %v1093_v51 = vmul.f32 0.70710677, %v1072_v42  ;;  %v1096_v52 = vmul.f32 0.70710677, %v1074_v43 }
 0x164   : > { %v1099_v53 = vmul.f32 0.70710677, %v1076_v44  ;;  %v1102_v54 = vmul.f32 0.70710677, %v1078_v45  ;;  %v1105_v55 = vmul.f32 0.70710677, %v1080_v46 }
 0x165   : > { %v1108_v56 = vmul.f32 0.70710677, %v1082_v47  ;;  %v1111_v57 = vmul.f32 0.70710677, %v1084_v48  ;;  %v479_v58 = vand.u32 2147483647, %v1087_v49 }
 0x166   : > { %v480_v59 = vand.u32 2147483647, %v1090_v50  ;;  %v481_v60 = vand.u32 2147483647, %v1093_v51  ;;  %v482_v61 = vand.u32 2147483647, %v1096_v52 }
 0x167   : > { %v483_v62 = vand.u32 2147483647, %v1099_v53  ;;  %v484_v63 = vand.u32 2147483647, %v1102_v54  ;;  %v485_v0 = vand.u32 2147483647, %v1105_v55 }
 0x168   : > { %v486_v1 = vand.u32 2147483647, %v1108_v56  ;;  %v487_v2 = vand.u32 2147483647, %v1111_v57  ;;  %v488_v3 = vmul.f32 0.3275911, %v479_v58 }
 0x169   : > { %v489_v4 = vmul.f32 0.3275911, %v480_v59  ;;  %v490_v5 = vmul.f32 0.3275911, %v481_v60  ;;  %v491_v6 = vmul.f32 0.3275911, %v482_v61 }
 0x16a   : > { %v492_v7 = vmul.f32 0.3275911, %v483_v62  ;;  %v493_v8 = vmul.f32 0.3275911, %v484_v63  ;;  %v494_v9 = vmul.f32 0.3275911, %v485_v0 }
 0x16b   : > { %v495_v10 = vmul.f32 0.3275911, %v486_v1  ;;  %v496_v11 = vmul.f32 0.3275911, %v487_v2  ;;  %v497_v12 = vadd.f32 1.0, %v488_v3  ;;  %v498_v13 = vadd.f32 1.0, %v489_v4 }
 0x16c   : > { %v499_v14 = vadd.f32 1.0, %v490_v5  ;;  %v500_v15 = vadd.f32 1.0, %v491_v6  ;;  %v501_v16 = vadd.f32 1.0, %v492_v7  ;;  %v502_v17 = vadd.f32 1.0, %v493_v8 }
 0x16d   : > { %v503_v18 = vadd.f32 1.0, %v494_v9  ;;  %879 = vrcp.f32 %v497_v12  ;;  %v605_v19 = vsub.f32 0.0, %v479_v58  ;;  %v606_v20 = vsub.f32 0.0, %v480_v59 }
 0x16e   : > { %881 = vrcp.f32 %v498_v13  ;;  %v607_v21 = vsub.f32 0.0, %v481_v60  ;;  %v608_v22 = vsub.f32 0.0, %v482_v61  ;;  %v609_v23 = vsub.f32 0.0, %v483_v62 }
 0x16f   : > { %v504_v24 = vadd.f32 1.0, %v495_v10  ;;  %v505_v25 = vadd.f32 1.0, %v496_v11  ;;  %883 = vrcp.f32 %v499_v14  ;;  %v610_v26 = vsub.f32 0.0, %v484_v63 }
 0x170   : > { %885 = vrcp.f32 %v500_v15  ;;  %v611_v27 = vsub.f32 0.0, %v485_v0  ;;  %v614_v28 = vmul.f32 %v605_v19, %v479_v58  ;;  %v615_v29 = vmul.f32 %v606_v20, %v480_v59 }
 0x171   : > { %887 = vrcp.f32 %v501_v16  ;;  %v612_v30 = vsub.f32 0.0, %v486_v1  ;;  %v616_v31 = vmul.f32 %v607_v21, %v481_v60  ;;  %v617_v32 = vmul.f32 %v608_v22, %v482_v61 }
 0x172   : > { %889 = vrcp.f32 %v502_v17  ;;  %v613_v33 = vsub.f32 0.0, %v487_v2  ;;  %v618_v34 = vmul.f32 %v609_v23, %v483_v62  ;;  %v619_v35 = vmul.f32 %v610_v26, %v484_v63 }
 0x173   : > { %891 = vrcp.f32 %v503_v18  ;;  %v623_v36 = vmul.f32 1.442695, %v614_v28  ;;  %v625_v37 = vmul.f32 1.442695, %v615_v29  ;;  %v1123_v38 = vmul.f32 0.5, %v1068_v40 }
 0x174   : > { %893 = vrcp.f32 %v504_v24  ;;  %v620_v39 = vmul.f32 %v611_v27, %v485_v0  ;;  %v627_v3 = vmul.f32 1.442695, %v616_v31  ;;  %v1126_v58 = vmul.f32 0.5, %v1070_v41 }
 0x175   : > { %895 = vrcp.f32 %v505_v25  ;;  %v621_v59 = vmul.f32 %v612_v30, %v486_v1  ;;  %v629_v60 = vmul.f32 1.442695, %v617_v32  ;;  %v1129_v61 = vmul.f32 0.5, %v1072_v42 }
 0x176   : > { %v1132_v62 = vmul.f32 0.5, %v1074_v43  ;;  %897 = vpow2.f32 %v623_v36  ;;  %v631_v63 = vmul.f32 1.442695, %v618_v34  ;;  %v1137_v40 = vmul.f32 0.5, %v1076_v44 }
 0x177   : > { %v1134_v4 = vpop.eup %879  ;;  %v622_v0 = vmul.f32 %v613_v33, %v487_v2  ;;  %899 = vpow2.f32 %v625_v37  ;;  %v633_v41 = vmul.f32 1.442695, %v619_v35  ;;  %v1142_v1 = vmul.f32 0.5, %v1078_v45 }
 0x178   : > { %v1139_v5 = vpop.eup %881  ;;  %v524_v42 = vmul.f32 1.0614054, %v1134_v4  ;;  %901 = vpow2.f32 %v627_v3  ;;  %v635_v43 = vmul.f32 1.442695, %v620_v39  ;;  %v1148_v7 = vmul.f32 0.5, %v1080_v46 }
 0x179   : > { %v1145_v6 = vpop.eup %883  ;;  %v525_v44 = vmul.f32 1.0614054, %v1139_v5  ;;  %903 = vpow2.f32 %v629_v60  ;;  %v637_v2 = vmul.f32 1.442695, %v621_v59  ;;  %v1154_v9 = vmul.f32 0.5, %v1082_v47 }
 0x17a   : > { %v1151_v8 = vpop.eup %885  ;;  %v526_v45 = vmul.f32 1.0614054, %v1145_v6  ;;  %v533_v10 = vadd.f32 -1.4531521, %v524_v42  ;;  %905 = vpow2.f32 %v631_v63  ;;  %v1160_v46 = vmul.f32 1.442695, %v622_v0 }
 0x17b   : > { %v1157_v11 = vpop.eup %887  ;;  %v527_v12 = vmul.f32 1.0614054, %v1151_v8  ;;  %v534_v13 = vadd.f32 -1.4531521, %v525_v44  ;;  %907 = vpow2.f32 %v633_v41  ;;  %vm659_vm6 = vcmp.ge.f32.partialorder %v1087_v49, 0.0 }
 0x17c   : > { %v1162_v14 = vpop.eup %889  ;;  %v528_v15 = vmul.f32 1.0614054, %v1157_v11  ;;  %v535_v16 = vadd.f32 -1.4531521, %v526_v45  ;;  %v542_v47 = vmul.f32 %v1134_v4, %v533_v10  ;;  %909 = vpow2.f32 %v635_v43 }
 0x17d   : > { %v1166_v17 = vpop.eup %891  ;;  %v529_v18 = vmul.f32 1.0614054, %v1162_v14  ;;  %v536_v19 = vadd.f32 -1.4531521, %v527_v12  ;;  %v543_v20 = vmul.f32 %v1139_v5, %v534_v13  ;;  %911 = vpow2.f32 %v637_v2 }
 0x17e   : > { %v1170_v21 = vpop.eup %893  ;;  %v530_v22 = vmul.f32 1.0614054, %v1166_v17  ;;  %v537_v23 = vadd.f32 -1.4531521, %v528_v15  ;;  %v544_v24 = vmul.f32 %v1145_v6, %v535_v16  ;;  %v551_v25 = vadd.f32 1.4214138, %v542_v47 }
 0x17f   : > { %v1174_v26 = vpop.eup %895  ;;  %v531_v27 = vmul.f32 1.0614054, %v1170_v21  ;;  %v538_v28 = vadd.f32 -1.4531521, %v529_v18  ;;  %v545_v29 = vmul.f32 %v1151_v8, %v536_v19  ;;  %v552_v30 = vadd.f32 1.4214138, %v543_v20 }
 0x180   : > { %v1178_v31 = vpop.eup %897  ;;  %v532_v32 = vmul.f32 1.0614054, %v1174_v26  ;;  %v539_v33 = vadd.f32 -1.4531521, %v530_v22  ;;  %v546_v34 = vmul.f32 %v1157_v11, %v537_v23  ;;  %v553_v35 = vadd.f32 1.4214138, %v544_v24 }
 0x181   : > { %v1182_v36 = vpop.eup %899  ;;  %v540_v37 = vadd.f32 -1.4531521, %v531_v27  ;;  %v547_v39 = vmul.f32 %v1162_v14, %v538_v28  ;;  %v554_v3 = vadd.f32 1.4214138, %v545_v29  ;;  %v560_v59 = vmul.f32 %v1134_v4, %v551_v25 }
 0x182   : > { %v1186_v60 = vpop.eup %901  ;;  %v541_v63 = vadd.f32 -1.4531521, %v532_v32  ;;  %v548_v0 = vmul.f32 %v1166_v17, %v539_v33  ;;  %v555_v41 = vadd.f32 1.4214138, %v546_v34  ;;  %v561_v42 = vmul.f32 %v1139_v5, %v552_v30 }
 0x183   : > { %v1190_v43 = vpop.eup %903  ;;  %v549_v44 = vmul.f32 %v1170_v21, %v540_v37  ;;  %v556_v2 = vadd.f32 1.4214138, %v547_v39  ;;  %v562_v45 = vmul.f32 %v1145_v6, %v553_v35  ;;  %v563_v10 = vmul.f32 %v1151_v8, %v554_v3 }
 0x184   : > { %v906_v12 = vpop.eup %905  ;;  %v550_v13 = vmul.f32 %v1174_v26, %v541_v63  ;;  %v557_v15 = vadd.f32 1.4214138, %v548_v0  ;;  %v564_v16 = vmul.f32 %v1157_v11, %v555_v41  ;;  %v569_v47 = vadd.f32 -0.28449672, %v560_v59 }
 0x185   : > { %v908_v18 = vpop.eup %907  ;;  %v558_v19 = vadd.f32 1.4214138, %v549_v44  ;;  %v565_v20 = vmul.f32 %v1162_v14, %v556_v2  ;;  %v570_v22 = vadd.f32 -0.28449672, %v561_v42  ;;  %v571_v23 = vadd.f32 -0.28449672, %v562_v45 }
 0x186   : > { %v910_v24 = vpop.eup %909  ;;  %v559_v25 = vadd.f32 1.4214138, %v550_v13  ;;  %v566_v27 = vmul.f32 %v1166_v17, %v557_v15  ;;  %v572_v28 = vadd.f32 -0.28449672, %v563_v10  ;;  %v573_v29 = vadd.f32 -0.28449672, %v564_v16 }
 0x187   : > { %v912_v30 = vpop.eup %911  ;;  %v567_v32 = vmul.f32 %v1170_v21, %v558_v19  ;;  %v574_v33 = vadd.f32 -0.28449672, %v565_v20  ;;  %v578_v34 = vmul.f32 %v1134_v4, %v569_v47  ;;  %v579_v35 = vmul.f32 %v1139_v5, %v570_v22 }
 0x188   : > { %v568_v37 = vmul.f32 %v1174_v26, %v559_v25  ;;  %v575_v39 = vadd.f32 -0.28449672, %v566_v27  ;;  %v580_v3 = vmul.f32 %v1145_v6, %v571_v23  ;;  %v581_v59 = vmul.f32 %v1151_v8, %v572_v28 }
 0x189   : > { %v576_v63 = vadd.f32 -0.28449672, %v567_v32  ;;  %v582_v0 = vmul.f32 %v1157_v11, %v573_v29  ;;  %v583_v41 = vmul.f32 %v1162_v14, %v574_v33  ;;  %v587_v42 = vadd.f32 0.2548296, %v578_v34 }
 0x18a   : > { %v577_v44 = vadd.f32 -0.28449672, %v568_v37  ;;  %v584_v2 = vmul.f32 %v1166_v17, %v575_v39  ;;  %v588_v45 = vadd.f32 0.2548296, %v579_v35  ;;  %v589_v10 = vadd.f32 0.2548296, %v580_v3 }
 0x18b   : > { %v585_v13 = vmul.f32 %v1170_v21, %v576_v63  ;;  %v590_v15 = vadd.f32 0.2548296, %v581_v59  ;;  %v591_v16 = vadd.f32 0.2548296, %v582_v0  ;;  %v592_v47 = vadd.f32 0.2548296, %v583_v41 }
 0x18c   : > { %v586_v19 = vmul.f32 %v1174_v26, %v577_v44  ;;  %v593_v20 = vadd.f32 0.2548296, %v584_v2  ;;  %v596_v22 = vmul.f32 %v1134_v4, %v587_v42  ;;  %v597_v23 = vmul.f32 %v1139_v5, %v588_v45 }
 0x18d   : > { %vm660_vm7 = vcmp.ge.f32.partialorder %v1090_v50, 0.0  ;;  %v594_v25 = vadd.f32 0.2548296, %v585_v13  ;;  %v598_v27 = vmul.f32 %v1145_v6, %v589_v10  ;;  %v599_v28 = vmul.f32 %v1151_v8, %v590_v15 }
 0x18e   : > { %v600_v29 = vmul.f32 %v1157_v11, %v591_v16  ;;  %vm661_vm8 = vcmp.ge.f32.partialorder %v1093_v51, 0.0  ;;  %vm662_vm9 = vcmp.ge.f32.partialorder %v1096_v52, 0.0  ;;  %vm663_vm10 = vcmp.ge.f32.partialorder %v1099_v53, 0.0 }
 0x18f   : > { %vm664_vm11 = vcmp.ge.f32.partialorder %v1102_v54, 0.0  ;;  %v595_v4 = vadd.f32 0.2548296, %v586_v19  ;;  %v601_v5 = vmul.f32 %v1162_v14, %v592_v47  ;;  %v602_v32 = vmul.f32 %v1166_v17, %v593_v20 }
 0x190   : > { %913 = vpow2.f32 %v1160_v46  ;;  %vm665_vm12 = vcmp.ge.f32.partialorder %v1105_v55, 0.0  ;;  %vm666_vm13 = vcmp.ge.f32.partialorder %v1108_v56, 0.0  ;;  %v603_v6 = vmul.f32 %v1170_v21, %v594_v25 }
 0x191   : > { %v641_v8 = vmul.f32 %v1178_v31, %v596_v22  ;;  %v642_v11 = vmul.f32 %v1182_v36, %v597_v23  ;;  %v643_v33 = vmul.f32 %v1186_v60, %v598_v27  ;;  %v604_v34 = vmul.f32 %v1174_v26, %v595_v4 }
 0x192   : > { %v644_v14 = vmul.f32 %v1190_v43, %v599_v28  ;;  %v645_v35 = vmul.f32 %v906_v12, %v600_v29  ;;  %v646_v17 = vmul.f32 %v908_v18, %v601_v5  ;;  %v647_v37 = vmul.f32 %v910_v24, %v602_v32 }
 0x193   : > { %v648_v46 = vmul.f32 %v912_v30, %v603_v6  ;;  %v650_v39 = vsub.f32 1.0, %v641_v8  ;;  %v651_v3 = vsub.f32 1.0, %v642_v11  ;;  %v652_v59 = vsub.f32 1.0, %v643_v33 }
 0x194   : > { %v653_v63 = vsub.f32 1.0, %v644_v14  ;;  %v654_v0 = vsub.f32 1.0, %v645_v35  ;;  %v655_v21 = vsub.f32 1.0, %v646_v17  ;;  %v656_v41 = vsub.f32 1.0, %v647_v37 }
 0x195   : > { %v657_v31 = vsub.f32 1.0, %v648_v46  ;;  %v668_v42 = vsub.f32 0.0, %v650_v39  ;;  %v669_v36 = vsub.f32 0.0, %v651_v3  ;;  %v670_v44 = vsub.f32 0.0, %v652_v59 }
 0x196   : > { %v671_v60 = vsub.f32 0.0, %v653_v63  ;;  %v672_v26 = vsub.f32 0.0, %v654_v0  ;;  %v673_v2 = vsub.f32 0.0, %v655_v21  ;;  %v674_v43 = vsub.f32 0.0, %v656_v41 }
 0x197   : > { %v675_v12 = vsub.f32 0.0, %v657_v31  ;;  %v677_v18 = vsel %vm659_vm6, %v650_v39, %v668_v42  ;;  %v678_v24 = vsel %vm660_vm7, %v651_v3, %v669_v36  ;;  %v679_v30 = vsel %vm661_vm8, %v652_v59, %v670_v44 }
 0x198   : > { %v680_v45 = vsel %vm662_vm9, %v653_v63, %v671_v60  ;;  %v681_v10 = vsel %vm663_vm10, %v654_v0, %v672_v26  ;;  %v682_v13 = vsel %vm664_vm11, %v655_v21, %v673_v2  ;;  %v683_v15 = vsel %vm665_vm12, %v656_v41, %v674_v43 }
 0x199   : > { %v684_v49 = vsel %vm666_vm13, %v657_v31, %v675_v12  ;;  %v686_v50 = vadd.f32 1.0, %v677_v18  ;;  %v687_v16 = vadd.f32 1.0, %v678_v24  ;;  %v688_v51 = vadd.f32 1.0, %v679_v30 }
 0x19a   : > { %v914_v47 = vpop.eup %913  ;;  %v689_v52 = vadd.f32 1.0, %v680_v45  ;;  %v690_v53 = vadd.f32 1.0, %v681_v10  ;;  %v691_v54 = vadd.f32 1.0, %v682_v13  ;;  %v692_v56 = vadd.f32 1.0, %v683_v15 }
 0x19b   : > { %v649_v55 = vmul.f32 %v914_v47, %v604_v34  ;;  %v693_v19 = vadd.f32 1.0, %v684_v49  ;;  %v695_v20 = vmul.f32 %v686_v50, %v1123_v38  ;;  %v696_v22 = vmul.f32 %v687_v16, %v1126_v58 }
 0x19c   : > { %v697_v23 = vmul.f32 %v688_v51, %v1129_v61  ;;  %v698_v25 = vmul.f32 %v689_v52, %v1132_v62  ;;  %v699_v27 = vmul.f32 %v690_v53, %v1137_v40  ;;  %v700_v29 = vmul.f32 %v691_v54, %v1142_v1 }
 0x19d   : > { %v658_v28 = vsub.f32 1.0, %v649_v55  ;;  %v701_v4 = vmul.f32 %v692_v56, %v1148_v7  ;;  %v702_v5 = vmul.f32 %v693_v19, %v1154_v9  ;;  %704 = vst [vmem:[%s1253_s19] sm:$0xff] %v695_v20  ;;  %705 = vst [vmem:[%s1253_s19 + $0x8] sm:$0xff] %v696_v22  ;;  %vm667_vm14 = vcmp.ge.f32.partialorder %v1111_v57, 0.0 }
 0x19e   : > { %706 = vst [vmem:[%s1253_s19 + $0x10] sm:$0xff] %v697_v23  ;;  %707 = vst [vmem:[%s1253_s19 + $0x18] sm:$0xff] %v698_v25  ;;  %v469_v61 = vmul.f32 0.5, %v1084_v48 }
 0x19f   : > { %708 = vst [vmem:[%s1253_s19 + $0x20] sm:$0xff] %v699_v27  ;;  %v676_v38 = vsub.f32 0.0, %v658_v28  ;;  %709 = vst [vmem:[%s1253_s19 + $0x28] sm:$0xff] %v700_v29 }
 0x1a0   : > { %710 = vst [vmem:[%s1253_s19 + $0x30] sm:$0xff] %v701_v4  ;;  %711 = vst [vmem:[%s1253_s19 + $0x38] sm:$0xff] %v702_v5 }
 0x1a1   : > { %v685_v58 = vsel %vm667_vm14, %v658_v28, %v676_v38 }
 0x1a2   : > { %v694_v62 = vadd.f32 1.0, %v685_v58 }
 0x1a4   : > { %v703_v40 = vmul.f32 %v694_v62, %v469_v61 }
 0x1a6   : > { %712 = vst [vmem:[%s1253_s19 + $0x40] sm:$0x1] %v703_v40 }
 0x1a7 PF: > { %s15_s15 = sadd.s32 1, %s953_s15  }
 0x1a8   : > { %p12_p3 = scmp.ge.s32.totalorder %s15_s15, 4  }
 0x1aa   :  { %14 = sbr.rel (!%p12_p3) target bundleno = 1 (0x1), region = 71 }
 0x1b1   :  { %734 = vsyncpa [#allocation3], 1 }
 0x1b2   :  { %736 = vsyncpa [#allocation3 + $0x1], 1 }

// kernel: _lambda_.5
= control target key start
LH: loop header
LB: loop body
LE: loop exit
PB: predicated region body
PF: predicated region fallthrough
CT: control target
= control target key end

     0   :  { %11 = vsyncpa [#allocation3], 0  ;;  %s1569_s0 = inlined_call_operand.vmem [shape: f32[64,384], index: 0, kind: input, shape index: {}]   ;;  %s1570_s1 = inlined_call_operand.hbm [shape: f32[384,128], index: 1, kind: input, shape index: {}]   ;;  %s1571_s2 = inlined_call_operand.vmem [shape: f32[1,128], index: 2, kind: input, shape index: {}]   ;;  %s1572_s3 = inlined_call_operand.vmem [shape: f32[1,128], index: 3, kind: input, shape index: {}, may-alias: {3,5}]   ;;  %s1573_s4 = inlined_call_operand.hbm [shape: f32[128,128], index: 4, kind: input, shape index: {}]   ;;  %s1574_s5 = inlined_call_operand.vmem [shape: f32[1,128], index: 5, kind: input, shape index: {}, may-alias: {3,5}]   ;;  %s1575_s6 = inlined_call_operand.vmem [shape: f32[64,128], index: 6, kind: output, shape index: {}]  }
   0x1   :  { %12 = vsyncpa [#allocation5], 0  ;;  %s1217_s21 = smov [#allocation2]   ;;  %s1169_s25 = scalar_lea.hbm %s1570_s1, 6144 }
   0x2   :  { %s20_s22 = sshll.u32 %s1217_s21, 4  ;;  %p1170_p0 = scmp.ne.s32.totalorder %s1570_s1, %s1169_s25  ;;  %s21_s22 = int_to_ptr.vmem [resolvable:$true] %s20_s22 }
   0x3   :  { %p1173_p1 = scmp.lt.u32.totalorder %s1169_s25, %s1570_s1 }
   0x5   :  { %p1175_p2 = pnand %p1173_p1, %p1170_p0 }
   0x7   :  { %1178 = shalt.err (!%p1175_p2)
}
   0x8   :  { %s1179_s30 = scalar_lea.vmem %s21_s22, 6144  ;;  %p1184_p4 = scmp.lt.s32.totalorder %s21_s22, %s21_s22 }
   0x9   :  { %p1180_p3 = scmp.ne.s32.totalorder %s21_s22, %s1179_s30  ;;  %p1185_p5 = scmp.lt.s32.totalorder %s1179_s30, %s1179_s30 }
   0xb   :  { %p1186_p6 = por %p1185_p5, %p1184_p4 }
   0xd   :  { %p1187_p7 = pnand %p1186_p6, %p1180_p3 }
   0xf   :  { %1190 = shalt.err (!%p1187_p7)
}
  0x10   :  { %s1218_s7 = smov 128   ;;  %s1219_s8 = smov 8  }
  0x11   :  { %26 = dma.hbm_to_vmem [thread:$0]  %s1570_s1, 6144, %s21_s22, [#allocation3], %s1218_s7, %s1218_s7, %s1219_s8  }
  0x12   :  { %s1220_s11 = smov [#allocation4]   ;;  %s1191_s15 = scalar_lea.hbm %s1573_s4, 2048 }
  0x13   :  { %s36_s12 = sshll.u32 %s1220_s11, 4  ;;  %p1192_p8 = scmp.ne.s32.totalorder %s1573_s4, %s1191_s15  ;;  %s37_s12 = int_to_ptr.vmem [resolvable:$true] %s36_s12 }
  0x14   :  { %p1195_p9 = scmp.lt.u32.totalorder %s1191_s15, %s1573_s4 }
  0x16   :  { %p1197_p10 = pnand %p1195_p9, %p1192_p8 }
  0x18   :  { %1200 = shalt.err (!%p1197_p10)
}
  0x19   :  { %s1201_s20 = scalar_lea.vmem %s37_s12, 2048  ;;  %p1206_p12 = scmp.lt.s32.totalorder %s37_s12, %s37_s12 }
  0x1a   :  { %p1202_p11 = scmp.ne.s32.totalorder %s37_s12, %s1201_s20  ;;  %p1207_p13 = scmp.lt.s32.totalorder %s1201_s20, %s1201_s20 }
  0x1c   :  { %p1208_p0 = por %p1207_p13, %p1206_p12 }
  0x1e   :  { %p1209_p1 = pnand %p1208_p0, %p1202_p11 }
  0x20   :  { %1212 = shalt.err (!%p1209_p1)
}
  0x21   :  { %42 = dma.hbm_to_vmem [thread:$0]  %s1573_s4, 2048, %s37_s12, [#allocation5], %s1218_s7, %s1218_s7, %s1219_s8  }
  0x22   :  { %1213 = dma.done.wait [#allocation3], 6144  }
  0x23   :  { %1214 = vsyncadd [#allocation3], 4294961152 }
  0x24   :  { %1215 = dma.done.wait [#allocation5], 2048  }
  0x25   :  { %1216 = vsyncadd [#allocation5], 4294965248  ;;  %v91_v0 = vld [vmem:[#allocation2 + $0x80] sm:$0xff]  ;;  %v92_v1 = vld [vmem:[#allocation2 + $0x88] sm:$0xff] }
  0x26   :  { %v75_v2 = vld [vmem:[#allocation2] sm:$0xff]  ;;  %v1005_v3 = vpack.c.bf16 %v92_v1, %v91_v0  ;;  %v76_v4 = vld [vmem:[#allocation2 + $0x8] sm:$0xff]  ;;  %v93_v9 = vld [vmem:[#allocation2 + $0x90] sm:$0xff] }
  0x27   :  { %v107_v5 = vld [vmem:[#allocation2 + $0x100] sm:$0xff]  ;;  %v108_v6 = vld [vmem:[#allocation2 + $0x108] sm:$0xff]  ;;  %v1007_v7 = vpack.c.bf16 %v76_v4, %v75_v2  ;;  %v94_v10 = vld [vmem:[#allocation2 + $0x98] sm:$0xff] }
  0x28   :  { %v1037_v8 = vpack.c.bf16 %v108_v6, %v107_v5  ;;  %v77_v11 = vld [vmem:[#allocation2 + $0x10] sm:$0xff]  ;;  %1006 = vmatprep.subr.bf16.mxu0 %v1005_v3  ;;  %v1009_v12 = vpack.c.bf16 %v94_v10, %v93_v9  ;;  %v78_v13 = vld [vmem:[#allocation2 + $0x18] sm:$0xff]  ;;  %v95_v18 = vld [vmem:[#allocation2 + $0xa0] sm:$0xff] }
  0x29   :  { %v109_v14 = vld [vmem:[#allocation2 + $0x110] sm:$0xff]  ;;  %v110_v15 = vld [vmem:[#allocation2 + $0x118] sm:$0xff]  ;;  %1008 = vmatpush3.bf16.msra.mxu0 %v1007_v7  ;;  %v1011_v16 = vpack.c.bf16 %v78_v13, %v77_v11  ;;  %v96_v19 = vld [vmem:[#allocation2 + $0xa8] sm:$0xff] }
  0x2a   :  { %1038 = vmatprep.subr.bf16.mxu1 %v1037_v8  ;;  %v1041_v17 = vpack.c.bf16 %v110_v15, %v109_v14  ;;  %v79_v20 = vld [vmem:[#allocation2 + $0x20] sm:$0xff]  ;;  %1010 = vmatprep.subr.bf16.mxu0 %v1009_v12  ;;  %v1013_v21 = vpack.c.bf16 %v96_v19, %v95_v18  ;;  %v80_v22 = vld [vmem:[#allocation2 + $0x28] sm:$0xff]  ;;  %v97_v26 = vld [vmem:[#allocation2 + $0xb0] sm:$0xff] }
  0x2b   :  { %1040 = vmatpush3.bf16.msra.mxu1 %v1037_v8  ;;  %v111_v23 = vld [vmem:[#allocation2 + $0x120] sm:$0xff]  ;;  %v112_v24 = vld [vmem:[#allocation2 + $0x128] sm:$0xff]  ;;  %v98_v27 = vld [vmem:[#allocation2 + $0xb8] sm:$0xff]  ;;  %v1015_v30 = vpack.c.bf16 %v80_v22, %v79_v20 }
  0x2c   :  { %1042 = vmatprep.subr.bf16.mxu1 %v1041_v17  ;;  %v1045_v25 = vpack.c.bf16 %v112_v24, %v111_v23  ;;  %v113_v28 = vld [vmem:[#allocation2 + $0x130] sm:$0xff]  ;;  %v114_v29 = vld [vmem:[#allocation2 + $0x138] sm:$0xff]  ;;  %v1017_v31 = vpack.c.bf16 %v98_v27, %v97_v26  ;;  %v99_v35 = vld [vmem:[#allocation2 + $0xc0] sm:$0xff] }
  0x2d   :  { %1012 = vmatpush3.bf16.msra.mxu0 %v1011_v16  ;;  %v81_v32 = vld [vmem:[#allocation2 + $0x30] sm:$0xff]  ;;  %v82_v33 = vld [vmem:[#allocation2 + $0x38] sm:$0xff]  ;;  %v1049_v34 = vpack.c.bf16 %v114_v29, %v113_v28  ;;  %v100_v36 = vld [vmem:[#allocation2 + $0xc8] sm:$0xff] }
  0x2e   :  { %1014 = vmatprep.subr.bf16.mxu0 %v1013_v21  ;;  %v115_v37 = vld [vmem:[#allocation2 + $0x140] sm:$0xff]  ;;  %v116_v38 = vld [vmem:[#allocation2 + $0x148] sm:$0xff]  ;;  %v1019_v39 = vpack.c.bf16 %v82_v33, %v81_v32  ;;  %v1021_v40 = vpack.c.bf16 %v100_v36, %v99_v35  ;;  %v101_v44 = vld [vmem:[#allocation2 + $0xd0] sm:$0xff] }
  0x2f   :  { %1044 = vmatpush3.bf16.msra.mxu1 %v1041_v17  ;;  %v83_v41 = vld [vmem:[#allocation2 + $0x40] sm:$0xff]  ;;  %v84_v42 = vld [vmem:[#allocation2 + $0x48] sm:$0xff]  ;;  %v1053_v43 = vpack.c.bf16 %v116_v38, %v115_v37  ;;  %v102_v45 = vld [vmem:[#allocation2 + $0xd8] sm:$0xff] }
  0x30   :  { %1046 = vmatprep.subr.bf16.mxu1 %v1045_v25  ;;  %v117_v46 = vld [vmem:[#allocation2 + $0x150] sm:$0xff]  ;;  %v118_v47 = vld [vmem:[#allocation2 + $0x158] sm:$0xff]  ;;  %v1023_v48 = vpack.c.bf16 %v84_v42, %v83_v41  ;;  %v52_v49 = vld [vmem:[%s1569_s0 + $0x8] sm:$0xff]  ;;  %v1025_v51 = vpack.c.bf16 %v102_v45, %v101_v44 }
  0x31   :  { %1016 = vmatpush3.bf16.msra.mxu0 %v1015_v30  ;;  %v53_v50 = vld [vmem:[%s1569_s0 + $0x10] sm:$0xff]  ;;  %v86_v53 = vld [vmem:[#allocation2 + $0x58] sm:$0xff]  ;;  %v1057_v54 = vpack.c.bf16 %v118_v47, %v117_v46  ;;  %v103_v55 = vld [vmem:[#allocation2 + $0xe0] sm:$0xff]  ;;  %187 = vmatprep.mubr.f32.mxu0 %v52_v49 }
  0x32   :  { %1018 = vmatprep.subr.bf16.mxu0 %v1017_v31  ;;  %v85_v52 = vld [vmem:[#allocation2 + $0x50] sm:$0xff]  ;;  %v104_v56 = vld [vmem:[#allocation2 + $0xe8] sm:$0xff]  ;;  %v119_v57 = vld [vmem:[#allocation2 + $0x160] sm:$0xff]  ;;  %949 = vmatprep.mubr.f32.mxu1 %v53_v50 }
  0x33   :  { %1048 = vmatpush3.bf16.msra.mxu1 %v1045_v25  ;;  %v120_v58 = vld [vmem:[#allocation2 + $0x168] sm:$0xff]  ;;  %v1027_v59 = vpack.c.bf16 %v86_v53, %v85_v52  ;;  %v1029_v60 = vpack.c.bf16 %v104_v56, %v103_v55  ;;  %v87_v61 = vld [vmem:[#allocation2 + $0x60] sm:$0xff]  ;;  %v105_v0 = vld [vmem:[#allocation2 + $0xf0] sm:$0xff] }
  0x34   :  { %1050 = vmatprep.subr.bf16.mxu1 %v1049_v34  ;;  %v88_v62 = vld [vmem:[#allocation2 + $0x68] sm:$0xff]  ;;  %v1061_v63 = vpack.c.bf16 %v120_v58, %v119_v57  ;;  %v106_v1 = vld [vmem:[#allocation2 + $0xf8] sm:$0xff]  ;;  %v121_v2 = vld [vmem:[#allocation2 + $0x170] sm:$0xff] }
  0x35   :  { %1020 = vmatpush3.bf16.msra.mxu0 %v1019_v39  ;;  %v122_v3 = vld [vmem:[#allocation2 + $0x178] sm:$0xff]  ;;  %v1031_v4 = vpack.c.bf16 %v88_v62, %v87_v61  ;;  %v1033_v5 = vpack.c.bf16 %v106_v1, %v105_v0  ;;  %v89_v6 = vld [vmem:[#allocation2 + $0x70] sm:$0xff]  ;;  %v51_v10 = vld [vmem:[%s1569_s0] sm:$0xff] }
  0x36   :  { %1022 = vmatprep.subr.bf16.mxu0 %v1021_v40  ;;  %v90_v7 = vld [vmem:[#allocation2 + $0x78] sm:$0xff]  ;;  %v1065_v8 = vpack.c.bf16 %v122_v3, %v121_v2  ;;  %v56_v11 = vld [vmem:[%s1569_s0 + $0x28] sm:$0xff]  ;;  %v55_v12 = vld [vmem:[%s1569_s0 + $0x20] sm:$0xff] }
  0x37   :  { %1052 = vmatpush3.bf16.msra.mxu1 %v1049_v34  ;;  %v1035_v9 = vpack.c.bf16 %v90_v7, %v89_v6  ;;  %v59_v13 = vld [vmem:[%s1569_s0 + $0x40] sm:$0xff]  ;;  %v54_v14 = vld [vmem:[%s1569_s0 + $0x18] sm:$0xff]  ;;  %v65_v17 = vld [vmem:[%s1569_s0 + $0x70] sm:$0xff] }
  0x38   :  { %1054 = vmatprep.subr.bf16.mxu1 %v1053_v43  ;;  %v58_v15 = vld [vmem:[%s1569_s0 + $0x38] sm:$0xff]  ;;  %v57_v18 = vld [vmem:[%s1569_s0 + $0x30] sm:$0xff]  ;;  %v68_v20 = vld [vmem:[%s1569_s0 + $0x88] sm:$0xff] }
  0x39   :  { %1024 = vmatpush3.bf16.msra.mxu0 %v1023_v48  ;;  %v62_v16 = vld [vmem:[%s1569_s0 + $0x58] sm:$0xff]  ;;  %v61_v19 = vld [vmem:[%s1569_s0 + $0x50] sm:$0xff]  ;;  %v71_v21 = vld [vmem:[%s1569_s0 + $0xa0] sm:$0xff] }
  0x3a   :  { %1026 = vmatprep.subr.bf16.mxu0 %v1025_v51  ;;  %v60_v22 = vld [vmem:[%s1569_s0 + $0x48] sm:$0xff]  ;;  %v74_v24 = vld [vmem:[%s1569_s0 + $0xb8] sm:$0xff]  ;;  %v63_v25 = vld [vmem:[%s1569_s0 + $0x60] sm:$0xff] }
  0x3b   :  { %1056 = vmatpush3.bf16.msra.mxu1 %v1053_v43  ;;  %v64_v23 = vld [vmem:[%s1569_s0 + $0x68] sm:$0xff]  ;;  %v67_v26 = vld [vmem:[%s1569_s0 + $0x80] sm:$0xff]  ;;  %v66_v27 = vld [vmem:[%s1569_s0 + $0x78] sm:$0xff] }
  0x3c   :  { %1058 = vmatprep.subr.bf16.mxu1 %v1057_v54  ;;  %v70_v28 = vld [vmem:[%s1569_s0 + $0x98] sm:$0xff]  ;;  %v69_v29 = vld [vmem:[%s1569_s0 + $0x90] sm:$0xff]  ;;  %v72_v31 = vld [vmem:[%s1569_s0 + $0xa8] sm:$0xff] }
  0x3d   :  { %1028 = vmatpush3.bf16.msra.mxu0 %v1027_v59  ;;  %v73_v30 = vld [vmem:[%s1569_s0 + $0xb0] sm:$0xff] }
  0x3e   :  { %1030 = vmatprep.subr.bf16.mxu0 %v1029_v60 }
  0x3f   :  { %1060 = vmatpush3.bf16.msra.mxu1 %v1057_v54 }
  0x40   :  { %1062 = vmatprep.subr.bf16.mxu1 %v1061_v63 }
  0x41   :  { %1032 = vmatpush3.bf16.msra.mxu0 %v1031_v4 }
  0x42   :  { %1034 = vmatprep.subr.bf16.mxu0 %v1033_v5 }
  0x43   :  { %1064 = vmatpush3.bf16.msra.mxu1 %v1061_v63 }
  0x44   :  { %1066 = vmatprep.subr.bf16.mxu1 %v1065_v8 }
  0x45   :  { %1036 = vmatpush3.bf16.msra.mxu0 %v1035_v9 }
  0x47   :  { %1068 = vmatpush3.bf16.msra.mxu1 %v1065_v8 }
  0x48   :  { %188 = vmatmul.mubr.f32.vlgmr.msra.gmra.mrb[0].mxu0 %v51_v10 }
  0x49   :  { %192 = vmatprep.mubr.f32.mxu0 %v55_v12 }
  0x4a   :  { %950 = vmatmul.mubr.f32.vlgmr.msra.gmra.mrb[0].mxu1 %v56_v11 }
  0x4b   :  { %952 = vmatprep.mubr.f32.mxu1 %v59_v13 }
  0x4c   :  { %193 = vmatmul.mubr.f32.gmra.mrb[2].mxu0 %v54_v14 }
  0x4d   :  { %197 = vmatprep.mubr.f32.mxu0 %v58_v15 }
  0x4e   :  { %953 = vmatmul.mubr.f32.gmra.mrb[2].mxu1 %v62_v16 }
  0x4f   :  { %955 = vmatprep.mubr.f32.mxu1 %v65_v17 }
  0x50   :  { %198 = vmatmul.mubr.f32.gmra.mrb[4].mxu0 %v57_v18 }
  0x51   :  { %202 = vmatprep.mubr.f32.mxu0 %v61_v19 }
  0x52   :  { %956 = vmatmul.mubr.f32.gmra.mrb[4].mxu1 %v68_v20 }
  0x53   :  { %958 = vmatprep.mubr.f32.mxu1 %v71_v21 }
  0x54   :  { %203 = vmatmul.mubr.f32.gmra.mrb[6].mxu0 %v60_v22 }
  0x55   :  { %207 = vmatprep.mubr.f32.mxu0 %v64_v23 }
  0x56   :  { %959 = vmatmul.mubr.f32.gmra.mrb[6].mxu1 %v74_v24 }
  0x58   :  { %208 = vmatmul.mubr.f32.gmra.mrb[8].mxu0 %v63_v25 }
  0x59   :  { %212 = vmatprep.mubr.f32.mxu0 %v67_v26 }
  0x5c   :  { %213 = vmatmul.mubr.f32.gmra.mrb[10].mxu0 %v66_v27 }
  0x5d   :  { %217 = vmatprep.mubr.f32.mxu0 %v70_v28 }
  0x60   :  { %218 = vmatmul.mubr.f32.gmra.mrb[12].mxu0 %v69_v29 }
  0x61   :  { %222 = vmatprep.mubr.f32.mxu0 %v73_v30 }
  0x64   :  { %223 = vmatmul.mubr.f32.gmra.mrb[14].mxu0 %v72_v31 }
 0x11b   :  { %v845_v32 = vpop.f32.mrb[0].mxu0 }
 0x11c   :  { %v846_v33 = vpop.f32.mrb[1].mxu0 }
 0x11d   :  { %v951_v34 = vpop.f32.mrb[0].mxu1  ;;  %v847_v35 = vadd.f32 %v846_v33, %v845_v32 }
 0x11e   :  { %v294_v36 = vpop.f32.mrb[1].mxu1 }
 0x11f   :  { %v1352_v37 = vadd.f32 %v847_v35, %v294_v36  ;;  %v848_v38 = vpop.f32.mrb[2].mxu0 }
 0x120   :  { %v849_v39 = vpop.f32.mrb[3].mxu0 }
 0x121   :  { %v954_v40 = vpop.f32.mrb[2].mxu1  ;;  %v1355_v41 = vmul.f32 0.70710677, %v1352_v37  ;;  %v850_v42 = vadd.f32 %v849_v39, %v848_v38 }
 0x122   :  { %v304_v43 = vpop.f32.mrb[3].mxu1 }
 0x123   :  { %v349_v44 = vand.u32 2147483647, %v1355_v41  ;;  %v1358_v45 = vadd.f32 %v951_v34, %v850_v42  ;;  %v851_v46 = vpop.f32.mrb[4].mxu0  ;;  %vm509_vm0 = vcmp.ge.f32.partialorder %v1355_v41, 0.0 }
 0x124   :  { %v852_v47 = vpop.f32.mrb[5].mxu0 }
 0x125   :  { %v957_v48 = vpop.f32.mrb[4].mxu1  ;;  %v357_v49 = vmul.f32 0.3275911, %v349_v44  ;;  %v1361_v50 = vmul.f32 0.70710677, %v1358_v45  ;;  %v853_v51 = vadd.f32 %v852_v47, %v851_v46  ;;  %v461_v5 = vsub.f32 0.0, %v349_v44 }
 0x126   :  { %v314_v52 = vpop.f32.mrb[5].mxu1 }
 0x127   :  { %v365_v53 = vadd.f32 1.0, %v357_v49  ;;  %v350_v54 = vand.u32 2147483647, %v1361_v50  ;;  %v1364_v55 = vadd.f32 %v853_v51, %v304_v43  ;;  %v854_v56 = vpop.f32.mrb[6].mxu0  ;;  %v469_v15 = vmul.f32 %v461_v5, %v349_v44 }
 0x128   :  { %v855_v57 = vpop.f32.mrb[7].mxu0  ;;  %vm510_vm1 = vcmp.ge.f32.partialorder %v1361_v50, 0.0 }
 0x129   :  { %v1366_v58 = vpop.f32.mrb[6].mxu1  ;;  %1121 = vrcp.f32 %v365_v53  ;;  %v358_v59 = vmul.f32 0.3275911, %v350_v54  ;;  %v1369_v61 = vmul.f32 0.70710677, %v1364_v55  ;;  %v856_v62 = vadd.f32 %v855_v57, %v854_v56 }
 0x12a   :  { %v324_v60 = vpop.f32.mrb[7].mxu1  ;;  %v462_v18 = vsub.f32 0.0, %v350_v54  ;;  %v477_v29 = vmul.f32 1.442695, %v469_v15 }
 0x12b   :  { %v366_v63 = vadd.f32 1.0, %v358_v59  ;;  %v857_v0 = vpop.f32.mrb[8].mxu0  ;;  %v351_v1 = vand.u32 2147483647, %v1369_v61  ;;  %v1372_v2 = vadd.f32 %v954_v40, %v856_v62  ;;  %vm511_vm2 = vcmp.ge.f32.partialorder %v1369_v61, 0.0 }
 0x12c   :  { %v858_v3 = vpop.f32.mrb[9].mxu0  ;;  %v470_v33 = vmul.f32 %v462_v18, %v350_v54 }
 0x12d   :  { %1123 = vrcp.f32 %v366_v63  ;;  %v859_v4 = vadd.f32 %v858_v3, %v857_v0  ;;  %v359_v6 = vmul.f32 0.3275911, %v351_v1  ;;  %v1375_v7 = vmul.f32 0.70710677, %v1372_v2 }
 0x12e   :  { %v463_v22 = vsub.f32 0.0, %v351_v1  ;;  %v479_v51 = vmul.f32 1.442695, %v470_v33 }
 0x12f   :  { %v1377_v8 = vadd.f32 %v859_v4, %v314_v52  ;;  %v860_v9 = vpop.f32.mrb[10].mxu0  ;;  %v367_v10 = vadd.f32 1.0, %v359_v6  ;;  %v352_v11 = vand.u32 2147483647, %v1375_v7  ;;  %vm512_vm4 = vcmp.ge.f32.partialorder %v1375_v7, 0.0 }
 0x130   :  { %v861_v12 = vpop.f32.mrb[11].mxu0  ;;  %v471_v39 = vmul.f32 %v463_v22, %v351_v1 }
 0x131   :  { %v1381_v13 = vmul.f32 0.70710677, %v1377_v8  ;;  %v862_v14 = vadd.f32 %v861_v12, %v860_v9  ;;  %1125 = vrcp.f32 %v367_v10  ;;  %v360_v16 = vmul.f32 0.3275911, %v352_v11 }
 0x132   :  { %v464_v30 = vsub.f32 0.0, %v352_v11  ;;  %v481_v56 = vmul.f32 1.442695, %v471_v39 }
 0x133   :  { %v1383_v17 = vpop.eup %1121  ;;  %v353_v19 = vand.u32 2147483647, %v1381_v13  ;;  %v1386_v20 = vadd.f32 %v957_v48, %v862_v14  ;;  %v863_v21 = vpop.f32.mrb[12].mxu0  ;;  %v368_v23 = vadd.f32 1.0, %v360_v16  ;;  %vm513_vm3 = vcmp.ge.f32.partialorder %v1381_v13, 0.0 }
 0x134   :  { %v864_v24 = vpop.f32.mrb[13].mxu0  ;;  %v389_v25 = vmul.f32 1.0614054, %v1383_v17  ;;  %v472_v46 = vmul.f32 %v464_v30, %v352_v11 }
 0x135   :  { %v361_v26 = vmul.f32 0.3275911, %v353_v19  ;;  %v1390_v27 = vmul.f32 0.70710677, %v1386_v20  ;;  %v865_v28 = vadd.f32 %v864_v24, %v863_v21  ;;  %1127 = vrcp.f32 %v368_v23 }
 0x136   :  { %v397_v31 = vadd.f32 -1.4531521, %v389_v25  ;;  %v465_v62 = vsub.f32 0.0, %v353_v19  ;;  %v483_v1 = vmul.f32 1.442695, %v472_v46 }
 0x137   :  { %v1392_v32 = vpop.eup %1123  ;;  %v369_v34 = vadd.f32 1.0, %v361_v26  ;;  %v354_v35 = vand.u32 2147483647, %v1390_v27  ;;  %v1395_v36 = vadd.f32 %v865_v28, %v324_v60  ;;  %v866_v38 = vpop.f32.mrb[14].mxu0  ;;  %vm514_vm5 = vcmp.ge.f32.partialorder %v1390_v27, 0.0 }
 0x138   :  { %v867_v40 = vpop.f32.mrb[15].mxu0  ;;  %v405_v42 = vmul.f32 %v1383_v17, %v397_v31  ;;  %v390_v43 = vmul.f32 1.0614054, %v1392_v32  ;;  %v473_v21 = vmul.f32 %v465_v62, %v353_v19 }
 0x139   :  { %1129 = vrcp.f32 %v369_v34  ;;  %v362_v44 = vmul.f32 0.3275911, %v354_v35  ;;  %v1400_v47 = vmul.f32 0.70710677, %v1395_v36  ;;  %v868_v48 = vadd.f32 %v867_v40, %v866_v38 }
 0x13a   :  { %v413_v49 = vadd.f32 1.4214138, %v405_v42  ;;  %1131 = vpow2.f32 %v477_v29  ;;  %v398_v53 = vadd.f32 -1.4531521, %v390_v43  ;;  %v333_v40 = vmul.f32 0.5, %v1352_v37 }
 0x13b   :  { %v370_v52 = vadd.f32 1.0, %v362_v44  ;;  %v1402_v54 = vpop.eup %1125  ;;  %v355_v57 = vand.u32 2147483647, %v1400_v47  ;;  %v1406_v59 = vadd.f32 %v1366_v58, %v868_v48  ;;  %v466_v58 = vsub.f32 0.0, %v354_v35 }
 0x13c   :  { %v421_v60 = vmul.f32 %v1383_v17, %v413_v49  ;;  %v406_v63 = vmul.f32 %v1392_v32, %v398_v53  ;;  %v391_v0 = vmul.f32 1.0614054, %v1402_v54  ;;  %v485_v42 = vmul.f32 1.442695, %v473_v21 }
 0x13d   :  { %1133 = vrcp.f32 %v370_v52  ;;  %v363_v3 = vmul.f32 0.3275911, %v355_v57  ;;  %v1412_v4 = vmul.f32 0.70710677, %v1406_v59  ;;  %v474_v28 = vmul.f32 %v466_v58, %v354_v35 }
 0x13e   :  { %1135 = vpow2.f32 %v479_v51  ;;  %v429_v5 = vadd.f32 -0.28449672, %v421_v60  ;;  %v414_v6 = vadd.f32 1.4214138, %v406_v63  ;;  %v399_v9 = vadd.f32 -1.4531521, %v391_v0 }
 0x13f   :  { %v1414_v10 = vpop.eup %1127  ;;  %1137 = vpow2.f32 %v481_v56  ;;  %v371_v11 = vadd.f32 1.0, %v363_v3  ;;  %v1417_v12 = vand.u32 2147483647, %v1412_v4  ;;  %v467_v29 = vsub.f32 0.0, %v355_v57 }
 0x140   :  { %v437_v14 = vmul.f32 %v1383_v17, %v429_v5  ;;  %v422_v15 = vmul.f32 %v1392_v32, %v414_v6  ;;  %v407_v16 = vmul.f32 %v1402_v54, %v399_v9  ;;  %v392_v18 = vmul.f32 1.0614054, %v1414_v10 }
 0x141   :  { %1139 = vrcp.f32 %v371_v11  ;;  %v364_v22 = vmul.f32 0.3275911, %v1417_v12  ;;  %v487_v51 = vmul.f32 1.442695, %v474_v28  ;;  %v475_v52 = vmul.f32 %v467_v29, %v355_v57 }
 0x142   :  { %1141 = vpow2.f32 %v483_v1  ;;  %v445_v24 = vadd.f32 0.2548296, %v437_v14  ;;  %v430_v25 = vadd.f32 -0.28449672, %v422_v15  ;;  %v415_v26 = vadd.f32 1.4214138, %v407_v16 }
 0x143   :  { %v1424_v23 = vpop.eup %1129  ;;  %v372_v30 = vadd.f32 1.0, %v364_v22  ;;  %v400_v39 = vadd.f32 -1.4531521, %v392_v18  ;;  %v489_v11 = vmul.f32 1.442695, %v475_v52  ;;  %v468_v22 = vsub.f32 0.0, %v1417_v12 }
 0x144   :  { %v393_v31 = vmul.f32 1.0614054, %v1424_v23  ;;  %v1132_v33 = vpop.eup %1131  ;;  %v453_v34 = vmul.f32 %v1383_v17, %v445_v24  ;;  %v438_v38 = vmul.f32 %v1392_v32, %v430_v25  ;;  %v423_v19 = vmul.f32 %v1402_v54, %v415_v26 }
 0x145   :  { %1143 = vrcp.f32 %v372_v30  ;;  %v408_v49 = vmul.f32 %v1414_v10, %v400_v39  ;;  %vm515_vm6 = vcmp.ge.f32.partialorder %v1400_v47, 0.0  ;;  %vm516_vm7 = vcmp.ge.f32.partialorder %v1412_v4, 0.0 }
 0x146   :  { %v401_v43 = vadd.f32 -1.4531521, %v393_v31  ;;  %v493_v35 = vmul.f32 %v1132_v33, %v453_v34  ;;  %v446_v46 = vadd.f32 0.2548296, %v438_v38  ;;  %v431_v48 = vadd.f32 -0.28449672, %v423_v19 }
 0x147   :  { %v1431_v44 = vpop.eup %1133  ;;  %v416_v63 = vadd.f32 1.4214138, %v408_v49  ;;  %1145 = vpow2.f32 %v485_v42  ;;  %v334_v19 = vmul.f32 0.5, %v1358_v45 }
 0x148   :  { %v409_v17 = vmul.f32 %v1424_v23, %v401_v43  ;;  %v394_v53 = vmul.f32 1.0614054, %v1431_v44  ;;  %v1136_v56 = vpop.eup %1135  ;;  %v501_v60 = vsub.f32 1.0, %v493_v35  ;;  %v454_v37 = vmul.f32 %v1392_v32, %v446_v46 }
 0x149   :  { %v439_v62 = vmul.f32 %v1402_v54, %v431_v48  ;;  %v1138_v0 = vpop.eup %1137  ;;  %v424_v9 = vmul.f32 %v1414_v10, %v416_v63  ;;  %1147 = vpow2.f32 %v487_v51  ;;  %v476_v48 = vmul.f32 %v468_v22, %v1417_v12 }
 0x14a   :  { %v417_v1 = vadd.f32 1.4214138, %v409_v17  ;;  %v402_v3 = vadd.f32 -1.4531521, %v394_v53  ;;  %v517_v5 = vsub.f32 0.0, %v501_v60  ;;  %v494_v6 = vmul.f32 %v1136_v56, %v454_v37 }
 0x14b   :  { %v447_v57 = vadd.f32 0.2548296, %v439_v62  ;;  %v1440_v58 = vpop.eup %1139  ;;  %v432_v31 = vadd.f32 -0.28449672, %v424_v9  ;;  %1149 = vpow2.f32 %v489_v11 }
 0x14c   :  { %v425_v32 = vmul.f32 %v1424_v23, %v417_v1  ;;  %v410_v14 = vmul.f32 %v1431_v44, %v402_v3  ;;  %v1142_v15 = vpop.eup %1141  ;;  %v525_v16 = vsel %vm509_vm0, %v501_v60, %v517_v5  ;;  %v502_v18 = vsub.f32 1.0, %v494_v6 }
 0x14d   :  { %v455_v41 = vmul.f32 %v1402_v54, %v447_v57  ;;  %v395_v21 = vmul.f32 1.0614054, %v1440_v58  ;;  %v533_v24 = vadd.f32 1.0, %v525_v16  ;;  %v440_v43 = vmul.f32 %v1414_v10, %v432_v31 }
 0x14e   :  { %v433_v25 = vadd.f32 -0.28449672, %v425_v32  ;;  %v418_v26 = vadd.f32 1.4214138, %v410_v14  ;;  %v518_v28 = vsub.f32 0.0, %v502_v18 }
 0x14f   :  { %v495_v29 = vmul.f32 %v1138_v0, %v455_v41  ;;  %v403_v30 = vadd.f32 -1.4531521, %v395_v21  ;;  %v1447_v33 = vpop.eup %1143  ;;  %v1449_v34 = vmul.f32 %v533_v24, %v333_v40  ;;  %v448_v51 = vadd.f32 0.2548296, %v440_v43 }
 0x150   :  { %v441_v38 = vmul.f32 %v1424_v23, %v433_v25  ;;  %v426_v54 = vmul.f32 %v1431_v44, %v418_v26  ;;  %v526_v39 = vsel %vm510_vm1, %v502_v18, %v518_v28  ;;  %v396_v56 = vmul.f32 1.0614054, %v1447_v33 }
 0x151   :  { %v411_v42 = vmul.f32 %v1440_v58, %v403_v30  ;;  %551 = vadd.xlane.f32.xlu0 %v1449_v34  ;;  %v534_v35 = vadd.f32 1.0, %v526_v39  ;;  %v503_v50 = vsub.f32 1.0, %v495_v29  ;;  %v1146_v52 = vpop.eup %1145  ;;  %v456_v37 = vmul.f32 %v1414_v10, %v448_v51 }
 0x152   :  { %v449_v46 = vadd.f32 0.2548296, %v441_v38  ;;  %v434_v40 = vadd.f32 -0.28449672, %v426_v54  ;;  %v404_v0 = vadd.f32 -1.4531521, %v396_v56 }
 0x153   :  { %v419_v49 = vadd.f32 1.4214138, %v411_v42  ;;  %v1459_v17 = vmul.f32 %v534_v35, %v334_v19  ;;  %v1148_v62 = vpop.eup %1147  ;;  %v491_v1 = vmul.f32 1.442695, %v476_v48  ;;  %v519_v3 = vsub.f32 0.0, %v503_v50 }
 0x154   :  { %v457_v45 = vmul.f32 %v1424_v23, %v449_v46  ;;  %v442_v53 = vmul.f32 %v1431_v44, %v434_v40  ;;  %v496_v6 = vmul.f32 %v1142_v15, %v456_v37  ;;  %v412_v9 = vmul.f32 %v1447_v33, %v404_v0 }
 0x155   :  { %v427_v60 = vmul.f32 %v1440_v58, %v419_v49  ;;  %553 = vadd.xlane.f32.xlu1 %v1459_v17  ;;  %1151 = vpow2.f32 %v491_v1  ;;  %v527_v18 = vsel %vm511_vm2, %v503_v50, %v519_v3  ;;  %v1150_v21 = vpop.eup %1149  ;;  %v337_v25 = vmul.f32 0.5, %v1377_v8 }
 0x156   :  { %v497_v12 = vmul.f32 %v1146_v52, %v457_v45  ;;  %v450_v63 = vadd.f32 0.2548296, %v442_v53  ;;  %v504_v32 = vsub.f32 1.0, %v496_v6  ;;  %v420_v16 = vadd.f32 1.4214138, %v412_v9 }
 0x157   :  { %v435_v5 = vadd.f32 -0.28449672, %v427_v60  ;;  %v535_v13 = vadd.f32 1.0, %v527_v18  ;;  %v335_v39 = vmul.f32 0.5, %v1364_v55  ;;  %v338_v8 = vmul.f32 0.5, %v1386_v20 }
 0x158   :  { %v505_v57 = vsub.f32 1.0, %v497_v12  ;;  %v458_v23 = vmul.f32 %v1431_v44, %v450_v63  ;;  %v520_v24 = vsub.f32 0.0, %v504_v32  ;;  %v428_v44 = vmul.f32 %v1447_v33, %v420_v16  ;;  %v671_v63 = vld [vmem:[#allocation4 + $0x18] sm:$0xff] }
 0x159   :  { %v443_v11 = vmul.f32 %v1440_v58, %v435_v5  ;;  %v543_v35 = vmul.f32 %v535_v13, %v335_v39  ;;  %v336_v55 = vmul.f32 0.5, %v1372_v2  ;;  %v339_v49 = vmul.f32 0.5, %v1395_v36  ;;  %v668_v2 = vld [vmem:[#allocation4] sm:$0xff]  ;;  %v669_v36 = vld [vmem:[#allocation4 + $0x8] sm:$0xff]  ;;  %v674_v13 = vld [vmem:[#allocation4 + $0x30] sm:$0xff] }
 0x15a   :  { %v521_v10 = vsub.f32 0.0, %v505_v57  ;;  %v498_v14 = vmul.f32 %v1148_v62, %v458_v23  ;;  %v436_v29 = vadd.f32 -0.28449672, %v428_v44  ;;  %v528_v54 = vsel %vm512_vm4, %v504_v32, %v520_v24  ;;  %v670_v62 = vld [vmem:[#allocation4 + $0x10] sm:$0xff] }
 0x15b   :  { %v451_v41 = vadd.f32 0.2548296, %v443_v11  ;;  %v536_v40 = vadd.f32 1.0, %v528_v54  ;;  %v1069_v12 = vpack.c.bf16 %v669_v36, %v668_v2  ;;  %v1073_v0 = vpack.c.bf16 %v671_v63, %v670_v62  ;;  %v810_v2 = vld [vmem:[%s1571_s2] ss:$0 sm:$0xff] }
 0x15c   :  { %v529_v15 = vsel %vm513_vm3, %v505_v57, %v521_v10  ;;  %v506_v22 = vsub.f32 1.0, %v498_v14  ;;  %v444_v19 = vmul.f32 %v1447_v33, %v436_v29  ;;  %v811_v63 = vld [vmem:[%s1572_s3] ss:$0 sm:$0xff] }
 0x15d   :  { %v537_v26 = vadd.f32 1.0, %v529_v15  ;;  %v459_v28 = vmul.f32 %v1440_v58, %v451_v41  ;;  %v544_v52 = vmul.f32 %v536_v40, %v336_v55  ;;  %1070 = vmatprep.subr.bf16.mxu0 %v1069_v12  ;;  %1101 = vmatprep.subr.bf16.mxu1 %v1069_v12  ;;  %v672_v15 = vld [vmem:[#allocation4 + $0x20] sm:$0xff] }
 0x15e   :  { %v522_v61 = vsub.f32 0.0, %v506_v22  ;;  %v452_v7 = vadd.f32 0.2548296, %v444_v19  ;;  %1072 = vmatpush3.bf16.msra.mxu0 %v1069_v12  ;;  %1109 = vmatpush3.bf16.msra.mxu1 %v1069_v12 }
 0x15f   :  { %v1476_v30 = vmul.f32 %v537_v26, %v337_v25  ;;  %v499_v31 = vmul.f32 %v1150_v21, %v459_v28  ;;  %v1152_v48 = vpop.eup %1151  ;;  %1074 = vmatprep.subr.bf16.mxu0 %v1073_v0  ;;  %1102 = vmatprep.subr.bf16.mxu1 %v1073_v0 }
 0x160   :  { %v530_v38 = vsel %vm514_vm5, %v506_v22, %v522_v61  ;;  %v460_v27 = vmul.f32 %v1447_v33, %v452_v7  ;;  %v340_v33 = vmul.f32 0.5, %v1406_v59  ;;  %v673_v22 = vld [vmem:[#allocation4 + $0x28] sm:$0xff] }
 0x161   :  { %559 = vadd.xlane.f32.xlu0 %v1476_v30  ;;  %v538_v58 = vadd.f32 1.0, %v530_v38  ;;  %v507_v42 = vsub.f32 1.0, %v499_v31  ;;  %v1077_v28 = vpack.c.bf16 %v673_v22, %v672_v15  ;;  %v675_v31 = vld [vmem:[#allocation4 + $0x38] sm:$0xff] }
 0x162   :  { %v500_v51 = vmul.f32 %v1152_v48, %v460_v27  ;;  %1076 = vmatpush3.bf16.msra.mxu0 %v1073_v0  ;;  %1110 = vmatpush3.bf16.msra.mxu1 %v1073_v0  ;;  %v1081_v54 = vpack.c.bf16 %v675_v31, %v674_v13  ;;  %v680_v48 = vld [vmem:[#allocation4 + $0x60] sm:$0xff] }
 0x163   :  { %v546_v43 = vmul.f32 %v538_v58, %v338_v8  ;;  %v523_v46 = vsub.f32 0.0, %v507_v42  ;;  %1078 = vmatprep.subr.bf16.mxu0 %v1077_v28  ;;  %1103 = vmatprep.subr.bf16.mxu1 %v1077_v28  ;;  %v676_v8 = vld [vmem:[#allocation4 + $0x40] sm:$0xff]  ;;  %v677_v58 = vld [vmem:[#allocation4 + $0x48] sm:$0xff] }
 0x164   :  { %v508_v53 = vsub.f32 1.0, %v500_v51  ;;  %v1085_v7 = vpack.c.bf16 %v677_v58, %v676_v8 }
 0x165   :  { %561 = vadd.xlane.f32.xlu1 %v546_v43  ;;  %555 = vadd.xlane.f32.xlu0 %v543_v35  ;;  %v531_v50 = vsel %vm515_vm6, %v507_v42, %v523_v46  ;;  %v679_v46 = vld [vmem:[#allocation4 + $0x58] sm:$0xff] }
 0x166   :  { %v539_v20 = vadd.f32 1.0, %v531_v50  ;;  %v524_v56 = vsub.f32 0.0, %v508_v53  ;;  %1080 = vmatpush3.bf16.msra.mxu0 %v1077_v28  ;;  %1111 = vmatpush3.bf16.msra.mxu1 %v1077_v28  ;;  %v681_v50 = vld [vmem:[#allocation4 + $0x68] sm:$0xff] }
 0x167   :  { %1082 = vmatprep.subr.bf16.mxu0 %v1081_v54  ;;  %1104 = vmatprep.subr.bf16.mxu1 %v1081_v54  ;;  %v1093_v55 = vpack.c.bf16 %v681_v50, %v680_v48 }
 0x168   :  { %v547_v45 = vmul.f32 %v539_v20, %v339_v49  ;;  %v532_v47 = vsel %vm516_vm7, %v508_v53, %v524_v56  ;;  %v682_v49 = vld [vmem:[#allocation4 + $0x70] sm:$0xff]  ;;  %v683_v20 = vld [vmem:[#allocation4 + $0x78] sm:$0xff] }
 0x169   :  { %557 = vadd.xlane.f32.xlu0 %v544_v52  ;;  %v540_v60 = vadd.f32 1.0, %v532_v47  ;;  %v1097_v51 = vpack.c.bf16 %v683_v20, %v682_v49 }
 0x16a   :  { %563 = vadd.xlane.f32.xlu1 %v547_v45  ;;  %1084 = vmatpush3.bf16.msra.mxu0 %v1081_v54 }
 0x16b   :  { %v1489_v37 = vmul.f32 %v540_v60, %v340_v33  ;;  %1112 = vmatpush3.bf16.msra.mxu1 %v1081_v54  ;;  %1086 = vmatprep.subr.bf16.mxu0 %v1085_v7 }
 0x16c   :  { %1105 = vmatprep.subr.bf16.mxu1 %v1085_v7 }
 0x16e   :  { %565 = vadd.xlane.f32.xlu1 %v1489_v37  ;;  %1088 = vmatpush3.bf16.msra.mxu0 %v1085_v7 }
 0x16f   :  { %1113 = vmatpush3.bf16.msra.mxu1 %v1085_v7 }
 0x1de   :  { %v552_v59 = vpop.xlane.xlu0 %551 }
 0x1df   :  { %v568_v4 = vmul.f32 0.0078125, %v552_v59 }
 0x1e1   :  { %v1493_v1 = vsub.f32 %v1449_v34, %v568_v4 }
 0x1e2   :  { %v554_v3 = vpop.xlane.xlu1 %553 }
 0x1e3   :  { %v569_v5 = vmul.f32 0.0078125, %v554_v3  ;;  %v584_v6 = vmul.f32 %v1493_v1, %v1493_v1 }
 0x1e5   :  { %v1498_v57 = vsub.f32 %v1459_v17, %v569_v5  ;;  %592 = vadd.xlane.f32.xlu0 %v584_v6 }
 0x1e7   :  { %v585_v23 = vmul.f32 %v1498_v57, %v1498_v57 }
 0x1e9   :  { %594 = vadd.xlane.f32.xlu0 %v585_v23 }
 0x1ee   :  { %v560_v9 = vpop.xlane.xlu0 %559 }
 0x1ef   :  { %v572_v11 = vmul.f32 0.0078125, %v560_v9 }
 0x1f1   :  { %v1503_v32 = vsub.f32 %v1476_v30, %v572_v11 }
 0x1f2   :  { %v562_v34 = vpop.xlane.xlu1 %561  ;;  %v556_v10 = vpop.xlane.xlu0 %555 }
 0x1f3   :  { %v573_v14 = vmul.f32 0.0078125, %v562_v34  ;;  %v570_v16 = vmul.f32 0.0078125, %v556_v10  ;;  %v588_v18 = vmul.f32 %v1503_v32, %v1503_v32 }
 0x1f5   :  { %v1507_v41 = vsub.f32 %v546_v43, %v573_v14  ;;  %v1509_v17 = vsub.f32 %v543_v35, %v570_v16  ;;  %600 = vadd.xlane.f32.xlu1 %v588_v18  ;;  %v678_v35 = vld [vmem:[#allocation4 + $0x50] sm:$0xff] }
 0x1f6   :  { %v558_v21 = vpop.xlane.xlu0 %557  ;;  %v1089_v27 = vpack.c.bf16 %v679_v46, %v678_v35 }
 0x1f7   :  { %v564_v24 = vpop.xlane.xlu1 %563  ;;  %v571_v44 = vmul.f32 0.0078125, %v558_v21  ;;  %v589_v25 = vmul.f32 %v1507_v41, %v1507_v41  ;;  %v586_v26 = vmul.f32 %v1509_v17, %v1509_v17 }
 0x1f8   :  { %v574_v61 = vmul.f32 0.0078125, %v564_v24  ;;  %1090 = vmatprep.subr.bf16.mxu0 %v1089_v27  ;;  %1106 = vmatprep.subr.bf16.mxu1 %v1089_v27 }
 0x1f9   :  { %v1515_v29 = vsub.f32 %v544_v52, %v571_v44  ;;  %602 = vadd.xlane.f32.xlu1 %v589_v25  ;;  %596 = vadd.xlane.f32.xlu0 %v586_v26 }
 0x1fa   :  { %v1517_v30 = vsub.f32 %v547_v45, %v574_v61  ;;  %1092 = vmatpush3.bf16.msra.mxu0 %v1089_v27  ;;  %1114 = vmatpush3.bf16.msra.mxu1 %v1089_v27 }
 0x1fb   :  { %v587_v38 = vmul.f32 %v1515_v29, %v1515_v29  ;;  %v566_v39 = vpop.xlane.xlu1 %565  ;;  %1094 = vmatprep.subr.bf16.mxu0 %v1093_v55  ;;  %1107 = vmatprep.subr.bf16.mxu1 %v1093_v55 }
 0x1fc   :  { %v590_v19 = vmul.f32 %v1517_v30, %v1517_v30  ;;  %v575_v42 = vmul.f32 0.0078125, %v566_v39 }
 0x1fd   :  { %598 = vadd.xlane.f32.xlu0 %v587_v38 }
 0x1fe   :  { %604 = vadd.xlane.f32.xlu1 %v590_v19  ;;  %v1524_v43 = vsub.f32 %v1489_v37, %v575_v42  ;;  %1096 = vmatpush3.bf16.msra.mxu0 %v1093_v55 }
 0x1ff   :  { %1115 = vmatpush3.bf16.msra.mxu1 %v1093_v55  ;;  %1098 = vmatprep.subr.bf16.mxu0 %v1097_v51 }
 0x200   :  { %v591_v40 = vmul.f32 %v1524_v43, %v1524_v43  ;;  %1108 = vmatprep.subr.bf16.mxu1 %v1097_v51 }
 0x202   :  { %606 = vadd.xlane.f32.xlu1 %v591_v40  ;;  %1100 = vmatpush3.bf16.msra.mxu0 %v1097_v51 }
 0x203   :  { %1116 = vmatpush3.bf16.msra.mxu1 %v1097_v51 }
 0x272   :  { %v593_v52 = vpop.xlane.xlu0 %592 }
 0x273   :  { %v608_v45 = vmul.f32 0.0078125, %v593_v52 }
 0x275   :  { %v616_v53 = vadd.f32 1e-05, %v608_v45 }
 0x276   :  { %v595_v56 = vpop.xlane.xlu0 %594 }
 0x277   :  { %1153 = vrsqrt.f32 %v616_v53  ;;  %v609_v47 = vmul.f32 0.0078125, %v595_v56 }
 0x279   :  { %v617_v33 = vadd.f32 1e-05, %v609_v47 }
 0x27b   :  { %1155 = vrsqrt.f32 %v617_v33 }
 0x281   :  { %v1154_v60 = vpop.eup %1153 }
 0x282   :  { %v601_v37 = vpop.xlane.xlu1 %600  ;;  %v632_v62 = vmul.f32 %v1154_v60, %v1493_v1 }
 0x283   :  { %v612_v36 = vmul.f32 0.0078125, %v601_v37 }
 0x284   :  { %v646_v0 = vmul.f32 %v810_v2, %v632_v62 }
 0x285   :  { %v620_v12 = vadd.f32 1e-05, %v612_v36  ;;  %v1156_v59 = vpop.eup %1155 }
 0x286   :  { %v603_v4 = vpop.xlane.xlu1 %602  ;;  %v597_v3 = vpop.xlane.xlu0 %596  ;;  %v633_v5 = vmul.f32 %v1156_v59, %v1498_v57  ;;  %v660_v9 = vadd.f32 %v811_v63, %v646_v0 }
 0x287   :  { %1157 = vrsqrt.f32 %v620_v12  ;;  %v613_v6 = vmul.f32 0.0078125, %v603_v4  ;;  %v610_v23 = vmul.f32 0.0078125, %v597_v3 }
 0x288   :  { %v647_v10 = vmul.f32 %v810_v2, %v633_v5  ;;  %993 = vmatprep.mubr.f32.mxu0 %v660_v9 }
 0x289   :  { %v621_v11 = vadd.f32 1e-05, %v613_v6  ;;  %v618_v34 = vadd.f32 1e-05, %v610_v23 }
 0x28a   :  { %v599_v1 = vpop.xlane.xlu0 %598  ;;  %v661_v18 = vadd.f32 %v811_v63, %v647_v10 }
 0x28b   :  { %1159 = vrsqrt.f32 %v621_v11  ;;  %v605_v14 = vpop.xlane.xlu1 %604  ;;  %v611_v16 = vmul.f32 0.0078125, %v599_v1 }
 0x28c   :  { %1161 = vrsqrt.f32 %v618_v34  ;;  %v614_v21 = vmul.f32 0.0078125, %v605_v14  ;;  %994 = vmatmul.mubr.f32.vlgmr.msra.gmra.mrb[16].mxu0 %v661_v18 }
 0x28d   :  { %v619_v15 = vadd.f32 1e-05, %v611_v16 }
 0x28e   :  { %v622_v22 = vadd.f32 1e-05, %v614_v21 }
 0x28f   :  { %1163 = vrsqrt.f32 %v619_v15  ;;  %v607_v24 = vpop.xlane.xlu1 %606 }
 0x290   :  { %1165 = vrsqrt.f32 %v622_v22  ;;  %v615_v25 = vmul.f32 0.0078125, %v607_v24 }
 0x291   :  { %v1158_v57 = vpop.eup %1157 }
 0x292   :  { %v636_v44 = vmul.f32 %v1158_v57, %v1503_v32  ;;  %v623_v61 = vadd.f32 1e-05, %v615_v25 }
 0x294   :  { %v650_v26 = vmul.f32 %v810_v2, %v636_v44  ;;  %1167 = vrsqrt.f32 %v623_v61 }
 0x295   :  { %v1160_v28 = vpop.eup %1159 }
 0x296   :  { %v1162_v13 = vpop.eup %1161  ;;  %v637_v31 = vmul.f32 %v1160_v28, %v1507_v41  ;;  %v664_v38 = vadd.f32 %v811_v63, %v650_v26 }
 0x297   :  { %v634_v54 = vmul.f32 %v1162_v13, %v1509_v17 }
 0x298   :  { %999 = vmatprep.mubr.f32.mxu1 %v664_v38  ;;  %v651_v19 = vmul.f32 %v810_v2, %v637_v31 }
 0x299   :  { %v1164_v39 = vpop.eup %1163  ;;  %v648_v8 = vmul.f32 %v810_v2, %v634_v54 }
 0x29a   :  { %v1166_v58 = vpop.eup %1165  ;;  %v665_v42 = vadd.f32 %v811_v63, %v651_v19  ;;  %v635_v7 = vmul.f32 %v1164_v39, %v1515_v29  ;;  %v812_v29 = vld [vmem:[%s1574_s5] ss:$0 sm:$0xff] }
 0x29b   :  { %v662_v32 = vadd.f32 %v811_v63, %v648_v8  ;;  %v638_v35 = vmul.f32 %v1166_v58, %v1517_v30 }
 0x29c   :  { %1000 = vmatmul.mubr.f32.vlgmr.msra.gmra.mrb[8].mxu1 %v665_v42  ;;  %v649_v46 = vmul.f32 %v810_v2, %v635_v7 }
 0x29d   :  { %996 = vmatprep.mubr.f32.mxu0 %v662_v32  ;;  %v652_v40 = vmul.f32 %v810_v2, %v638_v35 }
 0x29e   :  { %v663_v41 = vadd.f32 %v811_v63, %v649_v46  ;;  %v1168_v48 = vpop.eup %1167 }
 0x29f   :  { %v666_v27 = vadd.f32 %v811_v63, %v652_v40  ;;  %v639_v17 = vmul.f32 %v1168_v48, %v1524_v43 }
 0x2a0   :  { %997 = vmatmul.mubr.f32.gmra.mrb[18].mxu0 %v663_v41 }
 0x2a1   :  { %1002 = vmatprep.mubr.f32.mxu1 %v666_v27  ;;  %v653_v50 = vmul.f32 %v810_v2, %v639_v17 }
 0x2a3   :  { %v667_v55 = vadd.f32 %v811_v63, %v653_v50 }
 0x2a5   :  { %1003 = vmatmul.mubr.f32.gmra.mrb[10].mxu1 %v667_v55 }
 0x35f   :  { %v995_v49 = vpop.f32.mrb[16].mxu0 }
 0x360   :  { %v763_v30 = vadd.f32 %v995_v49, %v812_v29  ;;  %v757_v20 = vpop.f32.mrb[17].mxu0 }
 0x361   :  { %v758_v51 = vadd.f32 %v812_v29, %v757_v20 }
 0x362   :  { %797 = vst [vmem:[%s1575_s6 + $0x8] sm:$0xff] %v763_v30 }
 0x363   :  { %796 = vst [vmem:[%s1575_s6] sm:$0xff] %v758_v51 }
 0x36f   :  { %v1001_v43 = vpop.f32.mrb[8].mxu1 }
 0x370   :  { %v783_v52 = vadd.f32 %v1001_v43, %v812_v29  ;;  %v777_v45 = vpop.f32.mrb[9].mxu1 }
 0x371   :  { %v778_v53 = vadd.f32 %v812_v29, %v777_v45 }
 0x372   :  { %801 = vst [vmem:[%s1575_s6 + $0x28] sm:$0xff] %v783_v52 }
 0x373   :  { %800 = vst [vmem:[%s1575_s6 + $0x20] sm:$0xff] %v778_v53  ;;  %v998_v56 = vpop.f32.mrb[18].mxu0 }
 0x374   :  { %v773_v47 = vadd.f32 %v998_v56, %v812_v29  ;;  %v767_v33 = vpop.f32.mrb[19].mxu0 }
 0x375   :  { %v768_v60 = vadd.f32 %v812_v29, %v767_v33 }
 0x376   :  { %799 = vst [vmem:[%s1575_s6 + $0x18] sm:$0xff] %v773_v47 }
 0x377   :  { %798 = vst [vmem:[%s1575_s6 + $0x10] sm:$0xff] %v768_v60 }
 0x378   :  { %v1004_v37 = vpop.f32.mrb[10].mxu1 }
 0x379   :  { %v793_v2 = vadd.f32 %v1004_v37, %v812_v29  ;;  %v787_v36 = vpop.f32.mrb[11].mxu1 }
 0x37a   :  { %v788_v62 = vadd.f32 %v812_v29, %v787_v36 }
 0x37b   :  { %803 = vst [vmem:[%s1575_s6 + $0x38] sm:$0xff] %v793_v2 }
 0x37c   :  { %802 = vst [vmem:[%s1575_s6 + $0x30] sm:$0xff] %v788_v62 }
 0x37d   :  { %808 = vsyncpa [#allocation3], 1 }
 0x37e   :  { %809 = vsyncpa [#allocation5], 1 }

// kernel: _lambda_.7
= control target key start
LH: loop header
LB: loop body
LE: loop exit
PB: predicated region body
PF: predicated region fallthrough
CT: control target
= control target key end

     0   :  { %s9553_s0 = inlined_call_operand.vmem [shape: f32[13], index: 0, kind: input, shape index: {}]   ;;  %s9554_s1 = inlined_call_operand.vmem [shape: f32[64,128], index: 1, kind: input, shape index: {}]   ;;  %s9555_s2 = inlined_call_operand.vmem [shape: f32[12,128,384], index: 2, kind: input, shape index: {}]   ;;  %s9556_s3 = inlined_call_operand.vmem [shape: f32[12,1,384], index: 3, kind: input, shape index: {}]   ;;  %s9557_s4 = inlined_call_operand.hbm [shape: f32[12,128,128], index: 4, kind: input, shape index: {}]   ;;  %s9558_s5 = inlined_call_operand.vmem [shape: f32[12,1,128], index: 5, kind: input, shape index: {}, may-alias: {5,7,11,13}]   ;;  %s9559_s6 = inlined_call_operand.vmem [shape: f32[12,1,128], index: 6, kind: input, shape index: {}, may-alias: {6,12}]   ;;  %s9560_s7 = inlined_call_operand.vmem [shape: f32[12,1,128], index: 7, kind: input, shape index: {}, may-alias: {5,7,11,13}]   ;;  %s9561_s8 = inlined_call_operand.hbm [shape: f32[12,128,512], index: 8, kind: input, shape index: {}]   ;;  %s9562_s9 = inlined_call_operand.vmem [shape: f32[12,1,512], index: 9, kind: input, shape index: {}]   ;;  %s9563_s10 = inlined_call_operand.hbm [shape: f32[12,512,128], index: 10, kind: input, shape index: {}]   ;;  %s9564_s11 = inlined_call_operand.vmem [shape: f32[12,1,128], index: 11, kind: input, shape index: {}, may-alias: {5,7,11,13}]   ;;  %s9565_s12 = inlined_call_operand.vmem [shape: f32[12,1,128], index: 12, kind: input, shape index: {}, may-alias: {6,12}]   ;;  %s9566_s13 = inlined_call_operand.vmem [shape: f32[12,1,128], index: 13, kind: input, shape index: {}, may-alias: {5,7,11,13}]   ;;  %s9567_s14 = inlined_call_operand.hbm [shape: f32[64,128], index: 14, kind: output, shape index: {}]  }
   0x1   :  { %9617 = sst [smem:[#allocation54_spill]] %s9553_s0 }
   0x2   :  { %9618 = sst [smem:[#allocation55_spill]] %s9554_s1 }
   0x3   :  { %9619 = sst [smem:[#allocation56_spill]] %s9555_s2 }
   0x4   :  { %9620 = sst [smem:[#allocation57_spill]] %s9556_s3 }
   0x5   :  { %9621 = sst [smem:[#allocation58_spill]] %s9557_s4 }
   0x6   :  { %9622 = sst [smem:[#allocation59_spill]] %s9561_s8 }
   0x7   :  { %9623 = sst [smem:[#allocation60_spill]] %s9563_s10 }
   0x8   :  { %9624 = sst [smem:[#allocation61_spill]] %s9565_s12 }
   0x9   :  { %9625 = sst [smem:[#allocation62_spill]] %s9566_s13 }
   0xa   :  { %9626 = sst [smem:[#allocation63_spill]] %s9567_s14 }
   0xb   :  { %19 = vsyncpa [#allocation6], 0 }
   0xc   :  { %20 = vsyncpa [#allocation4], 0 }
   0xd   :  { %22 = vsyncpa [#allocation4 + $0x1], 0 }
   0xe   :  { %23 = vsyncpa [#allocation9], 0 }
   0xf   :  { %25 = vsyncpa [#allocation9 + $0x1], 0 }
  0x10   :  { %26 = vsyncpa [#allocation5], 0  ;;  %s7314_s29 = smov 0   ;;  %s7316_s30 = smov 0  }
  0x11   :  { %s7318_s15 = smov 0   ;;  %s7320_s16 = smov 0  }
  0x12 LB: > { %9627 = sst [smem:[#allocation16_spill]] %s7218_s15  ;;  %s7335_s17 = sadd.s32 1, %s7222_s16   ;;  %s7222_s16 = sphi %s7320_s16, %s9766_s16   ;;  %s7218_s15 = sphi %s7318_s15, %s9768_s15   ;;  %s7214_s30 = sphi %s7316_s30, %s9770_s30   ;;  %s7210_s29 = sphi %s7314_s29, %s9769_s29  }
  0x13   : > { %9628 = sst [smem:[#allocation17_spill]] %s7335_s17  ;;  %s133_s18 = sadd.s32 1, %s7218_s15 }
  0x14   : > { %s130_s19 = ssub.s32 %s7222_s16, %s7335_s17  ;;  %p140_p0 = scmp.ne.s32.totalorder %s7218_s15, %s7214_s30 }
  0x15   : > { %p131_p1 = scmp.eq.s32.totalorder %s130_s19, 0  ;;  %p141_p2 = scmp.eq.s32.totalorder %s7222_s16, 0 }
  0x16   : > { %p6521_p3 = scmp.lt.s32.totalorder %s7222_s16, 12  ;;  %s7348_s21 = sand.u32 1, %s7218_s15  }
  0x17   : > { %s7345_s20 = scalar_select %p131_p1, %s7218_s15, %s133_s18  }
  0x18   : > { %p142_p4 = por %p141_p2, %p140_p0  ;;  %s493_s22 = sand.u32 1, %s7222_s16  }
  0x19   : > { %9629 = sst [smem:[#allocation18_spill]] %s7345_s20  ;;  %s9571_s23 = sshll.u32 %s7348_s21, 9 }
  0x1a   : > { %p7352_p5 = pnand %p6521_p3, %p142_p4  ;;  %s9572_s25 = sshll.u32 %s7222_s16, 13 }
  0x1b   : > { %s9631_s8 = sld [smem:[#allocation59_spill]]  ;;  %s497_s18 = scalar_lea.vmem [#allocation8], %s9571_s23 }
  0x1c   : > { %s504_s19 = sshll.u32 %s497_s18, 4  ;;  %s7368_s20 = scalar_lea.sflag [#allocation9], %s493_s22  ;;  %s7366_s19 = int_to_ptr.vmem [resolvable:$true] %s504_s19 }
  0x1d   : > { %p7374_p7 = pneg %p7352_p5 }
  0x21   : > { %s7362_s28 = scalar_lea.hbm %s9631_s8, %s9572_s25  ;;  %s7050_s23 = scalar_lea.hbm %s9631_s8, 98304 }
  0x22   : > { %s7045_s15 = scalar_lea.hbm %s7362_s28, 8192  ;;  %p7051_p10 = scmp.lt.u32.totalorder %s7362_s28, %s9631_s8 }
  0x23   : > { %p7046_p6 = scmp.ne.s32.totalorder %s7362_s28, %s7045_s15  ;;  %p7052_p11 = scmp.lt.u32.totalorder %s7050_s23, %s7045_s15 }
  0x24   : > { %p7054_p13 = scmp.lt.u32.totalorder %s7045_s15, %s7362_s28 }
  0x25   : > { %p7048_p8 = pnand %p7374_p7, %p7046_p6  ;;  %p7053_p12 = por %p7052_p11, %p7051_p10 }
  0x27   : > { %p7049_p9 = pneg %p7048_p8  ;;  %p7055_p0 = por %p7054_p13, %p7053_p12 }
  0x29   : > { %p7056_p1 = pnand %p7055_p0, %p7049_p9 }
  0x2b   : > { %7059 = shalt.err (!%p7056_p1)
}
  0x2c   : > { %s7060_s22 = scalar_lea.vmem %s7366_s19, 8192  ;;  %s7224_s26 = smov [#allocation8]  }
  0x2d   : > { %p7061_p2 = scmp.ne.s32.totalorder %s7366_s19, %s7060_s22  ;;  %s7065_s27 = sshll.u32 %s7224_s26, 4  ;;  %s7066_s27 = int_to_ptr.vmem [resolvable:$false] %s7065_s27 }
  0x2e   : > { %s7067_s25 = scalar_lea.vmem %s7066_s27, 16384  ;;  %p7068_p6 = scmp.lt.s32.totalorder %s7366_s19, %s7066_s27 }
  0x2f   : > { %p7063_p3 = pnand %p7061_p2, %p7374_p7  ;;  %p7069_p8 = scmp.lt.s32.totalorder %s7067_s25, %s7060_s22 }
  0x31   : > { %p7064_p4 = pneg %p7063_p3  ;;  %p7070_p10 = por %p7069_p8, %p7068_p6 }
  0x33   : > { %p7071_p11 = pnand %p7070_p10, %p7064_p4 }
  0x35   : > { %7074 = shalt.err (!%p7071_p11)
}
  0x36   : > { %s7225_s15 = smov 512   ;;  %s7226_s23 = smov 32  }
  0x37   : > { %6516 = dma.hbm_to_vmem [thread:$0]  (!%p7352_p5), %s7362_s28, 8192, %s7366_s19, %s7368_s20, %s7225_s15, %s7225_s15, %s7226_s23  }
  0x38   : > { %s9633_s18 = sshll.u32 %s7222_s16, 13  ;;  %s9634_s10 = sld [smem:[#allocation60_spill]] }
  0x39   : > { %s9635_s25 = sshll.u32 %s7348_s21, 9  ;;  %s7410_s1 = sadd.s32 4294967295, %s7222_s16  }
  0x3a   : > { %s525_s8 = scalar_lea.vmem [#allocation10], %s9635_s25  ;;  %p146_p9 = scmp.ne.s32.totalorder %s7214_s30, %s7210_s29 }
  0x3b   : > { %s532_s14 = sshll.u32 %s525_s8, 4  ;;  %p9575_p12 = scmp.eq.s32.totalorder %s7410_s1, 0  ;;  %s7407_s14 = int_to_ptr.vmem [resolvable:$true] %s532_s14 }
  0x3c   : > { %p5377_p13 = scmp.ge.s32.totalorder %s7222_s16, 1  ;;  %p412_p0 = scmp.lt.s32.totalorder %s7222_s16, 13 }
  0x3d   : > { %p7420_p2 = por %p9575_p12, %p146_p9  ;;  %s9637_s0 = sld [smem:[#allocation54_spill]] }
  0x3e   : > { %s7403_s27 = scalar_lea.hbm %s9634_s10, %s9633_s18  ;;  %p7427_p3 = pnand %p5377_p13, %p412_p0 }
  0x3f   : > { %s9636_s28 = scalar_select %p7420_p2, 1, 0 }
  0x40   : > { %s9638_s23 = scalar_select %p7427_p3, 1, 0 }
  0x41   : > { %p6506_p4 = pneg %p7427_p3  ;;  %s5380_s29 = sshll.u32 %s7348_s21, 7 }
  0x42   : > { %s5503_s18 = sshll.u32 %s7222_s16, 11  ;;  %s9640_s4 = sld [smem:[#allocation58_spill]] }
  0x43   : > { %s425_s15 = sshll.u32 %s9637_s0, 4  ;;  %p7437_p6 = pnand %p6506_p4, %p9575_p12  ;;  %s426_s15 = int_to_ptr.vmem [resolvable:$true] %s425_s15 }
  0x44   : > { %s458_s8 = scalar_lea.vmem [#allocation7], %s5380_s29  ;;  %s7075_s13 = scalar_lea.vmem %s426_s15, 16 }
  0x45   : > { %s465_s0 = sshll.u32 %s458_s8, 4  ;;  %p7076_p8 = scmp.ne.s32.totalorder %s426_s15, %s7075_s13  ;;  %s7446_s0 = int_to_ptr.vmem [resolvable:$true] %s465_s0 }
  0x46   : > { %p7077_p10 = pneg %p7437_p6  ;;  %p7083_p13 = scmp.lt.s32.totalorder %s426_s15, %s426_s15 }
  0x47   : > { %p7084_p0 = scmp.lt.s32.totalorder %s7075_s13, %s7075_s13 }
  0x48   : > { %s7444_s19 = scalar_lea.hbm %s9640_s4, %s5503_s18  ;;  %p7078_p11 = pnand %p7077_p10, %p7076_p8 }
  0x49   : > { %p7085_p4 = por %p7084_p0, %p7083_p13 }
  0x4a   : > { %p7079_p9 = pneg %p7078_p11 }
  0x4c   : > { %p7086_p1 = pnand %p7085_p4, %p7079_p9 }
  0x4e   : > { %7089 = shalt.err (!%p7086_p1)
}
  0x4f   : > { %s7227_s16 = smov [#allocation3]   ;;  %s455_s29 = scalar_lea.sflag [#allocation4], %s7348_s21 }
  0x50   : > { %6509 = dma.vmem_to_smem (!%p7437_p6), %s426_s15, 16, %s7227_s16, [#allocation6]  }
  0x51   : > { %s7090_s18 = scalar_lea.hbm %s7444_s19, 2048  ;;  %s7095_s25 = scalar_lea.hbm %s9640_s4, 24576 }
  0x52   : > { %p7091_p12 = scmp.ne.s32.totalorder %s7444_s19, %s7090_s18  ;;  %p7096_p1 = scmp.lt.u32.totalorder %s7444_s19, %s9640_s4 }
  0x53   : > { %p7097_p11 = scmp.lt.u32.totalorder %s7095_s25, %s7090_s18  ;;  %p7099_p13 = scmp.lt.u32.totalorder %s7090_s18, %s7444_s19 }
  0x54   : > { %p7093_p8 = pnand %p7091_p12, %p7374_p7 }
  0x55   : > { %p7098_p9 = por %p7097_p11, %p7096_p1 }
  0x56   : > { %p7094_p10 = pneg %p7093_p8 }
  0x57   : > { %p7100_p0 = por %p7099_p13, %p7098_p9 }
  0x59   : > { %p7101_p4 = pnand %p7100_p0, %p7094_p10 }
  0x5b   : > { %7104 = shalt.err (!%p7101_p4)
}
  0x5c   : > { %s7105_s15 = scalar_lea.vmem %s7446_s0, 2048  ;;  %s7228_s22 = smov [#allocation7]  }
  0x5d   : > { %p7106_p12 = scmp.ne.s32.totalorder %s7446_s0, %s7105_s15  ;;  %s7110_s16 = sshll.u32 %s7228_s22, 4  ;;  %s7111_s16 = int_to_ptr.vmem [resolvable:$false] %s7110_s16 }
  0x5e   : > { %s7112_s12 = scalar_lea.vmem %s7111_s16, 4096  ;;  %p7113_p2 = scmp.lt.s32.totalorder %s7446_s0, %s7111_s16 }
  0x5f   : > { %p7108_p6 = pnand %p7106_p12, %p7374_p7  ;;  %p7114_p3 = scmp.lt.s32.totalorder %s7112_s12, %s7105_s15 }
  0x61   : > { %p7109_p8 = pneg %p7108_p6  ;;  %p7115_p1 = por %p7114_p3, %p7113_p2 }
  0x63   : > { %p7116_p11 = pnand %p7115_p1, %p7109_p8 }
  0x65   : > { %7119 = shalt.err (!%p7116_p11)
}
  0x66   : > { %s7229_s18 = smov 128   ;;  %s7230_s13 = smov 8  }
  0x67   : > { %6513 = dma.hbm_to_vmem [thread:$0]  (!%p7352_p5), %s7444_s19, 2048, %s7446_s0, %s455_s29, %s7229_s18, %s7229_s18, %s7230_s13  }
  0x68   : > { %s7120_s26 = scalar_lea.hbm %s7403_s27, 8192  ;;  %s7125_s15 = scalar_lea.hbm %s9634_s10, 98304 }
  0x69   : > { %p7121_p2 = scmp.ne.s32.totalorder %s7403_s27, %s7120_s26  ;;  %p7126_p9 = scmp.lt.u32.totalorder %s7403_s27, %s9634_s10 }
  0x6a   : > { %p7127_p13 = scmp.lt.u32.totalorder %s7125_s15, %s7120_s26  ;;  %p7129_p4 = scmp.lt.u32.totalorder %s7120_s26, %s7403_s27 }
  0x6b   : > { %p7123_p3 = pnand %p7121_p2, %p7374_p7 }
  0x6c   : > { %p7128_p0 = por %p7127_p13, %p7126_p9 }
  0x6d   : > { %p7124_p10 = pneg %p7123_p3 }
  0x6e   : > { %p7130_p12 = por %p7129_p4, %p7128_p0 }
  0x70   : > { %p7131_p6 = pnand %p7130_p12, %p7124_p10 }
  0x72   : > { %7134 = shalt.err (!%p7131_p6)
}
  0x73   : > { %s7135_s0 = scalar_lea.vmem %s7407_s14, 8192  ;;  %s7231_s21 = smov [#allocation10]  }
  0x74   : > { %p7136_p8 = scmp.ne.s32.totalorder %s7407_s14, %s7135_s0  ;;  %s7140_s19 = sshll.u32 %s7231_s21, 4  ;;  %s7141_s19 = int_to_ptr.vmem [resolvable:$false] %s7140_s19 }
  0x75   : > { %s7142_s29 = scalar_lea.vmem %s7141_s19, 16384  ;;  %p7143_p2 = scmp.lt.s32.totalorder %s7407_s14, %s7141_s19 }
  0x76   : > { %p7138_p1 = pnand %p7136_p8, %p7374_p7  ;;  %p7144_p3 = scmp.lt.s32.totalorder %s7142_s29, %s7135_s0 }
  0x78   : > { %p7139_p11 = pneg %p7138_p1  ;;  %p7145_p9 = por %p7144_p3, %p7143_p2 }
  0x7a   : > { %p7146_p13 = pnand %p7145_p9, %p7139_p11 }
  0x7c   : > { %7149 = shalt.err (!%p7146_p13)
}
  0x7d   : > { %6519 = dma.hbm_to_vmem [thread:$0]  (!%p7352_p5), %s7403_s27, 8192, %s7407_s14, %s7368_s20, %s7229_s18, %s7229_s18, %s7230_s13  }
  0x7e   : > { %p9641_p7 = scmp.ne.s32.totalorder %s9638_s23, 0 }
  0x80   : > { %562 = sbr.rel (%p9641_p7) target bundleno = 4613 (0x1205), region = 76 }
  0x87   : > { %p9642_p10 = scmp.eq.s32.totalorder %s7410_s1, 0 }
  0x89   : > { %7193 = dma.done.wait (%p9642_p10), [#allocation6], 16   ;;  %p9643_p0 = pmov %p9642_p10 }
  0x8a   : > { %s568_s17 = sand.u32 1, %s7214_s30   ;;  %p9644_p4 = scmp.ne.s32.totalorder %s9636_s28, 0 }
  0x8b   : > { %7195 = vsyncadd (%p9643_p0), [#allocation6], 4294967280  ;;  %s5391_s24 = sshll.u32 %s568_s17, 7  ;;  %s569_s12 = scalar_lea.sflag [#allocation4], %s568_s17 }
  0x8c   : > { %s7511_s26 = scalar_lea.vmem [#allocation7], %s5391_s24 }
  0x8d   : > { %7197 = dma.done.wait (%p9644_p4), %s569_s12, 2048  }
  0x8e   : > { %7199 = vsyncadd (%p9644_p4), %s569_s12, 4294965248  ;;  %s577_s14 = sand.u32 1, %s7410_s1   ;;  %s5392_s20 = sshll.u32 %s568_s17, 9 }
  0x8f   : > { %s578_s27 = scalar_lea.sflag [#allocation9], %s577_s14  ;;  %s7518_s23 = scalar_lea.vmem [#allocation8], %s5392_s20 }
  0x90   : > { %7201 = dma.done.wait (%p9644_p4), %s578_s27, 16384  }
  0x91   : > { %7203 = vsyncadd (%p9644_p4), %s578_s27, 4294950912  ;;  %s7524_s18 = scalar_lea.vmem [#allocation10], %s5392_s20 }
  0x92   : > { %595 = sfence }
  0x93   : > { %p672_p5 = scmp.lt.s32.totalorder %s7410_s1, 11  ;;  %s9645_s2 = sld [smem:[#allocation56_spill]] }
  0x94   : > { %s9646_s3 = sld [smem:[#allocation57_spill]]  ;;  %s9648_s10 = sld [smem:[#allocation62_spill]] }
  0x95   : > { %s7528_s13 = scalar_select %p672_p5, %s7410_s1, 11 }
  0x96   : > { %p9649_p12 = scmp.ne.s32.totalorder %s7410_s1, 0 }
  0x97   : > { %s6490_s25 = smul.u32 384, %s7528_s13  ;;  %s5395_s28 = sshll.u32 %s7528_s13, 2 }
  0x98   : > { %s6491_s22 = smul.u32 3, %s7528_s13  ;;  %s7558_s16 = scalar_lea.vmem %s9562_s9, %s5395_s28 }
  0x99   : > { %s7543_s17 = scalar_lea.vmem %s9645_s2, %s6490_s25  ;;  %s696_s25 = scalar_lea.vmem %s9564_s11, %s7528_s13 }
  0x9a   : > { %s7552_s4 = scalar_lea.vmem %s9646_s3, %s6491_s22  ;;  %s9647_s2 = sld [smem:[#allocation61_spill]] }
  0x9b   : > { %s702_s20 = scalar_lea.vmem %s9648_s10, %s7528_s13  ;;  %706 = sbr.rel (%p9649_p12) target bundleno = 173 (0xad), region = 96 }
  0x9c   : > { %s9650_s15 = sld [smem:[#allocation55_spill]] (!%p9649_p12) }
  0xa0   : > { %s699_s24 = scalar_lea.vmem %s9647_s2, %s7528_s13  ;;  %s723_s2 = sld [smem:[#allocation3]] (!%p9649_p12) }
  0xa2   : > { %s9651_s8 = smov %s9650_s15  ;;  %v707_v0 = vld [vmem:[%s9650_s15] sm:$0xff] }
  0xa3   : > { %v708_v1 = vld [vmem:[%s9651_s8 + $0x8] sm:$0xff]  ;;  %v709_v2 = vld [vmem:[%s9651_s8 + $0x10] sm:$0xff]  ;;  %715 = vst [vmem:[#allocation2] sm:$0xff] %v707_v0  ;;  %v710_v3 = vld [vmem:[%s9651_s8 + $0x18] sm:$0xff] }
  0xa4   : > { %716 = vst [vmem:[#allocation2 + $0x8] sm:$0xff] %v708_v1  ;;  %717 = vst [vmem:[#allocation2 + $0x10] sm:$0xff] %v709_v2  ;;  %v711_v4 = vld [vmem:[%s9651_s8 + $0x20] sm:$0xff]  ;;  %v712_v5 = vld [vmem:[%s9651_s8 + $0x28] sm:$0xff] }
  0xa5   : > { %718 = vst [vmem:[#allocation2 + $0x18] sm:$0xff] %v710_v3  ;;  %719 = vst [vmem:[#allocation2 + $0x20] sm:$0xff] %v711_v4  ;;  %v713_v6 = vld [vmem:[%s9651_s8 + $0x30] sm:$0xff]  ;;  %v714_v7 = vld [vmem:[%s9651_s8 + $0x38] sm:$0xff] }
  0xa6   : > { %720 = vst [vmem:[#allocation2 + $0x28] sm:$0xff] %v712_v5  ;;  %721 = vst [vmem:[#allocation2 + $0x30] sm:$0xff] %v713_v6  ;;  %v724_v8 = vstv %s723_s2 }
  0xa7   : > { %722 = vst [vmem:[#allocation2 + $0x38] sm:$0xff] %v714_v7  ;;  %v725_v9 = vmul.f32 %v724_v8, %v707_v0  ;;  %v726_v10 = vmul.f32 %v724_v8, %v708_v1  ;;  %v727_v11 = vmul.f32 %v724_v8, %v709_v2  ;;  %v728_v12 = vmul.f32 %v724_v8, %v710_v3 }
  0xa8   : > { %v729_v13 = vmul.f32 %v724_v8, %v711_v4  ;;  %v730_v14 = vmul.f32 %v724_v8, %v712_v5  ;;  %v731_v15 = vmul.f32 %v724_v8, %v713_v6  ;;  %v732_v16 = vmul.f32 %v724_v8, %v714_v7 }
  0xa9   : > { %733 = vst [vmem:[#allocation11] sm:$0xff] %v725_v9  ;;  %734 = vst [vmem:[#allocation11 + $0x8] sm:$0xff] %v726_v10 }
  0xaa   : > { %735 = vst [vmem:[#allocation11 + $0x10] sm:$0xff] %v727_v11  ;;  %736 = vst [vmem:[#allocation11 + $0x18] sm:$0xff] %v728_v12 }
  0xab   : > { %737 = vst [vmem:[#allocation11 + $0x20] sm:$0xff] %v729_v13  ;;  %738 = vst [vmem:[#allocation11 + $0x28] sm:$0xff] %v730_v14 }
  0xac   : > { %739 = vst [vmem:[#allocation11 + $0x30] sm:$0xff] %v731_v15  ;;  %740 = vst [vmem:[#allocation11 + $0x38] sm:$0xff] %v732_v16 }
  0xad PF: > { %v750_v17 = vld [vmem:[%s7543_s17 + $0x8] sm:$0xff]  ;;  %v753_v18 = vld [vmem:[%s7543_s17 + $0x20] sm:$0xff]  ;;  %v752_v21 = vld [vmem:[%s7543_s17 + $0x18] sm:$0xff]  ;;  %v7232_v24 = vmov 0.0   ;;  %vm1040_vm0 = vcmask 261120   ;;  %s7235_s21 = smov 32   ;;  %s9654_s2 = scalar_lea.vmem %s9558_s5, %s7528_s13 }
  0xae   : > { %v749_v19 = vld [vmem:[%s7543_s17] sm:$0xff]  ;;  %v6106_v20 = vpack.c.bf16 %v753_v18, %v750_v17  ;;  %v756_v22 = vld [vmem:[%s7543_s17 + $0x38] sm:$0xff]  ;;  %v759_v23 = vld [vmem:[%s7543_s17 + $0x50] sm:$0xff]  ;;  %878 = vmatprep.mubr.f32.mxu0 %v7232_v24  ;;  %vm3273_vm2 = vcmask 523264   ;;  %vm3282_vm3 = vcmask 785408   ;;  %s9655_s14 = scalar_lea.vmem %s9559_s6, %s7528_s13  ;;  %s9656_s12 = scalar_lea.vmem %s9560_s7, %s7528_s13 }
  0xaf   : > { %v6108_v25 = vpack.c.bf16 %v752_v21, %v749_v19  ;;  %v6110_v26 = vpack.c.bf16 %v759_v23, %v756_v22  ;;  %v755_v27 = vld [vmem:[%s7543_s17 + $0x30] sm:$0xff]  ;;  %v758_v28 = vld [vmem:[%s7543_s17 + $0x48] sm:$0xff]  ;;  %v765_v30 = vld [vmem:[%s7543_s17 + $0x80] sm:$0xff]  ;;  %s7236_s13 = smov [#allocation11]   ;;  %p6523_p6 = scmp.eq.s32.totalorder %s7410_s1, 11 }
  0xb0   : > { %v762_v29 = vld [vmem:[%s7543_s17 + $0x68] sm:$0xff]  ;;  %6107 = vmatprep.subr.bf16.mxu0 %v6106_v20  ;;  %v6112_v31 = vpack.c.bf16 %v758_v28, %v755_v27  ;;  %v761_v33 = vld [vmem:[%s7543_s17 + $0x60] sm:$0xff]  ;;  %v764_v34 = vld [vmem:[%s7543_s17 + $0x78] sm:$0xff] }
  0xb1   : > { %6109 = vmatpush1.bf16.msra.mxu0 %v6108_v25  ;;  %v6114_v32 = vpack.c.bf16 %v765_v30, %v762_v29  ;;  %v768_v35 = vld [vmem:[%s7543_s17 + $0x98] sm:$0xff]  ;;  %v771_v36 = vld [vmem:[%s7543_s17 + $0xb0] sm:$0xff]  ;;  %v6116_v37 = vpack.c.bf16 %v764_v34, %v761_v33  ;;  %v770_v40 = vld [vmem:[%s7543_s17 + $0xa8] sm:$0xff] }
  0xb2   : > { %6111 = vmatprep.subr.bf16.mxu0 %v6110_v26  ;;  %v6118_v38 = vpack.c.bf16 %v771_v36, %v768_v35  ;;  %v767_v39 = vld [vmem:[%s7543_s17 + $0x90] sm:$0xff]  ;;  %v774_v41 = vld [vmem:[%s7543_s17 + $0xc8] sm:$0xff]  ;;  %v777_v42 = vld [vmem:[%s7543_s17 + $0xe0] sm:$0xff]  ;;  %v799_v35 = vlaneseq }
  0xb3   : > { %v7617_v43 = vld [vmem:[#allocation2] sm:$0xff]  ;;  %v6120_v44 = vpack.c.bf16 %v770_v40, %v767_v39  ;;  %v776_v46 = vld [vmem:[%s7543_s17 + $0xd8] sm:$0xff]  ;;  %v6122_v47 = vpack.c.bf16 %v777_v42, %v774_v41  ;;  %v751_v49 = vld [vmem:[%s7543_s17 + $0x10] sm:$0xff] }
  0xb4   : > { %5826 = vmatprep.mubr.f32.mxu1 %v7617_v43  ;;  %v773_v45 = vld [vmem:[%s7543_s17 + $0xc0] sm:$0xff]  ;;  %v780_v48 = vld [vmem:[%s7543_s17 + $0xf8] sm:$0xff]  ;;  %v754_v50 = vld [vmem:[%s7543_s17 + $0x28] sm:$0xff]  ;;  %v7658_v36 = vshrl.u32 %v799_v35, 7 }
  0xb5   : > { %6113 = vmatpush1.bf16.msra.mxu0 %v6112_v31  ;;  %v783_v51 = vld [vmem:[%s7543_s17 + $0x110] sm:$0xff]  ;;  %v6138_v52 = vpack.c.bf16 %v754_v50, %v751_v49  ;;  %v757_v53 = vld [vmem:[%s7543_s17 + $0x40] sm:$0xff]  ;;  %v760_v54 = vld [vmem:[%s7543_s17 + $0x58] sm:$0xff]  ;;  %v6124_v58 = vpack.c.bf16 %v776_v46, %v773_v45 }
  0xb6   : > { %6115 = vmatprep.subr.bf16.mxu0 %v6114_v32  ;;  %v6142_v55 = vpack.c.bf16 %v760_v54, %v757_v53  ;;  %v763_v56 = vld [vmem:[%s7543_s17 + $0x70] sm:$0xff]  ;;  %v766_v57 = vld [vmem:[%s7543_s17 + $0x88] sm:$0xff]  ;;  %v6126_v59 = vpack.c.bf16 %v783_v51, %v780_v48  ;;  %v789_v63 = vld [vmem:[%s7543_s17 + $0x140] sm:$0xff]  ;;  %v805_v40 = vsub.s32 1, %v7658_v36 }
  0xb7   : > { %6139 = vmatprep.subr.bf16.mxu1 %v6138_v52  ;;  %v779_v60 = vld [vmem:[%s7543_s17 + $0xf0] sm:$0xff]  ;;  %v782_v61 = vld [vmem:[%s7543_s17 + $0x108] sm:$0xff]  ;;  %v6146_v0 = vpack.c.bf16 %v766_v57, %v763_v56  ;;  %v769_v1 = vld [vmem:[%s7543_s17 + $0xa0] sm:$0xff] }
  0xb8   : > { %6141 = vmatpush3.bf16.msra.mxu1 %v6138_v52  ;;  %v786_v62 = vld [vmem:[%s7543_s17 + $0x128] sm:$0xff]  ;;  %v772_v2 = vld [vmem:[%s7543_s17 + $0xb8] sm:$0xff]  ;;  %v6128_v3 = vpack.c.bf16 %v782_v61, %v779_v60  ;;  %v785_v5 = vld [vmem:[%s7543_s17 + $0x120] sm:$0xff] }
  0xb9   : > { %6117 = vmatpush1.bf16.msra.mxu0 %v6116_v37  ;;  %6143 = vmatprep.subr.bf16.mxu1 %v6142_v55  ;;  %v6130_v4 = vpack.c.bf16 %v789_v63, %v786_v62  ;;  %v788_v6 = vld [vmem:[%s7543_s17 + $0x138] sm:$0xff]  ;;  %v795_v8 = vld [vmem:[%s7543_s17 + $0x170] sm:$0xff]  ;;  %v6150_v9 = vpack.c.bf16 %v772_v2, %v769_v1  ;;  %v778_v11 = vld [vmem:[%s7543_s17 + $0xe8] sm:$0xff]  ;;  %v801_v37 = vsub.s32 0, %v7658_v36 }
  0xba   : > { %6119 = vmatprep.subr.bf16.mxu0 %v6118_v38  ;;  %v792_v7 = vld [vmem:[%s7543_s17 + $0x158] sm:$0xff]  ;;  %v775_v10 = vld [vmem:[%s7543_s17 + $0xd0] sm:$0xff]  ;;  %v6132_v12 = vpack.c.bf16 %v788_v6, %v785_v5  ;;  %v794_v15 = vld [vmem:[%s7543_s17 + $0x168] sm:$0xff] }
  0xbb   : > { %v6134_v13 = vpack.c.bf16 %v795_v8, %v792_v7  ;;  %v791_v14 = vld [vmem:[%s7543_s17 + $0x150] sm:$0xff]  ;;  %v6154_v16 = vpack.c.bf16 %v778_v11, %v775_v10  ;;  %v781_v17 = vld [vmem:[%s7543_s17 + $0x100] sm:$0xff]  ;;  %v784_v18 = vld [vmem:[%s7543_s17 + $0x118] sm:$0xff] }
  0xbc   : > { %6145 = vmatpush3.bf16.msra.mxu1 %v6142_v55  ;;  %v6136_v19 = vpack.c.bf16 %v794_v15, %v791_v14  ;;  %v6158_v20 = vpack.c.bf16 %v784_v18, %v781_v17  ;;  %v787_v21 = vld [vmem:[%s7543_s17 + $0x130] sm:$0xff]  ;;  %v790_v22 = vld [vmem:[%s7543_s17 + $0x148] sm:$0xff]  ;;  %v793_v25 = vld [vmem:[%s7543_s17 + $0x160] sm:$0xff] }
  0xbd   : > { %6121 = vmatpush1.bf16.msra.mxu0 %v6120_v44  ;;  %6147 = vmatprep.subr.bf16.mxu1 %v6146_v0  ;;  %v6162_v23 = vpack.c.bf16 %v790_v22, %v787_v21  ;;  %v796_v26 = vld [vmem:[%s7543_s17 + $0x178] sm:$0xff]  ;;  %v742_v27 = vld [vmem:[#allocation2 + $0x8] sm:$0xff]  ;;  %v743_v29 = vld [vmem:[#allocation2 + $0x10] sm:$0xff]  ;;  %s7234_s17 = smov 64  }
  0xbe   : > { %6123 = vmatprep.subr.bf16.mxu0 %v6122_v47  ;;  %v6166_v28 = vpack.c.bf16 %v796_v26, %v793_v25  ;;  %v744_v30 = vld [vmem:[#allocation2 + $0x18] sm:$0xff]  ;;  %v745_v31 = vld [vmem:[#allocation2 + $0x20] sm:$0xff]  ;;  %v746_v32 = vld [vmem:[#allocation2 + $0x28] sm:$0xff] }
  0xbf   : > { %v747_v33 = vld [vmem:[#allocation2 + $0x30] sm:$0xff]  ;;  %v748_v34 = vld [vmem:[#allocation2 + $0x38] sm:$0xff]  ;;  %v797_v38 = vld [vmem:[%s7552_s4] sm:$0x7]  ;;  %s7233_s4 = smov 96  }
  0xc0   : > { %6149 = vmatpush3.bf16.msra.mxu1 %v6146_v0  ;;  %v7664_v39 = vrot.slane %v797_v38, %v801_v37  ;;  %v806_v44 = vrot.slane %v797_v38, %v805_v40  ;;  %vm7676_vm1 = vmpackc.low %vm1040_vm0, %vm1040_vm0 }
  0xc1   : > { %6125 = vmatpush1.bf16.msra.mxu0 %v6124_v58  ;;  %6151 = vmatprep.subr.bf16.mxu1 %v6150_v9 }
  0xc2   : > { %6127 = vmatprep.subr.bf16.mxu0 %v6126_v59 }
  0xc4   : > { %6153 = vmatpush3.bf16.msra.mxu1 %v6150_v9 }
  0xc5   : > { %6129 = vmatpush1.bf16.msra.mxu0 %v6128_v3  ;;  %6155 = vmatprep.subr.bf16.mxu1 %v6154_v16 }
  0xc6   : > { %6131 = vmatprep.subr.bf16.mxu0 %v6130_v4  ;;  %v809_v4 = vsub.s32 2, %v7658_v36 }
  0xc8   : > { %6157 = vmatpush3.bf16.msra.mxu1 %v6154_v16  ;;  %v810_v15 = vrot.slane %v797_v38, %v809_v4 }
  0xc9   : > { %6133 = vmatpush1.bf16.msra.mxu0 %v6132_v12  ;;  %6159 = vmatprep.subr.bf16.mxu1 %v6158_v20 }
  0xca   : > { %6135 = vmatprep.subr.bf16.mxu0 %v6134_v13 }
  0xcc   : > { %6161 = vmatpush3.bf16.msra.mxu1 %v6158_v20 }
  0xcd   : > { %6137 = vmatpush1.bf16.msra.mxu0 %v6136_v19  ;;  %6163 = vmatprep.subr.bf16.mxu1 %v6162_v23 }
  0xd0   : > { %879 = vmatmul.mubr.f32.vlgmr.msra.gmra.mrb[0].mxu0 %v7617_v43  ;;  %6165 = vmatpush3.bf16.msra.mxu1 %v6162_v23 }
  0xd1   : > { %884 = vmatprep.mubr.f32.mxu0 %v7232_v24  ;;  %6167 = vmatprep.subr.bf16.mxu1 %v6166_v28 }
  0xd4   : > { %885 = vmatmul.mubr.f32.gmra.mrb[2].mxu0 %v742_v27  ;;  %6169 = vmatpush3.bf16.msra.mxu1 %v6166_v28 }
  0xd5   : > { %890 = vmatprep.mubr.f32.mxu0 %v7232_v24 }
  0xd7   : > { %5827 = vmatmul.mubr.f32.vlgmr.msra.gmra.mrb[0].mxu1 %v742_v27 }
  0xd8   : > { %891 = vmatmul.mubr.f32.gmra.mrb[4].mxu0 %v743_v29  ;;  %5829 = vmatprep.mubr.f32.mxu1 %v743_v29 }
  0xd9   : > { %896 = vmatprep.mubr.f32.mxu0 %v7232_v24 }
  0xdb   : > { %5830 = vmatmul.mubr.f32.gmra.mrb[2].mxu1 %v744_v30 }
  0xdc   : > { %897 = vmatmul.mubr.f32.gmra.mrb[6].mxu0 %v744_v30  ;;  %5832 = vmatprep.mubr.f32.mxu1 %v745_v31 }
  0xdd   : > { %902 = vmatprep.mubr.f32.mxu0 %v7232_v24 }
  0xdf   : > { %5833 = vmatmul.mubr.f32.gmra.mrb[4].mxu1 %v746_v32 }
  0xe0   : > { %903 = vmatmul.mubr.f32.gmra.mrb[8].mxu0 %v745_v31  ;;  %5835 = vmatprep.mubr.f32.mxu1 %v747_v33 }
  0xe1   : > { %908 = vmatprep.mubr.f32.mxu0 %v7232_v24 }
  0xe3   : > { %5836 = vmatmul.mubr.f32.gmra.mrb[6].mxu1 %v748_v34 }
  0xe4   : > { %909 = vmatmul.mubr.f32.gmra.mrb[10].mxu0 %v746_v32 }
  0xe5   : > { %914 = vmatprep.mubr.f32.mxu0 %v7232_v24 }
  0xe8   : > { %915 = vmatmul.mubr.f32.gmra.mrb[12].mxu0 %v747_v33 }
  0xe9   : > { %920 = vmatprep.mubr.f32.mxu0 %v7232_v24 }
  0xec   : > { %921 = vmatmul.mubr.f32.gmra.mrb[14].mxu0 %v748_v34 }
 0x1a3   : > { %v880_v41 = vpop.f32.mrb[0].mxu0 }
 0x1a4   : > { %v881_v42 = vadd.f32 %v880_v41, %v7664_v39  ;;  %v882_v43 = vpop.f32.mrb[1].mxu0 }
 0x1a5   : > { %v883_v48 = vadd.f32 %v882_v43, %v806_v44 }
 0x1a6   : > { %v7670_v45 = vmul.f32 0.17677669, %v881_v42 }
 0x1a7   : > { %v886_v46 = vpop.f32.mrb[2].mxu0 }
 0x1a8   : > { %v888_v47 = vpop.f32.mrb[3].mxu0  ;;  %5846 = vmatprep.mubr.msk.f32.mxu1 %vm1040_vm0, %v7670_v45  ;;  %v887_v3 = vadd.f32 %v886_v46, %v7664_v39 }
 0x1a9   : > { %v889_v49 = vadd.f32 %v888_v47, %v806_v44 }
 0x1aa   : > { %v5828_v57 = vpop.f32.mrb[0].mxu1  ;;  %v7695_v12 = vmul.f32 0.17677669, %v887_v3 }
 0x1ab   : > { %v892_v51 = vpop.f32.mrb[4].mxu0  ;;  %v6170_v52 = vpack.c.bf16 %v889_v49, %v883_v48  ;;  %v7680_v53 = vpack.i.bf16 %v889_v49, %v883_v48  ;;  %v993_v60 = vpop.f32.mrb[1].mxu1  ;;  %v7715_v26 = vadd.f32 %v5828_v57, %v810_v15 }
 0x1ac   : > { %v894_v54 = vpop.f32.mrb[5].mxu0  ;;  %v893_v7 = vadd.f32 %v892_v51, %v7664_v39  ;;  %v7717_v27 = vadd.f32 %v993_v60, %v810_v15 }
 0x1ad   : > { %6172 = vmatprep.subr.msk.bf16.mxu1 %vm7676_vm1, %v6170_v52  ;;  %v895_v58 = vadd.f32 %v894_v54, %v806_v44 }
 0x1ae   : > { %6175 = vmatpush3.bf16.xpose.msk.msra.mxu1 %vm7676_vm1, %v6170_v52  ;;  %v5831_v1 = vpop.f32.mrb[2].mxu1  ;;  %v7703_v19 = vmul.f32 0.17677669, %v893_v7  ;;  %v6194_v34 = vpack.c.bf16 %v7715_v26, %v7717_v27 }
 0x1af   : > { %v898_v55 = vpop.f32.mrb[6].mxu0  ;;  %v1003_v2 = vpop.f32.mrb[3].mxu1  ;;  %v7735_v43 = vadd.f32 %v5831_v1, %v810_v15 }
 0x1b0   : > { %v900_v56 = vpop.f32.mrb[7].mxu0  ;;  %v899_v13 = vadd.f32 %v898_v55, %v7664_v39 }
 0x1b1   : > { %v901_v59 = vadd.f32 %v900_v56, %v806_v44 }
 0x1b2   : > { %v5834_v9 = vpop.f32.mrb[4].mxu1  ;;  %v7719_v29 = vmul.f32 0.17677669, %v899_v13 }
 0x1b3   : > { %v904_v61 = vpop.f32.mrb[8].mxu0  ;;  %v6176_v62 = vpack.c.bf16 %v901_v59, %v895_v58  ;;  %v7686_v63 = vpack.i.bf16 %v901_v59, %v895_v58  ;;  %v1013_v11 = vpop.f32.mrb[5].mxu1  ;;  %v7744_v49 = vadd.f32 %v5834_v9, %v810_v15 }
 0x1b4   : > { %v906_v0 = vpop.f32.mrb[9].mxu0  ;;  %v905_v14 = vadd.f32 %v904_v61, %v7664_v39  ;;  %v7746_v51 = vadd.f32 %v1013_v11, %v810_v15 }
 0x1b5   : > { %6178 = vmatprep.subr.msk.bf16.mxu1 %vm7676_vm1, %v6176_v62  ;;  %v907_v5 = vadd.f32 %v906_v0, %v806_v44 }
 0x1b6   : > { %6181 = vmatpush3.bf16.xpose.msk.msra.mxu1 %vm7676_vm1, %v6176_v62  ;;  %v5837_v21 = vpop.f32.mrb[6].mxu1  ;;  %v7709_v25 = vmul.f32 0.17677669, %v905_v14 }
 0x1b7   : > { %v910_v6 = vpop.f32.mrb[10].mxu0  ;;  %v1029_v22 = vadd.f32 %v5837_v21, %v810_v15  ;;  %v1023_v23 = vpop.f32.mrb[7].mxu1 }
 0x1b8   : > { %v912_v8 = vpop.f32.mrb[11].mxu0  ;;  %v1024_v28 = vadd.f32 %v1023_v23, %v810_v15  ;;  %v911_v41 = vadd.f32 %v910_v6, %v7664_v39 }
 0x1b9   : > { %v913_v10 = vadd.f32 %v912_v8, %v806_v44 }
 0x1ba   : > { %v7739_v46 = vmul.f32 0.17677669, %v911_v41  ;;  %v7763_v55 = vpack.c.bf16 %v1029_v22, %v1024_v28  ;;  %v7765_v56 = vpack.i.bf16 %v1029_v22, %v1024_v28 }
 0x1bb   : > { %v916_v16 = vpop.f32.mrb[12].mxu0  ;;  %v6182_v17 = vpack.c.bf16 %v913_v10, %v907_v5  ;;  %v7701_v18 = vpack.i.bf16 %v913_v10, %v907_v5 }
 0x1bc   : > { %v918_v20 = vpop.f32.mrb[13].mxu0  ;;  %v917_v42 = vadd.f32 %v916_v16, %v7664_v39 }
 0x1bd   : > { %5847 = vmatmul.mubr.msk.f32.vlgmr.msra.gmra.mrb[8].mxu1 %vm1040_vm0, %v7695_v12  ;;  %6184 = vmatprep.subr.msk.bf16.mxu1 %vm7676_vm1, %v6182_v17  ;;  %v919_v30 = vadd.f32 %v918_v20, %v806_v44 }
 0x1be   : > { %5849 = vmatprep.mubr.msk.f32.mxu1 %vm1040_vm0, %v7703_v19  ;;  %6187 = vmatpush3.bf16.xpose.msk.msra.mxu1 %vm7676_vm1, %v6182_v17  ;;  %v7742_v48 = vmul.f32 0.17677669, %v917_v42 }
 0x1bf   : > { %v922_v31 = vpop.f32.mrb[14].mxu0 }
 0x1c0   : > { %v924_v32 = vpop.f32.mrb[15].mxu0  ;;  %v923_v47 = vadd.f32 %v922_v31, %v7664_v39  ;;  %v7758_v39 = vpack.c.bf16 %v7744_v49, %v7746_v51 }
 0x1c1   : > { %v925_v33 = vadd.f32 %v924_v32, %v806_v44  ;;  %5850 = vmatmul.mubr.msk.f32.gmra.mrb[10].mxu1 %vm1040_vm0, %v7719_v29  ;;  %v7737_v44 = vadd.f32 %v1003_v2, %v810_v15 }
 0x1c2   : > { %5860 = vmatprep.mubr.msk.f32.mxu1 %vm1040_vm0, %v7709_v25  ;;  %v7750_v54 = vmul.f32 0.17677669, %v923_v47 }
 0x1c3   : > { %v6188_v35 = vpack.c.bf16 %v925_v33, %v919_v30  ;;  %v7727_v38 = vpack.i.bf16 %v925_v33, %v919_v30  ;;  %v6198_v52 = vpack.c.bf16 %v7735_v43, %v7737_v44 }
 0x1c5   : > { %6190 = vmatprep.subr.msk.bf16.mxu1 %vm7676_vm1, %v6188_v35 }
 0x1c6   : > { %6193 = vmatpush3.bf16.xpose.msk.msra.mxu1 %vm7676_vm1, %v6188_v35 }
 0x1c7   : > { %6195 = vmatprep.subr.bf16.mxu1 %v6194_v34 }
 0x1cd   : > { %5861 = vmatmul.mubr.msk.f32.vlgmr.msra.gmra.mrb[12].mxu1 %vm1040_vm0, %v7739_v46 }
 0x1ce   : > { %5863 = vmatprep.mubr.msk.f32.mxu1 %vm1040_vm0, %v7742_v48  ;;  %6197 = vmatpush3.bf16.msra.mxu1 %v6194_v34 }
 0x1cf   : > { %6199 = vmatprep.subr.bf16.mxu1 %v6198_v52 }
 0x1d1   : > { %5864 = vmatmul.mubr.msk.f32.gmra.mrb[14].mxu1 %vm1040_vm0, %v7750_v54 }
 0x1d2   : > { %6201 = vmatpush3.bf16.msra.mxu1 %v6198_v52 }
 0x1d3   : > { %6203 = vmatprep.subr.bf16.mxu1 %v7758_v39 }
 0x290   : > { %v5848_v57 = vpop.f32.mrb[8].mxu1 }
 0x291   : > { %v1131_v58 = vpop.f32.mrb[9].mxu1  ;;  %v1262_v59 = vsel %vm1040_vm0, %v5848_v57, -inf }
 0x292   : > { %1263 = vmax.xlane.f32.xlu0 %v1262_v59  ;;  %v1259_v62 = vsel %vm1040_vm0, %v1131_v58, -inf }
 0x294   : > { %v5851_v60 = vpop.f32.mrb[10].mxu1 }
 0x295   : > { %v1141_v61 = vpop.f32.mrb[11].mxu1  ;;  %v1268_v0 = vsel %vm1040_vm0, %v5851_v60, -inf }
 0x296   : > { %1260 = vmax.xlane.f32.xlu0 %v1259_v62  ;;  %1269 = vmax.xlane.f32.xlu1 %v1268_v0  ;;  %v1265_v1 = vsel %vm1040_vm0, %v1141_v61, -inf }
 0x29a   : > { %1266 = vmax.xlane.f32.xlu1 %v1265_v1 }
 0x2a0   : > { %v5862_v2 = vpop.f32.mrb[12].mxu1 }
 0x2a1   : > { %v1240_v3 = vpop.f32.mrb[13].mxu1  ;;  %v1274_v5 = vsel %vm1040_vm0, %v5862_v2, -inf }
 0x2a2   : > { %1275 = vmax.xlane.f32.xlu1 %v1274_v5  ;;  %v1271_v6 = vsel %vm1040_vm0, %v1240_v3, -inf }
 0x2a3   : > { %1272 = vmax.xlane.f32.xlu0 %v1271_v6 }
 0x2a4   : > { %v7773_v7 = vpop.f32.mrb[14].mxu1 }
 0x2a5   : > { %v7775_v8 = vpop.f32.mrb[15].mxu1  ;;  %v1280_v9 = vsel %vm1040_vm0, %v7773_v7, -inf }
 0x2a6   : > { %1281 = vmax.xlane.f32.xlu1 %v1280_v9  ;;  %v1277_v10 = vsel %vm1040_vm0, %v7775_v8, -inf }
 0x2a7   : > { %1278 = vmax.xlane.f32.xlu0 %v1277_v10 }
 0x2b7   : > { %6575 = vrot.lane.b32.xlu1 %v7686_v63, %s7233_s4 }
 0x2bd   : > { %6570 = vrot.lane.b32.xlu0 %v7680_v53, %s7233_s4 }
 0x31f   : > { %v1264_v11 = vpop.xlane.xlu0 %1263 }
 0x320   : > { %v1284_v13 = vsub.f32 %v5848_v57, %v1264_v11 }
 0x322   : > { %v1293_v14 = vmul.f32 1.442695, %v1284_v13 }
 0x323   : > { %v1261_v15 = vpop.xlane.xlu0 %1260  ;;  %v1270_v17 = vpop.xlane.xlu1 %1269 }
 0x324   : > { %6749 = vpow2.f32 %v1293_v14  ;;  %v1283_v16 = vsub.f32 %v1131_v58, %v1261_v15  ;;  %v1286_v62 = vsub.f32 %v5851_v60, %v1270_v17 }
 0x326   : > { %v1291_v20 = vmul.f32 1.442695, %v1283_v16  ;;  %v1297_v1 = vmul.f32 1.442695, %v1286_v62 }
 0x327   : > { %v1267_v21 = vpop.xlane.xlu1 %1266 }
 0x328   : > { %6751 = vpow2.f32 %v1291_v20  ;;  %v1285_v0 = vsub.f32 %v1141_v61, %v1267_v21 }
 0x329   : > { %6753 = vpow2.f32 %v1297_v1 }
 0x32a   : > { %v1295_v6 = vmul.f32 1.442695, %v1285_v0 }
 0x32c   : > { %6755 = vpow2.f32 %v1295_v6 }
 0x32e   : > { %v7785_v22 = vpop.eup %6749 }
 0x32f   : > { %v1276_v23 = vpop.xlane.xlu1 %1275  ;;  %v1310_v28 = vsel %vm1040_vm0, %v7785_v22, 0.0 }
 0x330   : > { %v1273_v30 = vpop.xlane.xlu0 %1272  ;;  %1311 = vadd.xlane.f32.xlu1 %v1310_v28  ;;  %v1288_v5 = vsub.f32 %v5862_v2, %v1276_v23 }
 0x331   : > { %v1287_v10 = vsub.f32 %v1240_v3, %v1273_v30 }
 0x332   : > { %v7789_v31 = vpop.eup %6751  ;;  %v1301_v9 = vmul.f32 1.442695, %v1288_v5 }
 0x333   : > { %v1282_v32 = vpop.xlane.xlu1 %1281  ;;  %v1307_v33 = vsel %vm1040_vm0, %v7789_v31, 0.0  ;;  %v1299_v11 = vmul.f32 1.442695, %v1287_v10  ;;  %v7805_v13 = vpop.eup %6753 }
 0x334   : > { %1308 = vadd.xlane.f32.xlu0 %v1307_v33  ;;  %v1279_v34 = vpop.xlane.xlu0 %1278  ;;  %6757 = vpow2.f32 %v1301_v9  ;;  %v1316_v15 = vsel %vm1040_vm0, %v7805_v13, 0.0  ;;  %v1290_v17 = vsub.f32 %v7773_v7, %v1282_v32 }
 0x335   : > { %6759 = vpow2.f32 %v1299_v11  ;;  %v1289_v21 = vsub.f32 %v7775_v8, %v1279_v34 }
 0x336   : > { %v7807_v14 = vpop.eup %6755  ;;  %v1305_v20 = vmul.f32 1.442695, %v1290_v17 }
 0x337   : > { %v6576_v35 = vpop.permute.xlu1 %6575  ;;  %v1313_v61 = vsel %vm1040_vm0, %v7807_v14, 0.0  ;;  %v1303_v23 = vmul.f32 1.442695, %v1289_v21 }
 0x338   : > { %v6571_v41 = vpop.permute.xlu0 %6570  ;;  %v6578_v42 = vunpack.i.h.bf16 %v6576_v35  ;;  %v6577_v47 = vunpack.i.l.bf16 %v6576_v35  ;;  %6761 = vpow2.f32 %v1305_v20 }
 0x339   : > { %v6573_v52 = vunpack.i.h.bf16 %v6571_v41  ;;  %v6572_v57 = vunpack.i.l.bf16 %v6571_v41  ;;  %6763 = vpow2.f32 %v1303_v23 }
 0x33a   : > { %v6216_v59 = vpack.c.bf16 %v6578_v42, %v6577_v47 }
 0x33b   : > { %v6210_v58 = vpack.c.bf16 %v6573_v52, %v6572_v57 }
 0x33d   : > { %6212 = vmatprep.subr.msk.bf16.mxu0 %vm7676_vm1, %v6210_v58 }
 0x33e   : > { %6215 = vmatpush3.bf16.xpose.msk.msra.mxu0 %vm7676_vm1, %v6210_v58  ;;  %v7811_v16 = vpop.eup %6757 }
 0x33f   : > { %6218 = vmatprep.subr.msk.bf16.mxu0 %vm7676_vm1, %v6216_v59  ;;  %v1322_v60 = vsel %vm1040_vm0, %v7811_v16, 0.0  ;;  %v7817_v2 = vpop.eup %6759 }
 0x340   : > { %v1319_v3 = vsel %vm1040_vm0, %v7817_v2, 0.0 }
 0x341   : > { %1541 = vrot.lane.b32.xlu1 %v7670_v45, %s7233_s4 }
 0x342   : > { %v7835_v28 = vpop.eup %6761 }
 0x343   : > { %v1328_v30 = vsel %vm1040_vm0, %v7835_v28, 0.0  ;;  %v7839_v33 = vpop.eup %6763 }
 0x344   : > { %v1325_v7 = vsel %vm1040_vm0, %v7839_v33, 0.0 }
 0x346   : > { %6221 = vmatpush3.bf16.xpose.msk.msra.mxu0 %vm7676_vm1, %v6216_v59 }
 0x34a   : > { %6580 = vrot.lane.b32.xlu0 %v7701_v18, %s7233_s4 }
 0x365   : > { %1317 = vadd.xlane.f32.xlu1 %v1316_v15 }
 0x369   : > { %1323 = vadd.xlane.f32.xlu1 %v1322_v60  ;;  %1314 = vadd.xlane.f32.xlu0 %v1313_v61 }
 0x36d   : > { %1320 = vadd.xlane.f32.xlu0 %v1319_v3 }
 0x37a   : > { %6585 = vrot.lane.b32.xlu1 %v7727_v38, %s7233_s4 }
 0x37e   : > { %1547 = vrot.lane.b32.xlu1 %v7719_v29, %s7233_s4 }
 0x383   : > { %1543 = vrot.lane.b32.xlu0 %v7695_v12, %s7233_s4 }
 0x387   : > { %1545 = vrot.lane.b32.xlu0 %v7703_v19, %s7233_s4 }
 0x38b   : > { %1658 = vrot.lane.b32.xlu0 %v7709_v25, %s7233_s4 }
 0x38f   : > { %1662 = vrot.lane.b32.xlu0 %v7742_v48, %s7233_s4 }
 0x3a2   : > { %1329 = vadd.xlane.f32.xlu1 %v1328_v30 }
 0x3a6   : > { %1326 = vadd.xlane.f32.xlu1 %v1325_v7 }
 0x3b7   : > { %1660 = vrot.lane.b32.xlu1 %v7739_v46, %s7233_s4 }
 0x3bb   : > { %1664 = vrot.lane.b32.xlu1 %v7750_v54, %s7233_s4 }
 0x3bd   : > { %v1312_v8 = vpop.xlane.xlu1 %1311 }
 0x3be   : > { %6765 = vrcp.f32 %v1312_v8 }
 0x3c1   : > { %v1542_v32 = vpop.permute.xlu1 %1541  ;;  %v1309_v34 = vpop.xlane.xlu0 %1308 }
 0x3c2   : > { %6767 = vrcp.f32 %v1309_v34  ;;  %5902 = vmatprep.mubr.msk.f32.mxu0 %vm1040_vm0, %v1542_v32 }
 0x3c5   : > { %v6581_v42 = vpop.permute.xlu0 %6580 }
 0x3c6   : > { %v6583_v57 = vunpack.i.h.bf16 %v6581_v42  ;;  %v6582_v58 = vunpack.i.l.bf16 %v6581_v42 }
 0x3c8   : > { %v6766_v35 = vpop.eup %6765  ;;  %v6222_v59 = vpack.c.bf16 %v6583_v57, %v6582_v58 }
 0x3c9   : > { %v1334_v52 = vmul.f32 %v6766_v35, %v7785_v22 }
 0x3cc   : > { %v6768_v41 = vpop.eup %6767 }
 0x3cd   : > { %v1332_v47 = vmul.f32 %v6768_v41, %v7789_v31 }
 0x3cf   : > { %5874 = vmatprep.mubr.msk.f32.mxu1 %vm1040_vm0, %v1332_v47 }
 0x3d0   : > { %5875 = vmatmul.mubr.msk.f32.vlgmr.msra.gmra.mrb[16].mxu1 %vm1040_vm0, %v1334_v52 }
 0x3d1   : > { %6205 = vmatpush3.bf16.msra.mxu1 %v7758_v39 }
 0x3d2   : > { %6207 = vmatprep.subr.bf16.mxu1 %v7763_v55 }
 0x3d5   : > { %6209 = vmatpush3.bf16.msra.mxu1 %v7763_v55 }
 0x3d6   : > { %6224 = vmatprep.subr.msk.bf16.mxu1 %vm7676_vm1, %v6222_v59 }
 0x3f2   : > { %v1318_v62 = vpop.xlane.xlu1 %1317 }
 0x3f3   : > { %6769 = vrcp.f32 %v1318_v62 }
 0x3f6   : > { %v1315_v31 = vpop.xlane.xlu0 %1314  ;;  %v1324_v22 = vpop.xlane.xlu1 %1323 }
 0x3f7   : > { %6771 = vrcp.f32 %v1315_v31 }
 0x3f8   : > { %6773 = vrcp.f32 %v1324_v22 }
 0x3fa   : > { %v1321_v0 = vpop.xlane.xlu0 %1320  ;;  %v6586_v1 = vpop.permute.xlu1 %6585 }
 0x3fb   : > { %6775 = vrcp.f32 %v1321_v0  ;;  %v6588_v61 = vunpack.i.h.bf16 %v6586_v1  ;;  %v6587_v3 = vunpack.i.l.bf16 %v6586_v1 }
 0x3fd   : > { %v6770_v39 = vpop.eup %6769  ;;  %v6228_v21 = vpack.c.bf16 %v6588_v61, %v6587_v3 }
 0x3fe   : > { %v1544_v5 = vpop.permute.xlu0 %1543  ;;  %v1548_v10 = vpop.permute.xlu1 %1547  ;;  %v1338_v15 = vmul.f32 %v6770_v39, %v7805_v13 }
 0x3ff   : > { %5903 = vmatmul.mubr.msk.f32.vlgmr.msra.gmra.mrb[16].mxu0 %vm1040_vm0, %v1544_v5 }
 0x401   : > { %v6772_v6 = vpop.eup %6771 }
 0x402   : > { %v1546_v9 = vpop.permute.xlu0 %1545  ;;  %v1336_v55 = vmul.f32 %v6772_v6, %v7807_v14  ;;  %v6774_v11 = vpop.eup %6773 }
 0x403   : > { %5905 = vmatprep.mubr.msk.f32.mxu0 %vm1040_vm0, %v1546_v9  ;;  %v1342_v20 = vmul.f32 %v6774_v11, %v7811_v16 }
 0x404   : > { %5906 = vmatmul.mubr.msk.f32.gmra.mrb[18].mxu0 %vm1040_vm0, %v1548_v10  ;;  %5877 = vmatprep.mubr.msk.f32.mxu1 %vm1040_vm0, %v1336_v55 }
 0x405   : > { %v6776_v60 = vpop.eup %6775  ;;  %5878 = vmatmul.mubr.msk.f32.gmra.mrb[18].mxu1 %vm1040_vm0, %v1338_v15 }
 0x406   : > { %v1340_v17 = vmul.f32 %v6776_v60, %v7817_v2  ;;  %v1659_v30 = vpop.permute.xlu0 %1658 }
 0x408   : > { %5888 = vmatprep.mubr.msk.f32.mxu1 %vm1040_vm0, %v1340_v17 }
 0x409   : > { %5889 = vmatmul.mubr.msk.f32.vlgmr.msra.gmra.mrb[20].mxu1 %vm1040_vm0, %v1342_v20 }
 0x40a   : > { %6227 = vmatpush3.bf16.xpose.msk.msra.mxu1 %vm7676_vm1, %v6222_v59  ;;  %v1663_v32 = vpop.permute.xlu0 %1662 }
 0x40b   : > { %6230 = vmatprep.subr.msk.bf16.mxu1 %vm7676_vm1, %v6228_v21 }
 0x412   : > { %6233 = vmatpush3.bf16.xpose.msk.msra.mxu1 %vm7676_vm1, %v6228_v21 }
 0x42f   : > { %v1330_v13 = vpop.xlane.xlu1 %1329 }
 0x430   : > { %6777 = vrcp.f32 %v1330_v13 }
 0x433   : > { %v1327_v14 = vpop.xlane.xlu1 %1326 }
 0x434   : > { %6779 = vrcp.f32 %v1327_v14 }
 0x437   : > { %v1661_v8 = vpop.permute.xlu1 %1660 }
 0x43a   : > { %v6778_v2 = vpop.eup %6777 }
 0x43b   : > { %v1346_v7 = vmul.f32 %v6778_v2, %v7835_v28  ;;  %v1665_v34 = vpop.permute.xlu1 %1664 }
 0x43e   : > { %v6780_v16 = vpop.eup %6779 }
 0x43f   : > { %v1344_v23 = vmul.f32 %v6780_v16, %v7839_v33 }
 0x441   : > { %5891 = vmatprep.mubr.msk.f32.mxu1 %vm1040_vm0, %v1344_v23 }
 0x442   : > { %5892 = vmatmul.mubr.msk.f32.gmra.mrb[22].mxu1 %vm1040_vm0, %v1346_v7 }
 0x443   : > { %5916 = vmatprep.mubr.msk.f32.mxu1 %vm1040_vm0, %v1659_v30 }
 0x446   : > { %5917 = vmatmul.mubr.msk.f32.vlgmr.msra.gmra.mrb[24].mxu1 %vm1040_vm0, %v1661_v8 }
 0x447   : > { %5919 = vmatprep.mubr.msk.f32.mxu1 %vm1040_vm0, %v1663_v32 }
 0x44a   : > { %5920 = vmatmul.mubr.msk.f32.gmra.mrb[26].mxu1 %vm1040_vm0, %v1665_v34 }
 0x4a3   : > { %v7882_v35 = vpop.f32.mrb[16].mxu1 }
 0x4a4   : > { %v7884_v33 = vpop.f32.mrb[17].mxu1 }
 0x4d2   : > { %v5904_v28 = vpop.f32.mrb[16].mxu0 }
 0x4d3   : > { %v1639_v41 = vpop.f32.mrb[17].mxu0  ;;  %v1778_v42 = vsel %vm1040_vm0, %v5904_v28, -inf }
 0x4d4   : > { %1779 = vmax.xlane.f32.xlu1 %v1778_v42  ;;  %v1775_v47 = vsel %vm1040_vm0, %v1639_v41, -inf }
 0x4d5   : > { %1776 = vmax.xlane.f32.xlu0 %v1775_v47 }
 0x4d7   : > { %v5907_v52 = vpop.f32.mrb[18].mxu0 }
 0x4d8   : > { %v1649_v57 = vpop.f32.mrb[19].mxu0  ;;  %v7888_v58 = vpop.f32.mrb[18].mxu1  ;;  %v1784_v22 = vsel %vm1040_vm0, %v5907_v52, -inf }
 0x4d9   : > { %v1781_v59 = vsel %vm1040_vm0, %v1649_v57, -inf  ;;  %v7891_v62 = vpop.f32.mrb[19].mxu1 }
 0x4da   : > { %1782 = vmax.xlane.f32.xlu0 %v1781_v59  ;;  %v7931_v59 = vpack.i.bf16 %v7715_v26, %v7717_v27 }
 0x4dc   : > { %v7893_v31 = vpop.f32.mrb[20].mxu1 }
 0x4dd   : > { %v7896_v0 = vpop.f32.mrb[21].mxu1 }
 0x4de   : > { %1785 = vmax.xlane.f32.xlu0 %v1784_v22  ;;  %v7939_v22 = vpack.i.bf16 %v7744_v49, %v7746_v51 }
 0x515   : > { %v7898_v1 = vpop.f32.mrb[22].mxu1 }
 0x516   : > { %v7900_v5 = vpop.f32.mrb[23].mxu1 }
 0x519   : > { %v5918_v39 = vpop.f32.mrb[24].mxu1 }
 0x51a   : > { %v7902_v6 = vpop.f32.mrb[25].mxu1  ;;  %v1790_v9 = vsel %vm1040_vm0, %v5918_v39, -inf }
 0x51b   : > { %1791 = vmax.xlane.f32.xlu1 %v1790_v9  ;;  %v1787_v10 = vsel %vm1040_vm0, %v7902_v6, -inf }
 0x51c   : > { %1788 = vmax.xlane.f32.xlu0 %v1787_v10 }
 0x51d   : > { %v5921_v55 = vpop.f32.mrb[26].mxu1 }
 0x51e   : > { %v1766_v11 = vpop.f32.mrb[27].mxu1  ;;  %v1796_v15 = vsel %vm1040_vm0, %v5921_v55, -inf }
 0x51f   : > { %1797 = vmax.xlane.f32.xlu1 %v1796_v15  ;;  %v1793_v60 = vsel %vm1040_vm0, %v1766_v11, -inf }
 0x520   : > { %1794 = vmax.xlane.f32.xlu0 %v1793_v60 }
 0x561   : > { %v1780_v61 = vpop.xlane.xlu1 %1779 }
 0x562   : > { %v1800_v3 = vsub.f32 %v5904_v28, %v1780_v61  ;;  %v1777_v17 = vpop.xlane.xlu0 %1776 }
 0x563   : > { %v1799_v20 = vsub.f32 %v1639_v41, %v1777_v17 }
 0x564   : > { %v1809_v21 = vmul.f32 1.442695, %v1800_v3 }
 0x565   : > { %v1807_v13 = vmul.f32 1.442695, %v1799_v20 }
 0x566   : > { %6781 = vpow2.f32 %v1809_v21 }
 0x567   : > { %6783 = vpow2.f32 %v1807_v13  ;;  %v1783_v14 = vpop.xlane.xlu0 %1782 }
 0x568   : > { %v1801_v2 = vsub.f32 %v1649_v57, %v1783_v14  ;;  %v7927_v57 = vpack.i.bf16 %v7735_v43, %v7737_v44 }
 0x56a   : > { %v1811_v16 = vmul.f32 1.442695, %v1801_v2 }
 0x56b   : > { %v1786_v23 = vpop.xlane.xlu0 %1785 }
 0x56c   : > { %6785 = vpow2.f32 %v1811_v16  ;;  %v1802_v30 = vsub.f32 %v5907_v52, %v1786_v23 }
 0x56e   : > { %v1813_v7 = vmul.f32 1.442695, %v1802_v30 }
 0x570   : > { %v7909_v8 = vpop.eup %6781  ;;  %6787 = vpow2.f32 %v1813_v7 }
 0x571   : > { %v7911_v32 = vpop.eup %6783  ;;  %v1826_v34 = vsel %vm1040_vm0, %v7909_v8, 0.0 }
 0x572   : > { %1827 = vadd.xlane.f32.xlu1 %v1826_v34  ;;  %v1823_v28 = vsel %vm1040_vm0, %v7911_v32, 0.0 }
 0x573   : > { %1824 = vadd.xlane.f32.xlu0 %v1823_v28 }
 0x576   : > { %v7917_v41 = vpop.eup %6785 }
 0x577   : > { %v1829_v42 = vsel %vm1040_vm0, %v7917_v41, 0.0 }
 0x578   : > { %1830 = vadd.xlane.f32.xlu0 %v1829_v42 }
 0x57a   : > { %v7921_v47 = vpop.eup %6787 }
 0x57b   : > { %v1832_v52 = vsel %vm1040_vm0, %v7921_v47, 0.0 }
 0x57c   : > { %1833 = vadd.xlane.f32.xlu1 %v1832_v52 }
 0x58d   : > { %6595 = vrot.lane.b32.xlu1 %v7927_v57, %s7233_s4 }
 0x58e   : > { %6590 = vrot.lane.b32.xlu0 %v7931_v59, %s7233_s4 }
 0x591   : > { %6605 = vrot.lane.b32.xlu1 %v7939_v22, %s7233_s4 }
 0x592   : > { %6600 = vrot.lane.b32.xlu0 %v7680_v53, %s7234_s17 }
 0x595   : > { %6615 = vrot.lane.b32.xlu1 %v7686_v63, %s7234_s17 }
 0x596   : > { %6610 = vrot.lane.b32.xlu0 %v7765_v56, %s7233_s4 }
 0x599   : > { %6620 = vrot.lane.b32.xlu1 %v7701_v18, %s7234_s17 }
 0x59a   : > { %2091 = vrot.lane.b32.xlu0 %v7695_v12, %s7234_s17 }
 0x59d   : > { %2089 = vrot.lane.b32.xlu1 %v7670_v45, %s7234_s17 }
 0x59e   : > { %2093 = vrot.lane.b32.xlu0 %v7703_v19, %s7234_s17 }
 0x5a8   : > { %v1792_v26 = vpop.xlane.xlu1 %1791 }
 0x5a9   : > { %v1789_v27 = vpop.xlane.xlu0 %1788  ;;  %v1804_v43 = vsub.f32 %v5918_v39, %v1792_v26 }
 0x5aa   : > { %v1803_v15 = vsub.f32 %v7902_v6, %v1789_v27 }
 0x5ab   : > { %v1817_v9 = vmul.f32 1.442695, %v1804_v43 }
 0x5ac   : > { %v1798_v44 = vpop.xlane.xlu1 %1797  ;;  %v1815_v3 = vmul.f32 1.442695, %v1803_v15 }
 0x5ad   : > { %v1806_v49 = vsub.f32 %v5921_v55, %v1798_v44  ;;  %v1795_v51 = vpop.xlane.xlu0 %1794 }
 0x5ae   : > { %v1805_v10 = vsub.f32 %v1766_v11, %v1795_v51 }
 0x5af   : > { %v1821_v60 = vmul.f32 1.442695, %v1806_v49 }
 0x5b0   : > { %v1819_v61 = vmul.f32 1.442695, %v1805_v10 }
 0x5b1   : > { %6789 = vpow2.f32 %v1821_v60 }
 0x5b2   : > { %6791 = vpow2.f32 %v1817_v9 }
 0x5b3   : > { %6793 = vpow2.f32 %v1819_v61 }
 0x5b4   : > { %6795 = vpow2.f32 %v1815_v3 }
 0x5bb   : > { %v7958_v17 = vpop.eup %6789 }
 0x5bc   : > { %v7960_v20 = vpop.eup %6791  ;;  %v1844_v39 = vsel %vm1040_vm0, %v7958_v17, 0.0 }
 0x5bd   : > { %v7964_v55 = vpop.eup %6793  ;;  %1845 = vadd.xlane.f32.xlu0 %v1844_v39  ;;  %v1838_v6 = vsel %vm1040_vm0, %v7960_v20, 0.0 }
 0x5be   : > { %v1841_v11 = vsel %vm1040_vm0, %v7964_v55, 0.0  ;;  %v7970_v21 = vpop.eup %6795 }
 0x5bf   : > { %v1835_v13 = vsel %vm1040_vm0, %v7970_v21, 0.0 }
 0x5c1   : > { %1839 = vadd.xlane.f32.xlu1 %v1838_v6  ;;  %1842 = vadd.xlane.f32.xlu0 %v1841_v11 }
 0x5c5   : > { %1836 = vadd.xlane.f32.xlu1 %v1835_v13 }
 0x5d6   : > { %6625 = vrot.lane.b32.xlu1 %v7727_v38, %s7234_s17 }
 0x5d7   : > { %2206 = vrot.lane.b32.xlu0 %v7709_v25, %s7234_s17 }
 0x5da   : > { %2095 = vrot.lane.b32.xlu1 %v7719_v29, %s7234_s17 }
 0x5db   : > { %2210 = vrot.lane.b32.xlu0 %v7742_v48, %s7234_s17 }
 0x5de   : > { %2208 = vrot.lane.b32.xlu1 %v7739_v46, %s7234_s17 }
 0x5e2   : > { %2212 = vrot.lane.b32.xlu1 %v7750_v54, %s7234_s17 }
 0x5ff   : > { %v1828_v2 = vpop.xlane.xlu1 %1827 }
 0x600   : > { %v1825_v14 = vpop.xlane.xlu0 %1824 }
 0x601   : > { %6797 = vrcp.f32 %v1825_v14 }
 0x602   : > { %6799 = vrcp.f32 %v1828_v2 }
 0x605   : > { %v1831_v16 = vpop.xlane.xlu0 %1830 }
 0x606   : > { %6801 = vrcp.f32 %v1831_v16 }
 0x609   : > { %v1834_v23 = vpop.xlane.xlu1 %1833  ;;  %v6591_v30 = vpop.permute.xlu0 %6590 }
 0x60a   : > { %v6593_v7 = vunpack.i.h.bf16 %v6591_v30  ;;  %v6592_v34 = vunpack.i.l.bf16 %v6591_v30  ;;  %6803 = vrcp.f32 %v1834_v23 }
 0x60b   : > { %v6798_v28 = vpop.eup %6797 }
 0x60c   : > { %v6234_v42 = vpack.c.bf16 %v6593_v7, %v6592_v34  ;;  %v1848_v52 = vmul.f32 %v6798_v28, %v7911_v32  ;;  %v6800_v10 = vpop.eup %6799 }
 0x60d   : > { %v6596_v26 = vpop.permute.xlu1 %6595  ;;  %v6601_v27 = vpop.permute.xlu0 %6600  ;;  %v1850_v13 = vmul.f32 %v6800_v10, %v7909_v8 }
 0x60e   : > { %v6598_v43 = vunpack.i.h.bf16 %v6596_v26  ;;  %v6597_v44 = vunpack.i.l.bf16 %v6596_v26  ;;  %v6603_v49 = vunpack.i.h.bf16 %v6601_v27  ;;  %v6602_v51 = vunpack.i.l.bf16 %v6601_v27  ;;  %6235 = vmatprep.subr.bf16.mxu0 %v6234_v42  ;;  %5930 = vmatprep.mubr.msk.f32.mxu0 %vm1040_vm0, %v1848_v52 }
 0x60f   : > { %6237 = vmatpush3.bf16.msra.mxu0 %v6234_v42 }
 0x610   : > { %v6238_v9 = vpack.c.bf16 %v6598_v43, %v6597_v44  ;;  %v6250_v15 = vpack.c.bf16 %v6603_v49, %v6602_v51  ;;  %v6802_v3 = vpop.eup %6801 }
 0x611   : > { %v6606_v60 = vpop.permute.xlu1 %6605  ;;  %v6611_v61 = vpop.permute.xlu0 %6610  ;;  %v1852_v23 = vmul.f32 %v6802_v3, %v7917_v41 }
 0x612   : > { %v6608_v39 = vunpack.i.h.bf16 %v6606_v60  ;;  %v6607_v6 = vunpack.i.l.bf16 %v6606_v60  ;;  %v6613_v11 = vunpack.i.h.bf16 %v6611_v61  ;;  %v6612_v32 = vunpack.i.l.bf16 %v6611_v61  ;;  %6239 = vmatprep.subr.bf16.mxu0 %v6238_v9 }
 0x613   : > { %6241 = vmatpush3.bf16.msra.mxu0 %v6238_v9 }
 0x614   : > { %6252 = vmatprep.subr.msk.bf16.mxu0 %vm7676_vm1, %v6250_v15  ;;  %v6242_v14 = vpack.c.bf16 %v6608_v39, %v6607_v6  ;;  %v6804_v2 = vpop.eup %6803  ;;  %v6246_v30 = vpack.c.bf16 %v6613_v11, %v6612_v32 }
 0x615   : > { %v6616_v16 = vpop.permute.xlu1 %6615  ;;  %v1854_v8 = vmul.f32 %v6804_v2, %v7921_v47  ;;  %v2092_v47 = vpop.permute.xlu0 %2091 }
 0x616   : > { %5931 = vmatmul.mubr.msk.f32.vlgmr.msra.gmra.mrb[20].mxu0 %vm1040_vm0, %v1850_v13  ;;  %6243 = vmatprep.subr.bf16.mxu1 %v6242_v14  ;;  %v6618_v7 = vunpack.i.h.bf16 %v6616_v16  ;;  %v6617_v34 = vunpack.i.l.bf16 %v6616_v16 }
 0x617   : > { %5933 = vmatprep.mubr.msk.f32.mxu0 %vm1040_vm0, %v1852_v23  ;;  %6245 = vmatpush3.bf16.msra.mxu1 %v6242_v14 }
 0x618   : > { %6247 = vmatprep.subr.bf16.mxu1 %v6246_v30  ;;  %v6256_v26 = vpack.c.bf16 %v6618_v7, %v6617_v34 }
 0x619   : > { %v6621_v28 = vpop.permute.xlu1 %6620  ;;  %v2094_v43 = vpop.permute.xlu0 %2093 }
 0x61a   : > { %v6623_v42 = vunpack.i.h.bf16 %v6621_v28  ;;  %v6622_v52 = vunpack.i.l.bf16 %v6621_v28  ;;  %5934 = vmatmul.mubr.msk.f32.gmra.mrb[22].mxu0 %vm1040_vm0, %v1854_v8 }
 0x61b   : > { %6249 = vmatpush3.bf16.msra.mxu1 %v6246_v30 }
 0x61c   : > { %v6262_v41 = vpack.c.bf16 %v6623_v42, %v6622_v52  ;;  %6255 = vmatpush3.bf16.xpose.msk.msra.mxu0 %vm7676_vm1, %v6250_v15 }
 0x61d   : > { %v2090_v27 = vpop.permute.xlu1 %2089  ;;  %6258 = vmatprep.subr.msk.bf16.mxu0 %vm7676_vm1, %v6256_v26 }
 0x61e   : > { %5958 = vmatprep.mubr.msk.f32.mxu0 %vm1040_vm0, %v2090_v27  ;;  %6264 = vmatprep.subr.msk.bf16.mxu1 %vm7676_vm1, %v6262_v41 }
 0x624   : > { %6261 = vmatpush3.bf16.xpose.msk.msra.mxu0 %vm7676_vm1, %v6256_v26 }
 0x62b   : > { %5959 = vmatmul.mubr.msk.f32.vlgmr.msra.gmra.mrb[24].mxu0 %vm1040_vm0, %v2092_v47 }
 0x62c   : > { %5961 = vmatprep.mubr.msk.f32.mxu0 %vm1040_vm0, %v2094_v43 }
 0x64a   : > { %v1846_v44 = vpop.xlane.xlu0 %1845 }
 0x64e   : > { %v1840_v49 = vpop.xlane.xlu1 %1839  ;;  %v1843_v51 = vpop.xlane.xlu0 %1842 }
 0x64f   : > { %6805 = vrcp.f32 %v1840_v49 }
 0x650   : > { %6807 = vrcp.f32 %v1843_v51 }
 0x652   : > { %v1837_v9 = vpop.xlane.xlu1 %1836  ;;  %v2207_v16 = vpop.permute.xlu0 %2206 }
 0x653   : > { %6809 = vrcp.f32 %v1837_v9 }
 0x654   : > { %6811 = vrcp.f32 %v1846_v44 }
 0x656   : > { %v6626_v10 = vpop.permute.xlu1 %6625 }
 0x657   : > { %v6628_v39 = vunpack.i.h.bf16 %v6626_v10  ;;  %v6627_v6 = vunpack.i.l.bf16 %v6626_v10 }
 0x659   : > { %v6806_v60 = vpop.eup %6805  ;;  %v6268_v2 = vpack.c.bf16 %v6628_v39, %v6627_v6 }
 0x65a   : > { %v2096_v15 = vpop.permute.xlu1 %2095  ;;  %v6808_v61 = vpop.eup %6807  ;;  %v1858_v32 = vmul.f32 %v6806_v60, %v7960_v20 }
 0x65b   : > { %5962 = vmatmul.mubr.msk.f32.gmra.mrb[26].mxu0 %vm1040_vm0, %v2096_v15  ;;  %v1860_v14 = vmul.f32 %v6808_v61, %v7964_v55  ;;  %v2211_v55 = vpop.permute.xlu0 %2210 }
 0x65d   : > { %v6810_v3 = vpop.eup %6809 }
 0x65e   : > { %v1856_v11 = vmul.f32 %v6810_v3, %v7970_v21  ;;  %v6812_v13 = vpop.eup %6811  ;;  %v2209_v20 = vpop.permute.xlu1 %2208 }
 0x65f   : > { %v1862_v21 = vmul.f32 %v6812_v13, %v7958_v17 }
 0x660   : > { %5944 = vmatprep.mubr.msk.f32.mxu1 %vm1040_vm0, %v1856_v11 }
 0x661   : > { %5945 = vmatmul.mubr.msk.f32.vlgmr.msra.gmra.mrb[28].mxu1 %vm1040_vm0, %v1858_v32 }
 0x662   : > { %6267 = vmatpush3.bf16.xpose.msk.msra.mxu1 %vm7676_vm1, %v6262_v41  ;;  %5947 = vmatprep.mubr.msk.f32.mxu1 %vm1040_vm0, %v1860_v14  ;;  %v2213_v23 = vpop.permute.xlu1 %2212 }
 0x663   : > { %6270 = vmatprep.subr.msk.bf16.mxu1 %vm7676_vm1, %v6268_v2 }
 0x665   : > { %5948 = vmatmul.mubr.msk.f32.gmra.mrb[30].mxu1 %vm1040_vm0, %v1862_v21 }
 0x666   : > { %5972 = vmatprep.mubr.msk.f32.mxu1 %vm1040_vm0, %v2207_v16 }
 0x66a   : > { %6273 = vmatpush3.bf16.xpose.msk.msra.mxu1 %vm7676_vm1, %v6268_v2 }
 0x671   : > { %5973 = vmatmul.mubr.msk.f32.vlgmr.msra.gmra.mrb[32].mxu1 %vm1040_vm0, %v2209_v20 }
 0x672   : > { %5975 = vmatprep.mubr.msk.f32.mxu1 %vm1040_vm0, %v2211_v55 }
 0x675   : > { %5976 = vmatmul.mubr.msk.f32.gmra.mrb[34].mxu1 %vm1040_vm0, %v2213_v23 }
 0x6e9   : > { %v8026_v30 = vpop.f32.mrb[20].mxu0 }
 0x6ea   : > { %v8028_v17 = vpop.f32.mrb[21].mxu0 }
 0x6eb   : > { %v6689_v7 = vpack.i.bf16 %v8026_v30, %v8028_v17 }
 0x6ed   : > { %v8032_v34 = vpop.f32.mrb[22].mxu0 }
 0x6ee   : > { %v8034_v8 = vpop.f32.mrb[23].mxu0 }
 0x6ef   : > { %v6704_v28 = vpack.i.bf16 %v8032_v34, %v8034_v8 }
 0x6fe   : > { %v5960_v42 = vpop.f32.mrb[24].mxu0 }
 0x6ff   : > { %v2187_v52 = vpop.f32.mrb[25].mxu0  ;;  %v2326_v26 = vsel %vm1040_vm0, %v5960_v42, -inf }
 0x700   : > { %2327 = vmax.xlane.f32.xlu1 %v2326_v26  ;;  %v2323_v41 = vsel %vm1040_vm0, %v2187_v52, -inf }
 0x701   : > { %2324 = vmax.xlane.f32.xlu0 %v2323_v41 }
 0x72e   : > { %v5963_v27 = vpop.f32.mrb[26].mxu0 }
 0x72f   : > { %v2197_v47 = vpop.f32.mrb[27].mxu0  ;;  %v2332_v49 = vsel %vm1040_vm0, %v5963_v27, -inf }
 0x730   : > { %v2329_v43 = vsel %vm1040_vm0, %v2197_v47, -inf }
 0x731   : > { %2330 = vmax.xlane.f32.xlu0 %v2329_v43 }
 0x734   : > { %v8041_v44 = vpop.f32.mrb[28].mxu1 }
 0x735   : > { %v8044_v51 = vpop.f32.mrb[29].mxu1  ;;  %2333 = vmax.xlane.f32.xlu0 %v2332_v49 }
 0x736   : > { %v6719_v9 = vpack.i.bf16 %v8041_v44, %v8044_v51 }
 0x738   : > { %v8048_v10 = vpop.f32.mrb[30].mxu1 }
 0x739   : > { %v8050_v15 = vpop.f32.mrb[31].mxu1 }
 0x73a   : > { %v6734_v60 = vpack.i.bf16 %v8048_v10, %v8050_v15 }
 0x744   : > { %v5974_v61 = vpop.f32.mrb[32].mxu1 }
 0x745   : > { %v8054_v3 = vpop.f32.mrb[33].mxu1  ;;  %v2338_v39 = vsel %vm1040_vm0, %v5974_v61, -inf }
 0x746   : > { %2339 = vmax.xlane.f32.xlu1 %v2338_v39  ;;  %v2335_v6 = vsel %vm1040_vm0, %v8054_v3, -inf }
 0x747   : > { %2336 = vmax.xlane.f32.xlu0 %v2335_v6 }
 0x748   : > { %v5977_v11 = vpop.f32.mrb[34].mxu1 }
 0x749   : > { %v2314_v32 = vpop.f32.mrb[35].mxu1  ;;  %v2344_v13 = vsel %vm1040_vm0, %v5977_v11, -inf }
 0x74a   : > { %2345 = vmax.xlane.f32.xlu1 %v2344_v13  ;;  %v2341_v14 = vsel %vm1040_vm0, %v2314_v32, -inf }
 0x74b   : > { %2342 = vmax.xlane.f32.xlu0 %v2341_v14 }
 0x78d   : > { %v2328_v2 = vpop.xlane.xlu1 %2327 }
 0x78e   : > { %v2348_v21 = vsub.f32 %v5960_v42, %v2328_v2  ;;  %v2325_v16 = vpop.xlane.xlu0 %2324 }
 0x78f   : > { %v2347_v20 = vsub.f32 %v2187_v52, %v2325_v16 }
 0x790   : > { %v2357_v55 = vmul.f32 1.442695, %v2348_v21 }
 0x791   : > { %v2355_v23 = vmul.f32 1.442695, %v2347_v20 }
 0x792   : > { %6813 = vpow2.f32 %v2357_v55 }
 0x793   : > { %6815 = vpow2.f32 %v2355_v23 }
 0x79c   : > { %v8061_v26 = vpop.eup %6813 }
 0x79d   : > { %v8063_v41 = vpop.eup %6815  ;;  %v2374_v43 = vsel %vm1040_vm0, %v8061_v26, 0.0 }
 0x79e   : > { %2375 = vadd.xlane.f32.xlu1 %v2374_v43  ;;  %v2371_v49 = vsel %vm1040_vm0, %v8063_v41, 0.0 }
 0x79f   : > { %2372 = vadd.xlane.f32.xlu0 %v2371_v49 }
 0x7be   : > { %v2331_v39 = vpop.xlane.xlu0 %2330 }
 0x7bf   : > { %v2349_v42 = vsub.f32 %v2197_v47, %v2331_v39 }
 0x7c1   : > { %v2359_v6 = vmul.f32 1.442695, %v2349_v42 }
 0x7c2   : > { %v2334_v52 = vpop.xlane.xlu0 %2333 }
 0x7c3   : > { %6817 = vpow2.f32 %v2359_v6  ;;  %v2350_v13 = vsub.f32 %v5963_v27, %v2334_v52 }
 0x7c5   : > { %v2361_v14 = vmul.f32 1.442695, %v2350_v13 }
 0x7c7   : > { %6819 = vpow2.f32 %v2361_v14 }
 0x7cd   : > { %v8069_v2 = vpop.eup %6817 }
 0x7ce   : > { %v2377_v21 = vsel %vm1040_vm0, %v8069_v2, 0.0 }
 0x7cf   : > { %2378 = vadd.xlane.f32.xlu0 %v2377_v21 }
 0x7d1   : > { %v8073_v16 = vpop.eup %6819 }
 0x7d2   : > { %v2380_v20 = vsel %vm1040_vm0, %v8073_v16, 0.0 }
 0x7d3   : > { %2381 = vadd.xlane.f32.xlu1 %v2380_v20  ;;  %v2340_v27 = vpop.xlane.xlu1 %2339 }
 0x7e4   : > { %6635 = vrot.lane.b32.xlu1 %v7927_v57, %s7234_s17 }
 0x7e5   : > { %6630 = vrot.lane.b32.xlu0 %v7931_v59, %s7234_s17 }
 0x7e8   : > { %6645 = vrot.lane.b32.xlu1 %v7939_v22, %s7234_s17 }
 0x7e9   : > { %6640 = vrot.lane.b32.xlu0 %v7680_v53, %s7235_s21  ;;  %v2337_v53 = vpop.xlane.xlu0 %2336 }
 0x7ea   : > { %v2351_v39 = vsub.f32 %v8054_v3, %v2337_v53 }
 0x7ec   : > { %6655 = vrot.lane.b32.xlu1 %v7686_v63, %s7235_s21  ;;  %v2346_v63 = vpop.xlane.xlu1 %2345 }
 0x7ed   : > { %6650 = vrot.lane.b32.xlu0 %v7765_v56, %s7234_s17  ;;  %v2354_v47 = vsub.f32 %v5977_v11, %v2346_v63  ;;  %v2343_v55 = vpop.xlane.xlu0 %2342 }
 0x7ee   : > { %v2353_v43 = vsub.f32 %v2314_v32, %v2343_v55 }
 0x7ef   : > { %v2369_v23 = vmul.f32 1.442695, %v2354_v47 }
 0x7f0   : > { %6660 = vrot.lane.b32.xlu1 %v7701_v18, %s7235_s21  ;;  %v2352_v18 = vsub.f32 %v5974_v61, %v2340_v27  ;;  %v2367_v49 = vmul.f32 1.442695, %v2353_v43 }
 0x7f1   : > { %2631 = vrot.lane.b32.xlu0 %v7695_v12, %s7235_s21  ;;  %6821 = vpow2.f32 %v2369_v23 }
 0x7f2   : > { %v2365_v12 = vmul.f32 1.442695, %v2352_v18  ;;  %6823 = vpow2.f32 %v2367_v49 }
 0x7f4   : > { %2629 = vrot.lane.b32.xlu1 %v7670_v45, %s7235_s21  ;;  %6825 = vpow2.f32 %v2365_v12  ;;  %v2363_v45 = vmul.f32 1.442695, %v2351_v39 }
 0x7f5   : > { %2633 = vrot.lane.b32.xlu0 %v7703_v19, %s7235_s21 }
 0x7f6   : > { %6827 = vpow2.f32 %v2363_v45 }
 0x7f8   : > { %6665 = vrot.lane.b32.xlu1 %v7727_v38, %s7235_s21 }
 0x7fb   : > { %v8100_v42 = vpop.eup %6821 }
 0x7fc   : > { %v2392_v19 = vsel %vm1040_vm0, %v8100_v42, 0.0  ;;  %v8104_v38 = vpop.eup %6823 }
 0x7fd   : > { %v2389_v61 = vsel %vm1040_vm0, %v8104_v38, 0.0 }
 0x7fe   : > { %v8108_v11 = vpop.eup %6825 }
 0x7ff   : > { %v2386_v3 = vsel %vm1040_vm0, %v8108_v11, 0.0 }
 0x800   : > { %v8112_v32 = vpop.eup %6827 }
 0x801   : > { %v2383_v6 = vsel %vm1040_vm0, %v8112_v32, 0.0 }
 0x814   : > { %2393 = vadd.xlane.f32.xlu0 %v2392_v19 }
 0x818   : > { %2390 = vadd.xlane.f32.xlu0 %v2389_v61 }
 0x81c   : > { %2387 = vadd.xlane.f32.xlu1 %v2386_v3 }
 0x820   : > { %2384 = vadd.xlane.f32.xlu1 %v2383_v6 }
 0x82b   : > { %v2376_v21 = vpop.xlane.xlu1 %2375 }
 0x82c   : > { %v2373_v52 = vpop.xlane.xlu0 %2372 }
 0x82d   : > { %6829 = vrcp.f32 %v2373_v52 }
 0x82e   : > { %2746 = vrot.lane.b32.xlu0 %v7709_v25, %s7235_s21  ;;  %6831 = vrcp.f32 %v2376_v21 }
 0x831   : > { %2635 = vrot.lane.b32.xlu1 %v7719_v29, %s7235_s21 }
 0x832   : > { %2750 = vrot.lane.b32.xlu0 %v7742_v48, %s7235_s21 }
 0x835   : > { %2748 = vrot.lane.b32.xlu1 %v7739_v46, %s7235_s21 }
 0x837   : > { %v6830_v13 = vpop.eup %6829 }
 0x838   : > { %v2396_v14 = vmul.f32 %v6830_v13, %v8063_v41  ;;  %v6832_v43 = vpop.eup %6831 }
 0x839   : > { %2752 = vrot.lane.b32.xlu1 %v7750_v54, %s7235_s21  ;;  %v2398_v6 = vmul.f32 %v6832_v43, %v8061_v26 }
 0x83a   : > { %5986 = vmatprep.mubr.msk.f32.mxu0 %vm1040_vm0, %v2396_v14 }
 0x85c   : > { %v2379_v20 = vpop.xlane.xlu0 %2378 }
 0x85d   : > { %6833 = vrcp.f32 %v2379_v20 }
 0x860   : > { %v2382_v25 = vpop.xlane.xlu1 %2381  ;;  %v6631_v29 = vpop.permute.xlu0 %6630 }
 0x861   : > { %v6633_v27 = vunpack.i.h.bf16 %v6631_v29  ;;  %v6632_v53 = vunpack.i.l.bf16 %v6631_v29  ;;  %6835 = vrcp.f32 %v2382_v25 }
 0x863   : > { %v6274_v48 = vpack.c.bf16 %v6633_v27, %v6632_v53 }
 0x864   : > { %v6636_v63 = vpop.permute.xlu1 %6635  ;;  %v6641_v46 = vpop.permute.xlu0 %6640 }
 0x865   : > { %v6638_v47 = vunpack.i.h.bf16 %v6636_v63  ;;  %v6637_v55 = vunpack.i.l.bf16 %v6636_v63  ;;  %v6643_v41 = vunpack.i.h.bf16 %v6641_v46  ;;  %v6642_v23 = vunpack.i.l.bf16 %v6641_v46  ;;  %6275 = vmatprep.subr.bf16.mxu0 %v6274_v48 }
 0x866   : > { %6277 = vmatpush3.bf16.msra.mxu0 %v6274_v48 }
 0x867   : > { %v6278_v54 = vpack.c.bf16 %v6638_v47, %v6637_v55  ;;  %v6290_v18 = vpack.c.bf16 %v6643_v41, %v6642_v23  ;;  %v6834_v39 = vpop.eup %6833 }
 0x868   : > { %v6646_v49 = vpop.permute.xlu1 %6645  ;;  %v6651_v12 = vpop.permute.xlu0 %6650  ;;  %v2400_v21 = vmul.f32 %v6834_v39, %v8069_v2 }
 0x869   : > { %v6648_v45 = vunpack.i.h.bf16 %v6646_v49  ;;  %v6647_v19 = vunpack.i.l.bf16 %v6646_v49  ;;  %v6653_v61 = vunpack.i.h.bf16 %v6651_v12  ;;  %v6652_v3 = vunpack.i.l.bf16 %v6651_v12  ;;  %6279 = vmatprep.subr.bf16.mxu0 %v6278_v54 }
 0x86a   : > { %6281 = vmatpush3.bf16.msra.mxu0 %v6278_v54 }
 0x86b   : > { %v6282_v52 = vpack.c.bf16 %v6648_v45, %v6647_v19  ;;  %6292 = vmatprep.subr.msk.bf16.mxu0 %vm7676_vm1, %v6290_v18  ;;  %v6836_v13 = vpop.eup %6835  ;;  %v6286_v20 = vpack.c.bf16 %v6653_v61, %v6652_v3 }
 0x86c   : > { %v6656_v14 = vpop.permute.xlu1 %6655  ;;  %v2402_v26 = vmul.f32 %v6836_v13, %v8073_v16  ;;  %v2632_v16 = vpop.permute.xlu0 %2631 }
 0x86d   : > { %5987 = vmatmul.mubr.msk.f32.vlgmr.msra.gmra.mrb[28].mxu0 %vm1040_vm0, %v2398_v6  ;;  %6283 = vmatprep.subr.bf16.mxu1 %v6282_v52  ;;  %v6658_v25 = vunpack.i.h.bf16 %v6656_v14  ;;  %v6657_v29 = vunpack.i.l.bf16 %v6656_v14 }
 0x86e   : > { %5989 = vmatprep.mubr.msk.f32.mxu0 %vm1040_vm0, %v2400_v21  ;;  %6285 = vmatpush3.bf16.msra.mxu1 %v6282_v52 }
 0x86f   : > { %6287 = vmatprep.subr.bf16.mxu1 %v6286_v20  ;;  %v6296_v63 = vpack.c.bf16 %v6658_v25, %v6657_v29 }
 0x870   : > { %v6661_v27 = vpop.permute.xlu1 %6660  ;;  %v2634_v47 = vpop.permute.xlu0 %2633 }
 0x871   : > { %v6663_v53 = vunpack.i.h.bf16 %v6661_v27  ;;  %v6662_v48 = vunpack.i.l.bf16 %v6661_v27  ;;  %5990 = vmatmul.mubr.msk.f32.gmra.mrb[30].mxu0 %vm1040_vm0, %v2402_v26 }
 0x872   : > { %6289 = vmatpush3.bf16.msra.mxu1 %v6286_v20 }
 0x873   : > { %v6302_v2 = vpack.c.bf16 %v6663_v53, %v6662_v48  ;;  %6295 = vmatpush3.bf16.xpose.msk.msra.mxu0 %vm7676_vm1, %v6290_v18 }
 0x874   : > { %v2630_v46 = vpop.permute.xlu1 %2629  ;;  %6298 = vmatprep.subr.msk.bf16.mxu0 %vm7676_vm1, %v6296_v63 }
 0x875   : > { %6014 = vmatprep.mubr.msk.f32.mxu0 %vm1040_vm0, %v2630_v46  ;;  %6304 = vmatprep.subr.msk.bf16.mxu1 %vm7676_vm1, %v6302_v2 }
 0x878   : > { %v6666_v41 = vpop.permute.xlu1 %6665 }
 0x879   : > { %v6668_v45 = vunpack.i.h.bf16 %v6666_v41  ;;  %v6667_v19 = vunpack.i.l.bf16 %v6666_v41 }
 0x87b   : > { %6301 = vmatpush3.bf16.xpose.msk.msra.mxu0 %vm7676_vm1, %v6296_v63  ;;  %v6308_v13 = vpack.c.bf16 %v6668_v45, %v6667_v19 }
 0x882   : > { %6015 = vmatmul.mubr.msk.f32.vlgmr.msra.gmra.mrb[32].mxu0 %vm1040_vm0, %v2632_v16 }
 0x883   : > { %6017 = vmatprep.mubr.msk.f32.mxu0 %vm1040_vm0, %v2634_v47 }
 0x8a1   : > { %v2394_v55 = vpop.xlane.xlu0 %2393 }
 0x8a5   : > { %v2391_v23 = vpop.xlane.xlu0 %2390 }
 0x8a6   : > { %6837 = vrcp.f32 %v2391_v23 }
 0x8a9   : > { %v2388_v54 = vpop.xlane.xlu1 %2387  ;;  %v2747_v14 = vpop.permute.xlu0 %2746 }
 0x8aa   : > { %6839 = vrcp.f32 %v2388_v54 }
 0x8ad   : > { %v2385_v43 = vpop.xlane.xlu1 %2384 }
 0x8ae   : > { %6841 = vrcp.f32 %v2385_v43 }
 0x8af   : > { %6843 = vrcp.f32 %v2394_v55 }
 0x8b0   : > { %v6838_v49 = vpop.eup %6837 }
 0x8b1   : > { %v2636_v18 = vpop.permute.xlu1 %2635  ;;  %v2408_v52 = vmul.f32 %v6838_v49, %v8104_v38 }
 0x8b2   : > { %6018 = vmatmul.mubr.msk.f32.gmra.mrb[34].mxu0 %vm1040_vm0, %v2636_v18 }
 0x8b4   : > { %v6840_v12 = vpop.eup %6839 }
 0x8b5   : > { %v2406_v3 = vmul.f32 %v6840_v12, %v8108_v11  ;;  %v2749_v38 = vpop.permute.xlu1 %2748  ;;  %v2751_v11 = vpop.permute.xlu0 %2750 }
 0x8b8   : > { %v6842_v39 = vpop.eup %6841 }
 0x8b9   : > { %v2404_v61 = vmul.f32 %v6842_v39, %v8112_v32  ;;  %v6844_v6 = vpop.eup %6843  ;;  %v2753_v21 = vpop.permute.xlu1 %2752 }
 0x8ba   : > { %v2410_v32 = vmul.f32 %v6844_v6, %v8100_v42 }
 0x8bb   : > { %6000 = vmatprep.mubr.msk.f32.mxu1 %vm1040_vm0, %v2404_v61 }
 0x8bc   : > { %6001 = vmatmul.mubr.msk.f32.vlgmr.msra.gmra.mrb[36].mxu1 %vm1040_vm0, %v2406_v3 }
 0x8bd   : > { %6307 = vmatpush3.bf16.xpose.msk.msra.mxu1 %vm7676_vm1, %v6302_v2  ;;  %6003 = vmatprep.mubr.msk.f32.mxu1 %vm1040_vm0, %v2408_v52 }
 0x8be   : > { %6310 = vmatprep.subr.msk.bf16.mxu1 %vm7676_vm1, %v6308_v13 }
 0x8c0   : > { %6004 = vmatmul.mubr.msk.f32.gmra.mrb[38].mxu1 %vm1040_vm0, %v2410_v32 }
 0x8c1   : > { %6028 = vmatprep.mubr.msk.f32.mxu1 %vm1040_vm0, %v2747_v14 }
 0x8c5   : > { %6313 = vmatpush3.bf16.xpose.msk.msra.mxu1 %vm7676_vm1, %v6308_v13 }
 0x8cc   : > { %6029 = vmatmul.mubr.msk.f32.vlgmr.msra.gmra.mrb[40].mxu1 %vm1040_vm0, %v2749_v38 }
 0x8cd   : > { %6031 = vmatprep.mubr.msk.f32.mxu1 %vm1040_vm0, %v2751_v11 }
 0x8d0   : > { %6032 = vmatmul.mubr.msk.f32.gmra.mrb[42].mxu1 %vm1040_vm0, %v2753_v21 }
 0x940   : > { %v8166_v20 = vpop.f32.mrb[28].mxu0 }
 0x941   : > { %v8168_v42 = vpop.f32.mrb[29].mxu0 }
 0x942   : > { %v6694_v25 = vpack.i.bf16 %v8166_v20, %v8168_v42 }
 0x944   : > { %v8172_v29 = vpop.f32.mrb[30].mxu0 }
 0x945   : > { %v8174_v50 = vpop.f32.mrb[31].mxu0 }
 0x946   : > { %v6709_v26 = vpack.i.bf16 %v8172_v29, %v8174_v50 }
 0x955   : > { %v6016_v27 = vpop.f32.mrb[32].mxu0 }
 0x956   : > { %v2727_v53 = vpop.f32.mrb[33].mxu0  ;;  %v2866_v48 = vsel %vm1040_vm0, %v6016_v27, -inf }
 0x957   : > { %2867 = vmax.xlane.f32.xlu1 %v2866_v48  ;;  %v2863_v63 = vsel %vm1040_vm0, %v2727_v53, -inf }
 0x958   : > { %2864 = vmax.xlane.f32.xlu0 %v2863_v63 }
 0x985   : > { %v6019_v2 = vpop.f32.mrb[34].mxu0 }
 0x986   : > { %v2737_v46 = vpop.f32.mrb[35].mxu0  ;;  %v2872_v47 = vsel %vm1040_vm0, %v6019_v2, -inf }
 0x987   : > { %v2869_v16 = vsel %vm1040_vm0, %v2737_v46, -inf }
 0x988   : > { %2870 = vmax.xlane.f32.xlu0 %v2869_v16 }
 0x98c   : > { %2873 = vmax.xlane.f32.xlu0 %v2872_v47 }
 0x98f   : > { %v8182_v55 = vpop.f32.mrb[36].mxu1 }
 0x990   : > { %v8184_v41 = vpop.f32.mrb[37].mxu1 }
 0x991   : > { %v6724_v23 = vpack.i.bf16 %v8182_v55, %v8184_v41 }
 0x993   : > { %v8188_v54 = vpop.f32.mrb[38].mxu1 }
 0x994   : > { %v8190_v43 = vpop.f32.mrb[39].mxu1 }
 0x995   : > { %v6739_v18 = vpack.i.bf16 %v8188_v54, %v8190_v43 }
 0x99f   : > { %v6030_v49 = vpop.f32.mrb[40].mxu1 }
 0x9a0   : > { %v2844_v12 = vpop.f32.mrb[41].mxu1  ;;  %v2878_v39 = vsel %vm1040_vm0, %v6030_v49, -inf }
 0x9a1   : > { %2879 = vmax.xlane.f32.xlu1 %v2878_v39  ;;  %v2875_v45 = vsel %vm1040_vm0, %v2844_v12, -inf }
 0x9a2   : > { %2876 = vmax.xlane.f32.xlu0 %v2875_v45 }
 0x9a3   : > { %v6033_v19 = vpop.f32.mrb[42].mxu1 }
 0x9a4   : > { %v2854_v61 = vpop.f32.mrb[43].mxu1  ;;  %v2884_v3 = vsel %vm1040_vm0, %v6033_v19, -inf }
 0x9a5   : > { %2885 = vmax.xlane.f32.xlu1 %v2884_v3  ;;  %v2881_v6 = vsel %vm1040_vm0, %v2854_v61, -inf }
 0x9a6   : > { %2882 = vmax.xlane.f32.xlu0 %v2881_v6 }
 0x9e4   : > { %v2868_v52 = vpop.xlane.xlu1 %2867 }
 0x9e5   : > { %v2888_v13 = vsub.f32 %v6016_v27, %v2868_v52  ;;  %v2865_v32 = vpop.xlane.xlu0 %2864 }
 0x9e6   : > { %v2887_v14 = vsub.f32 %v2727_v53, %v2865_v32 }
 0x9e7   : > { %v2897_v38 = vmul.f32 1.442695, %v2888_v13 }
 0x9e8   : > { %v2895_v11 = vmul.f32 1.442695, %v2887_v14 }
 0x9e9   : > { %6845 = vpow2.f32 %v2897_v38 }
 0x9ea   : > { %6847 = vpow2.f32 %v2895_v11 }
 0x9f3   : > { %v8198_v21 = vpop.eup %6845 }
 0x9f4   : > { %v6848_v48 = vpop.eup %6847  ;;  %v2914_v63 = vsel %vm1040_vm0, %v8198_v21, 0.0 }
 0x9f5   : > { %2915 = vadd.xlane.f32.xlu1 %v2914_v63  ;;  %v2911_v16 = vsel %vm1040_vm0, %v6848_v48, 0.0 }
 0x9f6   : > { %2912 = vadd.xlane.f32.xlu0 %v2911_v16 }
 0xa15   : > { %v2871_v47 = vpop.xlane.xlu0 %2870 }
 0xa16   : > { %v2889_v39 = vsub.f32 %v2737_v46, %v2871_v47 }
 0xa18   : > { %v2899_v45 = vmul.f32 1.442695, %v2889_v39 }
 0xa19   : > { %v2874_v27 = vpop.xlane.xlu0 %2873 }
 0xa1a   : > { %6849 = vpow2.f32 %v2899_v45  ;;  %v2890_v53 = vsub.f32 %v6019_v2, %v2874_v27 }
 0xa1c   : > { %v2901_v3 = vmul.f32 1.442695, %v2890_v53 }
 0xa1e   : > { %6851 = vpow2.f32 %v2901_v3 }
 0xa24   : > { %v8203_v6 = vpop.eup %6849 }
 0xa25   : > { %v2917_v52 = vsel %vm1040_vm0, %v8203_v6, 0.0 }
 0xa26   : > { %2918 = vadd.xlane.f32.xlu0 %v2917_v52 }
 0xa28   : > { %v8207_v13 = vpop.eup %6851 }
 0xa29   : > { %v2920_v32 = vsel %vm1040_vm0, %v8207_v13, 0.0 }
 0xa2a   : > { %2921 = vadd.xlane.f32.xlu1 %v2920_v32 }
 0xa2e   : > { %v2880_v2 = vpop.xlane.xlu1 %2879 }
 0xa2f   : > { %v2877_v46 = vpop.xlane.xlu0 %2876  ;;  %v2892_v11 = vsub.f32 %v6030_v49, %v2880_v2 }
 0xa30   : > { %v2891_v14 = vsub.f32 %v2844_v12, %v2877_v46 }
 0xa31   : > { %v2905_v39 = vmul.f32 1.442695, %v2892_v11 }
 0xa32   : > { %v2886_v38 = vpop.xlane.xlu1 %2885  ;;  %v2903_v63 = vmul.f32 1.442695, %v2891_v14 }
 0xa33   : > { %v2894_v16 = vsub.f32 %v6033_v19, %v2886_v38  ;;  %v2883_v47 = vpop.xlane.xlu0 %2882 }
 0xa34   : > { %6853 = vpow2.f32 %v2903_v63  ;;  %v2893_v27 = vsub.f32 %v2854_v61, %v2883_v47 }
 0xa35   : > { %v2909_v45 = vmul.f32 1.442695, %v2894_v16  ;;  %6855 = vpow2.f32 %v2905_v39 }
 0xa36   : > { %v2907_v53 = vmul.f32 1.442695, %v2893_v27 }
 0xa37   : > { %6857 = vpow2.f32 %v2909_v45 }
 0xa38   : > { %6859 = vpow2.f32 %v2907_v53 }
 0xa3b   : > { %6675 = vrot.lane.b32.xlu1 %v7927_v57, %s7235_s21 }
 0xa3c   : > { %6670 = vrot.lane.b32.xlu0 %v7931_v59, %s7235_s21 }
 0xa3e   : > { %v8215_v57 = vpop.eup %6853 }
 0xa3f   : > { %v8217_v3 = vpop.eup %6855  ;;  %v2923_v59 = vsel %vm1040_vm0, %v8215_v57, 0.0 }
 0xa40   : > { %v2926_v49 = vsel %vm1040_vm0, %v8217_v3, 0.0 }
 0xa41   : > { %v8221_v12 = vpop.eup %6857 }
 0xa42   : > { %v2932_v19 = vsel %vm1040_vm0, %v8221_v12, 0.0  ;;  %v8227_v61 = vpop.eup %6859 }
 0xa43   : > { %v2929_v52 = vsel %vm1040_vm0, %v8227_v61, 0.0 }
 0xa5b   : > { %2924 = vadd.xlane.f32.xlu0 %v2923_v59 }
 0xa5f   : > { %2927 = vadd.xlane.f32.xlu1 %v2926_v49  ;;  %2933 = vadd.xlane.f32.xlu0 %v2932_v19 }
 0xa63   : > { %2930 = vadd.xlane.f32.xlu1 %v2929_v52 }
 0xa74   : > { %6685 = vrot.lane.b32.xlu1 %v7765_v56, %s7235_s21 }
 0xa75   : > { %6680 = vrot.lane.b32.xlu0 %v7939_v22, %s7235_s21 }
 0xa78   : > { %6690 = vrot.lane.b32.xlu1 %v6689_v7, %s7235_s21 }
 0xa7c   : > { %6695 = vrot.lane.b32.xlu1 %v6694_v25, %s7234_s17 }
 0xa80   : > { %6705 = vrot.lane.b32.xlu1 %v6704_v28, %s7235_s21 }
 0xa82   : > { %v2916_v22 = vpop.xlane.xlu1 %2915 }
 0xa83   : > { %v2913_v32 = vpop.xlane.xlu0 %2912 }
 0xa84   : > { %6861 = vrcp.f32 %v2913_v32 }
 0xa85   : > { %6863 = vrcp.f32 %v2916_v22 }
 0xa8e   : > { %v6862_v56 = vpop.eup %6861 }
 0xa8f   : > { %v2936_v2 = vmul.f32 %v6862_v56, %v6848_v48  ;;  %v6864_v28 = vpop.eup %6863 }
 0xa90   : > { %v2938_v38 = vmul.f32 %v6864_v28, %v8198_v21  ;;  %v3298_v28 = vld [vmem:[%s7511_s26 + $0x38] sm:$0xff] }
 0xa91   : > { %6042 = vmatprep.mubr.msk.f32.mxu0 %vm1040_vm0, %v2936_v2 }
 0xab3   : > { %v2919_v46 = vpop.xlane.xlu0 %2918 }
 0xab4   : > { %6865 = vrcp.f32 %v2919_v46 }
 0xab7   : > { %v2922_v30 = vpop.xlane.xlu1 %2921  ;;  %v6671_v17 = vpop.permute.xlu0 %6670 }
 0xab8   : > { %v6673_v7 = vunpack.i.h.bf16 %v6671_v17  ;;  %v6672_v20 = vunpack.i.l.bf16 %v6671_v17  ;;  %6867 = vrcp.f32 %v2922_v30 }
 0xaba   : > { %v6314_v42 = vpack.c.bf16 %v6673_v7, %v6672_v20  ;;  %v3291_v7 = vld [vmem:[%s7511_s26] sm:$0xff]  ;;  %v3292_v20 = vld [vmem:[%s7511_s26 + $0x8] sm:$0xff] }
 0xabb   : > { %v6676_v25 = vpop.permute.xlu1 %6675 }
 0xabc   : > { %v6678_v14 = vunpack.i.h.bf16 %v6676_v25  ;;  %v6677_v34 = vunpack.i.l.bf16 %v6676_v25  ;;  %6315 = vmatprep.subr.bf16.mxu0 %v6314_v42  ;;  %v3294_v25 = vld [vmem:[%s7511_s26 + $0x18] sm:$0xff] }
 0xabd   : > { %6317 = vmatpush3.bf16.msra.mxu0 %v6314_v42  ;;  %v3293_v42 = vld [vmem:[%s7511_s26 + $0x10] sm:$0xff] }
 0xabe   : > { %v6318_v8 = vpack.c.bf16 %v6678_v14, %v6677_v34  ;;  %v6866_v48 = vpop.eup %6865  ;;  %v3295_v14 = vld [vmem:[%s7511_s26 + $0x20] sm:$0xff]  ;;  %v3296_v34 = vld [vmem:[%s7511_s26 + $0x28] sm:$0xff] }
 0xabf   : > { %v2940_v63 = vmul.f32 %v6866_v48, %v8203_v6 }
 0xac0   : > { %6319 = vmatprep.subr.bf16.mxu0 %v6318_v8 }
 0xac1   : > { %6321 = vmatpush3.bf16.msra.mxu0 %v6318_v8  ;;  %v3297_v8 = vld [vmem:[%s7511_s26 + $0x30] sm:$0xff] }
 0xac2   : > { %v6868_v11 = vpop.eup %6867  ;;  %v6342_v48 = vpack.c.bf16 %v3298_v28, %v3297_v8 }
 0xac3   : > { %v2942_v16 = vmul.f32 %v6868_v11, %v8207_v13  ;;  %v3300_v11 = vld [vmem:[%s7511_s26 + $0x48] sm:$0xff] }
 0xac4   : > { %6043 = vmatmul.mubr.msk.f32.vlgmr.msra.gmra.mrb[36].mxu0 %vm1040_vm0, %v2938_v38  ;;  %v3299_v38 = vld [vmem:[%s7511_s26 + $0x40] sm:$0xff] }
 0xac5   : > { %6045 = vmatprep.mubr.msk.f32.mxu0 %vm1040_vm0, %v2940_v63  ;;  %v6346_v63 = vpack.c.bf16 %v3300_v11, %v3299_v38 }
 0xac8   : > { %6046 = vmatmul.mubr.msk.f32.gmra.mrb[38].mxu0 %vm1040_vm0, %v2942_v16  ;;  %v3301_v16 = vld [vmem:[%s7511_s26 + $0x50] sm:$0xff] }
 0xae8   : > { %v2925_v47 = vpop.xlane.xlu0 %2924 }
 0xae9   : > { %6869 = vrcp.f32 %v2925_v47  ;;  %v3302_v47 = vld [vmem:[%s7511_s26 + $0x58] sm:$0xff] }
 0xaec   : > { %v2928_v39 = vpop.xlane.xlu1 %2927  ;;  %v2934_v45 = vpop.xlane.xlu0 %2933 }
 0xaed   : > { %6871 = vrcp.f32 %v2928_v39  ;;  %v6350_v39 = vpack.c.bf16 %v3302_v47, %v3301_v16 }
 0xaf0   : > { %v2931_v27 = vpop.xlane.xlu1 %2930  ;;  %v6681_v53 = vpop.permute.xlu0 %6680 }
 0xaf1   : > { %6873 = vrcp.f32 %v2931_v27  ;;  %v6683_v21 = vunpack.i.h.bf16 %v6681_v53  ;;  %v6682_v59 = vunpack.i.l.bf16 %v6681_v53  ;;  %v3304_v27 = vld [vmem:[%s7511_s26 + $0x68] sm:$0xff] }
 0xaf2   : > { %6875 = vrcp.f32 %v2934_v45  ;;  %v3303_v45 = vld [vmem:[%s7511_s26 + $0x60] sm:$0xff] }
 0xaf3   : > { %v6870_v6 = vpop.eup %6869  ;;  %v6322_v49 = vpack.c.bf16 %v6683_v21, %v6682_v59  ;;  %v6354_v53 = vpack.c.bf16 %v3304_v27, %v3303_v45  ;;  %v3305_v21 = vld [vmem:[%s7511_s26 + $0x70] sm:$0xff]  ;;  %v3306_v59 = vld [vmem:[%s7511_s26 + $0x78] sm:$0xff] }
 0xaf4   : > { %v6686_v19 = vpop.permute.xlu1 %6685  ;;  %v2944_v52 = vmul.f32 %v6870_v6, %v8215_v57  ;;  %v6358_v6 = vpack.c.bf16 %v3306_v59, %v3305_v21 }
 0xaf5   : > { %v6688_v32 = vunpack.i.h.bf16 %v6686_v19  ;;  %v6687_v13 = vunpack.i.l.bf16 %v6686_v19  ;;  %6323 = vmatprep.subr.bf16.mxu1 %v6322_v49 }
 0xaf6   : > { %6325 = vmatpush3.bf16.msra.mxu1 %v6322_v49  ;;  %6056 = vmatprep.mubr.msk.f32.mxu1 %vm1040_vm0, %v2944_v52 }
 0xaf7   : > { %v6326_v56 = vpack.c.bf16 %v6688_v32, %v6687_v13  ;;  %v6872_v2 = vpop.eup %6871 }
 0xaf8   : > { %v2946_v46 = vmul.f32 %v6872_v2, %v8217_v3  ;;  %v6330_v3 = vpack.c.bf16 %v3292_v20, %v3291_v7  ;;  %v6691_v44 = vpop.permute.xlu1 %6690 }
 0xaf9   : > { %6327 = vmatprep.subr.bf16.mxu1 %v6326_v56  ;;  %v6692_v10 = vunpack.i.l.bf16 %v6691_v44 }
 0xafa   : > { %6329 = vmatpush3.bf16.msra.mxu1 %v6326_v56  ;;  %6331 = vmatprep.subr.bf16.mxu0 %v6330_v3 }
 0xafb   : > { %v6874_v22 = vpop.eup %6873  ;;  %6333 = vmatpush3.bf16.msra.mxu0 %v6330_v3  ;;  %v3265_v54 = vsel %vm1040_vm0, %v7884_v33, %v6692_v10 }
 0xafc   : > { %v6876_v57 = vpop.eup %6875  ;;  %v2948_v30 = vmul.f32 %v6874_v22, %v8227_v61  ;;  %v6334_v61 = vpack.c.bf16 %v3294_v25, %v3293_v42  ;;  %v6696_v51 = vpop.permute.xlu1 %6695 }
 0xafd   : > { %6057 = vmatmul.mubr.msk.f32.vlgmr.msra.gmra.mrb[44].mxu1 %vm1040_vm0, %v2946_v46  ;;  %v2950_v17 = vmul.f32 %v6876_v57, %v8221_v12  ;;  %v6338_v12 = vpack.c.bf16 %v3296_v34, %v3295_v14  ;;  %v6698_v15 = vunpack.i.h.bf16 %v6696_v51 }
 0xafe   : > { %6059 = vmatprep.mubr.msk.f32.mxu1 %vm1040_vm0, %v2948_v30  ;;  %6335 = vmatprep.subr.bf16.mxu0 %v6334_v61 }
 0xaff   : > { %6337 = vmatpush3.bf16.msra.mxu0 %v6334_v61 }
 0xb00   : > { %6339 = vmatprep.subr.bf16.mxu0 %v6338_v12  ;;  %v6706_v55 = vpop.permute.xlu1 %6705 }
 0xb01   : > { %6060 = vmatmul.mubr.msk.f32.gmra.mrb[46].mxu1 %vm1040_vm0, %v2950_v17  ;;  %v6707_v17 = vunpack.i.l.bf16 %v6706_v55 }
 0xb02   : > { %3696 = vmatprep.mubr.f32.mxu1 %v7232_v24 }
 0xb03   : > { %6341 = vmatpush3.bf16.msra.mxu0 %v6338_v12  ;;  %v3267_v33 = vsel %vm1040_vm0, %v7891_v62, %v6707_v17  ;;  %v7039_v17 = vld [vmem:[#allocation2 + $0x10] sm:$0xff] }
 0xb04   : > { %6343 = vmatprep.subr.bf16.mxu0 %v6342_v48 }
 0xb07   : > { %6345 = vmatpush3.bf16.msra.mxu0 %v6342_v48 }
 0xb08   : > { %6347 = vmatprep.subr.bf16.mxu0 %v6346_v63 }
 0xb0b   : > { %6349 = vmatpush3.bf16.msra.mxu0 %v6346_v63 }
 0xb0c   : > { %6351 = vmatprep.subr.bf16.mxu0 %v6350_v39 }
 0xb0f   : > { %6353 = vmatpush3.bf16.msra.mxu0 %v6350_v39 }
 0xb10   : > { %6355 = vmatprep.subr.bf16.mxu0 %v6354_v53 }
 0xb13   : > { %6357 = vmatpush3.bf16.msra.mxu0 %v6354_v53 }
 0xb14   : > { %6359 = vmatprep.subr.bf16.mxu0 %v6358_v6 }
 0xb17   : > { %6361 = vmatpush3.bf16.msra.mxu0 %v6358_v6 }
 0xb97   : > { %v6044_v49 = vpop.f32.mrb[36].mxu0 }
 0xb98   : > { %v3041_v19 = vpop.f32.mrb[37].mxu0 }
 0xb99   : > { %v6699_v52 = vpack.i.bf16 %v6044_v49, %v3041_v19 }
 0xb9b   : > { %6700 = vrot.lane.b32.xlu0 %v6699_v52, %s7233_s4  ;;  %v6047_v32 = vpop.f32.mrb[38].mxu0 }
 0xb9c   : > { %v3051_v13 = vpop.f32.mrb[39].mxu0 }
 0xb9d   : > { %v6714_v56 = vpack.i.bf16 %v6047_v32, %v3051_v13 }
 0xb9f   : > { %6710 = vrot.lane.b32.xlu0 %v6709_v26, %s7234_s17  ;;  %6715 = vrot.lane.b32.xlu1 %v6714_v56, %s7233_s4 }
 0xba3   : > { %6720 = vrot.lane.b32.xlu0 %v6719_v9, %s7235_s21  ;;  %6725 = vrot.lane.b32.xlu1 %v6724_v23, %s7234_s17  ;;  %v6693_v9 = vunpack.i.h.bf16 %v6691_v44 }
 0xba5   : > { %v3266_v23 = vsel %vm1040_vm0, %v7882_v35, %v6693_v9 }
 0xba6   : > { %v3275_v43 = vsel %vm3273_vm2, %v3266_v23, %v6698_v15  ;;  %v7038_v23 = vld [vmem:[#allocation2] sm:$0xff] }
 0xba7   : > { %6735 = vrot.lane.b32.xlu1 %v6734_v60, %s7235_s21  ;;  %v6697_v60 = vunpack.i.l.bf16 %v6696_v51 }
 0xba9   : > { %v3274_v7 = vsel %vm3273_vm2, %v3265_v54, %v6697_v60 }
 0xbd0   : > { %v6058_v2 = vpop.f32.mrb[44].mxu1 }
 0xbd1   : > { %v3150_v29 = vpop.f32.mrb[45].mxu1 }
 0xbd2   : > { %v6729_v50 = vpack.i.bf16 %v6058_v2, %v3150_v29 }
 0xbd4   : > { %v6061_v26 = vpop.f32.mrb[46].mxu1  ;;  %6730 = vrot.lane.b32.xlu0 %v6729_v50, %s7233_s4 }
 0xbd5   : > { %v3160_v22 = vpop.f32.mrb[47].mxu1 }
 0xbd6   : > { %v6744_v46 = vpack.i.bf16 %v6061_v26, %v3160_v22 }
 0xbd8   : > { %6740 = vrot.lane.b32.xlu0 %v6739_v18, %s7234_s17  ;;  %6745 = vrot.lane.b32.xlu1 %v6744_v46, %s7233_s4  ;;  %v6708_v18 = vunpack.i.h.bf16 %v6706_v55  ;;  %v7037_v55 = vld [vmem:[#allocation2 + $0x8] sm:$0xff] }
 0xbda   : > { %v3268_v12 = vsel %vm1040_vm0, %v7888_v58, %v6708_v18 }
 0xc0d   : > { %v6701_v41 = vpop.permute.xlu0 %6700 }
 0xc0e   : > { %v6703_v57 = vunpack.i.h.bf16 %v6701_v41  ;;  %v6702_v30 = vunpack.i.l.bf16 %v6701_v41 }
 0xc10   : > { %v3283_v20 = vsel %vm3282_vm3, %v3274_v7, %v6702_v30  ;;  %v3284_v42 = vsel %vm3282_vm3, %v3275_v43, %v6703_v57 }
 0xc11   : > { %v6711_v3 = vpop.permute.xlu0 %6710  ;;  %6094 = vmatprep.mubr.f32.mxu0 %v3283_v20  ;;  %v6716_v25 = vpop.permute.xlu1 %6715  ;;  %v7040_v20 = vld [vmem:[#allocation2 + $0x18] sm:$0xff] }
 0xc12   : > { %v6713_v61 = vunpack.i.h.bf16 %v6711_v3  ;;  %v6712_v35 = vunpack.i.l.bf16 %v6711_v3  ;;  %v6718_v14 = vunpack.i.h.bf16 %v6716_v25  ;;  %v6717_v34 = vunpack.i.l.bf16 %v6716_v25  ;;  %6095 = vmatmul.mubr.f32.vlgmr.msra.gmra.mrb[40].mxu0 %v3284_v42 }
 0xc14   : > { %v3276_v8 = vsel %vm3273_vm2, %v3267_v33, %v6712_v35  ;;  %v3277_v28 = vsel %vm3273_vm2, %v3268_v12, %v6713_v61  ;;  %v7042_v33 = vld [vmem:[#allocation2 + $0x20] sm:$0xff] }
 0xc15   : > { %v3285_v48 = vsel %vm3282_vm3, %v3276_v8, %v6717_v34  ;;  %v3286_v38 = vsel %vm3282_vm3, %v3277_v28, %v6718_v14  ;;  %v6721_v11 = vpop.permute.xlu0 %6720  ;;  %v6726_v63 = vpop.permute.xlu1 %6725  ;;  %v7041_v14 = vld [vmem:[#allocation2 + $0x28] sm:$0xff] }
 0xc16   : > { %6097 = vmatprep.mubr.f32.mxu0 %v3285_v48  ;;  %v6723_v16 = vunpack.i.h.bf16 %v6721_v11  ;;  %v6722_v47 = vunpack.i.l.bf16 %v6721_v11  ;;  %v6728_v39 = vunpack.i.h.bf16 %v6726_v63  ;;  %v6727_v45 = vunpack.i.l.bf16 %v6726_v63  ;;  %v7043_v11 = vld [vmem:[#allocation2 + $0x38] sm:$0xff] }
 0xc17   : > { %6098 = vmatmul.mubr.f32.gmra.mrb[42].mxu0 %v3286_v38 }
 0xc18   : > { %v3269_v58 = vsel %vm1040_vm0, %v7896_v0, %v6722_v47  ;;  %v3270_v27 = vsel %vm1040_vm0, %v7893_v31, %v6723_v16  ;;  %v7044_v16 = vld [vmem:[#allocation2 + $0x30] sm:$0xff] }
 0xc19   : > { %v6736_v62 = vpop.permute.xlu1 %6735  ;;  %v3278_v19 = vsel %vm3273_vm2, %v3269_v58, %v6727_v45  ;;  %v3279_v52 = vsel %vm3273_vm2, %v3270_v27, %v6728_v39  ;;  %v3547_v39 = vld [vmem:[%s7518_s23 + $0x8] sm:$0xff]  ;;  %v3553_v27 = vld [vmem:[%s7518_s23 + $0x38] sm:$0xff] }
 0xc1a   : > { %v6738_v6 = vunpack.i.h.bf16 %v6736_v62  ;;  %v6737_v49 = vunpack.i.l.bf16 %v6736_v62  ;;  %v3551_v45 = vld [vmem:[%s7518_s23 + $0x28] sm:$0xff]  ;;  %v3549_v62 = vld [vmem:[%s7518_s23 + $0x18] sm:$0xff] }
 0xc1b   : > { %v6362_v58 = vpack.c.bf16 %v3551_v45, %v3547_v39  ;;  %v3573_v39 = vld [vmem:[%s7518_s23 + $0xd8] sm:$0xff] }
 0xc1c   : > { %v3271_v26 = vsel %vm1040_vm0, %v7900_v5, %v6737_v49  ;;  %v3272_v22 = vsel %vm1040_vm0, %v7898_v1, %v6738_v6  ;;  %v5493_v5 = vld [vmem:[%s9654_s2] ss:$0 sm:$0xff]  ;;  %v3548_v49 = vld [vmem:[%s7518_s23 + $0x10] sm:$0xff] }
 0xc1d   : > { %6363 = vmatprep.subr.bf16.mxu1 %v6362_v58  ;;  %v3570_v58 = vld [vmem:[%s7518_s23 + $0xc0] sm:$0xff] }
 0xc46   : > { %v6731_v53 = vpop.permute.xlu0 %6730 }
 0xc47   : > { %v6733_v21 = vunpack.i.h.bf16 %v6731_v53  ;;  %v6732_v59 = vunpack.i.l.bf16 %v6731_v53  ;;  %v3546_v53 = vld [vmem:[%s7518_s23] sm:$0xff] }
 0xc49   : > { %v3287_v32 = vsel %vm3282_vm3, %v3278_v19, %v6732_v59  ;;  %v3288_v13 = vsel %vm3282_vm3, %v3279_v52, %v6733_v21  ;;  %v3550_v21 = vld [vmem:[%s7518_s23 + $0x20] sm:$0xff]  ;;  %v6394_v59 = vpack.c.bf16 %v3553_v27, %v3549_v62  ;;  %v3552_v19 = vld [vmem:[%s7518_s23 + $0x30] sm:$0xff]  ;;  %v3555_v52 = vld [vmem:[%s7518_s23 + $0x48] sm:$0xff] }
 0xc4a   : > { %v6741_v56 = vpop.permute.xlu0 %6740  ;;  %v6746_v2 = vpop.permute.xlu1 %6745  ;;  %6100 = vmatprep.mubr.f32.mxu0 %v3287_v32  ;;  %v6364_v6 = vpack.c.bf16 %v3550_v21, %v3546_v53  ;;  %v6396_v32 = vpack.c.bf16 %v3552_v19, %v3548_v49  ;;  %v3577_v62 = vld [vmem:[%s7518_s23 + $0xf8] sm:$0xff]  ;;  %v3574_v27 = vld [vmem:[%s7518_s23 + $0xe0] sm:$0xff]  ;;  %v3572_v21 = vld [vmem:[%s7518_s23 + $0xd0] sm:$0xff] }
 0xc4b   : > { %v6743_v0 = vunpack.i.h.bf16 %v6741_v56  ;;  %v6742_v29 = vunpack.i.l.bf16 %v6741_v56  ;;  %v6748_v31 = vunpack.i.h.bf16 %v6746_v2  ;;  %v6747_v50 = vunpack.i.l.bf16 %v6746_v2  ;;  %6101 = vmatmul.mubr.f32.gmra.mrb[44].mxu0 %v3288_v13  ;;  %v3559_v13 = vld [vmem:[%s7518_s23 + $0x68] sm:$0xff]  ;;  %v3557_v56 = vld [vmem:[%s7518_s23 + $0x58] sm:$0xff]  ;;  %6395 = vmatprep.subr.bf16.mxu0 %v6394_v59  ;;  %v3576_v59 = vld [vmem:[%s7518_s23 + $0xf0] sm:$0xff] }
 0xc4c   : > { %v3561_v2 = vld [vmem:[%s7518_s23 + $0x78] sm:$0xff]  ;;  %6365 = vmatpush1.bf16.msra.mxu1 %v6364_v6  ;;  %6397 = vmatpush1.bf16.msra.mxu0 %v6396_v32  ;;  %v6376_v53 = vpack.c.bf16 %v3574_v27, %v3570_v58  ;;  %v6408_v6 = vpack.c.bf16 %v3576_v59, %v3572_v21  ;;  %v3579_v49 = vld [vmem:[%s7518_s23 + $0x108] sm:$0xff]  ;;  %v3604_v27 = vld [vmem:[%s7518_s23 + $0x1d0] sm:$0xff] }
 0xc4d   : > { %v3280_v46 = vsel %vm3273_vm2, %v3271_v26, %v6742_v29  ;;  %v3281_v44 = vsel %vm3273_vm2, %v3272_v22, %v6743_v0  ;;  %v6366_v0 = vpack.c.bf16 %v3559_v13, %v3555_v52  ;;  %v6398_v29 = vpack.c.bf16 %v3561_v2, %v3557_v56  ;;  %v3556_v26 = vld [vmem:[%s7518_s23 + $0x50] sm:$0xff]  ;;  %v3583_v19 = vld [vmem:[%s7518_s23 + $0x128] sm:$0xff]  ;;  %v3581_v52 = vld [vmem:[%s7518_s23 + $0x118] sm:$0xff] }
 0xc4e   : > { %v3289_v51 = vsel %vm3282_vm3, %v3280_v46, %v6747_v50  ;;  %v3290_v9 = vsel %vm3282_vm3, %v3281_v44, %v6748_v31  ;;  %v3554_v31 = vld [vmem:[%s7518_s23 + $0x40] sm:$0xff]  ;;  %v3560_v46 = vld [vmem:[%s7518_s23 + $0x70] sm:$0xff]  ;;  %v3563_v44 = vld [vmem:[%s7518_s23 + $0x88] sm:$0xff]  ;;  %v6378_v32 = vpack.c.bf16 %v3583_v19, %v3579_v49 }
 0xc4f   : > { %6103 = vmatprep.mubr.f32.mxu0 %v3289_v51  ;;  %v3558_v50 = vld [vmem:[%s7518_s23 + $0x60] sm:$0xff]  ;;  %v3567_v51 = vld [vmem:[%s7518_s23 + $0xa8] sm:$0xff]  ;;  %6367 = vmatprep.subr.bf16.mxu1 %v6366_v0  ;;  %v3585_v13 = vld [vmem:[%s7518_s23 + $0x138] sm:$0xff] }
 0xc50   : > { %6104 = vmatmul.mubr.f32.gmra.mrb[46].mxu0 %v3290_v9  ;;  %v6368_v22 = vpack.c.bf16 %v3558_v50, %v3554_v31  ;;  %6399 = vmatprep.subr.bf16.mxu0 %v6398_v29  ;;  %v6400_v9 = vpack.c.bf16 %v3560_v46, %v3556_v26  ;;  %v3578_v56 = vld [vmem:[%s7518_s23 + $0x100] sm:$0xff]  ;;  %v6410_v0 = vpack.c.bf16 %v3585_v13, %v3581_v52  ;;  %v3580_v31 = vld [vmem:[%s7518_s23 + $0x110] sm:$0xff]  ;;  %v3591_v46 = vld [vmem:[%s7518_s23 + $0x168] sm:$0xff] }
 0xc51   : > { %3809 = vmatprep.mubr.f32.mxu0 %v7232_v24  ;;  %v3582_v2 = vld [vmem:[%s7518_s23 + $0x120] sm:$0xff]  ;;  %v3584_v50 = vld [vmem:[%s7518_s23 + $0x130] sm:$0xff] }
 0xc52   : > { %6369 = vmatpush1.bf16.msra.mxu1 %v6368_v22  ;;  %6401 = vmatpush1.bf16.msra.mxu0 %v6400_v9  ;;  %v6380_v29 = vpack.c.bf16 %v3582_v2, %v3578_v56  ;;  %v6412_v26 = vpack.c.bf16 %v3584_v50, %v3580_v31  ;;  %v3587_v22 = vld [vmem:[%s7518_s23 + $0x148] sm:$0xff]  ;;  %v3593_v9 = vld [vmem:[%s7518_s23 + $0x178] sm:$0xff] }
 0xce5   : > { %v6096_v10 = vpop.f32.mrb[40].mxu0 }
 0xce6   : > { %v3386_v15 = vadd.f32 %v6096_v10, %v5493_v5  ;;  %v3380_v1 = vpop.f32.mrb[41].mxu0  ;;  %v3565_v10 = vld [vmem:[%s7518_s23 + $0x98] sm:$0xff] }
 0xce7   : > { %v3381_v60 = vadd.f32 %v5493_v5, %v3380_v1  ;;  %v3562_v1 = vld [vmem:[%s7518_s23 + $0x80] sm:$0xff] }
 0xce8   : > { %v8341_v41 = vadd.f32 %v7037_v55, %v3386_v15  ;;  %v3569_v15 = vld [vmem:[%s7518_s23 + $0xb8] sm:$0xff]  ;;  %v3566_v55 = vld [vmem:[%s7518_s23 + $0xa0] sm:$0xff] }
 0xce9   : > { %v8343_v57 = vadd.f32 %v7038_v23, %v3381_v60  ;;  %v6402_v60 = vpack.c.bf16 %v3569_v15, %v3565_v10  ;;  %v3564_v23 = vld [vmem:[%s7518_s23 + $0x90] sm:$0xff]  ;;  %v3590_v10 = vld [vmem:[%s7518_s23 + $0x160] sm:$0xff] }
 0xcea   : > { %3431 = vadd.xlane.f32.xlu1 %v8341_v41  ;;  %v6099_v30 = vpop.f32.mrb[42].mxu0 }
 0xceb   : > { %v3390_v54 = vpop.f32.mrb[43].mxu0  ;;  %3429 = vadd.xlane.f32.xlu0 %v8343_v57  ;;  %v3396_v18 = vadd.f32 %v6099_v30, %v5493_v5  ;;  %v3568_v30 = vld [vmem:[%s7518_s23 + $0xb0] sm:$0xff]  ;;  %6403 = vmatprep.subr.bf16.mxu0 %v6402_v60 }
 0xcec   : > { %v3391_v43 = vadd.f32 %v5493_v5, %v3390_v54  ;;  %v6372_v54 = vpack.c.bf16 %v3566_v55, %v3562_v1  ;;  %v3588_v60 = vld [vmem:[%s7518_s23 + $0x150] sm:$0xff] }
 0xced   : > { %v8350_v42 = vadd.f32 %v7040_v20, %v3396_v18  ;;  %v3592_v55 = vld [vmem:[%s7518_s23 + $0x170] sm:$0xff] }
 0xcee   : > { %v8347_v7 = vadd.f32 %v7039_v17, %v3391_v43  ;;  %v6404_v43 = vpack.c.bf16 %v3568_v30, %v3564_v23  ;;  %v6416_v23 = vpack.c.bf16 %v3592_v55, %v3588_v60  ;;  %v3595_v30 = vld [vmem:[%s7518_s23 + $0x188] sm:$0xff] }
 0xcf0   : > { %3433 = vadd.xlane.f32.xlu0 %v8347_v7  ;;  %6405 = vmatpush1.bf16.msra.mxu0 %v6404_v43  ;;  %v3597_v43 = vld [vmem:[%s7518_s23 + $0x198] sm:$0xff] }
 0xcf4   : > { %3435 = vadd.xlane.f32.xlu0 %v8350_v42 }
 0xd1e   : > { %v6102_v3 = vpop.f32.mrb[44].mxu0 }
 0xd1f   : > { %v3406_v25 = vadd.f32 %v6102_v3, %v5493_v5  ;;  %v3400_v61 = vpop.f32.mrb[45].mxu0 }
 0xd20   : > { %v3401_v35 = vadd.f32 %v5493_v5, %v3400_v61 }
 0xd21   : > { %v8353_v34 = vadd.f32 %v7041_v14, %v3406_v25 }
 0xd22   : > { %v8355_v12 = vadd.f32 %v7042_v33, %v3401_v35 }
 0xd23   : > { %3439 = vadd.xlane.f32.xlu1 %v8353_v34  ;;  %v6105_v8 = vpop.f32.mrb[46].mxu0 }
 0xd24   : > { %v3416_v28 = vadd.f32 %v6105_v8, %v5493_v5  ;;  %v3410_v48 = vpop.f32.mrb[47].mxu0  ;;  %3437 = vadd.xlane.f32.xlu0 %v8355_v12 }
 0xd25   : > { %v3411_v38 = vadd.f32 %v5493_v5, %v3410_v48  ;;  %v6370_v5 = vpack.c.bf16 %v3567_v51, %v3563_v44  ;;  %v3589_v44 = vld [vmem:[%s7518_s23 + $0x158] sm:$0xff]  ;;  %v6382_v51 = vpack.c.bf16 %v3591_v46, %v3587_v22 }
 0xd26   : > { %v8359_v63 = vadd.f32 %v7043_v11, %v3416_v28  ;;  %v6414_v15 = vpack.c.bf16 %v3593_v9, %v3589_v44 }
 0xd27   : > { %v8361_v47 = vadd.f32 %v7044_v16, %v3411_v38  ;;  %6371 = vmatprep.subr.bf16.mxu1 %v6370_v5  ;;  %v3571_v16 = vld [vmem:[%s7518_s23 + $0xc8] sm:$0xff]  ;;  %v3586_v5 = vld [vmem:[%s7518_s23 + $0x140] sm:$0xff] }
 0xd28   : > { %3443 = vadd.xlane.f32.xlu1 %v8359_v63  ;;  %6373 = vmatpush1.bf16.msra.mxu1 %v6372_v54  ;;  %v6384_v1 = vpack.c.bf16 %v3590_v10, %v3586_v5  ;;  %v3599_v54 = vld [vmem:[%s7518_s23 + $0x1a8] sm:$0xff] }
 0xd29   : > { %3441 = vadd.xlane.f32.xlu0 %v8361_v47 }
 0xd77   : > { %v3432_v18 = vpop.xlane.xlu1 %3431 }
 0xd78   : > { %v3447_v17 = vmul.f32 0.0078125, %v3432_v18  ;;  %v3430_v20 = vpop.xlane.xlu0 %3429  ;;  %v6386_v18 = vpack.c.bf16 %v3599_v54, %v3595_v30 }
 0xd79   : > { %v3446_v3 = vmul.f32 0.0078125, %v3430_v20  ;;  %v3594_v20 = vld [vmem:[%s7518_s23 + $0x180] sm:$0xff] }
 0xd7a   : > { %v8390_v25 = vsub.f32 %v8341_v41, %v3447_v17  ;;  %v3601_v17 = vld [vmem:[%s7518_s23 + $0x1b8] sm:$0xff] }
 0xd7b   : > { %v8393_v61 = vsub.f32 %v8343_v57, %v3446_v3  ;;  %v3598_v3 = vld [vmem:[%s7518_s23 + $0x1a0] sm:$0xff] }
 0xd7c   : > { %v3463_v35 = vmul.f32 %v8390_v25, %v8390_v25 }
 0xd7d   : > { %v3434_v14 = vpop.xlane.xlu0 %3433  ;;  %v3462_v33 = vmul.f32 %v8393_v61, %v8393_v61 }
 0xd7e   : > { %v3448_v8 = vmul.f32 0.0078125, %v3434_v14  ;;  %3472 = vadd.xlane.f32.xlu1 %v3463_v35  ;;  %v6418_v35 = vpack.c.bf16 %v3601_v17, %v3597_v43  ;;  %v6388_v14 = vpack.c.bf16 %v3598_v3, %v3594_v20  ;;  %v8483_v43 = vld [vmem:[%s9656_s12] ss:$0 sm:$0xff] }
 0xd7f   : > { %3470 = vadd.xlane.f32.xlu0 %v3462_v33  ;;  %v3596_v33 = vld [vmem:[%s7518_s23 + $0x190] sm:$0xff] }
 0xd80   : > { %v8400_v41 = vsub.f32 %v8347_v7, %v3448_v8  ;;  %v3575_v7 = vld [vmem:[%s7518_s23 + $0xe8] sm:$0xff]  ;;  %v3600_v8 = vld [vmem:[%s7518_s23 + $0x1b0] sm:$0xff] }
 0xd81   : > { %v3436_v57 = vpop.xlane.xlu0 %3435  ;;  %v6374_v45 = vpack.c.bf16 %v3575_v7, %v3571_v16  ;;  %v3609_v7 = vld [vmem:[%s7518_s23 + $0x1f8] sm:$0xff] }
 0xd82   : > { %v3449_v28 = vmul.f32 0.0078125, %v3436_v57  ;;  %v3464_v48 = vmul.f32 %v8400_v41, %v8400_v41  ;;  %v6420_v57 = vpack.c.bf16 %v3600_v8, %v3596_v33 }
 0xd83   : > { %6375 = vmatprep.subr.bf16.mxu1 %v6374_v45  ;;  %v3606_v45 = vld [vmem:[%s7518_s23 + $0x1e0] sm:$0xff] }
 0xd84   : > { %v8405_v38 = vsub.f32 %v8350_v42, %v3449_v28  ;;  %3474 = vadd.xlane.f32.xlu0 %v3464_v48  ;;  %v6406_v42 = vpack.c.bf16 %v3577_v62, %v3573_v39  ;;  %6377 = vmatpush1.bf16.msra.mxu1 %v6376_v53  ;;  %v3603_v28 = vld [vmem:[%s7518_s23 + $0x1c8] sm:$0xff]  ;;  %v3602_v39 = vld [vmem:[%s7518_s23 + $0x1c0] sm:$0xff] }
 0xd85   : > { %6379 = vmatprep.subr.bf16.mxu1 %v6378_v32  ;;  %v3607_v48 = vld [vmem:[%s7518_s23 + $0x1e8] sm:$0xff]  ;;  %v6392_v58 = vpack.c.bf16 %v3606_v45, %v3602_v39 }
 0xd86   : > { %v3465_v11 = vmul.f32 %v8405_v38, %v8405_v38  ;;  %6407 = vmatprep.subr.bf16.mxu0 %v6406_v42  ;;  %v6390_v16 = vpack.c.bf16 %v3607_v48, %v3603_v28  ;;  %v3608_v42 = vld [vmem:[%s7518_s23 + $0x1f0] sm:$0xff] }
 0xd87   : > { %6409 = vmatpush1.bf16.msra.mxu0 %v6408_v6  ;;  %v6424_v53 = vpack.c.bf16 %v3608_v42, %v3604_v27 }
 0xd88   : > { %3476 = vadd.xlane.f32.xlu1 %v3465_v11  ;;  %6411 = vmatprep.subr.bf16.mxu0 %v6410_v0  ;;  %v3605_v11 = vld [vmem:[%s7518_s23 + $0x1d8] sm:$0xff] }
 0xd89   : > { %6381 = vmatpush1.bf16.msra.mxu1 %v6380_v29  ;;  %v6422_v62 = vpack.c.bf16 %v3609_v7, %v3605_v11 }
 0xd8a   : > { %6383 = vmatprep.subr.bf16.mxu1 %v6382_v51 }
 0xd8b   : > { %6413 = vmatpush1.bf16.msra.mxu0 %v6412_v26 }
 0xd8c   : > { %6415 = vmatprep.subr.bf16.mxu0 %v6414_v15 }
 0xd8d   : > { %6385 = vmatpush1.bf16.msra.mxu1 %v6384_v1 }
 0xd8e   : > { %6387 = vmatprep.subr.bf16.mxu1 %v6386_v18 }
 0xd8f   : > { %6417 = vmatpush1.bf16.msra.mxu0 %v6416_v23  ;;  %v8474_v23 = vld [vmem:[%s9655_s14] ss:$0 sm:$0xff] }
 0xd90   : > { %6419 = vmatprep.subr.bf16.mxu0 %v6418_v35 }
 0xd91   : > { %6389 = vmatpush1.bf16.msra.mxu1 %v6388_v14 }
 0xd92   : > { %6391 = vmatprep.subr.bf16.mxu1 %v6390_v16 }
 0xd93   : > { %6421 = vmatpush1.bf16.msra.mxu0 %v6420_v57 }
 0xd94   : > { %6423 = vmatprep.subr.bf16.mxu0 %v6422_v62 }
 0xd95   : > { %6393 = vmatpush1.bf16.msra.mxu1 %v6392_v58 }
 0xd97   : > { %6425 = vmatpush1.bf16.msra.mxu0 %v6424_v53 }
 0xdb0   : > { %v3440_v21 = vpop.xlane.xlu1 %3439 }
 0xdb1   : > { %v3451_v59 = vmul.f32 0.0078125, %v3440_v21  ;;  %v3438_v6 = vpop.xlane.xlu0 %3437 }
 0xdb2   : > { %v3450_v49 = vmul.f32 0.0078125, %v3438_v6 }
 0xdb3   : > { %v8450_v19 = vsub.f32 %v8353_v34, %v3451_v59 }
 0xdb4   : > { %v8453_v52 = vsub.f32 %v8355_v12, %v3450_v49 }
 0xdb5   : > { %v3444_v32 = vpop.xlane.xlu1 %3443  ;;  %v3467_v13 = vmul.f32 %v8450_v19, %v8450_v19 }
 0xdb6   : > { %v3453_v56 = vmul.f32 0.0078125, %v3444_v32  ;;  %v3442_v2 = vpop.xlane.xlu0 %3441  ;;  %v3466_v0 = vmul.f32 %v8453_v52, %v8453_v52 }
 0xdb7   : > { %v3452_v29 = vmul.f32 0.0078125, %v3442_v2  ;;  %3480 = vadd.xlane.f32.xlu1 %v3467_v13 }
 0xdb8   : > { %v8460_v31 = vsub.f32 %v8359_v63, %v3453_v56  ;;  %3478 = vadd.xlane.f32.xlu0 %v3466_v0 }
 0xdb9   : > { %v8463_v34 = vsub.f32 %v8361_v47, %v3452_v29 }
 0xdba   : > { %v3469_v12 = vmul.f32 %v8460_v31, %v8460_v31 }
 0xdbb   : > { %v3468_v50 = vmul.f32 %v8463_v34, %v8463_v34 }
 0xdbc   : > { %3484 = vadd.xlane.f32.xlu1 %v3469_v12 }
 0xdbd   : > { %3482 = vadd.xlane.f32.xlu0 %v3468_v50  ;;  %v4738_v50 = vld [vmem:[%s7524_s18 + $0x80] sm:$0xff] }
 0xe0b   : > { %v3473_v26 = vpop.xlane.xlu1 %3472 }
 0xe0c   : > { %v3487_v22 = vmul.f32 0.0078125, %v3473_v26  ;;  %v3471_v46 = vpop.xlane.xlu0 %3470  ;;  %v4739_v26 = vld [vmem:[%s7524_s18 + $0x88] sm:$0xff] }
 0xe0d   : > { %v3486_v44 = vmul.f32 0.0078125, %v3471_v46  ;;  %v6426_v46 = vpack.c.bf16 %v4739_v26, %v4738_v50  ;;  %v4779_v50 = vld [vmem:[%s7524_s18 + $0x1c8] sm:$0xff]  ;;  %v4730_v26 = vld [vmem:[%s7524_s18 + $0x40] sm:$0xff] }
 0xe0e   : > { %v3495_v51 = vadd.f32 1e-05, %v3487_v22  ;;  %v4770_v22 = vld [vmem:[%s7524_s18 + $0x180] sm:$0xff] }
 0xe0f   : > { %v3494_v63 = vadd.f32 1e-05, %v3486_v44  ;;  %v4771_v44 = vld [vmem:[%s7524_s18 + $0x188] sm:$0xff]  ;;  %6427 = vmatprep.subr.bf16.mxu1 %v6426_v46 }
 0xe10   : > { %6877 = vrsqrt.f32 %v3495_v51  ;;  %v4722_v51 = vld [vmem:[%s7524_s18] sm:$0xff]  ;;  %v4731_v46 = vld [vmem:[%s7524_s18 + $0x48] sm:$0xff] }
 0xe11   : > { %6879 = vrsqrt.f32 %v3494_v63  ;;  %v3475_v47 = vpop.xlane.xlu0 %3474  ;;  %v4723_v63 = vld [vmem:[%s7524_s18 + $0x8] sm:$0xff] }
 0xe12   : > { %v3488_v9 = vmul.f32 0.0078125, %v3475_v47  ;;  %v6458_v47 = vpack.c.bf16 %v4771_v44, %v4770_v22  ;;  %v4762_v44 = vld [vmem:[%s7524_s18 + $0x140] sm:$0xff] }
 0xe14   : > { %v3496_v5 = vadd.f32 1e-05, %v3488_v9  ;;  %v6428_v9 = vpack.c.bf16 %v4723_v63, %v4722_v51  ;;  %6459 = vmatprep.subr.bf16.mxu0 %v6458_v47  ;;  %v4763_v51 = vld [vmem:[%s7524_s18 + $0x148] sm:$0xff]  ;;  %v4748_v63 = vld [vmem:[%s7524_s18 + $0xd0] sm:$0xff]  ;;  %v4749_v47 = vld [vmem:[%s7524_s18 + $0xd8] sm:$0xff] }
 0xe15   : > { %v3477_v10 = vpop.xlane.xlu1 %3476 }
 0xe16   : > { %6881 = vrsqrt.f32 %v3496_v5  ;;  %v3489_v15 = vmul.f32 0.0078125, %v3477_v10  ;;  %v4755_v5 = vld [vmem:[%s7524_s18 + $0x108] sm:$0xff] }
 0xe18   : > { %v3497_v1 = vadd.f32 1e-05, %v3489_v15  ;;  %v4740_v15 = vld [vmem:[%s7524_s18 + $0x90] sm:$0xff] }
 0xe1a   : > { %v6878_v60 = vpop.eup %6877  ;;  %6883 = vrsqrt.f32 %v3497_v1  ;;  %v4741_v1 = vld [vmem:[%s7524_s18 + $0x98] sm:$0xff] }
 0xe1b   : > { %v6880_v55 = vpop.eup %6879  ;;  %v3511_v54 = vmul.f32 %v6878_v60, %v8390_v25  ;;  %v4772_v60 = vld [vmem:[%s7524_s18 + $0x190] sm:$0xff] }
 0xe1c   : > { %v3510_v30 = vmul.f32 %v6880_v55, %v8393_v61  ;;  %v6430_v55 = vpack.c.bf16 %v4741_v1, %v4740_v15  ;;  %v6446_v15 = vpack.c.bf16 %v4749_v47, %v4748_v63  ;;  %v4732_v1 = vld [vmem:[%s7524_s18 + $0x50] sm:$0xff] }
 0xe1d   : > { %v3525_v3 = vmul.f32 %v8474_v23, %v3511_v54  ;;  %v4725_v54 = vld [vmem:[%s7524_s18 + $0x18] sm:$0xff] }
 0xe1e   : > { %v3524_v18 = vmul.f32 %v8474_v23, %v3510_v30  ;;  %v4724_v30 = vld [vmem:[%s7524_s18 + $0x10] sm:$0xff] }
 0xe1f   : > { %v8496_v61 = vadd.f32 %v8483_v43, %v3525_v3  ;;  %v4757_v3 = vld [vmem:[%s7524_s18 + $0x118] sm:$0xff] }
 0xe20   : > { %v6882_v17 = vpop.eup %6881  ;;  %v8487_v20 = vadd.f32 %v8483_v43, %v3524_v18  ;;  %v6432_v18 = vpack.c.bf16 %v4725_v54, %v4724_v30  ;;  %v4765_v30 = vld [vmem:[%s7524_s18 + $0x158] sm:$0xff]  ;;  %v4750_v54 = vld [vmem:[%s7524_s18 + $0xe0] sm:$0xff] }
 0xe21   : > { %v3512_v35 = vmul.f32 %v6882_v17, %v8400_v41  ;;  %9658 = vst [vmem:[#allocation20_spill] sm:$0xff] %v8496_v61  ;;  %v4756_v17 = vld [vmem:[%s7524_s18 + $0x110] sm:$0xff] }
 0xe22   : > { %9657 = vst [vmem:[#allocation19_spill] sm:$0xff] %v8487_v20  ;;  %3697 = vmatmul.mubr.f32.vlgmr.msra.gmra.mrb[48].mxu1 %v8487_v20  ;;  %3810 = vmatmul.mubr.f32.vlgmr.msra.gmra.mrb[48].mxu0 %v8487_v20 }
 0xe23   : > { %3702 = vmatprep.mubr.f32.mxu1 %v7232_v24  ;;  %3815 = vmatprep.mubr.f32.mxu0 %v7232_v24  ;;  %v3526_v14 = vmul.f32 %v8474_v23, %v3512_v35  ;;  %v6464_v35 = vpack.c.bf16 %v4757_v3, %v4756_v17  ;;  %v4783_v17 = vld [vmem:[%s7524_s18 + $0x1e8] sm:$0xff] }
 0xe24   : > { %v6884_v25 = vpop.eup %6883  ;;  %6429 = vmatpush3.bf16.msra.mxu1 %v6428_v9  ;;  %v4780_v9 = vld [vmem:[%s7524_s18 + $0x1d0] sm:$0xff] }
 0xe25   : > { %v3513_v33 = vmul.f32 %v6884_v25, %v8405_v38  ;;  %v8505_v41 = vadd.f32 %v8483_v43, %v3526_v14  ;;  %6431 = vmatprep.subr.bf16.mxu1 %v6430_v55  ;;  %v4742_v25 = vld [vmem:[%s7524_s18 + $0xa0] sm:$0xff]  ;;  %v4743_v14 = vld [vmem:[%s7524_s18 + $0xa8] sm:$0xff]  ;;  %v4764_v55 = vld [vmem:[%s7524_s18 + $0x150] sm:$0xff] }
 0xe26   : > { %3703 = vmatmul.mubr.f32.gmra.mrb[50].mxu1 %v8496_v61  ;;  %3816 = vmatmul.mubr.f32.gmra.mrb[50].mxu0 %v8496_v61 }
 0xe27   : > { %3708 = vmatprep.mubr.f32.mxu1 %v7232_v24  ;;  %3821 = vmatprep.mubr.f32.mxu0 %v7232_v24  ;;  %9659 = vst [vmem:[#allocation21_spill] sm:$0xff] %v8505_v41  ;;  %v3527_v8 = vmul.f32 %v8474_v23, %v3513_v33  ;;  %v4774_v33 = vld [vmem:[%s7524_s18 + $0x1a0] sm:$0xff] }
 0xe28   : > { %6433 = vmatpush3.bf16.msra.mxu1 %v6432_v18  ;;  %v4782_v18 = vld [vmem:[%s7524_s18 + $0x1e0] sm:$0xff] }
 0xe29   : > { %v8513_v38 = vadd.f32 %v8483_v43, %v3527_v8  ;;  %v6434_v8 = vpack.c.bf16 %v4743_v14, %v4742_v25  ;;  %v4734_v14 = vld [vmem:[%s7524_s18 + $0x60] sm:$0xff] }
 0xe2a   : > { %3709 = vmatmul.mubr.f32.gmra.mrb[52].mxu1 %v8505_v41  ;;  %3822 = vmatmul.mubr.f32.gmra.mrb[52].mxu0 %v8505_v41 }
 0xe2b   : > { %3714 = vmatprep.mubr.f32.mxu1 %v7232_v24  ;;  %3827 = vmatprep.mubr.f32.mxu0 %v7232_v24  ;;  %9660 = vst [vmem:[#allocation22_spill] sm:$0xff] %v8513_v38 }
 0xe2c   : > { %6435 = vmatprep.subr.bf16.mxu1 %v6434_v8  ;;  %v4766_v8 = vld [vmem:[%s7524_s18 + $0x160] sm:$0xff] }
 0xe2e   : > { %3715 = vmatmul.mubr.f32.gmra.mrb[54].mxu1 %v8513_v38  ;;  %3828 = vmatmul.mubr.f32.gmra.mrb[54].mxu0 %v8513_v38 }
 0xe2f   : > { %3720 = vmatprep.mubr.f32.mxu1 %v7232_v24  ;;  %3833 = vmatprep.mubr.f32.mxu0 %v7232_v24 }
 0xe44   : > { %v3481_v57 = vpop.xlane.xlu1 %3480 }
 0xe45   : > { %v3491_v28 = vmul.f32 0.0078125, %v3481_v57  ;;  %v3479_v48 = vpop.xlane.xlu0 %3478  ;;  %v4775_v57 = vld [vmem:[%s7524_s18 + $0x1a8] sm:$0xff] }
 0xe46   : > { %v3490_v11 = vmul.f32 0.0078125, %v3479_v48  ;;  %v4727_v48 = vld [vmem:[%s7524_s18 + $0x28] sm:$0xff] }
 0xe47   : > { %v3499_v16 = vadd.f32 1e-05, %v3491_v28  ;;  %v4726_v28 = vld [vmem:[%s7524_s18 + $0x20] sm:$0xff] }
 0xe48   : > { %v3498_v7 = vadd.f32 1e-05, %v3490_v11  ;;  %v6466_v11 = vpack.c.bf16 %v4775_v57, %v4774_v33  ;;  %v4735_v33 = vld [vmem:[%s7524_s18 + $0x68] sm:$0xff]  ;;  %v6482_v57 = vpack.c.bf16 %v4783_v17, %v4782_v18 }
 0xe49   : > { %6885 = vrsqrt.f32 %v3499_v16  ;;  %v3485_v39 = vpop.xlane.xlu1 %3484  ;;  %v6436_v16 = vpack.c.bf16 %v4727_v48, %v4726_v28  ;;  %v4767_v28 = vld [vmem:[%s7524_s18 + $0x168] sm:$0xff]  ;;  %v4752_v48 = vld [vmem:[%s7524_s18 + $0xf0] sm:$0xff] }
 0xe4a   : > { %6887 = vrsqrt.f32 %v3498_v7  ;;  %v3493_v45 = vmul.f32 0.0078125, %v3485_v39  ;;  %v3483_v62 = vpop.xlane.xlu0 %3482  ;;  %v4758_v7 = vld [vmem:[%s7524_s18 + $0x120] sm:$0xff]  ;;  %v4759_v39 = vld [vmem:[%s7524_s18 + $0x128] sm:$0xff] }
 0xe4b   : > { %v3492_v58 = vmul.f32 0.0078125, %v3483_v62  ;;  %v6468_v62 = vpack.c.bf16 %v4759_v39, %v4758_v7  ;;  %6437 = vmatpush3.bf16.msra.mxu1 %v6436_v16  ;;  %v4784_v16 = vld [vmem:[%s7524_s18 + $0x1f0] sm:$0xff]  ;;  %v4785_v7 = vld [vmem:[%s7524_s18 + $0x1f8] sm:$0xff]  ;;  %v6452_v39 = vpack.c.bf16 %v4735_v33, %v4734_v14 }
 0xe4c   : > { %v3501_v27 = vadd.f32 1e-05, %v3493_v45  ;;  %v4744_v45 = vld [vmem:[%s7524_s18 + $0xb0] sm:$0xff] }
 0xe4d   : > { %v3500_v42 = vadd.f32 1e-05, %v3492_v58  ;;  %v4745_v58 = vld [vmem:[%s7524_s18 + $0xb8] sm:$0xff] }
 0xe4e   : > { %6889 = vrsqrt.f32 %v3501_v27  ;;  %v4776_v27 = vld [vmem:[%s7524_s18 + $0x1b0] sm:$0xff] }
 0xe4f   : > { %6891 = vrsqrt.f32 %v3500_v42  ;;  %v4777_v42 = vld [vmem:[%s7524_s18 + $0x1b8] sm:$0xff] }
 0xe53   : > { %v6886_v53 = vpop.eup %6885 }
 0xe54   : > { %v6888_v21 = vpop.eup %6887  ;;  %v3515_v6 = vmul.f32 %v6886_v53, %v8450_v19  ;;  %v6438_v53 = vpack.c.bf16 %v4745_v58, %v4744_v45  ;;  %v6484_v45 = vpack.c.bf16 %v4767_v28, %v4766_v8  ;;  %v4736_v58 = vld [vmem:[%s7524_s18 + $0x70] sm:$0xff] }
 0xe55   : > { %v3514_v59 = vmul.f32 %v6888_v21, %v8453_v52  ;;  %v6470_v21 = vpack.c.bf16 %v4777_v42, %v4776_v27  ;;  %v4737_v27 = vld [vmem:[%s7524_s18 + $0x78] sm:$0xff]  ;;  %v6486_v42 = vpack.c.bf16 %v4785_v7, %v4784_v16 }
 0xe56   : > { %v3529_v2 = vmul.f32 %v8474_v23, %v3515_v6  ;;  %v4729_v6 = vld [vmem:[%s7524_s18 + $0x38] sm:$0xff]  ;;  %6439 = vmatprep.subr.bf16.mxu1 %v6438_v53  ;;  %v4768_v53 = vld [vmem:[%s7524_s18 + $0x170] sm:$0xff] }
 0xe57   : > { %v3528_v49 = vmul.f32 %v8474_v23, %v3514_v59  ;;  %v4728_v59 = vld [vmem:[%s7524_s18 + $0x30] sm:$0xff] }
 0xe58   : > { %v6890_v32 = vpop.eup %6889  ;;  %v8535_v12 = vadd.f32 %v8483_v43, %v3529_v2  ;;  %v4746_v2 = vld [vmem:[%s7524_s18 + $0xc0] sm:$0xff] }
 0xe59   : > { %v6892_v13 = vpop.eup %6891  ;;  %v8523_v56 = vadd.f32 %v8483_v43, %v3528_v49  ;;  %v3517_v0 = vmul.f32 %v6890_v32, %v8460_v31  ;;  %v4760_v49 = vld [vmem:[%s7524_s18 + $0x130] sm:$0xff]  ;;  %v6440_v32 = vpack.c.bf16 %v4729_v6, %v4728_v59  ;;  %v6456_v59 = vpack.c.bf16 %v4737_v27, %v4736_v58 }
 0xe5a   : > { %v3516_v29 = vmul.f32 %v6892_v13, %v8463_v34  ;;  %9662 = vst [vmem:[#allocation24_spill] sm:$0xff] %v8535_v12  ;;  %v4761_v13 = vld [vmem:[%s7524_s18 + $0x138] sm:$0xff] }
 0xe5b   : > { %9661 = vst [vmem:[#allocation23_spill] sm:$0xff] %v8523_v56  ;;  %3721 = vmatmul.mubr.f32.gmra.mrb[56].mxu1 %v8523_v56  ;;  %3834 = vmatmul.mubr.f32.gmra.mrb[56].mxu0 %v8523_v56  ;;  %v3531_v52 = vmul.f32 %v8474_v23, %v3517_v0  ;;  %v4747_v0 = vld [vmem:[%s7524_s18 + $0xc8] sm:$0xff] }
 0xe5c   : > { %3726 = vmatprep.mubr.f32.mxu1 %v7232_v24  ;;  %3839 = vmatprep.mubr.f32.mxu0 %v7232_v24  ;;  %v3530_v19 = vmul.f32 %v8474_v23, %v3516_v29  ;;  %v4773_v23 = vld [vmem:[%s7524_s18 + $0x198] sm:$0xff]  ;;  %v6472_v29 = vpack.c.bf16 %v4761_v13, %v4760_v49  ;;  %v3610_v49 = vld [vmem:[%s7558_s16] sm:$0xf] }
 0xe5d   : > { %v8538_v31 = vadd.f32 %v8483_v43, %v3531_v52  ;;  %v6442_v52 = vpack.c.bf16 %v4747_v0, %v4746_v2  ;;  %6441 = vmatpush3.bf16.msra.mxu1 %v6440_v32  ;;  %v8620_v32 = vrot.slane %v3610_v49, %v801_v37  ;;  %v8624_v13 = vrot.slane %v3610_v49, %v809_v4 }
 0xe5e   : > { %v8541_v34 = vadd.f32 %v8483_v43, %v3530_v19  ;;  %v6462_v43 = vpack.c.bf16 %v4773_v23, %v4772_v60  ;;  %v4778_v19 = vld [vmem:[%s7524_s18 + $0x1c0] sm:$0xff]  ;;  %v4733_v60 = vld [vmem:[%s7524_s18 + $0x58] sm:$0xff]  ;;  %v3626_v2 = vsub.s32 3, %v7658_v36 }
 0xe5f   : > { %9663 = vst [vmem:[#allocation25_spill] sm:$0xff] %v8538_v31  ;;  %3727 = vmatmul.mubr.f32.gmra.mrb[58].mxu1 %v8535_v12  ;;  %3840 = vmatmul.mubr.f32.gmra.mrb[58].mxu0 %v8535_v12  ;;  %v6474_v22 = vpack.c.bf16 %v4779_v50, %v4778_v19  ;;  %v6448_v3 = vpack.c.bf16 %v4733_v60, %v4732_v1 }
 0xe60   : > { %9664 = vst [vmem:[#allocation26_spill] sm:$0xff] %v8541_v34  ;;  %3732 = vmatprep.mubr.f32.mxu1 %v7232_v24  ;;  %3845 = vmatprep.mubr.f32.mxu0 %v7232_v24 }
 0xe61   : > { %6443 = vmatprep.subr.bf16.mxu1 %v6442_v52  ;;  %v8629_v52 = vrot.slane %v3610_v49, %v805_v40 }
 0xe63   : > { %3733 = vmatmul.mubr.f32.gmra.mrb[60].mxu1 %v8541_v34  ;;  %3846 = vmatmul.mubr.f32.gmra.mrb[60].mxu0 %v8541_v34 }
 0xe64   : > { %3738 = vmatprep.mubr.f32.mxu1 %v7232_v24  ;;  %3851 = vmatprep.mubr.f32.mxu0 %v7232_v24  ;;  %v4754_v24 = vld [vmem:[%s7524_s18 + $0x100] sm:$0xff] }
 0xe65   : > { %v6460_v10 = vpack.c.bf16 %v4755_v5, %v4754_v24  ;;  %v6444_v24 = vpack.c.bf16 %v4731_v46, %v4730_v26  ;;  %v4781_v5 = vld [vmem:[%s7524_s18 + $0x1d8] sm:$0xff] }
 0xe66   : > { %v6478_v23 = vpack.c.bf16 %v4781_v5, %v4780_v9 }
 0xe67   : > { %3739 = vmatmul.mubr.f32.gmra.mrb[62].mxu1 %v8538_v31  ;;  %3852 = vmatmul.mubr.f32.gmra.mrb[62].mxu0 %v8538_v31 }
 0xe68   : > { %6461 = vmatpush3.bf16.msra.mxu0 %v6460_v10  ;;  %v6476_v10 = vpack.c.bf16 %v4763_v51, %v4762_v44  ;;  %6445 = vmatpush3.bf16.msra.mxu1 %v6444_v24 }
 0xe69   : > { %6463 = vmatprep.subr.bf16.mxu0 %v6462_v43  ;;  %v4751_v43 = vld [vmem:[%s7524_s18 + $0xe8] sm:$0xff]  ;;  %6447 = vmatprep.subr.bf16.mxu1 %v6446_v15 }
 0xe6a   : > { %v6450_v25 = vpack.c.bf16 %v4751_v43, %v4750_v54 }
 0xe6c   : > { %6465 = vmatpush3.bf16.msra.mxu0 %v6464_v35  ;;  %v6480_v35 = vpack.c.bf16 %v4765_v30, %v4764_v55  ;;  %6449 = vmatpush3.bf16.msra.mxu1 %v6448_v3 }
 0xe6d   : > { %6467 = vmatprep.subr.bf16.mxu0 %v6466_v11  ;;  %v4753_v11 = vld [vmem:[%s7524_s18 + $0xf8] sm:$0xff]  ;;  %6451 = vmatprep.subr.bf16.mxu1 %v6450_v25 }
 0xe70   : > { %6469 = vmatpush3.bf16.msra.mxu0 %v6468_v62  ;;  %v6454_v62 = vpack.c.bf16 %v4753_v11, %v4752_v48  ;;  %6453 = vmatpush3.bf16.msra.mxu1 %v6452_v39 }
 0xe71   : > { %6471 = vmatprep.subr.bf16.mxu0 %v6470_v21  ;;  %v4769_v21 = vld [vmem:[%s7524_s18 + $0x178] sm:$0xff] }
 0xe72   : > { %6455 = vmatprep.subr.bf16.mxu1 %v6454_v62  ;;  %v6488_v6 = vpack.c.bf16 %v4769_v21, %v4768_v53 }
 0xe74   : > { %6473 = vmatpush3.bf16.msra.mxu0 %v6472_v29  ;;  %6457 = vmatpush3.bf16.msra.mxu1 %v6456_v59 }
 0xe75   : > { %6475 = vmatprep.subr.bf16.mxu0 %v6474_v22  ;;  %v8633_v22 = vrot.slane %v3610_v49, %v3626_v2 }
 0xe78   : > { %6477 = vmatpush3.bf16.msra.mxu0 %v6476_v10 }
 0xe79   : > { %6479 = vmatprep.subr.bf16.mxu0 %v6478_v23 }
 0xe7c   : > { %6481 = vmatpush3.bf16.msra.mxu0 %v6480_v35 }
 0xe7d   : > { %6483 = vmatprep.subr.bf16.mxu0 %v6482_v57 }
 0xe80   : > { %6485 = vmatpush3.bf16.msra.mxu0 %v6484_v45 }
 0xe81   : > { %6487 = vmatprep.subr.bf16.mxu0 %v6486_v42 }
 0xe84   : > { %6489 = vmatpush3.bf16.msra.mxu0 %v6488_v6 }
 0xef5   : > { %v3698_v0 = vpop.f32.mrb[48].mxu1  ;;  %v3811_v29 = vpop.f32.mrb[48].mxu0 }
 0xef6   : > { %v3699_v19 = vadd.f32 %v3698_v0, %v8620_v32  ;;  %v3812_v50 = vadd.f32 %v3811_v29, %v8624_v13  ;;  %v3700_v26 = vpop.f32.mrb[49].mxu1  ;;  %v3813_v37 = vpop.f32.mrb[49].mxu0 }
 0xef7   : > { %v3701_v44 = vadd.f32 %v3700_v26, %v8629_v52  ;;  %v3814_v40 = vadd.f32 %v3813_v37, %v8633_v22 }
 0xef8   : > { %v8635_v46 = vmul.f32 0.70710677, %v3699_v19  ;;  %v8637_v4 = vmul.f32 0.70710677, %v3812_v50  ;;  %v8663_v45 = vmul.f32 0.5, %v3699_v19  ;;  %v8665_v62 = vmul.f32 0.5, %v3812_v50 }
 0xef9   : > { %v8643_v9 = vmul.f32 0.70710677, %v3701_v44  ;;  %v8645_v10 = vmul.f32 0.70710677, %v3814_v40  ;;  %v3704_v15 = vpop.f32.mrb[50].mxu1  ;;  %v3817_v1 = vpop.f32.mrb[50].mxu0 }
 0xefa   : > { %v3922_v51 = vand.u32 2147483647, %v8635_v46  ;;  %v3924_v36 = vand.u32 2147483647, %v8637_v4  ;;  %v3706_v60 = vpop.f32.mrb[51].mxu1  ;;  %v3819_v55 = vpop.f32.mrb[51].mxu0  ;;  %v3705_v39 = vadd.f32 %v3704_v15, %v8620_v32  ;;  %v3818_v27 = vadd.f32 %v3817_v1, %v8624_v13 }
 0xefb   : > { %v3923_v18 = vand.u32 2147483647, %v8643_v9  ;;  %v3925_v17 = vand.u32 2147483647, %v8645_v10  ;;  %v3707_v11 = vadd.f32 %v3706_v60, %v8629_v52  ;;  %v8670_v53 = vmul.f32 0.5, %v3701_v44 }
 0xefc   : > { %v3954_v63 = vmul.f32 0.3275911, %v3922_v51  ;;  %v3956_v47 = vmul.f32 0.3275911, %v3924_v36  ;;  %v4370_v25 = vsub.f32 0.0, %v3922_v51  ;;  %v4372_v8 = vsub.f32 0.0, %v3924_v36 }
 0xefd   : > { %v3710_v23 = vpop.f32.mrb[52].mxu1  ;;  %v3823_v30 = vpop.f32.mrb[52].mxu0  ;;  %v4371_v57 = vsub.f32 0.0, %v3923_v18  ;;  %v4373_v28 = vsub.f32 0.0, %v3925_v17  ;;  %v3955_v16 = vmul.f32 0.3275911, %v3923_v18  ;;  %v3820_v19 = vadd.f32 %v3819_v55, %v8633_v22 }
 0xefe   : > { %v3986_v24 = vadd.f32 1.0, %v3954_v63  ;;  %v3988_v5 = vadd.f32 1.0, %v3956_v47  ;;  %v8647_v54 = vpop.f32.mrb[53].mxu1  ;;  %v8649_v43 = vpop.f32.mrb[53].mxu0  ;;  %v4402_v48 = vmul.f32 %v4370_v25, %v3922_v51  ;;  %v3957_v7 = vmul.f32 0.3275911, %v3925_v17 }
 0xeff   : > { %v4404_v58 = vmul.f32 %v4372_v8, %v3924_v36  ;;  %v4403_v21 = vmul.f32 %v4371_v57, %v3923_v18  ;;  %v8672_v59 = vmul.f32 0.5, %v3814_v40  ;;  %v4405_v6 = vmul.f32 %v4373_v28, %v3925_v17 }
 0xf00   : > { %6893 = vrcp.f32 %v3986_v24  ;;  %v4434_v0 = vmul.f32 1.442695, %v4402_v48  ;;  %v8677_v29 = vmul.f32 0.70710677, %v3707_v11  ;;  %v3987_v26 = vadd.f32 1.0, %v3955_v16 }
 0xf01   : > { %6895 = vrcp.f32 %v3988_v5  ;;  %v8653_v3 = vpop.f32.mrb[54].mxu1  ;;  %v8655_v35 = vpop.f32.mrb[54].mxu0  ;;  %v3989_v37 = vadd.f32 1.0, %v3957_v7  ;;  %v8681_v51 = vmul.f32 0.70710677, %v3705_v39  ;;  %v8686_v5 = vadd.f32 %v3710_v23, %v8620_v32 }
 0xf02   : > { %v8657_v14 = vpop.f32.mrb[55].mxu1  ;;  %v8659_v33 = vpop.f32.mrb[55].mxu0  ;;  %v4438_v36 = vmul.f32 1.442695, %v4404_v58  ;;  %v8683_v40 = vmul.f32 0.70710677, %v3818_v27  ;;  %6897 = vpow2.f32 %v4434_v0  ;;  %v8697_v25 = vadd.f32 %v3823_v30, %v8624_v13 }
 0xf03   : > { %v4436_v47 = vmul.f32 1.442695, %v4403_v21  ;;  %v4440_v24 = vmul.f32 1.442695, %v4405_v6  ;;  %v3927_v1 = vand.u32 2147483647, %v8677_v29  ;;  %v8715_v0 = vadd.f32 %v8647_v54, %v8629_v52 }
 0xf04   : > { %v8690_v60 = vmul.f32 0.70710677, %v3820_v19  ;;  %v8693_v18 = vmul.f32 0.5, %v3705_v39  ;;  %v3926_v17 = vand.u32 2147483647, %v8681_v51  ;;  %6899 = vpow2.f32 %v4438_v36 }
 0xf05   : > { %v8699_v23 = vmul.f32 0.5, %v3818_v27  ;;  %v3928_v57 = vand.u32 2147483647, %v8683_v40  ;;  %6901 = vrcp.f32 %v3987_v26  ;;  %v8702_v48 = vmul.f32 0.5, %v3707_v11 }
 0xf06   : > { %v8705_v16 = vmul.f32 0.70710677, %v8686_v5  ;;  %6903 = vpow2.f32 %v4436_v47  ;;  %v3959_v39 = vmul.f32 0.3275911, %v3927_v1  ;;  %v3929_v30 = vand.u32 2147483647, %v8690_v60 }
 0xf07   : > { %9665 = vst [vmem:[#allocation27_spill] sm:$0xff] %v8699_v23  ;;  %6905 = vrcp.f32 %v3989_v37  ;;  %v3958_v27 = vmul.f32 0.3275911, %v3926_v17  ;;  %v8711_v21 = vmul.f32 0.70710677, %v8697_v25  ;;  %v4376_v26 = vsub.f32 0.0, %v3928_v57 }
 0xf08   : > { %9666 = vst [vmem:[#allocation28_spill] sm:$0xff] %v8705_v16  ;;  %v3960_v11 = vmul.f32 0.3275911, %v3928_v57  ;;  %v3930_v36 = vand.u32 2147483647, %v8705_v16  ;;  %v3991_v37 = vadd.f32 1.0, %v3959_v39  ;;  %v8725_v54 = vadd.f32 %v8649_v43, %v8633_v22 }
 0xf09   : > { %9667 = vst [vmem:[#allocation29_spill] sm:$0xff] %v8711_v21  ;;  %v4375_v47 = vsub.f32 0.0, %v3927_v1  ;;  %v8728_v34 = vmul.f32 0.70710677, %v8715_v0  ;;  %v4408_v12 = vmul.f32 %v4376_v26, %v3928_v57  ;;  %6907 = vpow2.f32 %v4440_v24 }
 0xf0a   : > { %v8668_v42 = vpop.eup %6893  ;;  %v3992_v39 = vadd.f32 1.0, %v3960_v11  ;;  %v4378_v56 = vsub.f32 0.0, %v3930_v36  ;;  %6909 = vrcp.f32 %v3991_v37  ;;  %v3962_v57 = vmul.f32 0.3275911, %v3930_v36 }
 0xf0b   : > { %v8674_v49 = vpop.eup %6895  ;;  %v4082_v2 = vmul.f32 1.0614054, %v8668_v42  ;;  %v4407_v41 = vmul.f32 %v4375_v47, %v3927_v1  ;;  %v3931_v11 = vand.u32 2147483647, %v8728_v34  ;;  %v4446_v24 = vmul.f32 1.442695, %v4408_v12 }
 0xf0c   : > { %v4084_v50 = vmul.f32 1.0614054, %v8674_v49  ;;  %v4410_v1 = vmul.f32 %v4378_v56, %v3930_v36  ;;  %vm4562_vm4 = vcmp.ge.f32.partialorder %v8635_v46, 0.0  ;;  %v8751_v12 = vmul.f32 0.5, %v8686_v5 }
 0xf0d   : > { %v4114_v44 = vadd.f32 -1.4531521, %v4082_v2  ;;  %v4374_v2 = vsub.f32 0.0, %v3926_v17  ;;  %vm4564_vm5 = vcmp.ge.f32.partialorder %v8637_v4, 0.0  ;;  %vm4563_vm6 = vcmp.ge.f32.partialorder %v8643_v9, 0.0 }
 0xf0e   : > { %v4116_v63 = vadd.f32 -1.4531521, %v4084_v50  ;;  %v4450_v56 = vmul.f32 1.442695, %v4410_v1  ;;  %9669 = vst [vmem:[#allocation31_spill] sm:$0xff] %v8751_v12  ;;  %vm4565_vm7 = vcmp.ge.f32.partialorder %v8645_v10, 0.0 }
 0xf0f   : > { %v4146_v15 = vmul.f32 %v8668_v42, %v4114_v44  ;;  %v8717_v44 = vmul.f32 0.5, %v3820_v19  ;;  %v3990_v19 = vadd.f32 1.0, %v3958_v27  ;;  %v4406_v31 = vmul.f32 %v4374_v2, %v3926_v17 }
 0xf10   : > { %v4148_v55 = vmul.f32 %v8674_v49, %v4116_v63  ;;  %v8734_v17 = vmul.f32 0.70710677, %v8725_v54  ;;  %vm4567_vm8 = vcmp.ge.f32.partialorder %v8677_v29, 0.0  ;;  %vm4569_vm9 = vcmp.ge.f32.partialorder %v8690_v60, 0.0 }
 0xf11   : > { %v4178_v8 = vadd.f32 1.4214138, %v4146_v15  ;;  %v3961_v15 = vmul.f32 0.3275911, %v3929_v30  ;;  %6911 = vrcp.f32 %v3990_v19  ;;  %v4442_v2 = vmul.f32 1.442695, %v4406_v31 }
 0xf12   : > { %v4180_v28 = vadd.f32 1.4214138, %v4148_v55  ;;  %9668 = vst [vmem:[#allocation30_spill] sm:$0xff] %v8734_v17  ;;  %6913 = vrcp.f32 %v3992_v39  ;;  %v3717_v31 = vadd.f32 %v8653_v3, %v8620_v32  ;;  %v3963_v19 = vmul.f32 0.3275911, %v3931_v11 }
 0xf13   : > { %v4210_v7 = vmul.f32 %v8668_v42, %v4178_v8  ;;  %v4377_v8 = vsub.f32 0.0, %v3929_v30  ;;  %v3993_v61 = vadd.f32 1.0, %v3961_v15  ;;  %vm4566_vm10 = vcmp.ge.f32.partialorder %v8681_v51, 0.0 }
 0xf14   : > { %v4212_v58 = vmul.f32 %v8674_v49, %v4180_v28  ;;  %v3932_v28 = vand.u32 2147483647, %v8711_v21  ;;  %v4379_v21 = vsub.f32 0.0, %v3931_v11  ;;  %v3995_v39 = vadd.f32 1.0, %v3963_v19 }
 0xf15   : > { %v4242_v6 = vadd.f32 -0.28449672, %v4210_v7  ;;  %v6898_v7 = vpop.eup %6897  ;;  %v4409_v43 = vmul.f32 %v4377_v8, %v3929_v30  ;;  %v4444_v30 = vmul.f32 1.442695, %v4407_v41  ;;  %6915 = vrcp.f32 %v3993_v61 }
 0xf16   : > { %v4244_v50 = vadd.f32 -0.28449672, %v4212_v58  ;;  %v6900_v38 = vpop.eup %6899  ;;  %v3964_v47 = vmul.f32 0.3275911, %v3932_v28  ;;  %v3933_v8 = vand.u32 2147483647, %v8734_v17  ;;  %6917 = vpow2.f32 %v4442_v2 }
 0xf17   : > { %v4274_v63 = vmul.f32 %v8668_v42, %v4242_v6  ;;  %v8731_v20 = vpop.eup %6901  ;;  %v4448_v15 = vmul.f32 1.442695, %v4409_v43  ;;  %6919 = vpow2.f32 %v4446_v24  ;;  %v3830_v61 = vadd.f32 %v8655_v35, %v8624_v13 }
 0xf18   : > { %v4276_v55 = vmul.f32 %v8674_v49, %v4244_v50  ;;  %v8736_v27 = vpop.eup %6903  ;;  %6921 = vpow2.f32 %v4444_v30  ;;  %v3996_v36 = vadd.f32 1.0, %v3964_v47  ;;  %v3965_v5 = vmul.f32 0.3275911, %v3933_v8 }
 0xf19   : > { %v4306_v58 = vadd.f32 0.2548296, %v4274_v63  ;;  %v4380_v63 = vsub.f32 0.0, %v3932_v28  ;;  %v8739_v26 = vpop.eup %6905  ;;  %6923 = vpow2.f32 %v4448_v15  ;;  %v4083_v1 = vmul.f32 1.0614054, %v8731_v20 }
 0xf1a   : > { %v4308_v6 = vadd.f32 0.2548296, %v4276_v55  ;;  %v4085_v47 = vmul.f32 1.0614054, %v8739_v26  ;;  %vm4568_vm11 = vcmp.ge.f32.partialorder %v8683_v40, 0.0  ;;  %vm4571_vm12 = vcmp.ge.f32.partialorder %v8728_v34, 0.0 }
 0xf1b   : > { %v4338_v50 = vmul.f32 %v8668_v42, %v4306_v58  ;;  %v4412_v55 = vmul.f32 %v4380_v63, %v3932_v28  ;;  %v3994_v58 = vadd.f32 1.0, %v3962_v57  ;;  %v4381_v28 = vsub.f32 0.0, %v3933_v8 }
 0xf1c   : > { %v4340_v42 = vmul.f32 %v8674_v49, %v4308_v6  ;;  %v8755_v6 = vpop.eup %6907  ;;  %v8764_v63 = vmul.f32 0.70710677, %v3830_v61 }
 0xf1d   : > { %v4498_v37 = vmul.f32 %v6898_v7, %v4338_v50  ;;  %v4454_v3 = vmul.f32 1.442695, %v4412_v55  ;;  %v8753_v7 = vmul.f32 0.70710677, %v3717_v31  ;;  %6925 = vrcp.f32 %v3994_v58  ;;  %v8760_v35 = vpop.eup %6909 }
 0xf1e   : > { %v8746_v49 = vmul.f32 %v6900_v38, %v4340_v42  ;;  %v8758_v38 = vmul.f32 0.5, %v8697_v25  ;;  %v4411_v50 = vmul.f32 %v4379_v21, %v3931_v11  ;;  %6927 = vpow2.f32 %v4450_v56  ;;  %9672 = vst [vmem:[#allocation34_spill] sm:$0xff] %v8764_v63  ;;  %v8766_v2 = vpop.eup %6911 }
 0xf1f   : > { %v4530_v41 = vsub.f32 1.0, %v4498_v37  ;;  %9670 = vst [vmem:[#allocation32_spill] sm:$0xff] %v8753_v7  ;;  %6929 = vrcp.f32 %v3996_v36  ;;  %v8769_v42 = vmul.f32 0.5, %v8715_v0  ;;  %v8772_v25 = vmul.f32 0.5, %v8725_v54  ;;  %v8774_v21 = vpop.eup %6913 }
 0xf20   : > { %9671 = vst [vmem:[#allocation33_spill] sm:$0xff] %v8758_v38  ;;  %v4532_v43 = vsub.f32 1.0, %v8746_v49  ;;  %6931 = vpow2.f32 %v4454_v3  ;;  %v4413_v11 = vmul.f32 %v4381_v28, %v3933_v8  ;;  %v3934_v24 = vand.u32 2147483647, %v8753_v7  ;;  %v8778_v37 = vpop.eup %6915 }
 0xf21   : > { %v4594_v57 = vsub.f32 0.0, %v4530_v41  ;;  %9673 = vst [vmem:[#allocation35_spill] sm:$0xff] %v8769_v42  ;;  %9674 = vst [vmem:[#allocation36_spill] sm:$0xff] %v8772_v25  ;;  %6933 = vrcp.f32 %v3995_v39  ;;  %v4452_v30 = vmul.f32 1.442695, %v4411_v50  ;;  %v3997_v55 = vadd.f32 1.0, %v3965_v5  ;;  %v8785_v19 = vpop.eup %6917 }
 0xf22   : > { %v4087_v0 = vmul.f32 1.0614054, %v8760_v35  ;;  %v4596_v15 = vsub.f32 0.0, %v4532_v43  ;;  %v8782_v54 = vmul.f32 0.5, %v3717_v31  ;;  %v3936_v58 = vand.u32 2147483647, %v8764_v63  ;;  %v8789_v3 = vpop.eup %6919 }
 0xf23   : > { %v4626_v8 = vsel %vm4562_vm4, %v4530_v41, %v4594_v57  ;;  %v4115_v49 = vadd.f32 -1.4531521, %v4083_v1  ;;  %v4117_v56 = vadd.f32 -1.4531521, %v4085_v47  ;;  %v4456_v28 = vmul.f32 1.442695, %v4413_v11  ;;  %v8793_v31 = vpop.eup %6921 }
 0xf24   : > { %9675 = vst [vmem:[#allocation37_spill] sm:$0xff] %v8782_v54  ;;  %v4119_v36 = vadd.f32 -1.4531521, %v4087_v0  ;;  %v3966_v39 = vmul.f32 0.3275911, %v3934_v24  ;;  %v4382_v50 = vsub.f32 0.0, %v3934_v24  ;;  %v3719_v5 = vadd.f32 %v8657_v14, %v8629_v52  ;;  %v8799_v57 = vpop.eup %6923 }
 0xf25   : > { %v4147_v54 = vmul.f32 %v8731_v20, %v4115_v49  ;;  %v4149_v63 = vmul.f32 %v8739_v26, %v4117_v56  ;;  %v4089_v41 = vmul.f32 1.0614054, %v8778_v37  ;;  %v4658_v1 = vadd.f32 1.0, %v4626_v8 }
 0xf26   : > { %v4151_v46 = vmul.f32 %v8760_v35, %v4119_v36  ;;  %6935 = vpow2.f32 %v4452_v30  ;;  %v8801_v11 = vmul.f32 0.5, %v3830_v61  ;;  %v3968_v47 = vmul.f32 0.3275911, %v3936_v58 }
 0xf27   : > { %v8807_v7 = vpop.eup %6925  ;;  %v4628_v49 = vsel %vm4564_vm5, %v4532_v43, %v4596_v15  ;;  %v4179_v56 = vadd.f32 1.4214138, %v4147_v54  ;;  %v4181_v36 = vadd.f32 1.4214138, %v4149_v63  ;;  %6937 = vrcp.f32 %v3997_v55 }
 0xf28   : > { %9676 = vst [vmem:[#allocation38_spill] sm:$0xff] %v8801_v11  ;;  %v4183_v38 = vadd.f32 1.4214138, %v4151_v46  ;;  %v8811_v12 = vpop.eup %6927  ;;  %v4414_v8 = vmul.f32 %v4382_v50, %v3934_v24  ;;  %v4384_v30 = vsub.f32 0.0, %v3936_v58  ;;  %v8813_v61 = vmul.f32 0.70710677, %v3719_v5 }
 0xf29   : > { %9677 = vst [vmem:[#allocation39_spill] sm:$0xff] %v8811_v12  ;;  %v8819_v16 = vpop.eup %6929  ;;  %v4211_v42 = vmul.f32 %v8731_v20, %v4179_v56  ;;  %v4213_v4 = vmul.f32 %v8739_v26, %v4181_v36  ;;  %v4121_v63 = vadd.f32 -1.4531521, %v4089_v41  ;;  %v4660_v55 = vadd.f32 1.0, %v4628_v49  ;;  %v9695_v34 = vld [vmem:[#allocation35_spill] sm:$0xff] }
 0xf2a   : > { %9678 = vst [vmem:[#allocation40_spill] sm:$0xff] %v8813_v61  ;;  %9679 = vst [vmem:[#allocation41_spill] sm:$0xff] %v8819_v16  ;;  %v4215_v43 = vmul.f32 %v8760_v35, %v4183_v38  ;;  %v8824_v15 = vpop.eup %6931  ;;  %6939 = vpow2.f32 %v4456_v28  ;;  %v3998_v24 = vadd.f32 1.0, %v3966_v39  ;;  %v3832_v54 = vadd.f32 %v8659_v33, %v8633_v22 }
 0xf2b   : > { %9680 = vst [vmem:[#allocation42_spill] sm:$0xff] %v8824_v15  ;;  %v8830_v46 = vpop.eup %6933  ;;  %v8833_v12 = vmul.f32 %v4658_v1, %v8663_v45  ;;  %v4243_v56 = vadd.f32 -0.28449672, %v4211_v42  ;;  %v4245_v36 = vadd.f32 -0.28449672, %v4213_v4  ;;  %v4416_v41 = vmul.f32 %v4384_v30, %v3936_v58 }
 0xf2c   : > { %v4247_v17 = vadd.f32 -0.28449672, %v4215_v43  ;;  %v4458_v38 = vmul.f32 1.442695, %v4414_v8  ;;  %v3935_v15 = vand.u32 2147483647, %v8813_v61  ;;  %v4153_v28 = vmul.f32 %v8778_v37, %v4121_v63 }
 0xf2d   : > { %v4000_v33 = vadd.f32 1.0, %v3968_v47  ;;  %v4275_v16 = vmul.f32 %v8731_v20, %v4243_v56  ;;  %v4277_v23 = vmul.f32 %v8739_v26, %v4245_v36  ;;  %6941 = vrcp.f32 %v3998_v24 }
 0xf2e   : > { %v8803_v0 = vpop.f32.mrb[56].mxu1  ;;  %v8805_v14 = vpop.f32.mrb[56].mxu0  ;;  %v4279_v45 = vmul.f32 %v8760_v35, %v4247_v17  ;;  %v8846_v1 = vmul.f32 0.5, %v3719_v5  ;;  %v8848_v58 = vmul.f32 0.70710677, %v3832_v54  ;;  %v8853_v4 = vmul.f32 %v4660_v55, %v8665_v62 }
 0xf2f   : > { %v8815_v11 = vpop.f32.mrb[57].mxu1  ;;  %v8817_v25 = vpop.f32.mrb[57].mxu0  ;;  %v4185_v8 = vadd.f32 1.4214138, %v4153_v28  ;;  %v4307_v47 = vadd.f32 0.2548296, %v4275_v16  ;;  %6943 = vpow2.f32 %v4458_v38  ;;  %v8872_v28 = vadd.f32 %v8803_v0, %v8620_v32 }
 0xf30   : > { %9681 = vst [vmem:[#allocation43_spill] sm:$0xff] %v8846_v1  ;;  %9682 = vst [vmem:[#allocation44_spill] sm:$0xff] %v8848_v58  ;;  %v4309_v43 = vadd.f32 0.2548296, %v4277_v23  ;;  %v4311_v63 = vadd.f32 0.2548296, %v4279_v45  ;;  %v8855_v56 = vpop.eup %6935  ;;  %6945 = vrcp.f32 %v4000_v33 }
 0xf31   : > { %v8860_v17 = vmul.f32 1.442695, %v4416_v41  ;;  %v3967_v5 = vmul.f32 0.3275911, %v3935_v15  ;;  %v4217_v24 = vmul.f32 %v8778_v37, %v4185_v8  ;;  %v4339_v23 = vmul.f32 %v8731_v20, %v4307_v47  ;;  %v8876_v41 = vpop.eup %6937 }
 0xf32   : > { %v8828_v50 = vpop.f32.mrb[58].mxu1  ;;  %v8837_v39 = vpop.f32.mrb[58].mxu0  ;;  %v4341_v16 = vmul.f32 %v8739_v26, %v4309_v43  ;;  %v4343_v55 = vmul.f32 %v8760_v35, %v4311_v63  ;;  %v4383_v45 = vsub.f32 0.0, %v3935_v15  ;;  %v4086_v1 = vmul.f32 1.0614054, %v8766_v2 }
 0xf33   : > { %v8839_v49 = vpop.f32.mrb[59].mxu1  ;;  %v8844_v42 = vpop.f32.mrb[59].mxu0  ;;  %v4249_v8 = vadd.f32 -0.28449672, %v4217_v24  ;;  %v4499_v20 = vmul.f32 %v8736_v27, %v4339_v23  ;;  %v3999_v63 = vadd.f32 1.0, %v3967_v5  ;;  %v8889_v33 = vmul.f32 0.5, %v3832_v54 }
 0xf34   : > { %v4501_v26 = vmul.f32 %v8755_v6, %v4341_v16  ;;  %v4503_v35 = vmul.f32 %v8793_v31, %v4343_v55  ;;  %v8887_v43 = vpop.eup %6939  ;;  %v8897_v31 = vmul.f32 0.70710677, %v8872_v28  ;;  %v4415_v16 = vmul.f32 %v4383_v45, %v3935_v15 }
 0xf35   : > { %9688 = vst [vmem:[#allocation50_spill] sm:$0xff] %v8889_v33  ;;  %v4281_v24 = vmul.f32 %v8778_v37, %v4249_v8  ;;  %v4531_v27 = vsub.f32 1.0, %v4499_v20  ;;  %v4088_v54 = vmul.f32 1.0614054, %v8774_v21  ;;  %6947 = vpow2.f32 %v8860_v17 }
 0xf36   : > { %v8850_v30 = vpop.f32.mrb[60].mxu1  ;;  %v8863_v36 = vpop.f32.mrb[60].mxu0  ;;  %v4533_v6 = vsub.f32 1.0, %v4501_v26  ;;  %v4535_v23 = vsub.f32 1.0, %v4503_v35  ;;  %v3938_v33 = vand.u32 2147483647, %v8897_v31  ;;  %6949 = vrcp.f32 %v3999_v63 }
 0xf37   : > { %9683 = vst [vmem:[#allocation45_spill] sm:$0xff] %v8863_v36  ;;  %v8865_v62 = vpop.f32.mrb[61].mxu1  ;;  %v8874_v38 = vpop.f32.mrb[61].mxu0  ;;  %v4313_v55 = vadd.f32 0.2548296, %v4281_v24  ;;  %v4595_v5 = vsub.f32 0.0, %v4531_v27 }
 0xf38   : > { %9684 = vst [vmem:[#allocation46_spill] sm:$0xff] %v8865_v62  ;;  %9685 = vst [vmem:[#allocation47_spill] sm:$0xff] %v8874_v38  ;;  %v3937_v62 = vand.u32 2147483647, %v8848_v58  ;;  %v4118_v38 = vadd.f32 -1.4531521, %v4086_v1  ;;  %v8906_v20 = vpop.eup %6941 }
 0xf39   : > { %v4597_v1 = vsub.f32 0.0, %v4533_v6  ;;  %v4599_v8 = vsub.f32 0.0, %v4535_v23  ;;  %9691 = vst [vmem:[#allocation53_spill] sm:$0xff] %v8906_v20  ;;  %v4345_v35 = vmul.f32 %v8778_v37, %v4313_v55  ;;  %v4120_v45 = vadd.f32 -1.4531521, %v4088_v54 }
 0xf3a   : > { %v8883_v47 = vpop.f32.mrb[62].mxu1  ;;  %v8885_v0 = vpop.f32.mrb[62].mxu0  ;;  %v4385_v26 = vsub.f32 0.0, %v3937_v62 }
 0xf3b   : > { %9686 = vst [vmem:[#allocation48_spill] sm:$0xff] %v8883_v47  ;;  %9687 = vst [vmem:[#allocation49_spill] sm:$0xff] %v8885_v0  ;;  %v8892_v61 = vpop.f32.mrb[63].mxu1  ;;  %v8894_v58 = vpop.f32.mrb[63].mxu0  ;;  %v4150_v0 = vmul.f32 %v8766_v2, %v4118_v38  ;;  %v4627_v38 = vsel %vm4563_vm6, %v4531_v27, %v4595_v5  ;;  %v4629_v24 = vsel %vm4565_vm7, %v4533_v6, %v4597_v1  ;;  %vm4578_vm6 = vcmp.ge.f32.partialorder %v8897_v31, 0.0 }
 0xf3c   : > { %9689 = vst [vmem:[#allocation51_spill] sm:$0xff] %v8892_v61  ;;  %9690 = vst [vmem:[#allocation52_spill] sm:$0xff] %v8894_v58  ;;  %v8904_v58 = vadd.f32 %v8805_v14, %v8624_v13  ;;  %v4631_v61 = vsel %vm4567_vm8, %v4535_v23, %v4599_v8  ;;  %v8916_v14 = vpop.eup %6943  ;;  %v4659_v47 = vadd.f32 1.0, %v4627_v38  ;;  %v4661_v20 = vadd.f32 1.0, %v4629_v24 }
 0xf3d   : > { %v4182_v15 = vadd.f32 1.4214138, %v4150_v0  ;;  %v4663_v36 = vadd.f32 1.0, %v4631_v61  ;;  %v4505_v37 = vmul.f32 %v8799_v57, %v4345_v35  ;;  %v3969_v0 = vmul.f32 0.3275911, %v3937_v62  ;;  %v8924_v27 = vpop.eup %6945 }
 0xf3e   : > { %v8920_v55 = vmul.f32 0.70710677, %v8904_v58  ;;  %v4152_v10 = vmul.f32 %v8774_v21, %v4120_v45  ;;  %v4691_v29 = vmul.f32 %v4659_v47, %v8670_v53  ;;  %v4693_v6 = vmul.f32 %v4661_v20, %v8672_v59 }
 0xf3f   : > { %v4214_v9 = vmul.f32 %v8766_v2, %v4182_v15  ;;  %v4695_v23 = vmul.f32 %v4663_v36, %v8702_v48  ;;  %v4537_v54 = vsub.f32 1.0, %v4505_v37  ;;  %v4460_v57 = vmul.f32 1.442695, %v4415_v16 }
 0xf40   : > { %v4184_v5 = vadd.f32 1.4214138, %v4152_v10  ;;  %v4417_v1 = vmul.f32 %v4385_v26, %v3937_v62  ;;  %4857 = vmatprep.mubr.f32.mxu1 %v4691_v29  ;;  %4962 = vmatprep.mubr.f32.mxu0 %v4693_v6  ;;  %v4386_v35 = vsub.f32 0.0, %v3938_v33  ;;  %v4091_v15 = vmul.f32 1.0614054, %v8830_v46 }
 0xf41   : > { %v4246_v61 = vadd.f32 -0.28449672, %v4214_v9  ;;  %v4601_v8 = vsub.f32 0.0, %v4537_v54  ;;  %4858 = vmatmul.mubr.f32.vlgmr.msra.gmra.mrb[64].mxu1 %v8833_v12  ;;  %4963 = vmatmul.mubr.f32.vlgmr.msra.gmra.mrb[64].mxu0 %v8853_v4  ;;  %v3970_v53 = vmul.f32 0.3275911, %v3938_v33  ;;  %v8940_v62 = vadd.f32 %v8815_v11, %v8629_v52 }
 0xf42   : > { %v4216_v48 = vmul.f32 %v8774_v21, %v4184_v5  ;;  %4862 = vmatprep.mubr.f32.mxu1 %v4695_v23  ;;  %v3940_v36 = vand.u32 2147483647, %v8920_v55  ;;  %v4123_v47 = vadd.f32 -1.4531521, %v4091_v15  ;;  %v4001_v63 = vadd.f32 1.0, %v3969_v0 }
 0xf43   : > { %v4278_v59 = vmul.f32 %v8766_v2, %v4246_v61  ;;  %v4633_v17 = vsel %vm4569_vm9, %v4537_v54, %v4601_v8  ;;  %6951 = vpow2.f32 %v4460_v57  ;;  %v4464_v20 = vmul.f32 1.442695, %v4417_v1  ;;  %v8961_v54 = vpop.eup %6947 }
 0xf44   : > { %v4665_v12 = vadd.f32 1.0, %v4633_v17  ;;  %v4248_v4 = vadd.f32 -0.28449672, %v4216_v48  ;;  %v4418_v26 = vmul.f32 %v4386_v35, %v3938_v33  ;;  %v4155_v45 = vmul.f32 %v8830_v46, %v4123_v47  ;;  %v8968_v8 = vpop.eup %6949 }
 0xf45   : > { %v4310_v16 = vadd.f32 0.2548296, %v4278_v59  ;;  %v8946_v38 = vmul.f32 0.5, %v8872_v28  ;;  %v4002_v37 = vadd.f32 1.0, %v3970_v53  ;;  %v8951_v0 = vmul.f32 0.70710677, %v8940_v62 }
 0xf46   : > { %v4697_v60 = vmul.f32 %v4665_v12, %v8717_v44  ;;  %v4280_v24 = vmul.f32 %v8774_v21, %v4248_v4  ;;  %v8955_v9 = vadd.f32 %v8817_v25, %v8633_v22  ;;  %v4187_v33 = vadd.f32 1.4214138, %v4155_v45 }
 0xf47   : > { %v4342_v11 = vmul.f32 %v8766_v2, %v4310_v16  ;;  %v4388_v10 = vsub.f32 0.0, %v3940_v36  ;;  %v4093_v28 = vmul.f32 1.0614054, %v8876_v41  ;;  %6953 = vrcp.f32 %v4001_v63 }
 0xf48   : > { %4967 = vmatprep.mubr.f32.mxu0 %v4697_v60  ;;  %v4312_v29 = vadd.f32 0.2548296, %v4280_v24  ;;  %v4466_v2 = vmul.f32 1.442695, %v4418_v26  ;;  %v3972_v6 = vmul.f32 0.3275911, %v3940_v36  ;;  %v4219_v23 = vmul.f32 %v8830_v46, %v4187_v33 }
 0xf49   : > { %v4502_v44 = vmul.f32 %v8785_v19, %v4342_v11  ;;  %6955 = vpow2.f32 %v4464_v20  ;;  %v4125_v61 = vadd.f32 -1.4531521, %v4093_v28  ;;  %v3939_v19 = vand.u32 2147483647, %v8951_v0 }
 0xf4a   : > { %v4344_v57 = vmul.f32 %v8774_v21, %v4312_v29  ;;  %6957 = vrcp.f32 %v4002_v37  ;;  %v8966_v5 = vmul.f32 0.70710677, %v8955_v9  ;;  %v4251_v1 = vadd.f32 -0.28449672, %v4219_v23 }
 0xf4b   : > { %v4534_v25 = vsub.f32 1.0, %v4502_v44  ;;  %v4420_v35 = vmul.f32 %v4388_v10, %v3940_v36  ;;  %v4157_v59 = vmul.f32 %v8876_v41, %v4125_v61  ;;  %6959 = vpow2.f32 %v4466_v2 }
 0xf4c   : > { %v4504_v53 = vmul.f32 %v8789_v3, %v4344_v57  ;;  %v8973_v48 = vmul.f32 0.5, %v8904_v58  ;;  %v4004_v21 = vadd.f32 1.0, %v3972_v6  ;;  %v4283_v17 = vmul.f32 %v8830_v46, %v4251_v1  ;;  %v9692_v57 = vld [vmem:[#allocation27_spill] sm:$0xff] }
 0xf4d   : > { %v4598_v15 = vsub.f32 0.0, %v4534_v25  ;;  %v4189_v12 = vadd.f32 1.4214138, %v4157_v59  ;;  %v8980_v36 = vadd.f32 %v8828_v50, %v8620_v32  ;;  %v8982_v16 = vpop.eup %6951  ;;  %v4387_v4 = vsub.f32 0.0, %v3939_v19 }
 0xf4e   : > { %v4536_v63 = vsub.f32 1.0, %v4504_v53  ;;  %v3941_v20 = vand.u32 2147483647, %v8966_v5  ;;  %v4315_v58 = vadd.f32 0.2548296, %v4283_v17  ;;  %6961 = vrcp.f32 %v4004_v21 }
 0xf4f   : > { %v4630_v47 = vsel %vm4566_vm10, %v4534_v25, %v4598_v15  ;;  %v4470_v26 = vmul.f32 1.442695, %v4420_v35  ;;  %v4221_v51 = vmul.f32 %v8876_v41, %v4189_v12  ;;  %v4090_v60 = vmul.f32 1.0614054, %v8807_v7 }
 0xf50   : > { %v4662_v3 = vadd.f32 1.0, %v4630_v47  ;;  %v4600_v45 = vsub.f32 0.0, %v4536_v63  ;;  %v3971_v50 = vmul.f32 0.3275911, %v3939_v19  ;;  %v4347_v24 = vmul.f32 %v8830_v46, %v4315_v58  ;;  %v9694_v47 = vld [vmem:[#allocation30_spill] sm:$0xff] }
 0xf51   : > { %v8993_v33 = vmul.f32 0.5, %v8940_v62  ;;  %v4253_v10 = vadd.f32 -0.28449672, %v4221_v51  ;;  %v8996_v44 = vmul.f32 0.70710677, %v8980_v36  ;;  %v8998_v29 = vpop.eup %6953  ;;  %v4419_v2 = vmul.f32 %v4387_v4, %v3939_v19  ;;  %v9693_v19 = vld [vmem:[#allocation41_spill] sm:$0xff] }
 0xf52   : > { %v4694_v11 = vmul.f32 %v4662_v3, %v8693_v18  ;;  %v4632_v37 = vsel %vm4568_vm11, %v4536_v63, %v4600_v45  ;;  %v4389_v6 = vsub.f32 0.0, %v3941_v20  ;;  %v4507_v18 = vmul.f32 %v8855_v56, %v4347_v24 }
 0xf53   : > { %v4664_v28 = vadd.f32 1.0, %v4632_v37  ;;  %v9001_v23 = vpop.eup %6955  ;;  %6963 = vpow2.f32 %v4470_v26  ;;  %v4285_v40 = vmul.f32 %v8876_v41, %v4253_v10  ;;  %v9006_v46 = vadd.f32 %v8837_v39, %v8624_v13 }
 0xf54   : > { %4863 = vmatmul.mubr.f32.gmra.mrb[66].mxu1 %v4694_v11  ;;  %v4122_v62 = vadd.f32 -1.4531521, %v4090_v60  ;;  %v9008_v25 = vpop.eup %6957  ;;  %v4003_v1 = vadd.f32 1.0, %v3971_v50  ;;  %v4539_v35 = vsub.f32 1.0, %v4507_v18  ;;  %v4092_v15 = vmul.f32 1.0614054, %v9693_v19 }
 0xf55   : > { %v4696_v61 = vmul.f32 %v4664_v28, %v9692_v57  ;;  %v3973_v53 = vmul.f32 0.3275911, %v3941_v20  ;;  %v4317_v56 = vadd.f32 0.2548296, %v4285_v40  ;;  %v3942_v59 = vand.u32 2147483647, %v8996_v44  ;;  %v9014_v17 = vpop.eup %6959 }
 0xf56   : > { %v4154_v21 = vmul.f32 %v8807_v7, %v4122_v62  ;;  %vm4573_vm13 = vcmp.ge.f32.partialorder %v9694_v47, 0.0  ;;  %v4468_v39 = vmul.f32 1.442695, %v4419_v2  ;;  %v4421_v63 = vmul.f32 %v4389_v6, %v3941_v20 }
 0xf57   : > { %4968 = vmatmul.mubr.f32.gmra.mrb[66].mxu0 %v4696_v61  ;;  %v4603_v12 = vsub.f32 0.0, %v4539_v35  ;;  %v4124_v3 = vadd.f32 -1.4531521, %v4092_v15  ;;  %v9018_v4 = vmul.f32 0.5, %v8955_v9  ;;  %v4349_v58 = vmul.f32 %v8876_v41, %v4317_v56 }
 0xf58   : > { %v9022_v26 = vmul.f32 0.70710677, %v9006_v46  ;;  %v4186_v45 = vadd.f32 1.4214138, %v4154_v21  ;;  %6965 = vrcp.f32 %v4003_v1  ;;  %v9029_v20 = vadd.f32 %v8839_v49, %v8629_v52  ;;  %v9033_v24 = vpop.eup %6961 }
 0xf59   : > { %v4635_v51 = vsel %vm4571_vm12, %v4539_v35, %v4603_v12  ;;  %v4156_v60 = vmul.f32 %v9693_v19, %v4124_v3  ;;  %v4509_v9 = vmul.f32 %v8887_v43, %v4349_v58  ;;  %v4390_v50 = vsub.f32 0.0, %v3942_v59  ;;  %v9697_v58 = vld [vmem:[#allocation28_spill] sm:$0xff] }
 0xf5a   : > { %v4667_v11 = vadd.f32 1.0, %v4635_v51  ;;  %v4218_v41 = vmul.f32 %v8807_v7, %v4186_v45  ;;  %6967 = vpow2.f32 %v4468_v39  ;;  %v4005_v37 = vadd.f32 1.0, %v3973_v53 }
 0xf5b   : > { %v4472_v10 = vmul.f32 1.442695, %v4421_v63  ;;  %v4188_v28 = vadd.f32 1.4214138, %v4156_v60  ;;  %v4541_v6 = vsub.f32 1.0, %v4509_v9  ;;  %v4422_v35 = vmul.f32 %v4390_v50, %v3942_v59  ;;  %v9698_v50 = vld [vmem:[#allocation36_spill] sm:$0xff] }
 0xf5c   : > { %v4699_v2 = vmul.f32 %v4667_v11, %v9695_v34  ;;  %v3944_v18 = vand.u32 2147483647, %v9022_v26  ;;  %v4250_v40 = vadd.f32 -0.28449672, %v4218_v41  ;;  %v3974_v49 = vmul.f32 0.3275911, %v3942_v59 }
 0xf5d   : > { %v4220_v62 = vmul.f32 %v9693_v19, %v4188_v28  ;;  %v9039_v43 = vmul.f32 0.70710677, %v9029_v20  ;;  %v4095_v57 = vmul.f32 1.0614054, %v8968_v8  ;;  %v9042_v61 = vpop.eup %6963  ;;  %v4605_v1 = vsub.f32 0.0, %v4541_v6  ;;  %v9699_v34 = vld [vmem:[#allocation29_spill] sm:$0xff] }
 0xf5e   : > { %4867 = vmatprep.mubr.f32.mxu1 %v4699_v2  ;;  %v4282_v15 = vmul.f32 %v8807_v7, %v4250_v40  ;;  %v9047_v53 = vadd.f32 %v8844_v42, %v8633_v22  ;;  %6969 = vrcp.f32 %v4005_v37  ;;  %v9050_v56 = vmul.f32 0.5, %v8980_v36 }
 0xf5f   : > { %v4252_v21 = vadd.f32 -0.28449672, %v4220_v62  ;;  %v4127_v39 = vadd.f32 -1.4531521, %v4095_v57  ;;  %6971 = vpow2.f32 %v4472_v10  ;;  %v4637_v63 = vsel %vm4573_vm13, %v4541_v6, %v4605_v1 }
 0xf60   : > { %9696 = vst [vmem:[#allocation27_spill] sm:$0xff] %v9050_v56  ;;  %v4392_v12 = vsub.f32 0.0, %v3944_v18  ;;  %v4314_v3 = vadd.f32 0.2548296, %v4282_v15  ;;  %vm4570_vm14 = vcmp.ge.f32.partialorder %v9697_v58, 0.0  ;;  %v4669_v59 = vadd.f32 1.0, %v4637_v63 }
 0xf61   : > { %v4006_v45 = vadd.f32 1.0, %v3974_v49  ;;  %v4284_v51 = vmul.f32 %v9693_v19, %v4252_v21  ;;  %v3943_v42 = vand.u32 2147483647, %v9039_v43  ;;  %v4474_v60 = vmul.f32 1.442695, %v4422_v35  ;;  %v9707_v58 = vld [vmem:[#allocation40_spill] sm:$0xff] }
 0xf62   : > { %v4346_v36 = vmul.f32 %v8807_v7, %v4314_v3  ;;  %v9059_v11 = vmul.f32 0.70710677, %v9047_v53  ;;  %v4159_v9 = vmul.f32 %v8968_v8, %v4127_v39  ;;  %v9062_v47 = vpop.eup %6965  ;;  %v4701_v41 = vmul.f32 %v4669_v59, %v9698_v50  ;;  %v9701_v7 = vld [vmem:[#allocation39_spill] sm:$0xff] }
 0xf63   : > { %v3976_v37 = vmul.f32 0.3275911, %v3944_v18  ;;  %v4316_v10 = vadd.f32 0.2548296, %v4284_v51  ;;  %v4097_v28 = vmul.f32 1.0614054, %v8998_v29  ;;  %v4424_v6 = vmul.f32 %v4392_v12, %v3944_v18 }
 0xf64   : > { %vm4572_vm15 = vcmp.ge.f32.partialorder %v9699_v34, 0.0  ;;  %v9068_v2 = vmul.f32 0.5, %v9006_v46  ;;  %v4506_v40 = vmul.f32 %v9701_v7, %v4346_v36  ;;  %v4191_v49 = vadd.f32 1.4214138, %v4159_v9  ;;  %v9071_v62 = vpop.eup %6967  ;;  %4972 = vmatprep.mubr.f32.mxu0 %v4701_v41  ;;  %v9702_v18 = vld [vmem:[#allocation42_spill] sm:$0xff]  ;;  %v9703_v7 = vld [vmem:[#allocation45_spill] sm:$0xff] }
 0xf65   : > { %v4348_v57 = vmul.f32 %v9693_v19, %v4316_v10  ;;  %v3975_v1 = vmul.f32 0.3275911, %v3943_v42  ;;  %v4391_v35 = vsub.f32 0.0, %v3943_v42  ;;  %v4129_v15 = vadd.f32 -1.4531521, %v4097_v28 }
 0xf66   : > { %9700 = vst [vmem:[#allocation41_spill] sm:$0xff] %v9068_v2  ;;  %6973 = vrcp.f32 %v4006_v45  ;;  %v4538_v21 = vsub.f32 1.0, %v4506_v40  ;;  %v3945_v39 = vand.u32 2147483647, %v9059_v11  ;;  %v4223_v63 = vmul.f32 %v8968_v8, %v4191_v49 }
 0xf67   : > { %6975 = vpow2.f32 %v4474_v60  ;;  %v4008_v46 = vadd.f32 1.0, %v3976_v37  ;;  %v4508_v12 = vmul.f32 %v9702_v18, %v4348_v57  ;;  %v4161_v3 = vmul.f32 %v8998_v29, %v4129_v15  ;;  %v9705_v15 = vld [vmem:[#allocation53_spill] sm:$0xff] }
 0xf68   : > { %v4478_v59 = vmul.f32 1.442695, %v4424_v6  ;;  %v4602_v51 = vsub.f32 0.0, %v4538_v21  ;;  %v4255_v36 = vadd.f32 -0.28449672, %v4223_v63  ;;  %v9080_v19 = vadd.f32 %v8850_v30, %v8620_v32  ;;  %v9082_v9 = vpop.eup %6969 }
 0xf69   : > { %v4540_v45 = vsub.f32 1.0, %v4508_v12  ;;  %v4007_v50 = vadd.f32 1.0, %v3975_v1  ;;  %v4423_v41 = vmul.f32 %v4391_v35, %v3943_v42  ;;  %v4193_v10 = vadd.f32 1.4214138, %v4161_v3  ;;  %v9084_v28 = vpop.eup %6971 }
 0xf6a   : > { %v4634_v60 = vsel %vm4570_vm14, %v4538_v21, %v4602_v51  ;;  %v3977_v37 = vmul.f32 0.3275911, %v3945_v39  ;;  %v4287_v6 = vmul.f32 %v8968_v8, %v4255_v36  ;;  %v9091_v40 = vadd.f32 %v9703_v7, %v8624_v13  ;;  %v9708_v21 = vld [vmem:[#allocation31_spill] sm:$0xff] }
 0xf6b   : > { %v4666_v30 = vadd.f32 1.0, %v4634_v60  ;;  %v4604_v49 = vsub.f32 0.0, %v4540_v45  ;;  %v4225_v57 = vmul.f32 %v8998_v29, %v4193_v10  ;;  %v4094_v1 = vmul.f32 1.0614054, %v9705_v15 }
 0xf6c   : > { %9704 = vst [vmem:[#allocation30_spill] sm:$0xff] %v9091_v40  ;;  %6977 = vrcp.f32 %v4008_v46  ;;  %v4393_v42 = vsub.f32 0.0, %v3945_v39  ;;  %v4319_v35 = vadd.f32 0.2548296, %v4287_v6  ;;  %v9096_v63 = vmul.f32 0.70710677, %v9080_v19 }
 0xf6d   : > { %vm4575_vm0 = vcmp.ge.f32.partialorder %v9707_v58, 0.0  ;;  %v4698_v18 = vmul.f32 %v4666_v30, %v9708_v21  ;;  %v4636_v12 = vsel %vm4572_vm15, %v4540_v45, %v4604_v49  ;;  %v4476_v3 = vmul.f32 1.442695, %v4423_v41  ;;  %v9710_v30 = vld [vmem:[#allocation33_spill] sm:$0xff] }
 0xf6e   : > { %9706 = vst [vmem:[#allocation35_spill] sm:$0xff] %v9096_v63  ;;  %v4257_v51 = vadd.f32 -0.28449672, %v4225_v57  ;;  %6979 = vpow2.f32 %v4478_v59  ;;  %v4668_v36 = vadd.f32 1.0, %v4636_v12  ;;  %v4351_v10 = vmul.f32 %v8968_v8, %v4319_v35 }
 0xf6f   : > { %v9104_v46 = vmul.f32 0.70710677, %v9091_v40  ;;  %4868 = vmatmul.mubr.f32.gmra.mrb[68].mxu1 %v4698_v18  ;;  %6981 = vrcp.f32 %v4007_v50  ;;  %v4009_v60 = vadd.f32 1.0, %v3977_v37  ;;  %v4126_v7 = vadd.f32 -1.4531521, %v4094_v1  ;;  %v9711_v37 = vld [vmem:[#allocation44_spill] sm:$0xff] }
 0xf70   : > { %v4289_v6 = vmul.f32 %v8998_v29, %v4257_v51  ;;  %v9107_v2 = vpop.eup %6973  ;;  %v4700_v34 = vmul.f32 %v4668_v36, %v9710_v30  ;;  %v4425_v45 = vmul.f32 %v4393_v42, %v3945_v39  ;;  %v4511_v41 = vmul.f32 %v8982_v16, %v4351_v10  ;;  %v9712_v39 = vld [vmem:[#allocation46_spill] sm:$0xff]  ;;  %v9713_v16 = vld [vmem:[#allocation47_spill] sm:$0xff] }
 0xf71   : > { %9709 = vst [vmem:[#allocation28_spill] sm:$0xff] %v9104_v46  ;;  %v3946_v59 = vand.u32 2147483647, %v9096_v63  ;;  %v9112_v49 = vpop.eup %6975  ;;  %6983 = vpow2.f32 %v4476_v3  ;;  %v4158_v57 = vmul.f32 %v9705_v15, %v4126_v7  ;;  %v4096_v50 = vmul.f32 1.0614054, %v8924_v27 }
 0xf72   : > { %v4321_v8 = vadd.f32 0.2548296, %v4289_v6  ;;  %vm4577_vm1 = vcmp.ge.f32.partialorder %v9711_v37, 0.0  ;;  %4973 = vmatmul.mubr.f32.gmra.mrb[68].mxu0 %v4700_v34  ;;  %v4543_v1 = vsub.f32 1.0, %v4511_v41  ;;  %v3948_v35 = vand.u32 2147483647, %v9104_v46 }
 0xf73   : > { %v9120_v42 = vadd.f32 %v9712_v39, %v8629_v52  ;;  %v9124_v21 = vadd.f32 %v9713_v16, %v8633_v22  ;;  %6985 = vrcp.f32 %v4009_v60  ;;  %v4190_v12 = vadd.f32 1.4214138, %v4158_v57 }
 0xf74   : > { %v4353_v18 = vmul.f32 %v8998_v29, %v4321_v8  ;;  %v4128_v3 = vadd.f32 -1.4531521, %v4096_v50  ;;  %v4607_v51 = vsub.f32 0.0, %v4543_v1  ;;  %v3978_v36 = vmul.f32 0.3275911, %v3946_v59 }
 0xf75   : > { %v4394_v10 = vsub.f32 0.0, %v3946_v59  ;;  %v9128_v6 = vmul.f32 0.70710677, %v9120_v42  ;;  %v4480_v7 = vmul.f32 1.442695, %v4425_v45  ;;  %v4222_v34 = vmul.f32 %v9705_v15, %v4190_v12 }
 0xf76   : > { %v4513_v30 = vmul.f32 %v9001_v23, %v4353_v18  ;;  %v4160_v41 = vmul.f32 %v8924_v27, %v4128_v3  ;;  %v9133_v39 = vpop.eup %6977  ;;  %v4639_v29 = vsel %vm4575_vm0, %v4543_v1, %v4607_v51  ;;  %v3980_v60 = vmul.f32 0.3275911, %v3948_v35  ;;  %v9715_v3 = vld [vmem:[#allocation48_spill] sm:$0xff]  ;;  %v9717_v1 = vld [vmem:[#allocation43_spill] sm:$0xff] }
 0xf77   : > { %v4396_v8 = vsub.f32 0.0, %v3948_v35  ;;  %v9138_v57 = vmul.f32 0.70710677, %v9124_v21  ;;  %v4671_v50 = vadd.f32 1.0, %v4639_v29  ;;  %v4254_v40 = vadd.f32 -0.28449672, %v4222_v34 }
 0xf78   : > { %v4545_v16 = vsub.f32 1.0, %v4513_v30  ;;  %v4192_v45 = vadd.f32 1.4214138, %v4160_v41  ;;  %v9140_v46 = vpop.eup %6979  ;;  %v4010_v23 = vadd.f32 1.0, %v3978_v36  ;;  %v4426_v18 = vmul.f32 %v4394_v10, %v3946_v59 }
 0xf79   : > { %9714 = vst [vmem:[#allocation36_spill] sm:$0xff] %v9138_v57  ;;  %v3947_v12 = vand.u32 2147483647, %v9128_v6  ;;  %v9145_v63 = vadd.f32 %v9715_v3, %v8620_v32  ;;  %v9147_v58 = vpop.eup %6981  ;;  %v4703_v51 = vmul.f32 %v4671_v50, %v9717_v1  ;;  %v4286_v29 = vmul.f32 %v9705_v15, %v4254_v40  ;;  %v9718_v3 = vld [vmem:[#allocation32_spill] sm:$0xff] }
 0xf7a   : > { %v4609_v56 = vsub.f32 0.0, %v4545_v16  ;;  %v4224_v30 = vmul.f32 %v8924_v27, %v4192_v45  ;;  %v9153_v34 = vmul.f32 0.5, %v9029_v20  ;;  %v9156_v59 = vmul.f32 0.5, %v9047_v53 }
 0xf7b   : > { %9716 = vst [vmem:[#allocation29_spill] sm:$0xff] %v9145_v63  ;;  %6987 = vpow2.f32 %v4480_v7  ;;  %v4428_v36 = vmul.f32 %v4396_v8, %v3948_v35  ;;  %v9158_v10 = vpop.eup %6983  ;;  %4872 = vmatprep.mubr.f32.mxu1 %v4703_v51  ;;  %v4318_v41 = vadd.f32 0.2548296, %v4286_v29  ;;  %v3949_v40 = vand.u32 2147483647, %v9138_v57 }
 0xf7c   : > { %v4641_v32 = vsel %vm4577_vm1, %v4545_v16, %v4609_v56  ;;  %v4256_v50 = vadd.f32 -0.28449672, %v4224_v30  ;;  %vm4574_vm2 = vcmp.ge.f32.partialorder %v9718_v3, 0.0  ;;  %6989 = vrcp.f32 %v4010_v23  ;;  %v9720_v56 = vld [vmem:[#allocation50_spill] sm:$0xff]  ;;  %v9721_v30 = vld [vmem:[#allocation49_spill] sm:$0xff] }
 0xf7d   : > { %v4673_v45 = vadd.f32 1.0, %v4641_v32  ;;  %v4012_v20 = vadd.f32 1.0, %v3980_v60  ;;  %v4395_v1 = vsub.f32 0.0, %v3947_v12  ;;  %v9164_v53 = vpop.eup %6985  ;;  %v4482_v7 = vmul.f32 1.442695, %v4426_v18  ;;  %v9723_v18 = vld [vmem:[#allocation51_spill] sm:$0xff] }
 0xf7e   : > { %v4350_v35 = vmul.f32 %v9705_v15, %v4318_v41  ;;  %v4288_v8 = vmul.f32 %v8924_v27, %v4256_v50  ;;  %v9169_v37 = vmul.f32 0.70710677, %v9145_v63  ;;  %v4486_v51 = vmul.f32 1.442695, %v4428_v36  ;;  %v9725_v41 = vld [vmem:[#allocation34_spill] sm:$0xff]  ;;  %v9733_v3 = vld [vmem:[#allocation37_spill] sm:$0xff] }
 0xf7f   : > { %v4705_v16 = vmul.f32 %v4673_v45, %v9720_v56  ;;  %v3979_v29 = vmul.f32 0.3275911, %v3947_v12  ;;  %v9174_v32 = vadd.f32 %v9721_v30, %v8624_v13  ;;  %v4397_v57 = vsub.f32 0.0, %v3949_v40 }
 0xf80   : > { %9719 = vst [vmem:[#allocation39_spill] sm:$0xff] %v9169_v37  ;;  %v4510_v60 = vmul.f32 %v8916_v14, %v4350_v35  ;;  %v4320_v23 = vadd.f32 0.2548296, %v4288_v8  ;;  %v9179_v15 = vadd.f32 %v9723_v18, %v8629_v52  ;;  %vm4576_vm3 = vcmp.ge.f32.partialorder %v9725_v41, 0.0 }
 0xf81   : > { %9722 = vst [vmem:[#allocation42_spill] sm:$0xff] %v9174_v32  ;;  %4977 = vmatprep.mubr.f32.mxu0 %v4705_v16  ;;  %v4427_v50 = vmul.f32 %v4395_v1, %v3947_v12  ;;  %v3981_v63 = vmul.f32 0.3275911, %v3949_v40  ;;  %v3950_v36 = vand.u32 2147483647, %v9169_v37  ;;  %v9187_v13 = vmul.f32 0.5, %v9080_v19 }
 0xf82   : > { %9724 = vst [vmem:[#allocation45_spill] sm:$0xff] %v9179_v15  ;;  %v9184_v45 = vmul.f32 0.70710677, %v9174_v32  ;;  %6991 = vrcp.f32 %v4012_v20  ;;  %v4542_v14 = vsub.f32 1.0, %v4510_v60  ;;  %v4352_v35 = vmul.f32 %v8924_v27, %v4320_v23  ;;  %v9729_v60 = vld [vmem:[#allocation52_spill] sm:$0xff] }
 0xf83   : > { %9727 = vst [vmem:[#allocation40_spill] sm:$0xff] %v9187_v13  ;;  %6993 = vpow2.f32 %v4482_v7  ;;  %v4011_v52 = vadd.f32 1.0, %v3979_v29  ;;  %v4398_v8 = vsub.f32 0.0, %v3950_v36  ;;  %v4429_v1 = vmul.f32 %v4397_v57, %v3949_v40 }
 0xf84   : > { %9726 = vst [vmem:[#allocation53_spill] sm:$0xff] %v9184_v45  ;;  %v3952_v56 = vand.u32 2147483647, %v9184_v45  ;;  %v4606_v16 = vsub.f32 0.0, %v4542_v14  ;;  %v4512_v12 = vmul.f32 %v8961_v54, %v4352_v35  ;;  %v9193_v30 = vmul.f32 0.70710677, %v9179_v15 }
 0xf85   : > { %v9195_v18 = vpop.eup %6987  ;;  %6995 = vpow2.f32 %v4486_v51  ;;  %v4484_v19 = vmul.f32 1.442695, %v4427_v50  ;;  %v4013_v20 = vadd.f32 1.0, %v3981_v63  ;;  %v9199_v27 = vadd.f32 %v9729_v60, %v8633_v22 }
 0xf86   : > { %9728 = vst [vmem:[#allocation31_spill] sm:$0xff] %v9193_v30  ;;  %v4638_v7 = vsel %vm4574_vm2, %v4542_v14, %v4606_v16  ;;  %v4544_v29 = vsub.f32 1.0, %v4512_v12  ;;  %v3982_v23 = vmul.f32 0.3275911, %v3950_v36  ;;  %v3951_v54 = vand.u32 2147483647, %v9193_v30  ;;  %v9204_v57 = vpop.eup %6989 }
 0xf87   : > { %9730 = vst [vmem:[#allocation33_spill] sm:$0xff] %v9199_v27  ;;  %v4670_v40 = vadd.f32 1.0, %v4638_v7  ;;  %v9207_v35 = vmul.f32 0.5, %v9120_v42  ;;  %v4430_v51 = vmul.f32 %v4398_v8, %v3950_v36  ;;  %v4400_v50 = vsub.f32 0.0, %v3952_v56 }
 0xf88   : > { %v4608_v63 = vsub.f32 0.0, %v4544_v29  ;;  %6997 = vrcp.f32 %v4011_v52  ;;  %v9210_v22 = vmul.f32 0.5, %v9124_v21  ;;  %v4488_v60 = vmul.f32 1.442695, %v4429_v1 }
 0xf89   : > { %9731 = vst [vmem:[#allocation44_spill] sm:$0xff] %v9207_v35  ;;  %v4702_v14 = vmul.f32 %v4670_v40, %v9733_v3  ;;  %6999 = vpow2.f32 %v4484_v19  ;;  %v4399_v16 = vsub.f32 0.0, %v3951_v54  ;;  %v9214_v12 = vmul.f32 0.70710677, %v9199_v27 }
 0xf8a   : > { %9732 = vst [vmem:[#allocation46_spill] sm:$0xff] %v9210_v22  ;;  %v4640_v7 = vsel %vm4576_vm3, %v4544_v29, %v4608_v63  ;;  %7001 = vrcp.f32 %v4013_v20  ;;  %v4014_v42 = vadd.f32 1.0, %v3982_v23  ;;  %v3984_v36 = vmul.f32 0.3275911, %v3952_v56  ;;  %v9735_v20 = vld [vmem:[#allocation38_spill] sm:$0xff] }
 0xf8b   : > { %9734 = vst [vmem:[#allocation47_spill] sm:$0xff] %v9214_v12  ;;  %4873 = vmatmul.mubr.f32.gmra.mrb[70].mxu1 %v4702_v14  ;;  %v4672_v8 = vadd.f32 1.0, %v4640_v7  ;;  %v9218_v52 = vmul.f32 1.442695, %v4430_v51  ;;  %v4432_v21 = vmul.f32 %v4400_v50, %v3952_v56  ;;  %v3953_v1 = vand.u32 2147483647, %v9214_v12 }
 0xf8c   : > { %v9221_v32 = vpop.eup %6991  ;;  %7003 = vpow2.f32 %v4488_v60  ;;  %v4099_v19 = vmul.f32 1.0614054, %v9062_v47  ;;  %v4101_v40 = vmul.f32 1.0614054, %v9082_v9  ;;  %v4098_v41 = vmul.f32 1.0614054, %v9008_v25 }
 0xf8d   : > { %v9226_v29 = vpop.eup %6993  ;;  %v4704_v23 = vmul.f32 %v4672_v8, %v9735_v20  ;;  %v3983_v63 = vmul.f32 0.3275911, %v3951_v54  ;;  %v4431_v3 = vmul.f32 %v4399_v16, %v3951_v54  ;;  %v3985_v51 = vmul.f32 0.3275911, %v3953_v1 }
 0xf8e   : > { %v9229_v14 = vadd.f32 1.0, %v3984_v36  ;;  %v4401_v56 = vsub.f32 0.0, %v3953_v1  ;;  %v4131_v50 = vadd.f32 -1.4531521, %v4099_v19  ;;  %v4133_v7 = vadd.f32 -1.4531521, %v4101_v40 }
 0xf8f   : > { %v9231_v45 = vpop.eup %6995  ;;  %4978 = vmatmul.mubr.f32.gmra.mrb[70].mxu0 %v4704_v23  ;;  %7005 = vrcp.f32 %v4014_v42  ;;  %v9233_v60 = vmul.f32 1.442695, %v4432_v21  ;;  %v4130_v27 = vadd.f32 -1.4531521, %v4098_v41  ;;  %v4100_v37 = vmul.f32 1.0614054, %v9033_v24 }
 0xf90   : > { %9736 = vst [vmem:[#allocation48_spill] sm:$0xff] %v9231_v45  ;;  %v4433_v12 = vmul.f32 %v4401_v56, %v3953_v1  ;;  %v4163_v8 = vmul.f32 %v9062_v47, %v4131_v50  ;;  %v4165_v54 = vmul.f32 %v9082_v9, %v4133_v7  ;;  %v4103_v16 = vmul.f32 1.0614054, %v9147_v58 }
 0xf91   : > { %v9239_v36 = vmul.f32 1.442695, %v4431_v3  ;;  %v4162_v19 = vmul.f32 %v9008_v25, %v4130_v27  ;;  %v4132_v40 = vadd.f32 -1.4531521, %v4100_v37  ;;  %v4105_v20 = vmul.f32 1.0614054, %v9164_v53 }
 0xf92   : > { %v9243_v42 = vpop.eup %6997  ;;  %v4015_v21 = vadd.f32 1.0, %v3983_v63  ;;  %v4017_v41 = vadd.f32 1.0, %v3985_v51  ;;  %v4195_v23 = vadd.f32 1.4214138, %v4163_v8  ;;  %v4197_v15 = vadd.f32 1.4214138, %v4165_v54 }
 0xf93   : > { %v9245_v1 = vpop.eup %6999  ;;  %v4194_v56 = vadd.f32 1.4214138, %v4162_v19  ;;  %v4164_v50 = vmul.f32 %v9033_v24, %v4132_v40  ;;  %v4135_v7 = vadd.f32 -1.4531521, %v4103_v16  ;;  %v4137_v13 = vadd.f32 -1.4531521, %v4105_v20 }
 0xf94   : > { %v9248_v3 = vpop.eup %7001  ;;  %v9250_v30 = vmul.f32 1.442695, %v4433_v12  ;;  %v4227_v37 = vmul.f32 %v9062_v47, %v4195_v23  ;;  %v4229_v27 = vmul.f32 %v9082_v9, %v4197_v15  ;;  %v4102_v63 = vmul.f32 1.0614054, %v9107_v2 }
 0xf95   : > { %v4226_v51 = vmul.f32 %v9008_v25, %v4194_v56  ;;  %v4196_v8 = vadd.f32 1.4214138, %v4164_v50  ;;  %v4167_v54 = vmul.f32 %v9147_v58, %v4135_v7  ;;  %v4169_v19 = vmul.f32 %v9164_v53, %v4137_v13 }
 0xf96   : > { %v9258_v40 = vpop.eup %7003  ;;  %7007 = vrcp.f32 %v4015_v21  ;;  %v4259_v16 = vadd.f32 -0.28449672, %v4227_v37  ;;  %v4261_v20 = vadd.f32 -0.28449672, %v4229_v27  ;;  %v4134_v12 = vadd.f32 -1.4531521, %v4102_v63 }
 0xf97   : > { %v4258_v22 = vadd.f32 -0.28449672, %v4226_v51  ;;  %v4228_v23 = vmul.f32 %v9033_v24, %v4196_v8  ;;  %v4199_v35 = vadd.f32 1.4214138, %v4167_v54  ;;  %v4201_v15 = vadd.f32 1.4214138, %v4169_v19 }
 0xf98   : > { %v4291_v45 = vmul.f32 %v9062_v47, %v4259_v16  ;;  %v4293_v56 = vmul.f32 %v9082_v9, %v4261_v20  ;;  %v4166_v50 = vmul.f32 %v9107_v2, %v4134_v12  ;;  %v4104_v7 = vmul.f32 1.0614054, %v9133_v39 }
 0xf99   : > { %v9265_v13 = vpop.eup %7005  ;;  %v4290_v21 = vmul.f32 %v9008_v25, %v4258_v22  ;;  %v4260_v37 = vadd.f32 -0.28449672, %v4228_v23  ;;  %v4231_v27 = vmul.f32 %v9147_v58, %v4199_v35  ;;  %v4233_v63 = vmul.f32 %v9164_v53, %v4201_v15 }
 0xf9a   : > { %7009 = vrcp.f32 %v4017_v41  ;;  %v4323_v51 = vadd.f32 0.2548296, %v4291_v45  ;;  %v4325_v8 = vadd.f32 0.2548296, %v4293_v56  ;;  %v4198_v54 = vadd.f32 1.4214138, %v4166_v50 }
 0xf9b   : > { %vm4579_vm4 = vcmp.ge.f32.partialorder %v8951_v0, 0.0  ;;  %vm4581_vm5 = vcmp.ge.f32.partialorder %v8966_v5, 0.0  ;;  %v4322_v19 = vadd.f32 0.2548296, %v4290_v21  ;;  %v4292_v16 = vmul.f32 %v9033_v24, %v4260_v37 }
 0xf9c   : > { %v4263_v20 = vadd.f32 -0.28449672, %v4231_v27  ;;  %v4265_v12 = vadd.f32 -0.28449672, %v4233_v63  ;;  %v4355_v22 = vmul.f32 %v9062_v47, %v4323_v51  ;;  %v4357_v35 = vmul.f32 %v9082_v9, %v4325_v8 }
 0xf9d   : > { %v4230_v41 = vmul.f32 %v9107_v2, %v4198_v54  ;;  %v4136_v45 = vadd.f32 -1.4531521, %v4104_v7  ;;  %v4354_v23 = vmul.f32 %v9008_v25, %v4322_v19  ;;  %v4324_v15 = vadd.f32 0.2548296, %v4292_v16 }
 0xf9e   : > { %v4295_v56 = vmul.f32 %v9147_v58, %v4263_v20  ;;  %v4297_v50 = vmul.f32 %v9164_v53, %v4265_v12  ;;  %vm4580_vm7 = vcmp.ge.f32.partialorder %v8920_v55, 0.0  ;;  %v4515_v21 = vmul.f32 %v9071_v62, %v4355_v22 }
 0xf9f   : > { %v4517_v37 = vmul.f32 %v9084_v28, %v4357_v35  ;;  %v4262_v27 = vadd.f32 -0.28449672, %v4230_v41  ;;  %v4168_v47 = vmul.f32 %v9133_v39, %v4136_v45  ;;  %v4514_v9 = vmul.f32 %v9014_v17, %v4354_v23 }
 0xfa0   : > { %v4356_v7 = vmul.f32 %v9033_v24, %v4324_v15  ;;  %v4327_v63 = vadd.f32 0.2548296, %v4295_v56  ;;  %v4329_v25 = vadd.f32 0.2548296, %v4297_v50  ;;  %v9286_v51 = vpop.eup %7007  ;;  %v4547_v8 = vsub.f32 1.0, %v4515_v21 }
 0xfa1   : > { %v4549_v54 = vsub.f32 1.0, %v4517_v37  ;;  %v4294_v19 = vmul.f32 %v9107_v2, %v4262_v27  ;;  %v4200_v16 = vadd.f32 1.4214138, %v4168_v47  ;;  %vm4583_vm8 = vcmp.ge.f32.partialorder %v9039_v43, 0.0 }
 0xfa2   : > { %vm4585_vm9 = vcmp.ge.f32.partialorder %v9059_v11, 0.0  ;;  %v4546_v62 = vsub.f32 1.0, %v4514_v9  ;;  %v4516_v28 = vmul.f32 %v9042_v61, %v4356_v7  ;;  %v4359_v17 = vmul.f32 %v9147_v58, %v4327_v63 }
 0xfa3   : > { %v4361_v24 = vmul.f32 %v9164_v53, %v4329_v25  ;;  %v4611_v20 = vsub.f32 0.0, %v4547_v8  ;;  %v4613_v12 = vsub.f32 0.0, %v4549_v54  ;;  %v4326_v22 = vadd.f32 0.2548296, %v4294_v19 }
 0xfa4   : > { %v4232_v35 = vmul.f32 %v9133_v39, %v4200_v16  ;;  %v4610_v41 = vsub.f32 0.0, %v4546_v62  ;;  %v4548_v45 = vsub.f32 1.0, %v4516_v28  ;;  %v4519_v23 = vmul.f32 %v9158_v10, %v4359_v17  ;;  %v9297_v56 = vpop.eup %7009 }
 0xfa5   : > { %v4521_v15 = vmul.f32 %v9195_v18, %v4361_v24  ;;  %vm4582_vm10 = vcmp.ge.f32.partialorder %v8996_v44, 0.0  ;;  %v4643_v61 = vsel %vm4579_vm4, %v4547_v8, %v4611_v20  ;;  %v4645_v58 = vsel %vm4581_vm5, %v4549_v54, %v4613_v12 }
 0xfa6   : > { %v4358_v53 = vmul.f32 %v9107_v2, %v4326_v22  ;;  %v4264_v50 = vadd.f32 -0.28449672, %v4232_v35  ;;  %v4675_v21 = vadd.f32 1.0, %v4643_v61  ;;  %v4677_v37 = vadd.f32 1.0, %v4645_v58 }
 0xfa7   : > { %v4642_v10 = vsel %vm4578_vm6, %v4546_v62, %v4610_v41  ;;  %v4612_v27 = vsub.f32 0.0, %v4548_v45  ;;  %v4551_v47 = vsub.f32 1.0, %v4519_v23  ;;  %v4553_v9 = vsub.f32 1.0, %v4521_v15  ;;  %v9737_v23 = vld [vmem:[#allocation27_spill] sm:$0xff] }
 0xfa8   : > { %v4674_v18 = vadd.f32 1.0, %v4642_v10  ;;  %v4518_v7 = vmul.f32 %v9112_v49, %v4358_v53  ;;  %v4707_v0 = vmul.f32 %v4675_v21, %v8993_v33  ;;  %v4709_v63 = vmul.f32 %v4677_v37, %v9018_v4 }
 0xfa9   : > { %v4644_v5 = vsel %vm4580_vm7, %v4548_v45, %v4612_v27  ;;  %v4296_v2 = vmul.f32 %v9133_v39, %v4264_v50  ;;  %v4615_v31 = vsub.f32 0.0, %v4551_v47  ;;  %v4617_v54 = vsub.f32 0.0, %v4553_v9 }
 0xfaa   : > { %v4706_v25 = vmul.f32 %v4674_v18, %v8946_v38  ;;  %v4676_v8 = vadd.f32 1.0, %v4644_v5  ;;  %7011 = vrcp.f32 %v9229_v14  ;;  %4877 = vmatprep.mubr.f32.mxu1 %v4707_v0  ;;  %4982 = vmatprep.mubr.f32.mxu0 %v4709_v63  ;;  %v4550_v19 = vsub.f32 1.0, %v4518_v7 }
 0xfab   : > { %v4328_v49 = vadd.f32 0.2548296, %v4296_v2  ;;  %v4107_v33 = vmul.f32 1.0614054, %v9243_v42  ;;  %vm4584_vm11 = vcmp.ge.f32.partialorder %v9022_v26, 0.0  ;;  %v4647_v4 = vsel %vm4583_vm8, %v4551_v47, %v4615_v31  ;;  %v9738_v26 = vld [vmem:[#allocation41_spill] sm:$0xff] }
 0xfac   : > { %4878 = vmatmul.mubr.f32.gmra.mrb[72].mxu1 %v4706_v25  ;;  %v4708_v55 = vmul.f32 %v4676_v8, %v8973_v48  ;;  %v4649_v38 = vsel %vm4585_vm9, %v4553_v9, %v4617_v54  ;;  %v4109_v16 = vmul.f32 1.0614054, %v9248_v3  ;;  %v4679_v14 = vadd.f32 1.0, %v4647_v4 }
 0xfad   : > { %v4681_v62 = vadd.f32 1.0, %v4649_v38  ;;  %v4614_v28 = vsub.f32 0.0, %v4550_v19  ;;  %v4360_v17 = vmul.f32 %v9133_v39, %v4328_v49  ;;  %7013 = vpow2.f32 %v9218_v52 }
 0xfae   : > { %4983 = vmatmul.mubr.f32.gmra.mrb[72].mxu0 %v4708_v55  ;;  %v4139_v24 = vadd.f32 -1.4531521, %v4107_v33  ;;  %v4141_v20 = vadd.f32 -1.4531521, %v4109_v16  ;;  %v4106_v48 = vmul.f32 1.0614054, %v9204_v57  ;;  %v4711_v43 = vmul.f32 %v4679_v14, %v9153_v34 }
 0xfaf   : > { %v4713_v12 = vmul.f32 %v4681_v62, %v9156_v59  ;;  %v4646_v11 = vsel %vm4582_vm10, %v4550_v19, %v4614_v28  ;;  %v4520_v22 = vmul.f32 %v9140_v46, %v4360_v17  ;;  %7015 = vpow2.f32 %v9233_v60 }
 0xfb0   : > { %v4678_v35 = vadd.f32 1.0, %v4646_v11  ;;  %v4171_v41 = vmul.f32 %v9243_v42, %v4139_v24  ;;  %v4173_v39 = vmul.f32 %v9248_v3, %v4141_v20  ;;  %v4138_v52 = vadd.f32 -1.4531521, %v4106_v48  ;;  %4882 = vmatprep.mubr.f32.mxu1 %v4711_v43  ;;  %v9739_v24 = vld [vmem:[#allocation36_spill] sm:$0xff] }
 0xfb1   : > { %4987 = vmatprep.mubr.f32.mxu0 %v4713_v12  ;;  %v4552_v45 = vsub.f32 1.0, %v4520_v22  ;;  %v4108_v34 = vmul.f32 1.0614054, %v9221_v32  ;;  %v4111_v59 = vmul.f32 1.0614054, %v9286_v51  ;;  %7017 = vpow2.f32 %v9239_v36 }
 0xfb2   : > { %v4710_v44 = vmul.f32 %v4678_v35, %v9737_v23  ;;  %v4203_v15 = vadd.f32 1.4214138, %v4171_v41  ;;  %v4205_v61 = vadd.f32 1.4214138, %v4173_v39  ;;  %v4170_v46 = vmul.f32 %v9204_v57, %v4138_v52  ;;  %v9740_v52 = vld [vmem:[#allocation35_spill] sm:$0xff] }
 0xfb3   : > { %v4616_v58 = vsub.f32 0.0, %v4552_v45  ;;  %v4140_v53 = vadd.f32 -1.4531521, %v4108_v34  ;;  %v4143_v50 = vadd.f32 -1.4531521, %v4111_v59  ;;  %7019 = vpow2.f32 %v9250_v30 }
 0xfb4   : > { %4883 = vmatmul.mubr.f32.gmra.mrb[74].mxu1 %v4710_v44  ;;  %v4235_v60 = vmul.f32 %v9243_v42, %v4203_v15  ;;  %v4237_v21 = vmul.f32 %v9248_v3, %v4205_v61  ;;  %v4202_v37 = vadd.f32 1.4214138, %v4170_v46  ;;  %v4113_v10 = vmul.f32 1.0614054, %v9297_v56  ;;  %v9342_v27 = vpop.eup %7011 }
 0xfb5   : > { %v4648_v18 = vsel %vm4584_vm11, %v4552_v45, %v4616_v58  ;;  %v4172_v47 = vmul.f32 %v9221_v32, %v4140_v53  ;;  %v4175_v36 = vmul.f32 %v9286_v51, %v4143_v50  ;;  %v4110_v9 = vmul.f32 1.0614054, %v9265_v13  ;;  %v9741_v50 = vld [vmem:[#allocation28_spill] sm:$0xff] }
 0xfb6   : > { %v4680_v7 = vadd.f32 1.0, %v4648_v18  ;;  %v4267_v0 = vadd.f32 -0.28449672, %v4235_v60  ;;  %v4269_v63 = vadd.f32 -0.28449672, %v4237_v21  ;;  %v4234_v5 = vmul.f32 %v9204_v57, %v4202_v37 }
 0xfb7   : > { %v4204_v2 = vadd.f32 1.4214138, %v4172_v47  ;;  %v4207_v25 = vadd.f32 1.4214138, %v4175_v36  ;;  %v4145_v8 = vadd.f32 -1.4531521, %v4113_v10  ;;  %v9351_v31 = vpop.eup %7013 }
 0xfb8   : > { %v4712_v54 = vmul.f32 %v4680_v7, %v9738_v26  ;;  %v4299_v19 = vmul.f32 %v9243_v42, %v4267_v0  ;;  %v4301_v49 = vmul.f32 %v9248_v3, %v4269_v63  ;;  %v4266_v33 = vadd.f32 -0.28449672, %v4234_v5  ;;  %v9742_v63 = vld [vmem:[#allocation48_spill] sm:$0xff] }
 0xfb9   : > { %v4236_v55 = vmul.f32 %v9221_v32, %v4204_v2  ;;  %v4239_v4 = vmul.f32 %v9286_v51, %v4207_v25  ;;  %v4177_v38 = vmul.f32 %v9297_v56, %v4145_v8  ;;  %v4142_v16 = vadd.f32 -1.4531521, %v4110_v9  ;;  %v9361_v17 = vpop.eup %7015 }
 0xfba   : > { %4988 = vmatmul.mubr.f32.gmra.mrb[74].mxu0 %v4712_v54  ;;  %v4331_v30 = vadd.f32 0.2548296, %v4299_v19  ;;  %v4333_v14 = vadd.f32 0.2548296, %v4301_v49  ;;  %v4298_v62 = vmul.f32 %v9204_v57, %v4266_v33  ;;  %v4112_v28 = vmul.f32 1.0614054, %v9342_v27 }
 0xfbb   : > { %vm4587_vm12 = vcmp.ge.f32.partialorder %v9128_v6, 0.0  ;;  %vm4589_vm13 = vcmp.ge.f32.partialorder %v9739_v24, 0.0  ;;  %v4268_v20 = vadd.f32 -0.28449672, %v4236_v55  ;;  %v4271_v48 = vadd.f32 -0.28449672, %v4239_v4  ;;  %v7018_v39 = vpop.eup %7017 }
 0xfbc   : > { %v4209_v43 = vadd.f32 1.4214138, %v4177_v38  ;;  %v4174_v12 = vmul.f32 %v9265_v13, %v4142_v16  ;;  %v4363_v11 = vmul.f32 %v9243_v42, %v4331_v30  ;;  %v4365_v22 = vmul.f32 %v9248_v3, %v4333_v14  ;;  %v9743_v30 = vld [vmem:[#allocation44_spill] sm:$0xff]  ;;  %v9744_v14 = vld [vmem:[#allocation46_spill] sm:$0xff] }
 0xfbd   : > { %v4330_v35 = vadd.f32 0.2548296, %v4298_v62  ;;  %v4144_v41 = vadd.f32 -1.4531521, %v4112_v28  ;;  %vm4586_vm14 = vcmp.ge.f32.partialorder %v9740_v52, 0.0  ;;  %v4300_v45 = vmul.f32 %v9221_v32, %v4268_v20  ;;  %v7020_v18 = vpop.eup %7019 }
 0xfbe   : > { %v4303_v34 = vmul.f32 %v9286_v51, %v4271_v48  ;;  %v4241_v59 = vmul.f32 %v9297_v56, %v4209_v43  ;;  %v4206_v23 = vadd.f32 1.4214138, %v4174_v12  ;;  %v4523_v44 = vmul.f32 %v9245_v1, %v4363_v11  ;;  %v9745_v11 = vld [vmem:[#allocation30_spill] sm:$0xff] }
 0xfbf   : > { %v4525_v15 = vmul.f32 %v9258_v40, %v4365_v22  ;;  %v4362_v42 = vmul.f32 %v9204_v57, %v4330_v35  ;;  %v4176_v3 = vmul.f32 %v9342_v27, %v4144_v41  ;;  %v4332_v61 = vadd.f32 0.2548296, %v4300_v45  ;;  %v9746_v35 = vld [vmem:[#allocation31_spill] sm:$0xff] }
 0xfc0   : > { %v4335_v46 = vadd.f32 0.2548296, %v4303_v34  ;;  %v4273_v58 = vadd.f32 -0.28449672, %v4241_v59  ;;  %v4238_v53 = vmul.f32 %v9265_v13, %v4206_v23  ;;  %vm4588_vm15 = vcmp.ge.f32.partialorder %v9741_v50, 0.0  ;;  %v9748_v23 = vld [vmem:[#allocation45_spill] sm:$0xff] }
 0xfc1   : > { %v4555_v60 = vsub.f32 1.0, %v4523_v44  ;;  %v4557_v21 = vsub.f32 1.0, %v4525_v15  ;;  %v4522_v37 = vmul.f32 %v9226_v29, %v4362_v42  ;;  %v4208_v10 = vadd.f32 1.4214138, %v4176_v3 }
 0xfc2   : > { %v4364_v1 = vmul.f32 %v9221_v32, %v4332_v61  ;;  %v4367_v40 = vmul.f32 %v9286_v51, %v4335_v46  ;;  %v4305_v57 = vmul.f32 %v9297_v56, %v4273_v58  ;;  %v4270_v47 = vadd.f32 -0.28449672, %v4238_v53  ;;  %v9749_v46 = vld [vmem:[#allocation47_spill] sm:$0xff] }
 0xfc3   : > { %v4619_v36 = vsub.f32 0.0, %v4555_v60  ;;  %v4621_v9 = vsub.f32 0.0, %v4557_v21  ;;  %v4554_v7 = vsub.f32 1.0, %v4522_v37  ;;  %v4240_v0 = vmul.f32 %v9342_v27, %v4208_v10 }
 0xfc4   : > { %v4524_v5 = vmul.f32 %v9742_v63, %v4364_v1  ;;  %v4527_v2 = vmul.f32 %v7018_v39, %v4367_v40  ;;  %v4337_v25 = vadd.f32 0.2548296, %v4305_v57  ;;  %v4302_v29 = vmul.f32 %v9265_v13, %v4270_v47 }
 0xfc5   : > { %v4651_v8 = vsel %vm4587_vm12, %v4555_v60, %v4619_v36  ;;  %v4653_v32 = vsel %vm4589_vm13, %v4557_v21, %v4621_v9  ;;  %v4618_v51 = vsub.f32 0.0, %v4554_v7  ;;  %v4272_v26 = vadd.f32 -0.28449672, %v4240_v0  ;;  %v9750_v21 = vld [vmem:[#allocation39_spill] sm:$0xff]  ;;  %v9753_v9 = vld [vmem:[#allocation53_spill] sm:$0xff]  ;;  %v9754_v0 = vld [vmem:[#allocation42_spill] sm:$0xff] }
 0xfc6   : > { %v4683_v54 = vadd.f32 1.0, %v4651_v8  ;;  %v4685_v19 = vadd.f32 1.0, %v4653_v32  ;;  %v4556_v49 = vsub.f32 1.0, %v4524_v5  ;;  %v4559_v33 = vsub.f32 1.0, %v4527_v2  ;;  %v9416_v8 = vld [vmem:[%s696_s25] ss:$0 sm:$0xff] }
 0xfc7   : > { %v4650_v55 = vsel %vm4586_vm14, %v4554_v7, %v4618_v51  ;;  %v4369_v4 = vmul.f32 %v9297_v56, %v4337_v25  ;;  %v4334_v38 = vadd.f32 0.2548296, %v4302_v29  ;;  %v4304_v16 = vmul.f32 %v9342_v27, %v4272_v26  ;;  %v9747_v56 = vld [vmem:[#allocation40_spill] sm:$0xff]  ;;  %s5145_s25 = sadd.s32 1, %s7410_s1 }
 0xfc8   : > { %v4715_v6 = vmul.f32 %v4683_v54, %v9743_v30  ;;  %v4717_v62 = vmul.f32 %v4685_v19, %v9744_v14  ;;  %v4682_v28 = vadd.f32 1.0, %v4650_v55  ;;  %v4620_v24 = vsub.f32 0.0, %v4556_v49  ;;  %s5146_s22 = sld [smem:[#allocation3 + %s5145_s25]] }
 0xfc9   : > { %v4623_v20 = vsub.f32 0.0, %v4559_v33  ;;  %v4529_v48 = vmul.f32 %v7020_v18, %v4369_v4  ;;  %v4366_v43 = vmul.f32 %v9265_v13, %v4334_v38  ;;  %v4336_v12 = vadd.f32 0.2548296, %v4304_v16 }
 0xfca   : > { %v3884_v22 = vmul.f32 0.5, %v9745_v11  ;;  %vm4591_vm0 = vcmp.ge.f32.partialorder %v9746_v35, 0.0  ;;  %4887 = vmatprep.mubr.f32.mxu1 %v4715_v6  ;;  %4992 = vmatprep.mubr.f32.mxu0 %v4717_v62  ;;  %v4714_v41 = vmul.f32 %v4682_v28, %v9747_v56  ;;  %v4652_v39 = vsel %vm4588_vm15, %v4556_v49, %v4620_v24  ;;  %v9756_v24 = vld [vmem:[#allocation20_spill] sm:$0xff] }
 0xfcb   : > { %v4684_v52 = vadd.f32 1.0, %v4652_v39  ;;  %v4655_v45 = vsel %vm4591_vm0, %v4559_v33, %v4623_v20  ;;  %v4561_v34 = vsub.f32 1.0, %v4529_v48  ;;  %v4526_v59 = vmul.f32 %v9351_v31, %v4366_v43  ;;  %v9751_v31 = vld [vmem:[#allocation33_spill] sm:$0xff]  ;;  %v9755_v33 = vld [vmem:[#allocation19_spill] sm:$0xff] }
 0xfcc   : > { %v3887_v44 = vmul.f32 0.5, %v9748_v23  ;;  %4888 = vmatmul.mubr.f32.gmra.mrb[76].mxu1 %v4714_v41  ;;  %v4687_v13 = vadd.f32 1.0, %v4655_v45  ;;  %v4368_v15 = vmul.f32 %v9342_v27, %v4336_v12  ;;  %vm4593_vm1 = vcmp.ge.f32.partialorder %v9749_v46, 0.0  ;;  %v9752_v27 = vld [vmem:[#allocation29_spill] sm:$0xff] }
 0xfcd   : > { %v4716_v42 = vmul.f32 %v4684_v52, %v3884_v22  ;;  %v4625_v3 = vsub.f32 0.0, %v4561_v34  ;;  %v4558_v61 = vsub.f32 1.0, %v4526_v59  ;;  %vm4590_vm2 = vcmp.ge.f32.partialorder %v9750_v21, 0.0  ;;  %v9757_v39 = vld [vmem:[#allocation21_spill] sm:$0xff] }
 0xfce   : > { %v4719_v58 = vmul.f32 %v4687_v13, %v3887_v44  ;;  %v4528_v53 = vmul.f32 %v9361_v17, %v4368_v15  ;;  %v3889_v37 = vmul.f32 0.5, %v9751_v31  ;;  %v3886_v40 = vmul.f32 0.5, %v9752_v27 }
 0xfcf   : > { %4993 = vmatmul.mubr.f32.gmra.mrb[76].mxu0 %v4716_v42  ;;  %v4657_v50 = vsel %vm4593_vm1, %v4561_v34, %v4625_v3  ;;  %v4622_v60 = vsub.f32 0.0, %v4558_v61  ;;  %vm4592_vm3 = vcmp.ge.f32.partialorder %v9753_v9, 0.0  ;;  %v3888_v63 = vmul.f32 0.5, %v9754_v0  ;;  %v9758_v3 = vld [vmem:[#allocation22_spill] sm:$0xff] }
 0xfd0   : > { %4892 = vmatprep.mubr.f32.mxu1 %v4719_v58  ;;  %v4689_v10 = vadd.f32 1.0, %v4657_v50  ;;  %v4560_v18 = vsub.f32 1.0, %v4528_v53 }
 0xfd1   : > { %v4654_v1 = vsel %vm4590_vm2, %v4558_v61, %v4622_v60 }
 0xfd2   : > { %v4721_v57 = vmul.f32 %v4689_v10, %v3889_v37  ;;  %v4686_v47 = vadd.f32 1.0, %v4654_v1  ;;  %v4624_v36 = vsub.f32 0.0, %v4560_v18 }
 0xfd4   : > { %4997 = vmatprep.mubr.f32.mxu0 %v4721_v57  ;;  %v4718_v17 = vmul.f32 %v4686_v47, %v3886_v40  ;;  %v4656_v7 = vsel %vm4592_vm3, %v4560_v18, %v4624_v36  ;;  %v9759_v18 = vld [vmem:[#allocation23_spill] sm:$0xff] }
 0xfd5   : > { %v4688_v5 = vadd.f32 1.0, %v4656_v7  ;;  %v9760_v7 = vld [vmem:[#allocation24_spill] sm:$0xff] }
 0xfd6   : > { %4893 = vmatmul.mubr.f32.gmra.mrb[78].mxu1 %v4718_v17 }
 0xfd7   : > { %v4720_v2 = vmul.f32 %v4688_v5, %v3888_v63 }
 0xfd9   : > { %4998 = vmatmul.mubr.f32.gmra.mrb[78].mxu0 %v4720_v2 }
0x1014   : > { %v5714_v25 = vpop.f32.mrb[64].mxu1  ;;  %v5770_v29 = vpop.f32.mrb[64].mxu0 }
0x1015   : > { %v5715_v32 = vpop.f32.mrb[65].mxu1  ;;  %v5771_v51 = vpop.f32.mrb[65].mxu0 }
0x1016   : > { %v5716_v26 = vadd.f32 %v5715_v32, %v5714_v25  ;;  %v5772_v54 = vadd.f32 %v5771_v51, %v5770_v29 }
0x1018   : > { %v4860_v19 = vadd.f32 %v5716_v26, %v9416_v8 }
0x101a   : > { %v4965_v49 = vadd.f32 %v5772_v54, %v4860_v19  ;;  %v9761_v54 = vld [vmem:[#allocation26_spill] sm:$0xff] }
0x101c   : > { %v9420_v55 = vadd.f32 %v4965_v49, %v9755_v33 }
0x101e   : > { %5013 = vadd.xlane.f32.xlu0 %v9420_v55 }
0x1027   : > { %v5717_v4 = vpop.f32.mrb[66].mxu1 }
0x1028   : > { %v5718_v38 = vpop.f32.mrb[67].mxu1 }
0x1029   : > { %v5719_v16 = vadd.f32 %v5718_v38, %v5717_v4 }
0x102a   : > { %v5773_v30 = vpop.f32.mrb[66].mxu0 }
0x102b   : > { %v4865_v6 = vadd.f32 %v5719_v16, %v9416_v8  ;;  %v5774_v14 = vpop.f32.mrb[67].mxu0 }
0x102c   : > { %v5775_v62 = vadd.f32 %v5774_v14, %v5773_v30 }
0x102e   : > { %v4970_v28 = vadd.f32 %v5775_v62, %v4865_v6 }
0x1030   : > { %v9425_v20 = vadd.f32 %v4970_v28, %v9756_v24  ;;  %v9762_v24 = vld [vmem:[#allocation25_spill] sm:$0xff] }
0x1032   : > { %5015 = vadd.xlane.f32.xlu1 %v9425_v20 }
0x1042   : > { %v5720_v48 = vpop.f32.mrb[68].mxu1 }
0x1043   : > { %v5721_v43 = vpop.f32.mrb[69].mxu1 }
0x1044   : > { %v5722_v12 = vadd.f32 %v5721_v43, %v5720_v48 }
0x1045   : > { %v5776_v11 = vpop.f32.mrb[68].mxu0 }
0x1046   : > { %v4870_v22 = vadd.f32 %v5722_v12, %v9416_v8  ;;  %v5777_v35 = vpop.f32.mrb[69].mxu0 }
0x1047   : > { %v5778_v56 = vadd.f32 %v5777_v35, %v5776_v11 }
0x1049   : > { %v4975_v41 = vadd.f32 %v5778_v56, %v4870_v22 }
0x104b   : > { %v9430_v52 = vadd.f32 %v4975_v41, %v9757_v39 }
0x104d   : > { %5017 = vadd.xlane.f32.xlu0 %v9430_v52 }
0x105e   : > { %v5723_v45 = vpop.f32.mrb[70].mxu1 }
0x105f   : > { %v5724_v34 = vpop.f32.mrb[71].mxu1 }
0x1060   : > { %v5725_v59 = vadd.f32 %v5724_v34, %v5723_v45 }
0x1062   : > { %v5779_v23 = vpop.f32.mrb[70].mxu0  ;;  %v4875_v44 = vadd.f32 %v5725_v59, %v9416_v8 }
0x1063   : > { %v5780_v13 = vpop.f32.mrb[71].mxu0 }
0x1064   : > { %v5781_v15 = vadd.f32 %v5780_v13, %v5779_v23 }
0x1066   : > { %v4980_v42 = vadd.f32 %v5781_v15, %v4875_v44 }
0x1068   : > { %v5006_v61 = vadd.f32 %v4980_v42, %v9758_v3 }
0x106a   : > { %5019 = vadd.xlane.f32.xlu1 %v5006_v61 }
0x107f   : > { %v5726_v46 = vpop.f32.mrb[72].mxu1 }
0x1080   : > { %v5727_v58 = vpop.f32.mrb[73].mxu1 }
0x1081   : > { %v5782_v53 = vpop.f32.mrb[72].mxu0  ;;  %v5728_v50 = vadd.f32 %v5727_v58, %v5726_v46 }
0x1082   : > { %v5783_v60 = vpop.f32.mrb[73].mxu0 }
0x1083   : > { %v4880_v21 = vadd.f32 %v5728_v50, %v9416_v8  ;;  %v5784_v31 = vadd.f32 %v5783_v60, %v5782_v53 }
0x1085   : > { %v4985_v37 = vadd.f32 %v5784_v31, %v4880_v21 }
0x1087   : > { %v5729_v10 = vpop.f32.mrb[74].mxu1  ;;  %v5007_v1 = vadd.f32 %v4985_v37, %v9759_v18 }
0x1088   : > { %v5730_v27 = vpop.f32.mrb[75].mxu1 }
0x1089   : > { %v5731_v40 = vadd.f32 %v5730_v27, %v5729_v10  ;;  %5021 = vadd.xlane.f32.xlu0 %v5007_v1 }
0x108b   : > { %v4885_v47 = vadd.f32 %v5731_v40, %v9416_v8  ;;  %v9476_v40 = vld [vmem:[%s699_s24] ss:$0 sm:$0xff]  ;;  %s5178_s24 = sshll.u32 %s7236_s13, 4  ;;  %s5179_s24 = int_to_ptr.vmem [resolvable:$true] %s5178_s24 }
0x108c   : > { %p7157_p2 = scmp.lt.s32.totalorder %s5179_s24, %s5179_s24 }
0x108d   : > { %v5785_v57 = vpop.f32.mrb[74].mxu0 }
0x108e   : > { %v5786_v36 = vpop.f32.mrb[75].mxu0 }
0x108f   : > { %v5787_v9 = vadd.f32 %v5786_v36, %v5785_v57 }
0x1091   : > { %v4990_v17 = vadd.f32 %v5787_v9, %v4885_v47  ;;  %v9483_v47 = vld [vmem:[%s702_s20] ss:$0 sm:$0xff]  ;;  %v9486_v9 = vstv %s5146_s22  ;;  %s7150_s20 = scalar_lea.vmem %s5179_s24, 1024 }
0x1092   : > { %p7151_p8 = scmp.ne.s32.totalorder %s5179_s24, %s7150_s20  ;;  %p7158_p3 = scmp.lt.s32.totalorder %s7150_s20, %s7150_s20 }
0x1093   : > { %v5008_v0 = vadd.f32 %v4990_v17, %v9760_v7 }
0x1094   : > { %p7152_p1 = pnand %p7151_p8, %p6523_p6  ;;  %p7159_p9 = por %p7158_p3, %p7157_p2 }
0x1095   : > { %5023 = vadd.xlane.f32.xlu1 %v5008_v0 }
0x1096   : > { %p7153_p11 = pneg %p7152_p1 }
0x1098   : > { %p7160_p13 = pnand %p7159_p9, %p7153_p11 }
0x109f   : > { %v5732_v63 = vpop.f32.mrb[76].mxu1 }
0x10a0   : > { %v5733_v5 = vpop.f32.mrb[77].mxu1 }
0x10a1   : > { %v5734_v2 = vadd.f32 %v5733_v5, %v5732_v63  ;;  %v5137_v63 = vld [vmem:[#allocation11] sm:$0xff] }
0x10a2   : > { %v5788_v25 = vpop.f32.mrb[76].mxu0 }
0x10a3   : > { %v4890_v29 = vadd.f32 %v5734_v2, %v9416_v8  ;;  %v5789_v32 = vpop.f32.mrb[77].mxu0 }
0x10a4   : > { %v5790_v51 = vadd.f32 %v5789_v32, %v5788_v25 }
0x10a6   : > { %v4995_v26 = vadd.f32 %v5790_v51, %v4890_v29 }
0x10a8   : > { %v5009_v19 = vadd.f32 %v4995_v26, %v9761_v54  ;;  %v5138_v54 = vld [vmem:[#allocation11 + $0x8] sm:$0xff] }
0x10a9   : > { %v5735_v49 = vpop.f32.mrb[78].mxu1 }
0x10aa   : > { %v5736_v33 = vpop.f32.mrb[79].mxu1  ;;  %5025 = vadd.xlane.f32.xlu0 %v5009_v19 }
0x10ab   : > { %v5737_v4 = vadd.f32 %v5736_v33, %v5735_v49  ;;  %v5014_v62 = vpop.xlane.xlu0 %5013 }
0x10ac   : > { %v5791_v38 = vpop.f32.mrb[78].mxu0  ;;  %v5029_v28 = vmul.f32 0.0078125, %v5014_v62  ;;  %v5139_v62 = vld [vmem:[#allocation11 + $0x10] sm:$0xff] }
0x10ad   : > { %v4895_v16 = vadd.f32 %v5737_v4, %v9416_v8  ;;  %v5792_v30 = vpop.f32.mrb[79].mxu0 }
0x10ae   : > { %v5793_v6 = vadd.f32 %v5792_v30, %v5791_v38  ;;  %v5037_v43 = vsub.f32 %v9420_v55, %v5029_v28 }
0x10b0   : > { %v5000_v14 = vadd.f32 %v5793_v6, %v4895_v16  ;;  %v5045_v12 = vmul.f32 %v5037_v43, %v5037_v43 }
0x10b2   : > { %v5010_v48 = vadd.f32 %v5000_v14, %v9762_v24  ;;  %5053 = vadd.xlane.f32.xlu0 %v5045_v12 }
0x10b4   : > { %5027 = vadd.xlane.f32.xlu1 %v5010_v48 }
0x10bf   : > { %v5016_v11 = vpop.xlane.xlu1 %5015 }
0x10c0   : > { %v5030_v22 = vmul.f32 0.0078125, %v5016_v11 }
0x10c2   : > { %v5038_v35 = vsub.f32 %v9425_v20, %v5030_v22 }
0x10c4   : > { %v5046_v56 = vmul.f32 %v5038_v35, %v5038_v35 }
0x10c6   : > { %5055 = vadd.xlane.f32.xlu1 %v5046_v56 }
0x10da   : > { %v5018_v41 = vpop.xlane.xlu0 %5017 }
0x10db   : > { %v5031_v8 = vmul.f32 0.0078125, %v5018_v41  ;;  %v5140_v41 = vld [vmem:[#allocation11 + $0x18] sm:$0xff] }
0x10dd   : > { %v9446_v39 = vsub.f32 %v9430_v52, %v5031_v8 }
0x10df   : > { %v5047_v45 = vmul.f32 %v9446_v39, %v9446_v39 }
0x10e1   : > { %5057 = vadd.xlane.f32.xlu0 %v5047_v45 }
0x10f7   : > { %v5020_v34 = vpop.xlane.xlu1 %5019 }
0x10f8   : > { %v5032_v55 = vmul.f32 0.0078125, %v5020_v34 }
0x10fa   : > { %v9450_v59 = vsub.f32 %v5006_v61, %v5032_v55 }
0x10fc   : > { %v5048_v23 = vmul.f32 %v9450_v59, %v9450_v59 }
0x10fe   : > { %5059 = vadd.xlane.f32.xlu1 %v5048_v23 }
0x1116   : > { %v5022_v20 = vpop.xlane.xlu0 %5021 }
0x1117   : > { %v5033_v44 = vmul.f32 0.0078125, %v5022_v20 }
0x1119   : > { %v9454_v13 = vsub.f32 %v5007_v1, %v5033_v44 }
0x111b   : > { %v5049_v52 = vmul.f32 %v9454_v13, %v9454_v13 }
0x111d   : > { %5061 = vadd.xlane.f32.xlu0 %v5049_v52 }
0x1122   : > { %v5024_v15 = vpop.xlane.xlu1 %5023 }
0x1123   : > { %v5034_v42 = vmul.f32 0.0078125, %v5024_v15 }
0x1125   : > { %v9458_v3 = vsub.f32 %v5008_v0, %v5034_v42 }
0x1127   : > { %v5050_v61 = vmul.f32 %v9458_v3, %v9458_v3 }
0x1129   : > { %5063 = vadd.xlane.f32.xlu1 %v5050_v61  ;;  %v5141_v61 = vld [vmem:[#allocation11 + $0x20] sm:$0xff] }
0x1137   : > { %v5026_v46 = vpop.xlane.xlu0 %5025 }
0x1138   : > { %v5035_v58 = vmul.f32 0.0078125, %v5026_v46 }
0x113a   : > { %v9462_v53 = vsub.f32 %v5009_v19, %v5035_v58 }
0x113c   : > { %v5051_v50 = vmul.f32 %v9462_v53, %v9462_v53 }
0x113e   : > { %5065 = vadd.xlane.f32.xlu0 %v5051_v50 }
0x113f   : > { %v5054_v37 = vpop.xlane.xlu0 %5053 }
0x1140   : > { %v5069_v10 = vmul.f32 0.0078125, %v5054_v37 }
0x1141   : > { %v5028_v60 = vpop.xlane.xlu1 %5027 }
0x1142   : > { %v5036_v21 = vmul.f32 0.0078125, %v5028_v60  ;;  %v5077_v1 = vadd.f32 1e-05, %v5069_v10 }
0x1144   : > { %v9466_v31 = vsub.f32 %v5010_v48, %v5036_v21  ;;  %7021 = vrsqrt.f32 %v5077_v1 }
0x1146   : > { %v5052_v18 = vmul.f32 %v9466_v31, %v9466_v31 }
0x1148   : > { %5067 = vadd.xlane.f32.xlu1 %v5052_v18 }
0x114e   : > { %v7022_v27 = vpop.eup %7021 }
0x114f   : > { %v5093_v57 = vmul.f32 %v7022_v27, %v5037_v43 }
0x1151   : > { %v5107_v36 = vmul.f32 %v9476_v40, %v5093_v57 }
0x1153   : > { %v5056_v17 = vpop.xlane.xlu1 %5055  ;;  %v5121_v7 = vadd.f32 %v9483_v47, %v5107_v36 }
0x1154   : > { %v5070_v0 = vmul.f32 0.0078125, %v5056_v17 }
0x1155   : > { %5129 = vst [vmem:[#allocation2] sm:$0xff] %v5121_v7  ;;  %v5148_v5 = vmul.f32 %v9486_v9, %v5121_v7 }
0x1156   : > { %v5078_v2 = vadd.f32 1e-05, %v5070_v0 }
0x1157   : > { %v5156_v25 = vadd.f32 %v5148_v5, %v5137_v63 }
0x1158   : > { %7023 = vrsqrt.f32 %v5078_v2  ;;  %v5143_v2 = vld [vmem:[#allocation11 + $0x30] sm:$0xff] }
0x1159   : > { %5164 = vst [vmem:[#allocation11] sm:$0xff] %v5156_v25 }
0x1162   : > { %v7024_v29 = vpop.eup %7023 }
0x1163   : > { %v5094_v32 = vmul.f32 %v7024_v29, %v5038_v35 }
0x1165   : > { %v5108_v51 = vmul.f32 %v9476_v40, %v5094_v32 }
0x1167   : > { %v5122_v26 = vadd.f32 %v9483_v47, %v5108_v51 }
0x1169   : > { %5130 = vst [vmem:[#allocation2 + $0x8] sm:$0xff] %v5122_v26  ;;  %v5149_v19 = vmul.f32 %v9486_v9, %v5122_v26 }
0x116b   : > { %v5157_v49 = vadd.f32 %v5149_v19, %v5138_v54 }
0x116d   : > { %5165 = vst [vmem:[#allocation11 + $0x8] sm:$0xff] %v5157_v49 }
0x116e   : > { %v5058_v33 = vpop.xlane.xlu0 %5057 }
0x116f   : > { %v5071_v4 = vmul.f32 0.0078125, %v5058_v33 }
0x1171   : > { %v5079_v38 = vadd.f32 1e-05, %v5071_v4 }
0x1173   : > { %7025 = vrsqrt.f32 %v5079_v38 }
0x117d   : > { %v7026_v16 = vpop.eup %7025 }
0x117e   : > { %v5095_v30 = vmul.f32 %v7026_v16, %v9446_v39 }
0x1180   : > { %v5109_v6 = vmul.f32 %v9476_v40, %v5095_v30 }
0x1182   : > { %v5123_v14 = vadd.f32 %v9483_v47, %v5109_v6 }
0x1184   : > { %5131 = vst [vmem:[#allocation2 + $0x10] sm:$0xff] %v5123_v14  ;;  %v5150_v28 = vmul.f32 %v9486_v9, %v5123_v14 }
0x1186   : > { %v5158_v24 = vadd.f32 %v5150_v28, %v5139_v62 }
0x1188   : > { %5166 = vst [vmem:[#allocation11 + $0x10] sm:$0xff] %v5158_v24 }
0x118b   : > { %v5060_v48 = vpop.xlane.xlu1 %5059 }
0x118c   : > { %v5072_v43 = vmul.f32 0.0078125, %v5060_v48 }
0x118e   : > { %v5080_v12 = vadd.f32 1e-05, %v5072_v43 }
0x1190   : > { %7027 = vrsqrt.f32 %v5080_v12 }
0x119a   : > { %v7028_v11 = vpop.eup %7027 }
0x119b   : > { %v5096_v22 = vmul.f32 %v7028_v11, %v9450_v59 }
0x119d   : > { %v5110_v35 = vmul.f32 %v9476_v40, %v5096_v22 }
0x119f   : > { %v5124_v56 = vadd.f32 %v9483_v47, %v5110_v35 }
0x11a1   : > { %5132 = vst [vmem:[#allocation2 + $0x18] sm:$0xff] %v5124_v56  ;;  %v5151_v8 = vmul.f32 %v9486_v9, %v5124_v56 }
0x11a3   : > { %v5159_v39 = vadd.f32 %v5151_v8, %v5140_v41 }
0x11a5   : > { %5167 = vst [vmem:[#allocation11 + $0x18] sm:$0xff] %v5159_v39 }
0x11aa   : > { %v5062_v45 = vpop.xlane.xlu0 %5061 }
0x11ab   : > { %v5073_v34 = vmul.f32 0.0078125, %v5062_v45 }
0x11ad   : > { %v5081_v55 = vadd.f32 1e-05, %v5073_v34 }
0x11af   : > { %7029 = vrsqrt.f32 %v5081_v55 }
0x11b6   : > { %v5064_v23 = vpop.xlane.xlu1 %5063 }
0x11b7   : > { %v5074_v20 = vmul.f32 0.0078125, %v5064_v23 }
0x11b9   : > { %v7030_v44 = vpop.eup %7029  ;;  %v5082_v52 = vadd.f32 1e-05, %v5074_v20 }
0x11ba   : > { %v5097_v59 = vmul.f32 %v7030_v44, %v9454_v13  ;;  %v5142_v13 = vld [vmem:[#allocation11 + $0x28] sm:$0xff] }
0x11bb   : > { %7031 = vrsqrt.f32 %v5082_v52 }
0x11bc   : > { %v5111_v15 = vmul.f32 %v9476_v40, %v5097_v59 }
0x11be   : > { %v5125_v42 = vadd.f32 %v9483_v47, %v5111_v15 }
0x11c0   : > { %5133 = vst [vmem:[#allocation2 + $0x20] sm:$0xff] %v5125_v42  ;;  %v5152_v46 = vmul.f32 %v9486_v9, %v5125_v42 }
0x11c2   : > { %v5160_v58 = vadd.f32 %v5152_v46, %v5141_v61 }
0x11c4   : > { %5168 = vst [vmem:[#allocation11 + $0x20] sm:$0xff] %v5160_v58 }
0x11c5   : > { %v7032_v50 = vpop.eup %7031 }
0x11c6   : > { %v5098_v60 = vmul.f32 %v7032_v50, %v9458_v3 }
0x11c8   : > { %v5112_v21 = vmul.f32 %v9476_v40, %v5098_v60 }
0x11ca   : > { %v5126_v37 = vadd.f32 %v9483_v47, %v5112_v21 }
0x11cb   : > { %v5066_v10 = vpop.xlane.xlu0 %5065 }
0x11cc   : > { %v5075_v18 = vmul.f32 0.0078125, %v5066_v10  ;;  %5134 = vst [vmem:[#allocation2 + $0x28] sm:$0xff] %v5126_v37  ;;  %v5153_v1 = vmul.f32 %v9486_v9, %v5126_v37 }
0x11ce   : > { %v5083_v27 = vadd.f32 1e-05, %v5075_v18  ;;  %v5161_v57 = vadd.f32 %v5153_v1, %v5142_v13 }
0x11d0   : > { %7033 = vrsqrt.f32 %v5083_v27  ;;  %5169 = vst [vmem:[#allocation11 + $0x28] sm:$0xff] %v5161_v57 }
0x11d5   : > { %v5068_v36 = vpop.xlane.xlu1 %5067 }
0x11d6   : > { %v5076_v17 = vmul.f32 0.0078125, %v5068_v36 }
0x11d8   : > { %v5084_v7 = vadd.f32 1e-05, %v5076_v17 }
0x11da   : > { %v7034_v0 = vpop.eup %7033  ;;  %7035 = vrsqrt.f32 %v5084_v7 }
0x11db   : > { %v5099_v3 = vmul.f32 %v7034_v0, %v9462_v53  ;;  %v5144_v53 = vld [vmem:[#allocation11 + $0x38] sm:$0xff] }
0x11dd   : > { %v5113_v63 = vmul.f32 %v9476_v40, %v5099_v3 }
0x11df   : > { %v5127_v5 = vadd.f32 %v9483_v47, %v5113_v63 }
0x11e1   : > { %5135 = vst [vmem:[#allocation2 + $0x30] sm:$0xff] %v5127_v5  ;;  %v5154_v25 = vmul.f32 %v9486_v9, %v5127_v5 }
0x11e3   : > { %v5162_v29 = vadd.f32 %v5154_v25, %v5143_v2 }
0x11e4   : > { %v7036_v32 = vpop.eup %7035 }
0x11e5   : > { %5170 = vst [vmem:[#allocation11 + $0x30] sm:$0xff] %v5162_v29  ;;  %v5100_v51 = vmul.f32 %v7036_v32, %v9466_v31 }
0x11e7   : > { %v5114_v26 = vmul.f32 %v9476_v40, %v5100_v51 }
0x11e9   : > { %v5128_v54 = vadd.f32 %v9483_v47, %v5114_v26 }
0x11eb   : > { %5136 = vst [vmem:[#allocation2 + $0x38] sm:$0xff] %v5128_v54  ;;  %v5155_v19 = vmul.f32 %v9486_v9, %v5128_v54 }
0x11ed   : > { %v5163_v49 = vadd.f32 %v5155_v19, %v5144_v53 }
0x11ef   : > { %5171 = vst [vmem:[#allocation11 + $0x38] sm:$0xff] %v5163_v49 }
0x11f0   : > { %7163 = shalt.err (!%p7160_p13)
}
0x11f1   : > { %s9765_s0 = sld [smem:[#allocation63_spill]] }
0x11f7   : > { %s7164_s2 = scalar_lea.hbm %s9765_s0, 1024 }
0x11f8   : > { %p7165_p7 = scmp.ne.s32.totalorder %s9765_s0, %s7164_s2  ;;  %p7170_p4 = scmp.lt.u32.totalorder %s7164_s2, %s9765_s0 }
0x11fa   : > { %p7166_p10 = pnand %p7165_p7, %p6523_p6 }
0x11fc   : > { %p7167_p0 = pneg %p7166_p10 }
0x11fe   : > { %p7172_p5 = pnand %p7170_p4, %p7167_p0 }
0x1200   : > { %7175 = shalt.err (!%p7172_p5)
}
0x1201   : > { %s7237_s29 = smov 128   ;;  %s7238_s12 = smov 8  }
0x1202   : > { %6503 = dma.vmem_to_hbm [thread:$0]  (%p6523_p6), %s5179_s24, 1024, %s9765_s0, [#allocation5], %s7237_s29, %s7237_s29, %s7238_s12  }
0x1203   : > { %7205 = dma.done.wait (%p6523_p6), [#allocation5], 1024  }
0x1204   : > { %7207 = vsyncadd (%p6523_p6), [#allocation5], 4294966272 }
0x1205 PF: > { %s9766_s16 = sld [smem:[#allocation17_spill]]  ;;  %s9767_s25 = sld [smem:[#allocation16_spill]] }
0x1206   : > { %s9768_s15 = sld [smem:[#allocation18_spill]]  ;;  %s9769_s29 = smov %s7214_s30 }
0x120b   : > { %p29_p12 = scmp.ge.s32.totalorder %s9766_s16, 14   ;;  %s9770_s30 = smov %s9767_s25 }
0x120d   :  { %31 = sbr.rel (!%p29_p12) target bundleno = 18 (0x12), region = 173 }
0x1214   :  { %5194 = vsyncpa [#allocation4], 1 }
0x1215   :  { %5196 = vsyncpa [#allocation4 + $0x1], 1 }
0x1216   :  { %5197 = vsyncpa [#allocation9], 1 }
0x1217   :  { %5199 = vsyncpa [#allocation9 + $0x1], 1 }
0x1218   :  { %5200 = vsyncpa [#allocation5], 1 }
0x1219   :  { %5202 = vsyncpa [#allocation5 + $0x1], 1 }
0x121a   :  { %5203 = vsyncpa [#allocation6], 1 }
0x121b   :  { %5205 = vsyncpa [#allocation6 + $0x1], 1 }

</bundles_post_ra>
